<compile_context>
chip_gen: v7x
topology: tpu7x:2x2x1
jax: 0.10.0
libtpu: 0.0.40
codegen_flags: <defaults>
</compile_context>

<pallas_src>
import functools

import jax
import jax.numpy as jnp
from jax import lax
from jax.experimental import pallas as pl
from jax.experimental.pallas import tpu as pltpu

LN_EPS = 1e-5                       # torch nn.LayerNorm default (Block default norm_layer)
_SQRT_2_OVER_PI = 0.7978845608028654


def _gelu_tanh(x):
    # tanh-form GELU: tanh routes to the EUP instead of a VALU erf polynomial.
    x3 = x * x * x
    return 0.5 * x * (1.0 + jnp.tanh(jnp.float32(_SQRT_2_OVER_PI)
                                     * (x + jnp.float32(0.044715) * x3)))


def _layernorm(x, w_row, b_row):
    # x: (M, C) f32; w_row/b_row: (1, C) f32
    mu = jnp.mean(x, axis=-1, keepdims=True)
    var = jnp.mean((x - mu) ** 2, axis=-1, keepdims=True)
    return (x - mu) * lax.rsqrt(var + LN_EPS) * w_row + b_row


def _block_body(r_ref, x_ref, ln1w_ref, ln1b_ref, qw_ref, kw_ref, vw_ref,
                projw_ref, projb_ref, ln2w_ref, ln2b_ref,
                fc1w_ref, fc1b_ref, fc2w_ref, fc2b_ref,
                ga_ref, x_out_ref, attn_out_ref, acc_ref,
                *, num_heads, dim, tokens, batch_tile):
    H, C, N, BT = num_heads, dim, tokens, batch_tile
    hd = C // H
    scale = jnp.float32(hd ** -0.5)
    f32, bf16 = jnp.float32, jnp.bfloat16

    # ---- norm1 (f32 math on bf16 activations) ----
    x32 = x_ref[...].astype(f32)                                      # (BT*N, C)
    xn_bf = _layernorm(x32, ln1w_ref[...], ln1b_ref[...]).astype(bf16)

    # ---- fused QKV: three full-width GEMMs (bf16 operands, f32 accumulation) ----
    q = jnp.dot(xn_bf, qw_ref[...], preferred_element_type=f32).astype(bf16)
    k = jnp.dot(xn_bf, kw_ref[...], preferred_element_type=f32).astype(bf16)
    v = jnp.dot(xn_bf, vw_ref[...], preferred_element_type=f32).astype(bf16)

    # Residual + proj bias seed the attention-output accumulator; each head's
    # av @ proj_w[h] then accumulates lane-dense into it (no masked scatters).
    acc_ref[...] = x32 + projb_ref[...]

    # blend scalars hoisted out of the head loop
    if ga_ref is not None:
        r = r_ref[0, 0]
        omr = 1.0 - r

    # TODO(synk): for production shapes (H=12, BT>=2) switch this static unroll to
    # lax.fori_loop(..., unroll=True) over heads to bound live ranges.
    for h in range(H):                                   # static unroll (small H here)
        c0 = h * hd
        for bi in range(BT):
            lo = bi * N
            q_bh = q[lo:lo + N, c0:c0 + hd]              # (N, hd) bf16, static slices
            k_bh = k[lo:lo + N, c0:c0 + hd]
            v_bh = v[lo:lo + N, c0:c0 + hd]
            s = lax.dot_general(q_bh, k_bh, (((1,), (1,)), ((), ())),
                                preferred_element_type=f32) * scale   # (N, N) f32
            s = s - jnp.max(s, axis=-1, keepdims=True)
            e = jnp.exp(s)
            den = jnp.sum(e, axis=-1, keepdims=True)
            inv = pl.reciprocal(den, approx=True)        # EUP
            inv = inv * (2.0 - den * inv)                # one Newton step -> ~exact
            a = e * inv
            if ga_ref is not None:                       # blend with global attention
                a = r * a + omr * ga_ref[bi, h, :, :].astype(f32)
            if attn_out_ref is not None:
                attn_out_ref[bi, h, :, :] = a.astype(bf16)
            av = jnp.dot(a.astype(bf16), v_bh, preferred_element_type=f32)   # (N, hd)
            # fused output projection: lane-dense (N, hd) @ (hd, C) accumulation
            acc_ref[lo:lo + N, :] += jnp.dot(av.astype(bf16), projw_ref[h],
                                             preferred_element_type=f32)

    # ---- attention residual is complete in acc; norm2 + MLP + residual ----
    x1 = acc_ref[...]                                                 # (BT*N, C) f32
    xn2_bf = _layernorm(x1, ln2w_ref[...], ln2b_ref[...]).astype(bf16)
    hpre = jnp.dot(xn2_bf, fc1w_ref[...], preferred_element_type=f32) + fc1b_ref[...]
    act = _gelu_tanh(hpre).astype(bf16)
    x2 = x1 + jnp.dot(act, fc2w_ref[...], preferred_element_type=f32) + fc2b_ref[...]
    x_out_ref[...] = x2.astype(bf16)


def _make_kernel(num_heads, dim, tokens, batch_tile, has_global, emit_attn):
    n_in = 15 + (1 if has_global else 0)      # r, x, 13 weights, [global_attn]
    n_out = 1 + (1 if emit_attn else 0)

    def kernel(*refs):
        ins = refs[:n_in]
        outs = refs[n_in:n_in + n_out]
        acc_ref = refs[n_in + n_out]
        ga_ref = ins[15] if has_global else None
        attn_out_ref = outs[1] if emit_attn else None
        _block_body(*ins[:15], ga_ref, outs[0], attn_out_ref, acc_ref,
                    num_heads=num_heads, dim=dim, tokens=tokens,
                    batch_tile=batch_tile)
    return kernel


def prepare_params(params, num_heads):
    """One-time weight conversion (outside the per-call path):
    transpose to (in, out) layout, cast GEMM weights to bf16, split qkv into three
    full-width (C, C) slabs and pre-split proj_w per head to (H, hd, C) so the fused
    proj accumulation is lane-dense.  LN params / biases stay f32."""
    C = params["ln1_w"].shape[0]
    H = num_heads
    hd = C // H
    bf16, f32 = jnp.bfloat16, jnp.float32
    qkv_w = params["qkv_w"].reshape(3, C, C)              # torch (3C, C) = (out, in)
    return {
        "ln1_w": params["ln1_w"].reshape(1, C).astype(f32),
        "ln1_b": params["ln1_b"].reshape(1, C).astype(f32),
        "q_w": qkv_w[0].T.astype(bf16),                   # (C_in, C_out), head-major out
        "k_w": qkv_w[1].T.astype(bf16),
        "v_w": qkv_w[2].T.astype(bf16),
        "proj_w": params["proj_w"].T.reshape(H, hd, C).astype(bf16),
        "proj_b": params["proj_b"].reshape(1, C).astype(f32),
        "ln2_w": params["ln2_w"].reshape(1, C).astype(f32),
        "ln2_b": params["ln2_b"].reshape(1, C).astype(f32),
        "fc1_w": params["fc1_w"].T.astype(bf16),          # (C, hidden)
        "fc1_b": params["fc1_b"].reshape(1, -1).astype(f32),
        "fc2_w": params["fc2_w"].T.astype(bf16),          # (hidden, C)
        "fc2_b": params["fc2_b"].reshape(1, C).astype(f32),
    }


def _default_vmem_limit():
    # ~75% of physical VMEM: v7x (64 MiB) -> 48 MiB, v5e/v6e (128 MiB) -> 96 MiB.
    try:
        info = pltpu.get_tpu_info()
        cap = int(getattr(info, "vmem_capacity_bytes", 64 * 1024 * 1024))
    except Exception:
        cap = 64 * 1024 * 1024                            # safe floor (v7x-sized)
    return int(min(cap * 3 // 4, 100 * 1024 * 1024))


def block_forward(x, wp, r, global_attn=None, num_heads=4, batch_tile=1,
                  return_attn=True, vmem_limit_bytes=None):
    """Pallas-fused Block.forward.  `wp` = prepare_params(...) output.
    Returns (x_out (B,N,C) bf16, attn (B,H,N,N) bf16 or None)."""
    B, N, C = x.shape
    H = num_heads
    assert C % H == 0
    has_global = global_attn is not None
    if has_global and global_attn.ndim == 5:
        # mimic `global_attn[-1]` (stack of per-layer attention maps)
        global_attn = global_attn[-1]

    # Keep the grid at >= 2 steps when B allows it (v7x has 2 TensorCores; a grid
    # of 1 idles one).  Larger batch_tile remains available for larger B on v5e/v6e.
    BT = max(1, min(batch_tile, B if B < 2 else B // 2))
    while B % BT:
        BT -= 1

    bf16, f32 = jnp.bfloat16, jnp.float32
    x2d = x.reshape(B * N, C).astype(bf16)                # lane-dense (tokens, C) slab
    r_arr = jnp.asarray(r, f32).reshape(1, 1)

    # Whole-array operands resident in VMEM for the entire grid (no per-step re-fetch).
    vmem = pl.BlockSpec(memory_space=pltpu.MemorySpace.VMEM)
    smem = pl.BlockSpec(memory_space=pltpu.MemorySpace.SMEM)

    in_specs = [smem,                                              # r (blend scalar)
                pl.BlockSpec((BT * N, C), lambda b: (b, 0))        # x rows
                ] + [vmem] * 13                                    # 13 resident weights
    args = [r_arr, x2d,
            wp["ln1_w"], wp["ln1_b"], wp["q_w"], wp["k_w"], wp["v_w"],
            wp["proj_w"], wp["proj_b"], wp["ln2_w"], wp["ln2_b"],
            wp["fc1_w"], wp["fc1_b"], wp["fc2_w"], wp["fc2_b"]]
    if has_global:
        # TODO(synk): on v5e/v6e consider pipeline_mode=pl.Buffered(3) here if this
        # (largest per-step) DMA shows up as exposed time; skip on v7x (VMEM budget).
        in_specs.append(pl.BlockSpec((BT, H, N, N), lambda b: (b, 0, 0, 0)))
        args.append(global_attn.astype(bf16))

    out_shape = [jax.ShapeDtypeStruct((B * N, C), bf16)]
    out_specs = [pl.BlockSpec((BT * N, C), lambda b: (b, 0))]
    if return_attn:
        out_shape.append(jax.ShapeDtypeStruct((B, H, N, N), bf16))
        out_specs.append(pl.BlockSpec((BT, H, N, N), lambda b: (b, 0, 0, 0)))

    if vmem_limit_bytes is None:
        vmem_limit_bytes = _default_vmem_limit()

    fn = pl.pallas_call(
        _make_kernel(H, C, N, BT, has_global, return_attn),
        grid=(B // BT,),
        in_specs=in_specs,
        out_specs=tuple(out_specs),
        out_shape=tuple(out_shape),
        scratch_shapes=[pltpu.VMEM((BT * N, C), jnp.float32)],   # fused proj accumulator
        compiler_params=pltpu.CompilerParams(
            dimension_semantics=("parallel",),
            vmem_limit_bytes=vmem_limit_bytes,
        ),
    )
    outs = fn(*args)
    if return_attn:
        x_out2d, attn_out = outs
    else:
        x_out2d, attn_out = outs[0], None
    return x_out2d.reshape(B, N, C), attn_out


# ------------------------- pure-JAX reference (f32) ------------------------------
def ref_block(x, params, r, global_attn=None, num_heads=4):
    x = x.astype(jnp.float32)
    B, N, C = x.shape
    H = num_heads
    hd = C // H
    if global_attn is not None and global_attn.ndim == 5:
        global_attn = global_attn[-1]
    if global_attn is not None:
        global_attn = global_attn.astype(jnp.float32)
    hi = jax.lax.Precision.HIGHEST

    def ln(y, w, b):
        mu = y.mean(-1, keepdims=True)
        var = ((y - mu) ** 2).mean(-1, keepdims=True)
        return (y - mu) / jnp.sqrt(var + LN_EPS) * w + b

    xn = ln(x, params["ln1_w"], params["ln1_b"])
    qkv = jnp.einsum("bnc,dc->bnd", xn, params["qkv_w"], precision=hi)
    qkv = qkv.reshape(B, N, 3, H, hd).transpose(2, 0, 3, 1, 4)
    q, k, v = qkv[0], qkv[1], qkv[2]
    attn = jnp.einsum("bhnd,bhmd->bhnm", q, k, precision=hi) * (hd ** -0.5)
    attn = jax.nn.softmax(attn, axis=-1)
    if global_attn is not None:
        attn = r * attn + (1 - r) * global_attn
    xo = jnp.einsum("bhnm,bhmd->bhnd", attn, v, precision=hi)
    xo = xo.transpose(0, 2, 1, 3).reshape(B, N, C)
    xo = jnp.einsum("bnc,dc->bnd", xo, params["proj_w"], precision=hi) + params["proj_b"]
    x1 = x + xo
    xn2 = ln(x1, params["ln2_w"], params["ln2_b"])
    h = jnp.einsum("bnc,dc->bnd", xn2, params["fc1_w"], precision=hi) + params["fc1_b"]
    a = jax.nn.gelu(h, approximate=False)
    x2 = x1 + jnp.einsum("bnh,dh->bnd", a, params["fc2_w"], precision=hi) + params["fc2_b"]
    return x2, attn


if __name__ == "__main__":
    # small but alignment-friendly shapes: N multiple of 128 keeps attention stores
    # lane-dense and the bf16 (BT*N, C) blocks tile-aligned.
    B, N, C, H = 4, 128, 64, 4
    hidden = int(C * 4.0)

    key = jax.random.PRNGKey(0)
    ks = jax.random.split(key, 13)
    params = {
        "ln1_w": 1.0 + 0.1 * jax.random.normal(ks[0], (C,), jnp.float32),
        "ln1_b": 0.1 * jax.random.normal(ks[1], (C,), jnp.float32),
        "qkv_w": 0.05 * jax.random.normal(ks[2], (3 * C, C), jnp.float32),   # torch (out,in)
        "proj_w": 0.05 * jax.random.normal(ks[3], (C, C), jnp.float32),
        "proj_b": 0.05 * jax.random.normal(ks[4], (C,), jnp.float32),
        "ln2_w": 1.0 + 0.1 * jax.random.normal(ks[5], (C,), jnp.float32),
        "ln2_b": 0.1 * jax.random.normal(ks[6], (C,), jnp.float32),
        "fc1_w": 0.05 * jax.random.normal(ks[7], (hidden, C), jnp.float32),
        "fc1_b": 0.05 * jax.random.normal(ks[8], (hidden,), jnp.float32),
        "fc2_w": 0.05 * jax.random.normal(ks[9], (C, hidden), jnp.float32),
        "fc2_b": 0.05 * jax.random.normal(ks[10], (C,), jnp.float32),
    }
    x = jax.random.normal(ks[11], (B, N, C), jnp.float32).astype(jnp.bfloat16)
    ga_logits = jax.random.normal(ks[12], (1, B, H, N, N), jnp.float32)
    global_attn = jax.nn.softmax(ga_logits, axis=-1).astype(jnp.bfloat16)
    r = 0.7

    wp = prepare_params(params, H)   # one-time transpose/split/bf16-cast of weights

    # (1) global_attn blending path, attention maps emitted, one batch / grid step
    x_out, attn_out = block_forward(x, wp, r, global_attn, num_heads=H,
                                    batch_tile=1, return_attn=True)
    jax.block_until_ready((x_out, attn_out))
    x_ref, attn_ref = ref_block(x, params, r, global_attn, num_heads=H)

    # (2) no blending, attention maps skipped, two batches / grid step (grid still 2)
    x_out2, _ = block_forward(x, wp, r, None, num_heads=H,
                              batch_tile=2, return_attn=False)
    jax.block_until_ready(x_out2)
    x_ref2, _ = ref_block(x, params, r, None, num_heads=H)

    def close(a, b, atol, rtol):
        return jnp.allclose(a.astype(jnp.float32), b.astype(jnp.float32),
                            atol=atol, rtol=rtol)

    # bf16 operands / bf16 outputs => mixed-precision tolerances vs. the f32 reference
    ok = (close(x_out, x_ref, 3e-2, 3e-2)
          and close(attn_out, attn_ref, 3e-3, 3e-2)
          and close(x_out2, x_ref2, 3e-2, 3e-2))
    assert ok, "Pallas kernel output does not match reference"
    print("KERNEL_OK")
</pallas_src>

<mosaic_0001>
module attributes {stable_mosaic.version = 11 : i64} {
  func.func @kernel(%arg0: i32, %arg1: memref<1x1xf32, #tpu.memory_space<smem>>, %arg2: memref<128x64xbf16, #tpu.memory_space<vmem>>, %arg3: memref<1x64xf32, #tpu.memory_space<vmem>>, %arg4: memref<1x64xf32, #tpu.memory_space<vmem>>, %arg5: memref<64x64xbf16, #tpu.memory_space<vmem>>, %arg6: memref<64x64xbf16, #tpu.memory_space<vmem>>, %arg7: memref<64x64xbf16, #tpu.memory_space<vmem>>, %arg8: memref<4x16x64xbf16, #tpu.memory_space<vmem>>, %arg9: memref<1x64xf32, #tpu.memory_space<vmem>>, %arg10: memref<1x64xf32, #tpu.memory_space<vmem>>, %arg11: memref<1x64xf32, #tpu.memory_space<vmem>>, %arg12: memref<64x256xbf16, #tpu.memory_space<vmem>>, %arg13: memref<1x256xf32, #tpu.memory_space<vmem>>, %arg14: memref<256x64xbf16, #tpu.memory_space<vmem>>, %arg15: memref<1x64xf32, #tpu.memory_space<vmem>>, %arg16: memref<1x4x128x128xbf16, #tpu.memory_space<vmem>>, %arg17: memref<128x64xbf16, #tpu.memory_space<vmem>>, %arg18: memref<1x4x128x128xbf16, #tpu.memory_space<vmem>>, %arg19: memref<128x64xf32, #tpu.memory_space<vmem>>) attributes {dimension_semantics = [#tpu.dimension_semantics<parallel>], iteration_bounds = array<i64: 4>, scalar_prefetch = 0 : i64, scratch_operands = 1 : i64, tpu.core_type = #tpu.core_type<tc>, window_params = [{transform_indices = @transform_0, window_bounds = array<i64: 1, 1>}, {transform_indices = @transform_1, window_bounds = array<i64: 128, 64>}, {pipeline_mode = #tpu.pipeline_mode<synchronous>, transform_indices = @transform_2, window_bounds = array<i64: 1, 64>}, {pipeline_mode = #tpu.pipeline_mode<synchronous>, transform_indices = @transform_3, window_bounds = array<i64: 1, 64>}, {pipeline_mode = #tpu.pipeline_mode<synchronous>, transform_indices = @transform_4, window_bounds = array<i64: 64, 64>}, {pipeline_mode = #tpu.pipeline_mode<synchronous>, transform_indices = @transform_5, window_bounds = array<i64: 64, 64>}, {pipeline_mode = #tpu.pipeline_mode<synchronous>, transform_indices = @transform_6, window_bounds = array<i64: 64, 64>}, {pipeline_mode = #tpu.pipeline_mode<synchronous>, transform_indices = @transform_7, window_bounds = array<i64: 4, 16, 64>}, {pipeline_mode = #tpu.pipeline_mode<synchronous>, transform_indices = @transform_8, window_bounds = array<i64: 1, 64>}, {pipeline_mode = #tpu.pipeline_mode<synchronous>, transform_indices = @transform_9, window_bounds = array<i64: 1, 64>}, {pipeline_mode = #tpu.pipeline_mode<synchronous>, transform_indices = @transform_10, window_bounds = array<i64: 1, 64>}, {pipeline_mode = #tpu.pipeline_mode<synchronous>, transform_indices = @transform_11, window_bounds = array<i64: 64, 256>}, {pipeline_mode = #tpu.pipeline_mode<synchronous>, transform_indices = @transform_12, window_bounds = array<i64: 1, 256>}, {pipeline_mode = #tpu.pipeline_mode<synchronous>, transform_indices = @transform_13, window_bounds = array<i64: 256, 64>}, {pipeline_mode = #tpu.pipeline_mode<synchronous>, transform_indices = @transform_14, window_bounds = array<i64: 1, 64>}, {transform_indices = @transform_15, window_bounds = array<i64: 1, 4, 128, 128>}, {transform_indices = @transform_16, window_bounds = array<i64: 128, 64>}, {transform_indices = @transform_17, window_bounds = array<i64: 1, 4, 128, 128>}]} {
    %c0 = arith.constant 0 : index
    %c0_0 = arith.constant 0 : index
    %0 = vector.load %arg2[%c0, %c0_0] : memref<128x64xbf16, #tpu.memory_space<vmem>>, vector<128x64xbf16>
    %1 = arith.extf %0 : vector<128x64xbf16> to vector<128x64xf32>
    %c0_1 = arith.constant 0 : index
    %c0_2 = arith.constant 0 : index
    %2 = vector.load %arg3[%c0_1, %c0_2] : memref<1x64xf32, #tpu.memory_space<vmem>>, vector<1x64xf32>
    %c0_3 = arith.constant 0 : index
    %c0_4 = arith.constant 0 : index
    %3 = vector.load %arg4[%c0_3, %c0_4] : memref<1x64xf32, #tpu.memory_space<vmem>>, vector<1x64xf32>
    %cst = arith.constant dense<0.000000e+00> : vector<128xf32>
    %4 = vector.multi_reduction <add>, %1, %cst [1] : vector<128x64xf32> to vector<128xf32>
    %5 = vector.shape_cast %4 : vector<128xf32> to vector<128x1xf32>
    %cst_5 = arith.constant 6.400000e+01 : f32
    %6 = vector.broadcast %cst_5 : f32 to vector<128x1xf32>
    %7 = arith.divf %5, %6 : vector<128x1xf32>
    %8 = vector.broadcast %7 : vector<128x1xf32> to vector<128x64xf32>
    %9 = arith.subf %1, %8 : vector<128x64xf32>
    %10 = arith.mulf %9, %9 : vector<128x64xf32>
    %cst_6 = arith.constant dense<0.000000e+00> : vector<128xf32>
    %11 = vector.multi_reduction <add>, %10, %cst_6 [1] : vector<128x64xf32> to vector<128xf32>
    %12 = vector.shape_cast %11 : vector<128xf32> to vector<128x1xf32>
    %cst_7 = arith.constant 6.400000e+01 : f32
    %13 = vector.broadcast %cst_7 : f32 to vector<128x1xf32>
    %14 = arith.divf %12, %13 : vector<128x1xf32>
    %15 = vector.broadcast %7 : vector<128x1xf32> to vector<128x64xf32>
    %16 = arith.subf %1, %15 : vector<128x64xf32>
    %cst_8 = arith.constant 9.99999974E-6 : f32
    %17 = vector.broadcast %cst_8 : f32 to vector<128x1xf32>
    %18 = arith.addf %14, %17 : vector<128x1xf32>
    %19 = math.rsqrt %18 : vector<128x1xf32>
    %20 = vector.broadcast %19 : vector<128x1xf32> to vector<128x64xf32>
    %21 = arith.mulf %16, %20 : vector<128x64xf32>
    %22 = vector.broadcast %2 : vector<1x64xf32> to vector<128x64xf32>
    %23 = arith.mulf %21, %22 : vector<128x64xf32>
    %24 = vector.broadcast %3 : vector<1x64xf32> to vector<128x64xf32>
    %25 = arith.addf %23, %24 : vector<128x64xf32>
    %26 = arith.truncf %25 : vector<128x64xf32> to vector<128x64xbf16>
    %c0_9 = arith.constant 0 : index
    %c0_10 = arith.constant 0 : index
    %27 = vector.load %arg5[%c0_9, %c0_10] : memref<64x64xbf16, #tpu.memory_space<vmem>>, vector<64x64xbf16>
    %cst_11 = arith.constant dense<0.000000e+00> : vector<128x64xf32>
    %28 = tpu.matmul %26, %27, %cst_11 {dimension_numbers = #tpu.dot_dimension_numbers<[1], [0], [0], [1], [0, 0, 1, 1], [], []>} : vector<128x64xbf16>, vector<64x64xbf16>, vector<128x64xf32> -> vector<128x64xf32>
    %29 = arith.truncf %28 : vector<128x64xf32> to vector<128x64xbf16>
    %c0_12 = arith.constant 0 : index
    %c0_13 = arith.constant 0 : index
    %30 = vector.load %arg6[%c0_12, %c0_13] : memref<64x64xbf16, #tpu.memory_space<vmem>>, vector<64x64xbf16>
    %cst_14 = arith.constant dense<0.000000e+00> : vector<128x64xf32>
    %31 = tpu.matmul %26, %30, %cst_14 {dimension_numbers = #tpu.dot_dimension_numbers<[1], [0], [0], [1], [0, 0, 1, 1], [], []>} : vector<128x64xbf16>, vector<64x64xbf16>, vector<128x64xf32> -> vector<128x64xf32>
    %32 = arith.truncf %31 : vector<128x64xf32> to vector<128x64xbf16>
    %c0_15 = arith.constant 0 : index
    %c0_16 = arith.constant 0 : index
    %33 = vector.load %arg7[%c0_15, %c0_16] : memref<64x64xbf16, #tpu.memory_space<vmem>>, vector<64x64xbf16>
    %cst_17 = arith.constant dense<0.000000e+00> : vector<128x64xf32>
    %34 = tpu.matmul %26, %33, %cst_17 {dimension_numbers = #tpu.dot_dimension_numbers<[1], [0], [0], [1], [0, 0, 1, 1], [], []>} : vector<128x64xbf16>, vector<64x64xbf16>, vector<128x64xf32> -> vector<128x64xf32>
    %35 = arith.truncf %34 : vector<128x64xf32> to vector<128x64xbf16>
    %c0_18 = arith.constant 0 : index
    %c0_19 = arith.constant 0 : index
    %36 = vector.load %arg9[%c0_18, %c0_19] : memref<1x64xf32, #tpu.memory_space<vmem>>, vector<1x64xf32>
    %37 = vector.broadcast %36 : vector<1x64xf32> to vector<128x64xf32>
    %38 = arith.addf %1, %37 : vector<128x64xf32>
    %c0_20 = arith.constant 0 : index
    %c0_21 = arith.constant 0 : index
    %39 = vector.load %arg19[%c0_20, %c0_21] : memref<128x64xf32, #tpu.memory_space<vmem>>, vector<128x64xf32>
    tpu.vector_store %arg19[%c0_20, %c0_21], %38 {strides = array<i32>} : memref<128x64xf32, #tpu.memory_space<vmem>>, vector<128x64xf32>,
    %c0_22 = arith.constant 0 : index
    %c0_23 = arith.constant 0 : index
    %40 = memref.load %arg1[%c0_22, %c0_23] : memref<1x1xf32, #tpu.memory_space<smem>>
    %cst_24 = arith.constant 1.000000e+00 : f32
    %41 = arith.subf %cst_24, %40 : f32
    %42 = vector.extract_strided_slice %29 {offsets = [0, 0], sizes = [128, 16], strides = [1, 1]} : vector<128x64xbf16> to vector<128x16xbf16>
    %43 = vector.extract_strided_slice %32 {offsets = [0, 0], sizes = [128, 16], strides = [1, 1]} : vector<128x64xbf16> to vector<128x16xbf16>
    %44 = vector.extract_strided_slice %35 {offsets = [0, 0], sizes = [128, 16], strides = [1, 1]} : vector<128x64xbf16> to vector<128x16xbf16>
    %cst_25 = arith.constant dense<0.000000e+00> : vector<128x128xf32>
    %45 = tpu.matmul %42, %43, %cst_25 {dimension_numbers = #tpu.dot_dimension_numbers<[1], [1], [0], [0], [0, 0, 1, 0], [], []>} : vector<128x16xbf16>, vector<128x16xbf16>, vector<128x128xf32> -> vector<128x128xf32>
    %cst_26 = arith.constant 2.500000e-01 : f32
    %46 = vector.broadcast %cst_26 : f32 to vector<128x128xf32>
    %47 = arith.mulf %45, %46 : vector<128x128xf32>
    %cst_27 = arith.constant dense<0xFF800000> : vector<128xf32>
    %48 = vector.multi_reduction <maximumf>, %47, %cst_27 [1] : vector<128x128xf32> to vector<128xf32>
    %49 = vector.shape_cast %48 : vector<128xf32> to vector<128x1xf32>
    %50 = vector.broadcast %49 : vector<128x1xf32> to vector<128x128xf32>
    %51 = arith.subf %47, %50 : vector<128x128xf32>
    %52 = math.exp %51 : vector<128x128xf32>
    %cst_28 = arith.constant dense<0.000000e+00> : vector<128xf32>
    %53 = vector.multi_reduction <add>, %52, %cst_28 [1] : vector<128x128xf32> to vector<128xf32>
    %54 = vector.shape_cast %53 : vector<128xf32> to vector<128x1xf32>
    %55 = tpu.reciprocal %54 {approx = true} : vector<128x1xf32> -> vector<128x1xf32>
    %56 = arith.mulf %54, %55 : vector<128x1xf32>
    %cst_29 = arith.constant 2.000000e+00 : f32
    %57 = vector.broadcast %cst_29 : f32 to vector<128x1xf32>
    %58 = arith.subf %57, %56 : vector<128x1xf32>
    %59 = arith.mulf %55, %58 : vector<128x1xf32>
    %60 = vector.broadcast %59 : vector<128x1xf32> to vector<128x128xf32>
    %61 = arith.mulf %52, %60 : vector<128x128xf32>
    %62 = vector.broadcast %40 : f32 to vector<128x128xf32>
    %63 = arith.mulf %62, %61 : vector<128x128xf32>
    %c0_30 = arith.constant 0 : index
    %c0_31 = arith.constant 0 : index
    %c0_32 = arith.constant 0 : index
    %c0_33 = arith.constant 0 : index
    %64 = vector.load %arg16[%c0_30, %c0_31, %c0_32, %c0_33] : memref<1x4x128x128xbf16, #tpu.memory_space<vmem>>, vector<1x1x128x128xbf16>
    %65 = vector.shape_cast %64 : vector<1x1x128x128xbf16> to vector<128x128xbf16>
    %66 = arith.extf %65 : vector<128x128xbf16> to vector<128x128xf32>
    %67 = vector.broadcast %41 : f32 to vector<128x128xf32>
    %68 = arith.mulf %67, %66 : vector<128x128xf32>
    %69 = arith.addf %63, %68 : vector<128x128xf32>
    %70 = arith.truncf %69 : vector<128x128xf32> to vector<128x128xbf16>
    %c0_34 = arith.constant 0 : index
    %c0_35 = arith.constant 0 : index
    %c0_36 = arith.constant 0 : index
    %c0_37 = arith.constant 0 : index
    %71 = vector.load %arg18[%c0_34, %c0_35, %c0_36, %c0_37] : memref<1x4x128x128xbf16, #tpu.memory_space<vmem>>, vector<1x1x128x128xbf16>
    %72 = vector.shape_cast %71 : vector<1x1x128x128xbf16> to vector<128x128xbf16>
    %73 = vector.shape_cast %70 : vector<128x128xbf16> to vector<1x1x128x128xbf16>
    tpu.vector_store %arg18[%c0_34, %c0_35, %c0_36, %c0_37], %73 {strides = array<i32>} : memref<1x4x128x128xbf16, #tpu.memory_space<vmem>>, vector<1x1x128x128xbf16>,
    %74 = arith.truncf %69 : vector<128x128xf32> to vector<128x128xbf16>
    %cst_38 = arith.constant dense<0.000000e+00> : vector<128x16xf32>
    %75 = tpu.matmul %74, %44, %cst_38 {dimension_numbers = #tpu.dot_dimension_numbers<[1], [0], [0], [1], [0, 0, 1, 1], [], []>} : vector<128x128xbf16>, vector<128x16xbf16>, vector<128x16xf32> -> vector<128x16xf32>
    %c0_39 = arith.constant 0 : index
    %c0_40 = arith.constant 0 : index
    %76 = vector.load %arg19[%c0_39, %c0_40] : memref<128x64xf32, #tpu.memory_space<vmem>>, vector<128x64xf32>
    %77 = arith.truncf %75 : vector<128x16xf32> to vector<128x16xbf16>
    %c0_41 = arith.constant 0 : index
    %c0_42 = arith.constant 0 : index
    %c0_43 = arith.constant 0 : index
    %78 = vector.load %arg8[%c0_41, %c0_42, %c0_43] : memref<4x16x64xbf16, #tpu.memory_space<vmem>>, vector<1x16x64xbf16>
    %79 = vector.shape_cast %78 : vector<1x16x64xbf16> to vector<16x64xbf16>
    %cst_44 = arith.constant dense<0.000000e+00> : vector<128x64xf32>
    %80 = tpu.matmul %77, %79, %cst_44 {dimension_numbers = #tpu.dot_dimension_numbers<[1], [0], [0], [1], [0, 0, 1, 1], [], []>} : vector<128x16xbf16>, vector<16x64xbf16>, vector<128x64xf32> -> vector<128x64xf32>
    %81 = arith.addf %76, %80 : vector<128x64xf32>
    %c0_45 = arith.constant 0 : index
    %c0_46 = arith.constant 0 : index
    %82 = vector.load %arg19[%c0_45, %c0_46] : memref<128x64xf32, #tpu.memory_space<vmem>>, vector<128x64xf32>
    tpu.vector_store %arg19[%c0_45, %c0_46], %81 {strides = array<i32>} : memref<128x64xf32, #tpu.memory_space<vmem>>, vector<128x64xf32>,
    %83 = vector.extract_strided_slice %29 {offsets = [0, 16], sizes = [128, 16], strides = [1, 1]} : vector<128x64xbf16> to vector<128x16xbf16>
    %84 = vector.extract_strided_slice %32 {offsets = [0, 16], sizes = [128, 16], strides = [1, 1]} : vector<128x64xbf16> to vector<128x16xbf16>
    %85 = vector.extract_strided_slice %35 {offsets = [0, 16], sizes = [128, 16], strides = [1, 1]} : vector<128x64xbf16> to vector<128x16xbf16>
    %cst_47 = arith.constant dense<0.000000e+00> : vector<128x128xf32>
    %86 = tpu.matmul %83, %84, %cst_47 {dimension_numbers = #tpu.dot_dimension_numbers<[1], [1], [0], [0], [0, 0, 1, 0], [], []>} : vector<128x16xbf16>, vector<128x16xbf16>, vector<128x128xf32> -> vector<128x128xf32>
    %cst_48 = arith.constant 2.500000e-01 : f32
    %87 = vector.broadcast %cst_48 : f32 to vector<128x128xf32>
    %88 = arith.mulf %86, %87 : vector<128x128xf32>
    %cst_49 = arith.constant dense<0xFF800000> : vector<128xf32>
    %89 = vector.multi_reduction <maximumf>, %88, %cst_49 [1] : vector<128x128xf32> to vector<128xf32>
    %90 = vector.shape_cast %89 : vector<128xf32> to vector<128x1xf32>
    %91 = vector.broadcast %90 : vector<128x1xf32> to vector<128x128xf32>
    %92 = arith.subf %88, %91 : vector<128x128xf32>
    %93 = math.exp %92 : vector<128x128xf32>
    %cst_50 = arith.constant dense<0.000000e+00> : vector<128xf32>
    %94 = vector.multi_reduction <add>, %93, %cst_50 [1] : vector<128x128xf32> to vector<128xf32>
    %95 = vector.shape_cast %94 : vector<128xf32> to vector<128x1xf32>
    %96 = tpu.reciprocal %95 {approx = true} : vector<128x1xf32> -> vector<128x1xf32>
    %97 = arith.mulf %95, %96 : vector<128x1xf32>
    %cst_51 = arith.constant 2.000000e+00 : f32
    %98 = vector.broadcast %cst_51 : f32 to vector<128x1xf32>
    %99 = arith.subf %98, %97 : vector<128x1xf32>
    %100 = arith.mulf %96, %99 : vector<128x1xf32>
    %101 = vector.broadcast %100 : vector<128x1xf32> to vector<128x128xf32>
    %102 = arith.mulf %93, %101 : vector<128x128xf32>
    %103 = vector.broadcast %40 : f32 to vector<128x128xf32>
    %104 = arith.mulf %103, %102 : vector<128x128xf32>
    %c0_52 = arith.constant 0 : index
    %c1 = arith.constant 1 : index
    %c0_53 = arith.constant 0 : index
    %c0_54 = arith.constant 0 : index
    %105 = vector.load %arg16[%c0_52, %c1, %c0_53, %c0_54] : memref<1x4x128x128xbf16, #tpu.memory_space<vmem>>, vector<1x1x128x128xbf16>
    %106 = vector.shape_cast %105 : vector<1x1x128x128xbf16> to vector<128x128xbf16>
    %107 = arith.extf %106 : vector<128x128xbf16> to vector<128x128xf32>
    %108 = vector.broadcast %41 : f32 to vector<128x128xf32>
    %109 = arith.mulf %108, %107 : vector<128x128xf32>
    %110 = arith.addf %104, %109 : vector<128x128xf32>
    %111 = arith.truncf %110 : vector<128x128xf32> to vector<128x128xbf16>
    %c0_55 = arith.constant 0 : index
    %c1_56 = arith.constant 1 : index
    %c0_57 = arith.constant 0 : index
    %c0_58 = arith.constant 0 : index
    %112 = vector.load %arg18[%c0_55, %c1_56, %c0_57, %c0_58] : memref<1x4x128x128xbf16, #tpu.memory_space<vmem>>, vector<1x1x128x128xbf16>
    %113 = vector.shape_cast %112 : vector<1x1x128x128xbf16> to vector<128x128xbf16>
    %114 = vector.shape_cast %111 : vector<128x128xbf16> to vector<1x1x128x128xbf16>
    tpu.vector_store %arg18[%c0_55, %c1_56, %c0_57, %c0_58], %114 {strides = array<i32>} : memref<1x4x128x128xbf16, #tpu.memory_space<vmem>>, vector<1x1x128x128xbf16>,
    %115 = arith.truncf %110 : vector<128x128xf32> to vector<128x128xbf16>
    %cst_59 = arith.constant dense<0.000000e+00> : vector<128x16xf32>
    %116 = tpu.matmul %115, %85, %cst_59 {dimension_numbers = #tpu.dot_dimension_numbers<[1], [0], [0], [1], [0, 0, 1, 1], [], []>} : vector<128x128xbf16>, vector<128x16xbf16>, vector<128x16xf32> -> vector<128x16xf32>
    %c0_60 = arith.constant 0 : index
    %c0_61 = arith.constant 0 : index
    %117 = vector.load %arg19[%c0_60, %c0_61] : memref<128x64xf32, #tpu.memory_space<vmem>>, vector<128x64xf32>
    %118 = arith.truncf %116 : vector<128x16xf32> to vector<128x16xbf16>
    %c1_62 = arith.constant 1 : index
    %c0_63 = arith.constant 0 : index
    %c0_64 = arith.constant 0 : index
    %119 = vector.load %arg8[%c1_62, %c0_63, %c0_64] : memref<4x16x64xbf16, #tpu.memory_space<vmem>>, vector<1x16x64xbf16>
    %120 = vector.shape_cast %119 : vector<1x16x64xbf16> to vector<16x64xbf16>
    %cst_65 = arith.constant dense<0.000000e+00> : vector<128x64xf32>
    %121 = tpu.matmul %118, %120, %cst_65 {dimension_numbers = #tpu.dot_dimension_numbers<[1], [0], [0], [1], [0, 0, 1, 1], [], []>} : vector<128x16xbf16>, vector<16x64xbf16>, vector<128x64xf32> -> vector<128x64xf32>
    %122 = arith.addf %117, %121 : vector<128x64xf32>
    %c0_66 = arith.constant 0 : index
    %c0_67 = arith.constant 0 : index
    %123 = vector.load %arg19[%c0_66, %c0_67] : memref<128x64xf32, #tpu.memory_space<vmem>>, vector<128x64xf32>
    tpu.vector_store %arg19[%c0_66, %c0_67], %122 {strides = array<i32>} : memref<128x64xf32, #tpu.memory_space<vmem>>, vector<128x64xf32>,
    %124 = vector.extract_strided_slice %29 {offsets = [0, 32], sizes = [128, 16], strides = [1, 1]} : vector<128x64xbf16> to vector<128x16xbf16>
    %125 = vector.extract_strided_slice %32 {offsets = [0, 32], sizes = [128, 16], strides = [1, 1]} : vector<128x64xbf16> to vector<128x16xbf16>
    %126 = vector.extract_strided_slice %35 {offsets = [0, 32], sizes = [128, 16], strides = [1, 1]} : vector<128x64xbf16> to vector<128x16xbf16>
    %cst_68 = arith.constant dense<0.000000e+00> : vector<128x128xf32>
    %127 = tpu.matmul %124, %125, %cst_68 {dimension_numbers = #tpu.dot_dimension_numbers<[1], [1], [0], [0], [0, 0, 1, 0], [], []>} : vector<128x16xbf16>, vector<128x16xbf16>, vector<128x128xf32> -> vector<128x128xf32>
    %cst_69 = arith.constant 2.500000e-01 : f32
    %128 = vector.broadcast %cst_69 : f32 to vector<128x128xf32>
    %129 = arith.mulf %127, %128 : vector<128x128xf32>
    %cst_70 = arith.constant dense<0xFF800000> : vector<128xf32>
    %130 = vector.multi_reduction <maximumf>, %129, %cst_70 [1] : vector<128x128xf32> to vector<128xf32>
    %131 = vector.shape_cast %130 : vector<128xf32> to vector<128x1xf32>
    %132 = vector.broadcast %131 : vector<128x1xf32> to vector<128x128xf32>
    %133 = arith.subf %129, %132 : vector<128x128xf32>
    %134 = math.exp %133 : vector<128x128xf32>
    %cst_71 = arith.constant dense<0.000000e+00> : vector<128xf32>
    %135 = vector.multi_reduction <add>, %134, %cst_71 [1] : vector<128x128xf32> to vector<128xf32>
    %136 = vector.shape_cast %135 : vector<128xf32> to vector<128x1xf32>
    %137 = tpu.reciprocal %136 {approx = true} : vector<128x1xf32> -> vector<128x1xf32>
    %138 = arith.mulf %136, %137 : vector<128x1xf32>
    %cst_72 = arith.constant 2.000000e+00 : f32
    %139 = vector.broadcast %cst_72 : f32 to vector<128x1xf32>
    %140 = arith.subf %139, %138 : vector<128x1xf32>
    %141 = arith.mulf %137, %140 : vector<128x1xf32>
    %142 = vector.broadcast %141 : vector<128x1xf32> to vector<128x128xf32>
    %143 = arith.mulf %134, %142 : vector<128x128xf32>
    %144 = vector.broadcast %40 : f32 to vector<128x128xf32>
    %145 = arith.mulf %144, %143 : vector<128x128xf32>
    %c0_73 = arith.constant 0 : index
    %c2 = arith.constant 2 : index
    %c0_74 = arith.constant 0 : index
    %c0_75 = arith.constant 0 : index
    %146 = vector.load %arg16[%c0_73, %c2, %c0_74, %c0_75] : memref<1x4x128x128xbf16, #tpu.memory_space<vmem>>, vector<1x1x128x128xbf16>
    %147 = vector.shape_cast %146 : vector<1x1x128x128xbf16> to vector<128x128xbf16>
    %148 = arith.extf %147 : vector<128x128xbf16> to vector<128x128xf32>
    %149 = vector.broadcast %41 : f32 to vector<128x128xf32>
    %150 = arith.mulf %149, %148 : vector<128x128xf32>
    %151 = arith.addf %145, %150 : vector<128x128xf32>
    %152 = arith.truncf %151 : vector<128x128xf32> to vector<128x128xbf16>
    %c0_76 = arith.constant 0 : index
    %c2_77 = arith.constant 2 : index
    %c0_78 = arith.constant 0 : index
    %c0_79 = arith.constant 0 : index
    %153 = vector.load %arg18[%c0_76, %c2_77, %c0_78, %c0_79] : memref<1x4x128x128xbf16, #tpu.memory_space<vmem>>, vector<1x1x128x128xbf16>
    %154 = vector.shape_cast %153 : vector<1x1x128x128xbf16> to vector<128x128xbf16>
    %155 = vector.shape_cast %152 : vector<128x128xbf16> to vector<1x1x128x128xbf16>
    tpu.vector_store %arg18[%c0_76, %c2_77, %c0_78, %c0_79], %155 {strides = array<i32>} : memref<1x4x128x128xbf16, #tpu.memory_space<vmem>>, vector<1x1x128x128xbf16>,
    %156 = arith.truncf %151 : vector<128x128xf32> to vector<128x128xbf16>
    %cst_80 = arith.constant dense<0.000000e+00> : vector<128x16xf32>
    %157 = tpu.matmul %156, %126, %cst_80 {dimension_numbers = #tpu.dot_dimension_numbers<[1], [0], [0], [1], [0, 0, 1, 1], [], []>} : vector<128x128xbf16>, vector<128x16xbf16>, vector<128x16xf32> -> vector<128x16xf32>
    %c0_81 = arith.constant 0 : index
    %c0_82 = arith.constant 0 : index
    %158 = vector.load %arg19[%c0_81, %c0_82] : memref<128x64xf32, #tpu.memory_space<vmem>>, vector<128x64xf32>
    %159 = arith.truncf %157 : vector<128x16xf32> to vector<128x16xbf16>
    %c2_83 = arith.constant 2 : index
    %c0_84 = arith.constant 0 : index
    %c0_85 = arith.constant 0 : index
    %160 = vector.load %arg8[%c2_83, %c0_84, %c0_85] : memref<4x16x64xbf16, #tpu.memory_space<vmem>>, vector<1x16x64xbf16>
    %161 = vector.shape_cast %160 : vector<1x16x64xbf16> to vector<16x64xbf16>
    %cst_86 = arith.constant dense<0.000000e+00> : vector<128x64xf32>
    %162 = tpu.matmul %159, %161, %cst_86 {dimension_numbers = #tpu.dot_dimension_numbers<[1], [0], [0], [1], [0, 0, 1, 1], [], []>} : vector<128x16xbf16>, vector<16x64xbf16>, vector<128x64xf32> -> vector<128x64xf32>
    %163 = arith.addf %158, %162 : vector<128x64xf32>
    %c0_87 = arith.constant 0 : index
    %c0_88 = arith.constant 0 : index
    %164 = vector.load %arg19[%c0_87, %c0_88] : memref<128x64xf32, #tpu.memory_space<vmem>>, vector<128x64xf32>
    tpu.vector_store %arg19[%c0_87, %c0_88], %163 {strides = array<i32>} : memref<128x64xf32, #tpu.memory_space<vmem>>, vector<128x64xf32>,
    %165 = vector.extract_strided_slice %29 {offsets = [0, 48], sizes = [128, 16], strides = [1, 1]} : vector<128x64xbf16> to vector<128x16xbf16>
    %166 = vector.extract_strided_slice %32 {offsets = [0, 48], sizes = [128, 16], strides = [1, 1]} : vector<128x64xbf16> to vector<128x16xbf16>
    %167 = vector.extract_strided_slice %35 {offsets = [0, 48], sizes = [128, 16], strides = [1, 1]} : vector<128x64xbf16> to vector<128x16xbf16>
    %cst_89 = arith.constant dense<0.000000e+00> : vector<128x128xf32>
    %168 = tpu.matmul %165, %166, %cst_89 {dimension_numbers = #tpu.dot_dimension_numbers<[1], [1], [0], [0], [0, 0, 1, 0], [], []>} : vector<128x16xbf16>, vector<128x16xbf16>, vector<128x128xf32> -> vector<128x128xf32>
    %cst_90 = arith.constant 2.500000e-01 : f32
    %169 = vector.broadcast %cst_90 : f32 to vector<128x128xf32>
    %170 = arith.mulf %168, %169 : vector<128x128xf32>
    %cst_91 = arith.constant dense<0xFF800000> : vector<128xf32>
    %171 = vector.multi_reduction <maximumf>, %170, %cst_91 [1] : vector<128x128xf32> to vector<128xf32>
    %172 = vector.shape_cast %171 : vector<128xf32> to vector<128x1xf32>
    %173 = vector.broadcast %172 : vector<128x1xf32> to vector<128x128xf32>
    %174 = arith.subf %170, %173 : vector<128x128xf32>
    %175 = math.exp %174 : vector<128x128xf32>
    %cst_92 = arith.constant dense<0.000000e+00> : vector<128xf32>
    %176 = vector.multi_reduction <add>, %175, %cst_92 [1] : vector<128x128xf32> to vector<128xf32>
    %177 = vector.shape_cast %176 : vector<128xf32> to vector<128x1xf32>
    %178 = tpu.reciprocal %177 {approx = true} : vector<128x1xf32> -> vector<128x1xf32>
    %179 = arith.mulf %177, %178 : vector<128x1xf32>
    %cst_93 = arith.constant 2.000000e+00 : f32
    %180 = vector.broadcast %cst_93 : f32 to vector<128x1xf32>
    %181 = arith.subf %180, %179 : vector<128x1xf32>
    %182 = arith.mulf %178, %181 : vector<128x1xf32>
    %183 = vector.broadcast %182 : vector<128x1xf32> to vector<128x128xf32>
    %184 = arith.mulf %175, %183 : vector<128x128xf32>
    %185 = vector.broadcast %40 : f32 to vector<128x128xf32>
    %186 = arith.mulf %185, %184 : vector<128x128xf32>
    %c0_94 = arith.constant 0 : index
    %c3 = arith.constant 3 : index
    %c0_95 = arith.constant 0 : index
    %c0_96 = arith.constant 0 : index
    %187 = vector.load %arg16[%c0_94, %c3, %c0_95, %c0_96] : memref<1x4x128x128xbf16, #tpu.memory_space<vmem>>, vector<1x1x128x128xbf16>
    %188 = vector.shape_cast %187 : vector<1x1x128x128xbf16> to vector<128x128xbf16>
    %189 = arith.extf %188 : vector<128x128xbf16> to vector<128x128xf32>
    %190 = vector.broadcast %41 : f32 to vector<128x128xf32>
    %191 = arith.mulf %190, %189 : vector<128x128xf32>
    %192 = arith.addf %186, %191 : vector<128x128xf32>
    %193 = arith.truncf %192 : vector<128x128xf32> to vector<128x128xbf16>
    %c0_97 = arith.constant 0 : index
    %c3_98 = arith.constant 3 : index
    %c0_99 = arith.constant 0 : index
    %c0_100 = arith.constant 0 : index
    %194 = vector.load %arg18[%c0_97, %c3_98, %c0_99, %c0_100] : memref<1x4x128x128xbf16, #tpu.memory_space<vmem>>, vector<1x1x128x128xbf16>
    %195 = vector.shape_cast %194 : vector<1x1x128x128xbf16> to vector<128x128xbf16>
    %196 = vector.shape_cast %193 : vector<128x128xbf16> to vector<1x1x128x128xbf16>
    tpu.vector_store %arg18[%c0_97, %c3_98, %c0_99, %c0_100], %196 {strides = array<i32>} : memref<1x4x128x128xbf16, #tpu.memory_space<vmem>>, vector<1x1x128x128xbf16>,
    %197 = arith.truncf %192 : vector<128x128xf32> to vector<128x128xbf16>
    %cst_101 = arith.constant dense<0.000000e+00> : vector<128x16xf32>
    %198 = tpu.matmul %197, %167, %cst_101 {dimension_numbers = #tpu.dot_dimension_numbers<[1], [0], [0], [1], [0, 0, 1, 1], [], []>} : vector<128x128xbf16>, vector<128x16xbf16>, vector<128x16xf32> -> vector<128x16xf32>
    %c0_102 = arith.constant 0 : index
    %c0_103 = arith.constant 0 : index
    %199 = vector.load %arg19[%c0_102, %c0_103] : memref<128x64xf32, #tpu.memory_space<vmem>>, vector<128x64xf32>
    %200 = arith.truncf %198 : vector<128x16xf32> to vector<128x16xbf16>
    %c3_104 = arith.constant 3 : index
    %c0_105 = arith.constant 0 : index
    %c0_106 = arith.constant 0 : index
    %201 = vector.load %arg8[%c3_104, %c0_105, %c0_106] : memref<4x16x64xbf16, #tpu.memory_space<vmem>>, vector<1x16x64xbf16>
    %202 = vector.shape_cast %201 : vector<1x16x64xbf16> to vector<16x64xbf16>
    %cst_107 = arith.constant dense<0.000000e+00> : vector<128x64xf32>
    %203 = tpu.matmul %200, %202, %cst_107 {dimension_numbers = #tpu.dot_dimension_numbers<[1], [0], [0], [1], [0, 0, 1, 1], [], []>} : vector<128x16xbf16>, vector<16x64xbf16>, vector<128x64xf32> -> vector<128x64xf32>
    %204 = arith.addf %199, %203 : vector<128x64xf32>
    %c0_108 = arith.constant 0 : index
    %c0_109 = arith.constant 0 : index
    %205 = vector.load %arg19[%c0_108, %c0_109] : memref<128x64xf32, #tpu.memory_space<vmem>>, vector<128x64xf32>
    tpu.vector_store %arg19[%c0_108, %c0_109], %204 {strides = array<i32>} : memref<128x64xf32, #tpu.memory_space<vmem>>, vector<128x64xf32>,
    %c0_110 = arith.constant 0 : index
    %c0_111 = arith.constant 0 : index
    %206 = vector.load %arg19[%c0_110, %c0_111] : memref<128x64xf32, #tpu.memory_space<vmem>>, vector<128x64xf32>
    %c0_112 = arith.constant 0 : index
    %c0_113 = arith.constant 0 : index
    %207 = vector.load %arg10[%c0_112, %c0_113] : memref<1x64xf32, #tpu.memory_space<vmem>>, vector<1x64xf32>
    %c0_114 = arith.constant 0 : index
    %c0_115 = arith.constant 0 : index
    %208 = vector.load %arg11[%c0_114, %c0_115] : memref<1x64xf32, #tpu.memory_space<vmem>>, vector<1x64xf32>
    %cst_116 = arith.constant dense<0.000000e+00> : vector<128xf32>
    %209 = vector.multi_reduction <add>, %206, %cst_116 [1] : vector<128x64xf32> to vector<128xf32>
    %210 = vector.shape_cast %209 : vector<128xf32> to vector<128x1xf32>
    %cst_117 = arith.constant 6.400000e+01 : f32
    %211 = vector.broadcast %cst_117 : f32 to vector<128x1xf32>
    %212 = arith.divf %210, %211 : vector<128x1xf32>
    %213 = vector.broadcast %212 : vector<128x1xf32> to vector<128x64xf32>
    %214 = arith.subf %206, %213 : vector<128x64xf32>
    %215 = arith.mulf %214, %214 : vector<128x64xf32>
    %cst_118 = arith.constant dense<0.000000e+00> : vector<128xf32>
    %216 = vector.multi_reduction <add>, %215, %cst_118 [1] : vector<128x64xf32> to vector<128xf32>
    %217 = vector.shape_cast %216 : vector<128xf32> to vector<128x1xf32>
    %cst_119 = arith.constant 6.400000e+01 : f32
    %218 = vector.broadcast %cst_119 : f32 to vector<128x1xf32>
    %219 = arith.divf %217, %218 : vector<128x1xf32>
    %220 = vector.broadcast %212 : vector<128x1xf32> to vector<128x64xf32>
    %221 = arith.subf %206, %220 : vector<128x64xf32>
    %cst_120 = arith.constant 9.99999974E-6 : f32
    %222 = vector.broadcast %cst_120 : f32 to vector<128x1xf32>
    %223 = arith.addf %219, %222 : vector<128x1xf32>
    %224 = math.rsqrt %223 : vector<128x1xf32>
    %225 = vector.broadcast %224 : vector<128x1xf32> to vector<128x64xf32>
    %226 = arith.mulf %221, %225 : vector<128x64xf32>
    %227 = vector.broadcast %207 : vector<1x64xf32> to vector<128x64xf32>
    %228 = arith.mulf %226, %227 : vector<128x64xf32>
    %229 = vector.broadcast %208 : vector<1x64xf32> to vector<128x64xf32>
    %230 = arith.addf %228, %229 : vector<128x64xf32>
    %231 = arith.truncf %230 : vector<128x64xf32> to vector<128x64xbf16>
    %c0_121 = arith.constant 0 : index
    %c0_122 = arith.constant 0 : index
    %232 = vector.load %arg12[%c0_121, %c0_122] : memref<64x256xbf16, #tpu.memory_space<vmem>>, vector<64x256xbf16>
    %cst_123 = arith.constant dense<0.000000e+00> : vector<128x256xf32>
    %233 = tpu.matmul %231, %232, %cst_123 {dimension_numbers = #tpu.dot_dimension_numbers<[1], [0], [0], [1], [0, 0, 1, 1], [], []>} : vector<128x64xbf16>, vector<64x256xbf16>, vector<128x256xf32> -> vector<128x256xf32>
    %c0_124 = arith.constant 0 : index
    %c0_125 = arith.constant 0 : index
    %234 = vector.load %arg13[%c0_124, %c0_125] : memref<1x256xf32, #tpu.memory_space<vmem>>, vector<1x256xf32>
    %235 = vector.broadcast %234 : vector<1x256xf32> to vector<128x256xf32>
    %236 = arith.addf %233, %235 : vector<128x256xf32>
    %237 = arith.mulf %236, %236 : vector<128x256xf32>
    %238 = arith.mulf %237, %236 : vector<128x256xf32>
    %cst_126 = arith.constant 5.000000e-01 : f32
    %239 = vector.broadcast %cst_126 : f32 to vector<128x256xf32>
    %240 = arith.mulf %239, %236 : vector<128x256xf32>
    %cst_127 = arith.constant 4.471500e-02 : f32
    %241 = vector.broadcast %cst_127 : f32 to vector<128x256xf32>
    %242 = arith.mulf %241, %238 : vector<128x256xf32>
    %243 = arith.addf %236, %242 : vector<128x256xf32>
    %cst_128 = arith.constant 0.797884583 : f32
    %244 = vector.broadcast %cst_128 : f32 to vector<128x256xf32>
    %245 = arith.mulf %244, %243 : vector<128x256xf32>
    %246 = math.tanh %245 : vector<128x256xf32>
    %cst_129 = arith.constant 1.000000e+00 : f32
    %247 = vector.broadcast %cst_129 : f32 to vector<128x256xf32>
    %248 = arith.addf %247, %246 : vector<128x256xf32>
    %249 = arith.mulf %240, %248 : vector<128x256xf32>
    %250 = arith.truncf %249 : vector<128x256xf32> to vector<128x256xbf16>
    %c0_130 = arith.constant 0 : index
    %c0_131 = arith.constant 0 : index
    %251 = vector.load %arg14[%c0_130, %c0_131] : memref<256x64xbf16, #tpu.memory_space<vmem>>, vector<256x64xbf16>
    %cst_132 = arith.constant dense<0.000000e+00> : vector<128x64xf32>
    %252 = tpu.matmul %250, %251, %cst_132 {dimension_numbers = #tpu.dot_dimension_numbers<[1], [0], [0], [1], [0, 0, 1, 1], [], []>} : vector<128x256xbf16>, vector<256x64xbf16>, vector<128x64xf32> -> vector<128x64xf32>
    %253 = arith.addf %206, %252 : vector<128x64xf32>
    %c0_133 = arith.constant 0 : index
    %c0_134 = arith.constant 0 : index
    %254 = vector.load %arg15[%c0_133, %c0_134] : memref<1x64xf32, #tpu.memory_space<vmem>>, vector<1x64xf32>
    %255 = vector.broadcast %254 : vector<1x64xf32> to vector<128x64xf32>
    %256 = arith.addf %253, %255 : vector<128x64xf32>
    %257 = arith.truncf %256 : vector<128x64xf32> to vector<128x64xbf16>
    %c0_135 = arith.constant 0 : index
    %c0_136 = arith.constant 0 : index
    %258 = vector.load %arg17[%c0_135, %c0_136] : memref<128x64xbf16, #tpu.memory_space<vmem>>, vector<128x64xbf16>
    tpu.vector_store %arg17[%c0_135, %c0_136], %257 {strides = array<i32>} : memref<128x64xbf16, #tpu.memory_space<vmem>>, vector<128x64xbf16>,
    return
  }
  func.func @transform_0(%arg0: i32) -> (i32, i32) {
    %c0_i32 = arith.constant 0 : i32
    %c0_i32_0 = arith.constant 0 : i32
    %c0_i32_1 = arith.constant 0 : i32
    return %c0_i32, %c0_i32_0 : i32, i32
  }
  func.func @transform_1(%arg0: i32) -> (i32, i32) {
    %c0_i32 = arith.constant 0 : i32
    %c0_i32_0 = arith.constant 0 : i32
    return %arg0, %c0_i32 : i32, i32
  }
  func.func @transform_2(%arg0: i32) -> (i32, i32) {
    %c0_i32 = arith.constant 0 : i32
    %c0_i32_0 = arith.constant 0 : i32
    %c0_i32_1 = arith.constant 0 : i32
    return %c0_i32, %c0_i32_0 : i32, i32
  }
  func.func @transform_3(%arg0: i32) -> (i32, i32) {
    %c0_i32 = arith.constant 0 : i32
    %c0_i32_0 = arith.constant 0 : i32
    %c0_i32_1 = arith.constant 0 : i32
    return %c0_i32, %c0_i32_0 : i32, i32
  }
  func.func @transform_4(%arg0: i32) -> (i32, i32) {
    %c0_i32 = arith.constant 0 : i32
    %c0_i32_0 = arith.constant 0 : i32
    %c0_i32_1 = arith.constant 0 : i32
    return %c0_i32, %c0_i32_0 : i32, i32
  }
  func.func @transform_5(%arg0: i32) -> (i32, i32) {
    %c0_i32 = arith.constant 0 : i32
    %c0_i32_0 = arith.constant 0 : i32
    %c0_i32_1 = arith.constant 0 : i32
    return %c0_i32, %c0_i32_0 : i32, i32
  }
  func.func @transform_6(%arg0: i32) -> (i32, i32) {
    %c0_i32 = arith.constant 0 : i32
    %c0_i32_0 = arith.constant 0 : i32
    %c0_i32_1 = arith.constant 0 : i32
    return %c0_i32, %c0_i32_0 : i32, i32
  }
  func.func @transform_7(%arg0: i32) -> (i32, i32, i32) {
    %c0_i32 = arith.constant 0 : i32
    %c0_i32_0 = arith.constant 0 : i32
    %c0_i32_1 = arith.constant 0 : i32
    %c0_i32_2 = arith.constant 0 : i32
    return %c0_i32, %c0_i32_0, %c0_i32_1 : i32, i32, i32
  }
  func.func @transform_8(%arg0: i32) -> (i32, i32) {
    %c0_i32 = arith.constant 0 : i32
    %c0_i32_0 = arith.constant 0 : i32
    %c0_i32_1 = arith.constant 0 : i32
    return %c0_i32, %c0_i32_0 : i32, i32
  }
  func.func @transform_9(%arg0: i32) -> (i32, i32) {
    %c0_i32 = arith.constant 0 : i32
    %c0_i32_0 = arith.constant 0 : i32
    %c0_i32_1 = arith.constant 0 : i32
    return %c0_i32, %c0_i32_0 : i32, i32
  }
  func.func @transform_10(%arg0: i32) -> (i32, i32) {
    %c0_i32 = arith.constant 0 : i32
    %c0_i32_0 = arith.constant 0 : i32
    %c0_i32_1 = arith.constant 0 : i32
    return %c0_i32, %c0_i32_0 : i32, i32
  }
  func.func @transform_11(%arg0: i32) -> (i32, i32) {
    %c0_i32 = arith.constant 0 : i32
    %c0_i32_0 = arith.constant 0 : i32
    %c0_i32_1 = arith.constant 0 : i32
    return %c0_i32, %c0_i32_0 : i32, i32
  }
  func.func @transform_12(%arg0: i32) -> (i32, i32) {
    %c0_i32 = arith.constant 0 : i32
    %c0_i32_0 = arith.constant 0 : i32
    %c0_i32_1 = arith.constant 0 : i32
    return %c0_i32, %c0_i32_0 : i32, i32
  }
  func.func @transform_13(%arg0: i32) -> (i32, i32) {
    %c0_i32 = arith.constant 0 : i32
    %c0_i32_0 = arith.constant 0 : i32
    %c0_i32_1 = arith.constant 0 : i32
    return %c0_i32, %c0_i32_0 : i32, i32
  }
  func.func @transform_14(%arg0: i32) -> (i32, i32) {
    %c0_i32 = arith.constant 0 : i32
    %c0_i32_0 = arith.constant 0 : i32
    %c0_i32_1 = arith.constant 0 : i32
    return %c0_i32, %c0_i32_0 : i32, i32
  }
  func.func @transform_15(%arg0: i32) -> (i32, i32, i32, i32) {
    %c0_i32 = arith.constant 0 : i32
    %c0_i32_0 = arith.constant 0 : i32
    %c0_i32_1 = arith.constant 0 : i32
    %c0_i32_2 = arith.constant 0 : i32
    return %arg0, %c0_i32, %c0_i32_0, %c0_i32_1 : i32, i32, i32, i32
  }
  func.func @transform_16(%arg0: i32) -> (i32, i32) {
    %c0_i32 = arith.constant 0 : i32
    %c0_i32_0 = arith.constant 0 : i32
    return %arg0, %c0_i32 : i32, i32
  }
  func.func @transform_17(%arg0: i32) -> (i32, i32, i32, i32) {
    %c0_i32 = arith.constant 0 : i32
    %c0_i32_0 = arith.constant 0 : i32
    %c0_i32_1 = arith.constant 0 : i32
    %c0_i32_2 = arith.constant 0 : i32
    return %arg0, %c0_i32, %c0_i32_0, %c0_i32_1 : i32, i32, i32, i32
  }
}

</mosaic_0001>

<bundles_post_ra>
// kernel: tpu_custom_call.1
= control target key start
LH: loop header
LB: loop body
LE: loop exit
PB: predicated region body
PF: predicated region fallthrough
CT: control target
= control target key end

     0   :  { %s10761_s0 = inlined_call_operand.<no memory space> [shape: f32[1,1], index: 0, kind: input, shape index: {}]   ;;  %s10762_s1 = inlined_call_operand.vmem [shape: bf16[512,64], index: 1, kind: input, shape index: {}]   ;;  %s10763_s2 = inlined_call_operand.vmem [shape: f32[1,64], index: 2, kind: input, shape index: {}]   ;;  %s10764_s3 = inlined_call_operand.vmem [shape: f32[1,64], index: 3, kind: input, shape index: {}]   ;;  %s10765_s4 = inlined_call_operand.vmem [shape: bf16[64,64], index: 4, kind: input, shape index: {}]   ;;  %s10766_s5 = inlined_call_operand.vmem [shape: bf16[64,64], index: 5, kind: input, shape index: {}]   ;;  %s10767_s6 = inlined_call_operand.vmem [shape: bf16[64,64], index: 6, kind: input, shape index: {}]   ;;  %s10768_s7 = inlined_call_operand.vmem [shape: bf16[4,16,64], index: 7, kind: input, shape index: {}]   ;;  %s10769_s8 = inlined_call_operand.vmem [shape: f32[1,64], index: 8, kind: input, shape index: {}]   ;;  %s10770_s9 = inlined_call_operand.vmem [shape: f32[1,64], index: 9, kind: input, shape index: {}]   ;;  %s10771_s10 = inlined_call_operand.vmem [shape: f32[1,64], index: 10, kind: input, shape index: {}]   ;;  %s10772_s11 = inlined_call_operand.vmem [shape: bf16[64,256], index: 11, kind: input, shape index: {}]   ;;  %s10773_s12 = inlined_call_operand.vmem [shape: f32[1,256], index: 12, kind: input, shape index: {}]   ;;  %s10774_s13 = inlined_call_operand.vmem [shape: bf16[256,64], index: 13, kind: input, shape index: {}]   ;;  %s10775_s14 = inlined_call_operand.vmem [shape: f32[1,64], index: 14, kind: input, shape index: {}]   ;;  %s10776_s15 = inlined_call_operand.hbm [shape: bf16[4,4,128,128], index: 15, kind: input, shape index: {}]   ;;  %s10777_s16 = inlined_call_operand.vmem [shape: bf16[512,64], index: 16, kind: output, shape index: {0}]   ;;  %s10778_s17 = inlined_call_operand.hbm [shape: bf16[4,4,128,128], index: 17, kind: output, shape index: {1}]  }
   0x1   :  { %10822 = sst [smem:[#allocation40_spill]] %s10761_s0 }
   0x2   :  { %10823 = sst [smem:[#allocation41_spill]] %s10762_s1  ;;  %s10827_s26 = sld [smem:[#allocation40_spill]] }
   0x3   :  { %10824 = sst [smem:[#allocation42_spill]] %s10763_s2 }
   0x4   :  { %10825 = sst [smem:[#allocation43_spill]] %s10775_s14 }
   0x5   :  { %10826 = sst [smem:[#allocation44_spill]] %s10777_s16 }
   0x8   :  { %23 = sst [smem:[#allocation3]] %s10827_s26 }
   0x9   :  { %24 = vsyncpa [#allocation5], 0 }
   0xa   :  { %26 = vsyncpa [#allocation5 + $0x1], 0 }
   0xb   :  { %27 = vsyncpa [#allocation6], 0 }
   0xc   :  { %29 = vsyncpa [#allocation6 + $0x1], 0  ;;  %s8234_s27 = smov 0   ;;  %s8236_s28 = smov 0  }
   0xd   :  { %s8238_s29 = smov 0   ;;  %s8240_s0 = smov 0  }
   0xe LB: > { %10828 = sst [smem:[#allocation10_spill]] %s8117_s27  ;;  %s8255_s30 = sadd.s32 4294967295, %s8129_s0   ;;  %s8129_s0 = sphi %s8240_s0, %s10908_s0   ;;  %s8125_s29 = sphi %s8238_s29, %s10910_s29   ;;  %s8121_s28 = sphi %s8236_s28, %s10912_s28   ;;  %s8117_s27 = sphi %s8234_s27, %s10911_s27  }
   0xf   : > { %10829 = sst [smem:[#allocation11_spill]] %s8125_s29  ;;  %s6018_s18 = sadd.s32 4294967294, %s8129_s0  }
  0x10   : > { %s8259_s19 = sadd.s32 1, %s8129_s0   ;;  %s362_s1 = sadd.s32 1, %s8125_s29 }
  0x11   : > { %10830 = sst [smem:[#allocation12_spill]] %s8259_s19  ;;  %s359_s20 = ssub.s32 %s8129_s0, %s8259_s19 }
  0x12   : > { %p369_p0 = scmp.ne.s32.totalorder %s8125_s29, %s8121_s28  ;;  %p360_p1 = scmp.eq.s32.totalorder %s359_s20, 0 }
  0x13   : > { %p370_p2 = scmp.eq.s32.totalorder %s8129_s0, 0  ;;  %p375_p3 = scmp.ne.s32.totalorder %s8121_s28, %s8117_s27 }
  0x14   : > { %p376_p4 = scmp.eq.s32.totalorder %s8255_s30, 0  ;;  %p425_p7 = scmp.eq.s32.totalorder %s8255_s30, 3 }
  0x15   : > { %s8271_s21 = scalar_select %p360_p1, %s8125_s29, %s362_s1  }
  0x16   : > { %p8273_p5 = por %p370_p2, %p369_p0  ;;  %p8277_p6 = por %p376_p4, %p375_p3 }
  0x17   : > { %10831 = sst [smem:[#allocation13_spill]] %s8271_s21  ;;  %p431_p8 = scmp.eq.s32.totalorder %s6018_s18, 3 }
  0x18   : > { %p7547_p9 = scmp.lt.s32.totalorder %s8129_s0, 4  ;;  %p8283_p10 = por %p425_p7, %p369_p0 }
  0x19   : > { %p8287_p11 = por %p431_p8, %p375_p3  ;;  %s502_s26 = sand.u32 1, %s8125_s29  }
  0x1a   : > { %s10834_s24 = scalar_select %p8283_p10, 1, 0 }
  0x1b   : > { %s10835_s25 = scalar_select %p8287_p11, 1, 0 }
  0x1c   : > { %s6360_s1 = sshll.u32 %s8129_s0, 12  ;;  %s6021_s20 = sshll.u32 %s502_s26, 8 }
  0x1d   : > { %s8296_s27 = scalar_lea.hbm %s10776_s15, %s6360_s1  ;;  %s506_s18 = scalar_lea.vmem [#allocation4], %s6021_s20 }
  0x1e   : > { %s513_s16 = sshll.u32 %s506_s18, 4  ;;  %p8300_p12 = pnand %p7547_p9, %p8273_p5  ;;  %s8304_s16 = int_to_ptr.vmem [resolvable:$true] %s513_s16 }
  0x1f   : > { %s8306_s29 = scalar_lea.sflag [#allocation5], %s502_s26  ;;  %s8033_s19 = scalar_lea.hbm %s8296_s27, 4096 }
  0x20   : > { %p8034_p13 = scmp.ne.s32.totalorder %s8296_s27, %s8033_s19  ;;  %p8035_p0 = pneg %p8300_p12 }
  0x21   : > { %s8038_s1 = scalar_lea.hbm %s10776_s15, 16384  ;;  %p8039_p3 = scmp.lt.u32.totalorder %s8296_s27, %s10776_s15 }
  0x22   : > { %p8036_p1 = pnand %p8035_p0, %p8034_p13  ;;  %p8040_p4 = scmp.lt.u32.totalorder %s8038_s1, %s8033_s19 }
  0x23   : > { %p8042_p7 = scmp.lt.u32.totalorder %s8033_s19, %s8296_s27 }
  0x24   : > { %p8037_p2 = pneg %p8036_p1  ;;  %p8041_p5 = por %p8040_p4, %p8039_p3 }
  0x26   : > { %p8043_p8 = por %p8042_p7, %p8041_p5 }
  0x28   : > { %p8044_p9 = pnand %p8043_p8, %p8037_p2 }
  0x2a   : > { %8047 = shalt.err (!%p8044_p9)
}
  0x2b   : > { %s8048_s26 = scalar_lea.vmem %s8304_s16, 4096  ;;  %s8131_s21 = smov [#allocation4]  }
  0x2c   : > { %p8049_p13 = scmp.ne.s32.totalorder %s8304_s16, %s8048_s26  ;;  %s8053_s22 = sshll.u32 %s8131_s21, 4  ;;  %s8054_s22 = int_to_ptr.vmem [resolvable:$false] %s8053_s22 }
  0x2d   : > { %s8055_s20 = scalar_lea.vmem %s8054_s22, 8192  ;;  %p8056_p10 = scmp.lt.s32.totalorder %s8304_s16, %s8054_s22 }
  0x2e   : > { %p8051_p1 = pnand %p8049_p13, %p8035_p0  ;;  %p8057_p3 = scmp.lt.s32.totalorder %s8055_s20, %s8048_s26 }
  0x30   : > { %p8052_p11 = pneg %p8051_p1  ;;  %p8058_p4 = por %p8057_p3, %p8056_p10 }
  0x32   : > { %p8059_p5 = pnand %p8058_p4, %p8052_p11 }
  0x34   : > { %8062 = shalt.err (!%p8059_p5)
}
  0x35   : > { %s8132_s19 = smov 64   ;;  %s8133_s1 = smov 4  }
  0x36   : > { %7542 = dma.hbm_to_vmem [thread:$0]  (!%p8300_p12), %s8296_s27, 4096, %s8304_s16, %s8306_s29, %s8132_s19, %s8132_s19, %s8133_s1  }
  0x37   : > { %p6024_p0 = scmp.ge.s32.totalorder %s8129_s0, 1  ;;  %p521_p2 = scmp.lt.s32.totalorder %s8129_s0, 5 }
  0x39   : > { %p522_p7 = pnand %p6024_p0, %p521_p2 }
  0x3b   : > { %525 = sbr.rel (%p522_p7) target bundleno = 3535 (0xdcf), region = 84 }
  0x42   : > { %s8337_s18 = sand.u32 1, %s8121_s28  }
  0x43   : > { %s6025_s26 = sshll.u32 %s8337_s18, 8  ;;  %s528_s21 = scalar_lea.sflag [#allocation5], %s8337_s18 }
  0x44   : > { %s8343_s22 = scalar_lea.vmem [#allocation4], %s6025_s26 }
  0x45   : > { %8108 = dma.done.wait (%p8277_p6), %s528_s21, 4096  }
  0x46   : > { %8110 = vsyncadd (%p8277_p6), %s528_s21, 4294963200  ;;  %s6027_s14 = sshll.u32 %s8255_s30, 4  ;;  %s10837_s20 = sld [smem:[#allocation41_spill]]  ;;  %vm639_vm0 = vcmask 523264   ;;  %v6069_v8 = vld [vmem:[%s10769_s8] ss:$0 sm:$0xff] }
  0x47   : > { %p593_p10 = scmp.lt.s32.totalorder %s6027_s14, 63  ;;  %s10838_s2 = sld [smem:[#allocation42_spill]]  ;;  %vm1377_vm1 = vcmask 130048  }
  0x48   : > { %s8134_s21 = smov 112   ;;  %s8135_s27 = smov 96  }
  0x49   : > { %s10914_s14 = smov (!%p593_p10, %s6027_s14), 63  ;;  %s1375_s29 = sld [smem:[#allocation3]] }
  0x4a   : > { %s10821_s16 = sshll.u32 %s10914_s14, 2  ;;  %s9170_s1 = scalar_lea.vmem [#allocation7], %s6025_s26 }
  0x4b   : > { %s8136_s26 = smov 80   ;;  %p10902_p11 = scmp.ne.s32.totalorder %s10834_s24, 0 }
  0x4c   : > { %s8358_s19 = scalar_lea.vmem %s10837_s20, %s10821_s16 }
  0x4d   : > { %v6765_v0 = vld [vmem:[%s8358_s19 + $0x20] sm:$0xff]   ;;  %v6766_v1 = vld [vmem:[%s8358_s19 + $0x28] sm:$0xff]   ;;  %v6767_v6 = vld [vmem:[%s8358_s19 + $0x30] sm:$0xff]  }
  0x4e   : > { %v8362_v2 = vunpack.c.l.bf16 %v6765_v0  ;;  %v8364_v3 = vunpack.c.l.bf16 %v6766_v1  ;;  %v8366_v4 = vunpack.c.h.bf16 %v6765_v0  ;;  %v8368_v5 = vunpack.c.h.bf16 %v6766_v1  ;;  %v6768_v7 = vld [vmem:[%s8358_s19 + $0x38] sm:$0xff]   ;;  %v6443_v11 = vld [vmem:[%s8358_s19] sm:$0xff]   ;;  %v6762_v16 = vld [vmem:[%s8358_s19 + $0x8] sm:$0xff]  }
  0x4f   : > { %v8375_v9 = vunpack.c.l.bf16 %v6767_v6  ;;  %v8377_v10 = vunpack.c.h.bf16 %v6767_v6  ;;  %v8389_v19 = vunpack.c.l.bf16 %v6768_v7  ;;  %v8391_v20 = vunpack.c.h.bf16 %v6768_v7  ;;  %v6763_v21 = vld [vmem:[%s8358_s19 + $0x10] sm:$0xff]   ;;  %v6764_v26 = vld [vmem:[%s8358_s19 + $0x18] sm:$0xff]   ;;  %s1376_s20 = ssub.f32 1.0, %s1375_s29  ;;  %s5891_s19 = scalar_lea.sflag [#allocation6], %s8337_s18 }
  0x50   : > { %v664_v12 = vsel %vm639_vm0, %v8362_v2, 0.0  ;;  %v1351_v13 = vadd.f32 %v8362_v2, %v6069_v8  ;;  %v670_v14 = vsel %vm639_vm0, %v8364_v3, 0.0  ;;  %v1353_v15 = vadd.f32 %v8364_v3, %v6069_v8 }
  0x51   : > { %665 = vadd.xlane.f32.xlu0 %v664_v12  ;;  %671 = vadd.xlane.f32.xlu1 %v670_v14  ;;  %v1352_v17 = vadd.f32 %v8366_v4, %v6069_v8  ;;  %v1354_v18 = vadd.f32 %v8368_v5, %v6069_v8  ;;  %v667_v22 = vsel %vm639_vm0, %v8366_v4, 0.0  ;;  %v673_v23 = vsel %vm639_vm0, %v8368_v5, 0.0 }
  0x52   : > { %1367 = vst.msk [vmem:[#allocation2 + $0x40] sm:$0xff] %vm639_vm0, %v1351_v13  ;;  %1369 = vst.msk [vmem:[#allocation2 + $0x50] sm:$0xff] %vm639_vm0, %v1353_v15  ;;  %v1355_v24 = vadd.f32 %v8375_v9, %v6069_v8  ;;  %v1356_v25 = vadd.f32 %v8377_v10, %v6069_v8  ;;  %v676_v27 = vsel %vm639_vm0, %v8375_v9, 0.0  ;;  %v679_v28 = vsel %vm639_vm0, %v8377_v10, 0.0 }
  0x53   : > { %1368 = vst.msk [vmem:[#allocation2 + $0x48] sm:$0xff] %vm639_vm0, %v1352_v17  ;;  %1370 = vst.msk [vmem:[#allocation2 + $0x58] sm:$0xff] %vm639_vm0, %v1354_v18  ;;  %v1357_v29 = vadd.f32 %v8389_v19, %v6069_v8  ;;  %v1358_v30 = vadd.f32 %v8391_v20, %v6069_v8  ;;  %v8413_v31 = vunpack.c.l.bf16 %v6443_v11  ;;  %v8415_v32 = vunpack.c.h.bf16 %v6443_v11 }
  0x54   : > { %1371 = vst.msk [vmem:[#allocation2 + $0x60] sm:$0xff] %vm639_vm0, %v1355_v24  ;;  %1372 = vst.msk [vmem:[#allocation2 + $0x68] sm:$0xff] %vm639_vm0, %v1356_v25  ;;  %v8419_v33 = vunpack.c.l.bf16 %v6762_v16  ;;  %v8421_v34 = vunpack.c.h.bf16 %v6762_v16  ;;  %v8425_v37 = vunpack.c.l.bf16 %v6763_v21  ;;  %v8427_v38 = vunpack.c.h.bf16 %v6763_v21 }
  0x55   : > { %668 = vadd.xlane.f32.xlu0 %v667_v22  ;;  %674 = vadd.xlane.f32.xlu1 %v673_v23  ;;  %1373 = vst.msk [vmem:[#allocation2 + $0x70] sm:$0xff] %vm639_vm0, %v1357_v29  ;;  %1374 = vst.msk [vmem:[#allocation2 + $0x78] sm:$0xff] %vm639_vm0, %v1358_v30  ;;  %v1343_v35 = vadd.f32 %v8413_v31, %v6069_v8  ;;  %v1344_v36 = vadd.f32 %v8415_v32, %v6069_v8  ;;  %v8431_v41 = vunpack.c.l.bf16 %v6764_v26 }
  0x56   : > { %v1345_v39 = vadd.f32 %v8419_v33, %v6069_v8  ;;  %v1346_v40 = vadd.f32 %v8421_v34, %v6069_v8  ;;  %v8433_v42 = vunpack.c.h.bf16 %v6764_v26  ;;  %v1347_v43 = vadd.f32 %v8425_v37, %v6069_v8 }
  0x57   : > { %1359 = vst.msk [vmem:[#allocation2] sm:$0xff] %vm639_vm0, %v1343_v35  ;;  %1360 = vst.msk [vmem:[#allocation2 + $0x8] sm:$0xff] %vm639_vm0, %v1344_v36  ;;  %v1348_v44 = vadd.f32 %v8427_v38, %v6069_v8  ;;  %v682_v45 = vsel %vm639_vm0, %v8389_v19, 0.0  ;;  %v685_v46 = vsel %vm639_vm0, %v8391_v20, 0.0  ;;  %v1349_v47 = vadd.f32 %v8431_v41, %v6069_v8 }
  0x58   : > { %1361 = vst.msk [vmem:[#allocation2 + $0x10] sm:$0xff] %vm639_vm0, %v1345_v39  ;;  %1362 = vst.msk [vmem:[#allocation2 + $0x18] sm:$0xff] %vm639_vm0, %v1346_v40  ;;  %v1350_v48 = vadd.f32 %v8433_v42, %v6069_v8  ;;  %v640_v49 = vsel %vm639_vm0, %v8413_v31, 0.0  ;;  %v643_v50 = vsel %vm639_vm0, %v8415_v32, 0.0  ;;  %v646_v51 = vsel %vm639_vm0, %v8419_v33, 0.0 }
  0x59   : > { %677 = vadd.xlane.f32.xlu0 %v676_v27  ;;  %680 = vadd.xlane.f32.xlu1 %v679_v28  ;;  %1363 = vst.msk [vmem:[#allocation2 + $0x20] sm:$0xff] %vm639_vm0, %v1347_v43  ;;  %1364 = vst.msk [vmem:[#allocation2 + $0x28] sm:$0xff] %vm639_vm0, %v1348_v44  ;;  %v649_v52 = vsel %vm639_vm0, %v8421_v34, 0.0  ;;  %v652_v53 = vsel %vm639_vm0, %v8425_v37, 0.0  ;;  %v655_v54 = vsel %vm639_vm0, %v8427_v38, 0.0  ;;  %v658_v55 = vsel %vm639_vm0, %v8431_v41, 0.0 }
  0x5a   : > { %1365 = vst.msk [vmem:[#allocation2 + $0x30] sm:$0xff] %vm639_vm0, %v1349_v47  ;;  %1366 = vst.msk [vmem:[#allocation2 + $0x38] sm:$0xff] %vm639_vm0, %v1350_v48  ;;  %v661_v56 = vsel %vm639_vm0, %v8433_v42, 0.0 }
  0x5d   : > { %683 = vadd.xlane.f32.xlu0 %v682_v45  ;;  %686 = vadd.xlane.f32.xlu1 %v685_v46 }
  0x61   : > { %641 = vadd.xlane.f32.xlu0 %v640_v49  ;;  %644 = vadd.xlane.f32.xlu1 %v643_v50 }
  0x65   : > { %647 = vadd.xlane.f32.xlu0 %v646_v51  ;;  %650 = vadd.xlane.f32.xlu1 %v649_v52 }
  0x69   : > { %653 = vadd.xlane.f32.xlu0 %v652_v53  ;;  %656 = vadd.xlane.f32.xlu1 %v655_v54 }
  0x6d   : > { %659 = vadd.xlane.f32.xlu0 %v658_v55  ;;  %662 = vadd.xlane.f32.xlu1 %v661_v56 }
  0xde   : > { %v666_v57 = vpop.xlane.xlu0 %665  ;;  %v672_v58 = vpop.xlane.xlu1 %671 }
  0xdf   : > { %v697_v59 = vmul.f32 0.015625, %v666_v57  ;;  %v699_v60 = vmul.f32 0.015625, %v672_v58 }
  0xe1   : > { %v8468_v61 = vsub.f32 %v8362_v2, %v697_v59  ;;  %v8471_v62 = vsub.f32 %v8364_v3, %v699_v60 }
  0xe2   : > { %v669_v63 = vpop.xlane.xlu0 %668  ;;  %v675_v0 = vpop.xlane.xlu1 %674 }
  0xe3   : > { %v698_v1 = vmul.f32 0.015625, %v669_v63  ;;  %v700_v6 = vmul.f32 0.015625, %v675_v0  ;;  %v729_v7 = vmul.f32 %v8468_v61, %v8468_v61  ;;  %v731_v8 = vmul.f32 %v8471_v62, %v8471_v62 }
  0xe5   : > { %v8478_v11 = vsub.f32 %v8366_v4, %v698_v1  ;;  %v8481_v12 = vsub.f32 %v8368_v5, %v700_v6  ;;  %v761_v2 = vsel %vm639_vm0, %v729_v7, 0.0  ;;  %v767_v14 = vsel %vm639_vm0, %v731_v8, 0.0 }
  0xe6   : > { %v678_v3 = vpop.xlane.xlu0 %677  ;;  %762 = vadd.xlane.f32.xlu0 %v761_v2  ;;  %v681_v13 = vpop.xlane.xlu1 %680 }
  0xe7   : > { %v701_v15 = vmul.f32 0.015625, %v678_v3  ;;  %v702_v16 = vmul.f32 0.015625, %v681_v13  ;;  %v730_v17 = vmul.f32 %v8478_v11, %v8478_v11  ;;  %v732_v18 = vmul.f32 %v8481_v12, %v8481_v12 }
  0xe9   : > { %v8490_v4 = vsub.f32 %v8375_v9, %v701_v15  ;;  %v8493_v5 = vsub.f32 %v8377_v10, %v702_v16  ;;  %v764_v21 = vsel %vm639_vm0, %v730_v17, 0.0  ;;  %v770_v24 = vsel %vm639_vm0, %v732_v18, 0.0  ;;  %v7590_v18 = vld [vmem:[%s10765_s4 + $0x8] sm:$0xff]  }
  0xea   : > { %v684_v22 = vpop.xlane.xlu0 %683  ;;  %765 = vadd.xlane.f32.xlu1 %v764_v21  ;;  %768 = vadd.xlane.f32.xlu0 %v767_v14  ;;  %v687_v23 = vpop.xlane.xlu1 %686  ;;  %v7591_v21 = vld [vmem:[%s10765_s4 + $0x10] sm:$0xff]  }
  0xeb   : > { %v703_v25 = vmul.f32 0.015625, %v684_v22  ;;  %v704_v26 = vmul.f32 0.015625, %v687_v23  ;;  %v733_v27 = vmul.f32 %v8490_v4, %v8490_v4  ;;  %v734_v9 = vmul.f32 %v8493_v5, %v8493_v5  ;;  %v7592_v22 = vld [vmem:[%s10765_s4 + $0x18] sm:$0xff]   ;;  %v8578_v23 = vld [vmem:[%s10766_s5] sm:$0xff]  }
  0xed   : > { %v8502_v28 = vsub.f32 %v8389_v19, %v703_v25  ;;  %v8505_v10 = vsub.f32 %v8391_v20, %v704_v26  ;;  %v773_v29 = vsel %vm639_vm0, %v733_v27, 0.0  ;;  %v776_v35 = vsel %vm639_vm0, %v734_v9, 0.0 }
  0xee   : > { %771 = vadd.xlane.f32.xlu1 %v770_v24  ;;  %774 = vadd.xlane.f32.xlu0 %v773_v29  ;;  %v642_v30 = vpop.xlane.xlu0 %641  ;;  %v645_v36 = vpop.xlane.xlu1 %644  ;;  %v8584_v24 = vld [vmem:[%s10767_s6] sm:$0xff]  }
  0xef   : > { %v689_v39 = vmul.f32 0.015625, %v642_v30  ;;  %v690_v40 = vmul.f32 0.015625, %v645_v36  ;;  %v735_v43 = vmul.f32 %v8502_v28, %v8502_v28  ;;  %v736_v19 = vmul.f32 %v8505_v10, %v8505_v10 }
  0xf1   : > { %v8514_v44 = vsub.f32 %v8413_v31, %v689_v39  ;;  %v8517_v20 = vsub.f32 %v8415_v32, %v690_v40  ;;  %v779_v45 = vsel %vm639_vm0, %v735_v43, 0.0  ;;  %v782_v47 = vsel %vm639_vm0, %v736_v19, 0.0 }
  0xf2   : > { %777 = vadd.xlane.f32.xlu1 %v776_v35  ;;  %780 = vadd.xlane.f32.xlu0 %v779_v45  ;;  %v648_v46 = vpop.xlane.xlu0 %647  ;;  %v651_v48 = vpop.xlane.xlu1 %650 }
  0xf3   : > { %v691_v49 = vmul.f32 0.015625, %v648_v46  ;;  %v692_v50 = vmul.f32 0.015625, %v651_v48  ;;  %v721_v51 = vmul.f32 %v8514_v44, %v8514_v44  ;;  %v722_v31 = vmul.f32 %v8517_v20, %v8517_v20 }
  0xf5   : > { %v8526_v52 = vsub.f32 %v8419_v33, %v691_v49  ;;  %v8529_v32 = vsub.f32 %v8421_v34, %v692_v50  ;;  %v737_v53 = vsel %vm639_vm0, %v721_v51, 0.0  ;;  %v740_v55 = vsel %vm639_vm0, %v722_v31, 0.0 }
  0xf6   : > { %783 = vadd.xlane.f32.xlu1 %v782_v47  ;;  %738 = vadd.xlane.f32.xlu0 %v737_v53  ;;  %v654_v54 = vpop.xlane.xlu0 %653  ;;  %v657_v56 = vpop.xlane.xlu1 %656 }
  0xf7   : > { %v693_v57 = vmul.f32 0.015625, %v654_v54  ;;  %v694_v58 = vmul.f32 0.015625, %v657_v56  ;;  %v723_v59 = vmul.f32 %v8526_v52, %v8526_v52  ;;  %v724_v33 = vmul.f32 %v8529_v32, %v8529_v32 }
  0xf9   : > { %v8538_v60 = vsub.f32 %v8425_v37, %v693_v57  ;;  %v8541_v34 = vsub.f32 %v8427_v38, %v694_v58  ;;  %v743_v63 = vsel %vm639_vm0, %v723_v59, 0.0  ;;  %v746_v1 = vsel %vm639_vm0, %v724_v33, 0.0  ;;  %v8591_v33 = vld [vmem:[%s10838_s2] ss:$0 sm:$0xff] }
  0xfa   : > { %741 = vadd.xlane.f32.xlu1 %v740_v55  ;;  %744 = vadd.xlane.f32.xlu0 %v743_v63  ;;  %v660_v0 = vpop.xlane.xlu0 %659  ;;  %v663_v6 = vpop.xlane.xlu1 %662 }
  0xfb   : > { %v695_v7 = vmul.f32 0.015625, %v660_v0  ;;  %v696_v8 = vmul.f32 0.015625, %v663_v6  ;;  %v725_v2 = vmul.f32 %v8538_v60, %v8538_v60  ;;  %v726_v37 = vmul.f32 %v8541_v34, %v8541_v34 }
  0xfd   : > { %v8550_v3 = vsub.f32 %v8431_v41, %v695_v7  ;;  %v8553_v38 = vsub.f32 %v8433_v42, %v696_v8  ;;  %v749_v13 = vsel %vm639_vm0, %v725_v2, 0.0  ;;  %v752_v14 = vsel %vm639_vm0, %v726_v37, 0.0  ;;  %v7589_v41 = vld [vmem:[%s10765_s4] sm:$0xff]  }
  0xfe   : > { %747 = vadd.xlane.f32.xlu1 %v746_v1  ;;  %750 = vadd.xlane.f32.xlu0 %v749_v13 }
  0xff   : > { %v727_v15 = vmul.f32 %v8550_v3, %v8550_v3  ;;  %v728_v16 = vmul.f32 %v8553_v38, %v8553_v38  ;;  %7495 = vmatprep.subr.bf16.mxu1 %v7589_v41  ;;  %7095 = vmatprep.subr.bf16.mxu0 %v7589_v41 }
 0x100   : > { %7499 = vmatpush3.bf16.msra.mxu1 %v7589_v41  ;;  %7096 = vmatpush3.bf16.msra.mxu0 %v7589_v41 }
 0x101   : > { %v755_v17 = vsel %vm639_vm0, %v727_v15, 0.0  ;;  %v758_v42 = vsel %vm639_vm0, %v728_v16, 0.0  ;;  %7496 = vmatprep.subr.bf16.mxu1 %v7590_v18  ;;  %7097 = vmatprep.subr.bf16.mxu0 %v7590_v18 }
 0x102   : > { %753 = vadd.xlane.f32.xlu1 %v752_v14  ;;  %756 = vadd.xlane.f32.xlu0 %v755_v17  ;;  %v8598_v14 = vld [vmem:[%s10764_s3] ss:$0 sm:$0xff] }
 0x104   : > { %7500 = vmatpush3.bf16.msra.mxu1 %v7590_v18  ;;  %7098 = vmatpush3.bf16.msra.mxu0 %v7590_v18 }
 0x105   : > { %7497 = vmatprep.subr.bf16.mxu1 %v7591_v21  ;;  %7099 = vmatprep.subr.bf16.mxu0 %v7591_v21 }
 0x106   : > { %759 = vadd.xlane.f32.xlu1 %v758_v42 }
 0x108   : > { %7501 = vmatpush3.bf16.msra.mxu1 %v7591_v21  ;;  %7100 = vmatpush3.bf16.msra.mxu0 %v7591_v21 }
 0x109   : > { %7498 = vmatprep.subr.bf16.mxu1 %v7592_v22  ;;  %7101 = vmatprep.subr.bf16.mxu0 %v7592_v22 }
 0x10c   : > { %7502 = vmatpush3.bf16.msra.mxu1 %v7592_v22  ;;  %7102 = vmatpush3.bf16.msra.mxu0 %v7592_v22 }
 0x10d   : > { %7119 = vmatprep.subr.bf16.mxu1 %v8578_v23  ;;  %7143 = vmatprep.subr.bf16.mxu0 %v8584_v24 }
 0x173   : > { %v763_v25 = vpop.xlane.xlu0 %762 }
 0x174   : > { %v793_v26 = vmul.f32 0.015625, %v763_v25 }
 0x176   : > { %v809_v27 = vadd.f32 1e-05, %v793_v26 }
 0x177   : > { %v766_v9 = vpop.xlane.xlu1 %765  ;;  %v769_v29 = vpop.xlane.xlu0 %768 }
 0x178   : > { %7633 = vrsqrt.f32 %v809_v27  ;;  %v794_v30 = vmul.f32 0.015625, %v766_v9  ;;  %v795_v35 = vmul.f32 0.015625, %v769_v29 }
 0x17a   : > { %v810_v36 = vadd.f32 1e-05, %v794_v30  ;;  %v811_v39 = vadd.f32 1e-05, %v795_v35 }
 0x17b   : > { %v772_v40 = vpop.xlane.xlu1 %771  ;;  %v775_v43 = vpop.xlane.xlu0 %774 }
 0x17c   : > { %7635 = vrsqrt.f32 %v810_v36  ;;  %v796_v19 = vmul.f32 0.015625, %v772_v40  ;;  %v797_v45 = vmul.f32 0.015625, %v775_v43 }
 0x17d   : > { %7637 = vrsqrt.f32 %v811_v39 }
 0x17e   : > { %v812_v46 = vadd.f32 1e-05, %v796_v19  ;;  %v813_v47 = vadd.f32 1e-05, %v797_v45 }
 0x17f   : > { %v778_v48 = vpop.xlane.xlu1 %777  ;;  %v781_v49 = vpop.xlane.xlu0 %780 }
 0x180   : > { %7639 = vrsqrt.f32 %v812_v46  ;;  %v798_v50 = vmul.f32 0.015625, %v778_v48  ;;  %v799_v51 = vmul.f32 0.015625, %v781_v49 }
 0x181   : > { %7641 = vrsqrt.f32 %v813_v47 }
 0x182   : > { %v7634_v31 = vpop.eup %7633  ;;  %v814_v53 = vadd.f32 1e-05, %v798_v50  ;;  %v815_v54 = vadd.f32 1e-05, %v799_v51 }
 0x183   : > { %v784_v55 = vpop.xlane.xlu1 %783  ;;  %v739_v56 = vpop.xlane.xlu0 %738  ;;  %v841_v57 = vmul.f32 %v7634_v31, %v8468_v61  ;;  %v7594_v31 = vld [vmem:[%s10766_s5 + $0x8] sm:$0xff]  }
 0x184   : > { %7643 = vrsqrt.f32 %v814_v53  ;;  %v800_v58 = vmul.f32 0.015625, %v784_v55  ;;  %v785_v59 = vmul.f32 0.015625, %v739_v56 }
 0x185   : > { %7645 = vrsqrt.f32 %v815_v54  ;;  %v863_v37 = vmul.f32 %v8591_v33, %v841_v57 }
 0x186   : > { %v7636_v63 = vpop.eup %7635  ;;  %v816_v0 = vadd.f32 1e-05, %v800_v58  ;;  %v801_v1 = vadd.f32 1e-05, %v785_v59 }
 0x187   : > { %v7638_v6 = vpop.eup %7637  ;;  %v742_v7 = vpop.xlane.xlu1 %741  ;;  %v842_v2 = vmul.f32 %v7636_v63, %v8478_v11  ;;  %v885_v22 = vadd.f32 %v8598_v14, %v863_v37 }
 0x188   : > { %v745_v8 = vpop.xlane.xlu0 %744  ;;  %7647 = vrsqrt.f32 %v816_v0  ;;  %v786_v61 = vmul.f32 0.015625, %v742_v7  ;;  %v843_v15 = vmul.f32 %v7638_v6, %v8471_v62  ;;  %v7595_v7 = vld [vmem:[%s10766_s5 + $0x10] sm:$0xff]  }
 0x189   : > { %v787_v13 = vmul.f32 0.015625, %v745_v8  ;;  %7649 = vrsqrt.f32 %v801_v1  ;;  %v864_v16 = vmul.f32 %v8591_v33, %v842_v2 }
 0x18a   : > { %v7640_v17 = vpop.eup %7639  ;;  %v802_v41 = vadd.f32 1e-05, %v786_v61  ;;  %v865_v27 = vmul.f32 %v8591_v33, %v843_v15 }
 0x18b   : > { %v803_v42 = vadd.f32 1e-05, %v787_v13  ;;  %v7642_v18 = vpop.eup %7641  ;;  %v748_v11 = vpop.xlane.xlu1 %747  ;;  %v886_v25 = vadd.f32 %v8598_v14, %v864_v16  ;;  %v844_v26 = vmul.f32 %v7640_v17, %v8481_v12  ;;  %v7596_v17 = vld [vmem:[%s10766_s5 + $0x18] sm:$0xff]  }
 0x18c   : > { %v751_v21 = vpop.xlane.xlu0 %750  ;;  %7651 = vrsqrt.f32 %v802_v41  ;;  %v788_v9 = vmul.f32 0.015625, %v748_v11  ;;  %v845_v35 = vmul.f32 %v7642_v18, %v8490_v4  ;;  %v887_v45 = vadd.f32 %v8598_v14, %v865_v27 }
 0x18d   : > { %v789_v62 = vmul.f32 0.015625, %v751_v21  ;;  %7653 = vrsqrt.f32 %v803_v42  ;;  %v8606_v29 = vpack.c.bf16 %v886_v25, %v885_v22  ;;  %v866_v30 = vmul.f32 %v8591_v33, %v844_v26 }
 0x18e   : > { %v7644_v36 = vpop.eup %7643  ;;  %v804_v39 = vadd.f32 1e-05, %v788_v9  ;;  %v867_v48 = vmul.f32 %v8591_v33, %v845_v35 }
 0x18f   : > { %v805_v40 = vadd.f32 1e-05, %v789_v62  ;;  %v7646_v43 = vpop.eup %7645  ;;  %v754_v19 = vpop.xlane.xlu1 %753  ;;  %7111 = vmatprep.mubr.msk.bf16.mxu1 %vm639_vm0, %v8606_v29  ;;  %v888_v46 = vadd.f32 %v8598_v14, %v866_v30  ;;  %v846_v47 = vmul.f32 %v7644_v36, %v8493_v5 }
 0x190   : > { %v757_v12 = vpop.xlane.xlu0 %756  ;;  %7655 = vrsqrt.f32 %v804_v39  ;;  %v790_v49 = vmul.f32 0.015625, %v754_v19  ;;  %v847_v50 = vmul.f32 %v7646_v43, %v8502_v28  ;;  %v889_v58 = vadd.f32 %v8598_v14, %v867_v48 }
 0x191   : > { %v791_v4 = vmul.f32 0.015625, %v757_v12  ;;  %7657 = vrsqrt.f32 %v805_v40  ;;  %v8617_v51 = vpack.c.bf16 %v888_v46, %v887_v45  ;;  %v868_v53 = vmul.f32 %v8591_v33, %v846_v47  ;;  %v7598_v40 = vld [vmem:[%s10767_s6 + $0x8] sm:$0xff]   ;;  %v7599_v47 = vld [vmem:[%s10767_s6 + $0x10] sm:$0xff]  }
 0x192   : > { %v7648_v54 = vpop.eup %7647  ;;  %v806_v55 = vadd.f32 1e-05, %v790_v49  ;;  %v869_v63 = vmul.f32 %v8591_v33, %v847_v50 }
 0x193   : > { %v807_v56 = vadd.f32 1e-05, %v791_v4  ;;  %v7650_v5 = vpop.eup %7649  ;;  %v760_v57 = vpop.xlane.xlu1 %759  ;;  %7112 = vmatmul.mubr.msk.bf16.vlgmr.msra.gmra.mrb[0].mxu1 %vm639_vm0, %v8617_v51  ;;  %v890_v28 = vadd.f32 %v8598_v14, %v868_v53  ;;  %v848_v59 = vmul.f32 %v7648_v54, %v8505_v10 }
 0x194   : > { %7659 = vrsqrt.f32 %v806_v55  ;;  %v792_v0 = vmul.f32 0.015625, %v760_v57  ;;  %7120 = vmatpush3.bf16.msra.mxu1 %v8578_v23  ;;  %v833_v1 = vmul.f32 %v7650_v5, %v8514_v44  ;;  %v891_v23 = vadd.f32 %v8598_v14, %v869_v63 }
 0x195   : > { %7661 = vrsqrt.f32 %v807_v56  ;;  %7121 = vmatprep.subr.bf16.mxu1 %v7594_v31  ;;  %v8631_v6 = vpack.c.bf16 %v890_v28, %v889_v58  ;;  %v870_v8 = vmul.f32 %v8591_v33, %v848_v59 }
 0x196   : > { %v7652_v2 = vpop.eup %7651  ;;  %v808_v10 = vadd.f32 1e-05, %v792_v0  ;;  %v855_v13 = vmul.f32 %v8591_v33, %v833_v1 }
 0x197   : > { %v7654_v37 = vpop.eup %7653  ;;  %7115 = vmatprep.mubr.msk.bf16.mxu1 %vm639_vm0, %v8631_v6  ;;  %v892_v44 = vadd.f32 %v8598_v14, %v870_v8  ;;  %v834_v61 = vmul.f32 %v7652_v2, %v8517_v20 }
 0x198   : > { %7663 = vrsqrt.f32 %v808_v10  ;;  %7122 = vmatpush3.bf16.msra.mxu1 %v7594_v31  ;;  %v835_v15 = vmul.f32 %v7654_v37, %v8526_v52  ;;  %v877_v20 = vadd.f32 %v8598_v14, %v855_v13 }
 0x199   : > { %7123 = vmatprep.subr.bf16.mxu1 %v7595_v7  ;;  %v8644_v16 = vpack.c.bf16 %v892_v44, %v891_v23  ;;  %v856_v41 = vmul.f32 %v8591_v33, %v834_v61 }
 0x19a   : > { %v7656_v42 = vpop.eup %7655  ;;  %v857_v21 = vmul.f32 %v8591_v33, %v835_v15 }
 0x19b   : > { %v7658_v18 = vpop.eup %7657  ;;  %7116 = vmatmul.mubr.msk.bf16.gmra.mrb[4].mxu1 %vm639_vm0, %v8644_v16  ;;  %v878_v11 = vadd.f32 %v8598_v14, %v856_v41  ;;  %v836_v52 = vmul.f32 %v7656_v42, %v8529_v32 }
 0x19c   : > { %7124 = vmatpush3.bf16.msra.mxu1 %v7595_v7  ;;  %v837_v22 = vmul.f32 %v7658_v18, %v8538_v60  ;;  %v879_v30 = vadd.f32 %v8598_v14, %v857_v21 }
 0x19d   : > { %7125 = vmatprep.subr.bf16.mxu1 %v7596_v17  ;;  %v893_v25 = vpack.c.bf16 %v878_v11, %v877_v20  ;;  %v858_v26 = vmul.f32 %v8591_v33, %v836_v52 }
 0x19e   : > { %v7660_v27 = vpop.eup %7659  ;;  %v859_v9 = vmul.f32 %v8591_v33, %v837_v22 }
 0x19f   : > { %v7662_v62 = vpop.eup %7661  ;;  %7103 = vmatprep.mubr.msk.bf16.mxu0 %vm639_vm0, %v893_v25  ;;  %7127 = vmatprep.mubr.msk.bf16.mxu1 %vm639_vm0, %v893_v25  ;;  %v880_v32 = vadd.f32 %v8598_v14, %v858_v26  ;;  %v838_v35 = vmul.f32 %v7660_v27, %v8541_v34 }
 0x1a0   : > { %7126 = vmatpush3.bf16.msra.mxu1 %v7596_v17  ;;  %v839_v60 = vmul.f32 %v7662_v62, %v8550_v3  ;;  %v881_v19 = vadd.f32 %v8598_v14, %v859_v9 }
 0x1a1   : > { %v894_v36 = vpack.c.bf16 %v880_v32, %v879_v30  ;;  %v860_v39 = vmul.f32 %v8591_v33, %v838_v35 }
 0x1a2   : > { %v7664_v43 = vpop.eup %7663  ;;  %v861_v3 = vmul.f32 %v8591_v33, %v839_v60 }
 0x1a3   : > { %7104 = vmatmul.mubr.msk.bf16.vlgmr.msra.gmra.mrb[0].mxu0 %vm639_vm0, %v894_v36  ;;  %7128 = vmatmul.mubr.msk.bf16.vlgmr.msra.gmra.mrb[8].mxu1 %vm639_vm0, %v894_v36  ;;  %v882_v12 = vadd.f32 %v8598_v14, %v860_v39  ;;  %v840_v34 = vmul.f32 %v7664_v43, %v8553_v38 }
 0x1a4   : > { %7144 = vmatpush3.bf16.msra.mxu0 %v8584_v24  ;;  %v883_v48 = vadd.f32 %v8598_v14, %v861_v3  ;;  %v7600_v24 = vld [vmem:[%s10767_s6 + $0x18] sm:$0xff]  }
 0x1a5   : > { %v895_v45 = vpack.c.bf16 %v882_v12, %v881_v19  ;;  %7145 = vmatprep.subr.bf16.mxu0 %v7598_v40  ;;  %v862_v46 = vmul.f32 %v8591_v33, %v840_v34 }
 0x1a7   : > { %7107 = vmatprep.mubr.msk.bf16.mxu0 %vm639_vm0, %v895_v45  ;;  %7131 = vmatprep.mubr.msk.bf16.mxu1 %vm639_vm0, %v895_v45  ;;  %v884_v38 = vadd.f32 %v8598_v14, %v862_v46 }
 0x1a8   : > { %7146 = vmatpush3.bf16.msra.mxu0 %v7598_v40 }
 0x1a9   : > { %v896_v49 = vpack.c.bf16 %v884_v38, %v883_v48  ;;  %7147 = vmatprep.subr.bf16.mxu0 %v7599_v47 }
 0x1ab   : > { %7108 = vmatmul.mubr.msk.bf16.gmra.mrb[4].mxu0 %vm639_vm0, %v896_v49  ;;  %7132 = vmatmul.mubr.msk.bf16.gmra.mrb[12].mxu1 %vm639_vm0, %v896_v49 }
 0x1ac   : > { %7135 = vmatprep.mubr.msk.bf16.mxu1 %vm639_vm0, %v8606_v29  ;;  %7148 = vmatpush3.bf16.msra.mxu0 %v7599_v47 }
 0x1ad   : > { %7151 = vmatprep.mubr.msk.bf16.mxu0 %vm639_vm0, %v893_v25  ;;  %7149 = vmatprep.subr.bf16.mxu0 %v7600_v24 }
 0x1b0   : > { %7150 = vmatpush3.bf16.msra.mxu0 %v7600_v24 }
 0x1b3   : > { %7136 = vmatmul.mubr.msk.bf16.gmra.mrb[16].mxu1 %vm639_vm0, %v8617_v51  ;;  %7152 = vmatmul.mubr.msk.bf16.vlgmr.msra.gmra.mrb[8].mxu0 %vm639_vm0, %v894_v36 }
 0x1b4   : > { %7139 = vmatprep.mubr.msk.bf16.mxu1 %vm639_vm0, %v8631_v6  ;;  %7155 = vmatprep.mubr.msk.bf16.mxu0 %vm639_vm0, %v895_v45 }
 0x1bb   : > { %7140 = vmatmul.mubr.msk.bf16.gmra.mrb[20].mxu1 %vm639_vm0, %v8644_v16  ;;  %7156 = vmatmul.mubr.msk.bf16.gmra.mrb[12].mxu0 %vm639_vm0, %v896_v49 }
 0x1bc   : > { %7159 = vmatprep.mubr.msk.bf16.mxu0 %vm639_vm0, %v8606_v29 }
 0x1c3   : > { %7160 = vmatmul.mubr.msk.bf16.gmra.mrb[16].mxu0 %vm639_vm0, %v8617_v51 }
 0x1c4   : > { %7163 = vmatprep.mubr.msk.bf16.mxu0 %vm639_vm0, %v8631_v6 }
 0x1cb   : > { %7164 = vmatmul.mubr.msk.bf16.gmra.mrb[20].mxu0 %vm639_vm0, %v8644_v16 }
 0x266   : > { %v7113_v33 = vpop.f32.mrb[0].mxu1 }
 0x267   : > { %v1023_v14 = vpop.f32.mrb[1].mxu1 }
 0x268   : > { %v7114_v4 = vpop.f32.mrb[2].mxu1 }
 0x269   : > { %v8709_v50 = vpack.c.bf16 %v7114_v4, %v7113_v33  ;;  %v1026_v31 = vpop.f32.mrb[3].mxu1 }
 0x26a   : > { %v8711_v53 = vpack.c.bf16 %v1026_v31, %v1023_v14 }
 0x26b   : > { %10839 = vst [vmem:[#allocation14_spill] sm:$0xff] %v8709_v50 }
 0x26c   : > { %10840 = vst [vmem:[#allocation15_spill] sm:$0xff] %v8711_v53 }
 0x26e   : > { %v7117_v54 = vpop.f32.mrb[4].mxu1 }
 0x26f   : > { %v1039_v55 = vpop.f32.mrb[5].mxu1 }
 0x270   : > { %v7118_v29 = vpop.f32.mrb[6].mxu1 }
 0x271   : > { %v8713_v56 = vpack.c.bf16 %v7118_v29, %v7117_v54  ;;  %v1042_v51 = vpop.f32.mrb[7].mxu1 }
 0x272   : > { %v8715_v5 = vpack.c.bf16 %v1042_v51, %v1039_v55 }
 0x273   : > { %10841 = vst [vmem:[#allocation16_spill] sm:$0xff] %v8713_v56 }
 0x274   : > { %10842 = vst [vmem:[#allocation17_spill] sm:$0xff] %v8715_v5 }
 0x276   : > { %v7105_v57 = vpop.f32.mrb[0].mxu0  ;;  %v7129_v58 = vpop.f32.mrb[8].mxu1 }
 0x277   : > { %v991_v28 = vpop.f32.mrb[1].mxu0  ;;  %v1128_v59 = vpop.f32.mrb[9].mxu1 }
 0x278   : > { %v7106_v63 = vpop.f32.mrb[2].mxu0  ;;  %v7130_v0 = vpop.f32.mrb[10].mxu1 }
 0x279   : > { %v8717_v1 = vpack.c.bf16 %v7106_v63, %v7105_v57  ;;  %v8719_v6 = vpack.c.bf16 %v7130_v0, %v7129_v58  ;;  %v994_v7 = vpop.f32.mrb[3].mxu0  ;;  %v1131_v8 = vpop.f32.mrb[11].mxu1 }
 0x27a   : > { %v8721_v2 = vpack.c.bf16 %v994_v7, %v991_v28  ;;  %v8723_v10 = vpack.c.bf16 %v1131_v8, %v1128_v59 }
 0x27b   : > { %2209 = vrot.lane.b32.xlu1 %v8719_v6, %s8134_s21  ;;  %v1406_v52 = vsel %vm1377_vm1, %v8719_v6, 0 }
 0x27c   : > { %2207 = vrot.lane.b32.xlu0 %v8723_v10, %s8134_s21  ;;  %7503 = vmatprep.subr.msk.bf16.mxu1 %vm1377_vm1, %v8723_v10  ;;  %v1403_v37 = vsel %vm1377_vm1, %v8723_v10, 0 }
 0x27d   : > { %7183 = vmatprep.mubr.msk.bf16.mxu1 %vm1377_vm1, %v8721_v2  ;;  %7168 = vmatpush3.bf16.xpose.msra.mxu1 %v1403_v37 }
 0x27e   : > { %v7109_v23 = vpop.f32.mrb[4].mxu0  ;;  %v7133_v44 = vpop.f32.mrb[12].mxu1  ;;  %7504 = vmatprep.subr.msk.bf16.mxu1 %vm1377_vm1, %v8719_v6 }
 0x27f   : > { %v1007_v61 = vpop.f32.mrb[5].mxu0  ;;  %v1144_v13 = vpop.f32.mrb[13].mxu1 }
 0x280   : > { %v7110_v15 = vpop.f32.mrb[6].mxu0  ;;  %v7134_v16 = vpop.f32.mrb[14].mxu1 }
 0x281   : > { %v8737_v17 = vpack.c.bf16 %v7110_v15, %v7109_v23  ;;  %v8739_v41 = vpack.c.bf16 %v7134_v16, %v7133_v44  ;;  %v1010_v42 = vpop.f32.mrb[7].mxu0  ;;  %v1147_v18 = vpop.f32.mrb[15].mxu1 }
 0x282   : > { %v8741_v20 = vpack.c.bf16 %v1010_v42, %v1007_v61  ;;  %v8743_v11 = vpack.c.bf16 %v1147_v18, %v1144_v13 }
 0x283   : > { %10843 = vst [vmem:[#allocation18_spill] sm:$0xff] %v8737_v17  ;;  %v1412_v24 = vsel %vm1377_vm1, %v8739_v41, 0 }
 0x284   : > { %10844 = vst [vmem:[#allocation19_spill] sm:$0xff] %v8741_v20  ;;  %2211 = vrot.lane.b32.xlu1 %v8743_v11, %s8134_s21  ;;  %v1409_v39 = vsel %vm1377_vm1, %v8743_v11, 0 }
 0x285   : > { %7170 = vmatpush3.bf16.xpose.msra.mxu1 %v1406_v52 }
 0x286   : > { %v7137_v21 = vpop.f32.mrb[16].mxu1  ;;  %v7153_v22 = vpop.f32.mrb[8].mxu0  ;;  %7505 = vmatprep.subr.msk.bf16.mxu1 %vm1377_vm1, %v8743_v11 }
 0x287   : > { %v1160_v25 = vpop.f32.mrb[17].mxu1  ;;  %v1265_v26 = vpop.f32.mrb[9].mxu0 }
 0x288   : > { %2213 = vrot.lane.b32.xlu1 %v8739_v41, %s8134_s21  ;;  %v7138_v27 = vpop.f32.mrb[18].mxu1  ;;  %v7154_v9 = vpop.f32.mrb[10].mxu0 }
 0x289   : > { %v8753_v62 = vpack.c.bf16 %v7138_v27, %v7137_v21  ;;  %v8755_v30 = vpack.c.bf16 %v7154_v9, %v7153_v22  ;;  %v1163_v32 = vpop.f32.mrb[19].mxu1  ;;  %v1268_v35 = vpop.f32.mrb[11].mxu0 }
 0x28a   : > { %v8757_v60 = vpack.c.bf16 %v1163_v32, %v1160_v25  ;;  %v8759_v36 = vpack.c.bf16 %v1268_v35, %v1265_v26 }
 0x28b   : > { %10845 = vst [vmem:[#allocation20_spill] sm:$0xff] %v8755_v30  ;;  %v1418_v0 = vsel %vm1377_vm1, %v8753_v62, 0 }
 0x28c   : > { %10846 = vst [vmem:[#allocation21_spill] sm:$0xff] %v8759_v36  ;;  %2217 = vrot.lane.b32.xlu1 %v8753_v62, %s8134_s21  ;;  %2215 = vrot.lane.b32.xlu0 %v8757_v60, %s8134_s21  ;;  %v1415_v29 = vsel %vm1377_vm1, %v8757_v60, 0 }
 0x28d   : > { %7199 = vmatprep.subr.bf16.mxu0 %v8759_v36  ;;  %7172 = vmatpush3.bf16.xpose.msra.mxu1 %v1409_v39 }
 0x28e   : > { %7200 = vmatpush3.bf16.msra.mxu0 %v8759_v36  ;;  %v7141_v40 = vpop.f32.mrb[20].mxu1  ;;  %v7157_v43 = vpop.f32.mrb[12].mxu0  ;;  %7506 = vmatprep.subr.msk.bf16.mxu1 %vm1377_vm1, %v8739_v41 }
 0x28f   : > { %7201 = vmatprep.subr.bf16.mxu0 %v8755_v30  ;;  %v1176_v19 = vpop.f32.mrb[21].mxu1  ;;  %v1281_v12 = vpop.f32.mrb[13].mxu0 }
 0x290   : > { %2185 = vrot.lane.b32.xlu1 %v8717_v1, %s8134_s21  ;;  %2183 = vrot.lane.b32.xlu0 %v8721_v2, %s8134_s21  ;;  %v7142_v34 = vpop.f32.mrb[22].mxu1  ;;  %v7158_v3 = vpop.f32.mrb[14].mxu0 }
 0x291   : > { %v8776_v45 = vpack.c.bf16 %v7142_v34, %v7141_v40  ;;  %v8778_v46 = vpack.c.bf16 %v7158_v3, %v7157_v43  ;;  %v1179_v47 = vpop.f32.mrb[23].mxu1  ;;  %v1284_v48 = vpop.f32.mrb[15].mxu0 }
 0x292   : > { %v8780_v38 = vpack.c.bf16 %v1179_v47, %v1176_v19  ;;  %v8782_v49 = vpack.c.bf16 %v1284_v48, %v1281_v12  ;;  %7202 = vmatpush3.bf16.msra.mxu0 %v8755_v30 }
 0x293   : > { %10847 = vst [vmem:[#allocation22_spill] sm:$0xff] %v8778_v46  ;;  %v1424_v8 = vsel %vm1377_vm1, %v8776_v45, 0 }
 0x294   : > { %10848 = vst [vmem:[#allocation23_spill] sm:$0xff] %v8782_v49  ;;  %2221 = vrot.lane.b32.xlu1 %v8776_v45, %s8134_s21  ;;  %2219 = vrot.lane.b32.xlu0 %v8780_v38, %s8134_s21  ;;  %v1421_v7 = vsel %vm1377_vm1, %v8780_v38, 0 }
 0x295   : > { %7203 = vmatprep.subr.bf16.mxu0 %v8782_v49  ;;  %7174 = vmatpush3.bf16.xpose.msra.mxu1 %v1412_v24 }
 0x296   : > { %7204 = vmatpush3.bf16.msra.mxu0 %v8782_v49  ;;  %v7161_v33 = vpop.f32.mrb[16].mxu0  ;;  %7507 = vmatprep.subr.msk.bf16.mxu1 %vm1377_vm1, %v8757_v60 }
 0x297   : > { %7205 = vmatprep.subr.bf16.mxu0 %v8778_v46  ;;  %v1297_v14 = vpop.f32.mrb[17].mxu0 }
 0x298   : > { %2189 = vrot.lane.b32.xlu1 %v8737_v17, %s8134_s21  ;;  %v7162_v4 = vpop.f32.mrb[18].mxu0  ;;  %2187 = vrot.lane.b32.xlu0 %v8741_v20, %s8134_s21 }
 0x299   : > { %v8800_v31 = vpack.c.bf16 %v7162_v4, %v7161_v33  ;;  %v1300_v54 = vpop.f32.mrb[19].mxu0 }
 0x29a   : > { %v8802_v55 = vpack.c.bf16 %v1300_v54, %v1297_v14  ;;  %7206 = vmatpush3.bf16.msra.mxu0 %v8778_v46 }
 0x29b   : > { %10849 = vst [vmem:[#allocation24_spill] sm:$0xff] %v8800_v31 }
 0x29c   : > { %10850 = vst [vmem:[#allocation25_spill] sm:$0xff] %v8802_v55  ;;  %2193 = vrot.lane.b32.xlu1 %v8709_v50, %s8134_s21  ;;  %7207 = vmatprep.subr.bf16.mxu0 %v8802_v55 }
 0x29d   : > { %2191 = vrot.lane.b32.xlu0 %v8711_v53, %s8134_s21  ;;  %7176 = vmatpush3.bf16.xpose.msra.mxu1 %v1415_v29 }
 0x29e   : > { %7208 = vmatpush3.bf16.msra.mxu0 %v8802_v55  ;;  %v7165_v51 = vpop.f32.mrb[20].mxu0  ;;  %7508 = vmatprep.subr.msk.bf16.mxu1 %vm1377_vm1, %v8753_v62 }
 0x29f   : > { %7209 = vmatprep.subr.bf16.mxu0 %v8800_v31  ;;  %v1313_v57 = vpop.f32.mrb[21].mxu0 }
 0x2a0   : > { %2197 = vrot.lane.b32.xlu1 %v8713_v56, %s8134_s21  ;;  %v7166_v58 = vpop.f32.mrb[22].mxu0 }
 0x2a1   : > { %v8818_v28 = vpack.c.bf16 %v7166_v58, %v7165_v51  ;;  %2195 = vrot.lane.b32.xlu0 %v8715_v5, %s8134_s21  ;;  %v1316_v59 = vpop.f32.mrb[23].mxu0 }
 0x2a2   : > { %v8822_v63 = vpack.c.bf16 %v1316_v59, %v1313_v57  ;;  %7210 = vmatpush3.bf16.msra.mxu0 %v8800_v31 }
 0x2a3   : > { %10851 = vst [vmem:[#allocation26_spill] sm:$0xff] %v8818_v28 }
 0x2a4   : > { %10852 = vst [vmem:[#allocation27_spill] sm:$0xff] %v8822_v63  ;;  %7211 = vmatprep.subr.bf16.mxu0 %v8822_v63 }
 0x2a5   : > { %7178 = vmatpush3.bf16.xpose.msra.mxu1 %v1418_v0 }
 0x2a6   : > { %7212 = vmatpush3.bf16.msra.mxu0 %v8822_v63  ;;  %7509 = vmatprep.subr.msk.bf16.mxu1 %vm1377_vm1, %v8780_v38 }
 0x2a7   : > { %7213 = vmatprep.subr.bf16.mxu0 %v8818_v28 }
 0x2aa   : > { %7214 = vmatpush3.bf16.msra.mxu0 %v8818_v28 }
 0x2ad   : > { %7180 = vmatpush3.bf16.xpose.msra.mxu1 %v1421_v7 }
 0x2ae   : > { %7510 = vmatprep.subr.msk.bf16.mxu1 %vm1377_vm1, %v8776_v45 }
 0x2b5   : > { %7182 = vmatpush3.bf16.xpose.msra.mxu1 %v1424_v8 }
 0x2bc   : > { %7184 = vmatmul.mubr.msk.bf16.vlgmr.msra.gmra.mrb[24].mxu1 %vm1377_vm1, %v8717_v1 }
 0x2bd   : > { %7187 = vmatprep.mubr.msk.bf16.mxu1 %vm1377_vm1, %v8741_v20 }
 0x2c4   : > { %7188 = vmatmul.mubr.msk.bf16.gmra.mrb[28].mxu1 %vm1377_vm1, %v8737_v17 }
 0x2c5   : > { %7191 = vmatprep.mubr.msk.bf16.mxu1 %vm1377_vm1, %v8711_v53 }
 0x2cc   : > { %7192 = vmatmul.mubr.msk.bf16.gmra.mrb[32].mxu1 %vm1377_vm1, %v8709_v50 }
 0x2cd   : > { %7195 = vmatprep.mubr.msk.bf16.mxu1 %vm1377_vm1, %v8715_v5 }
 0x2d4   : > { %7196 = vmatmul.mubr.msk.bf16.gmra.mrb[36].mxu1 %vm1377_vm1, %v8713_v56 }
 0x2ed   : > { %v2210_v44 = vpop.permute.xlu1 %2209 }
 0x2ee   : > { %v2208_v37 = vpop.permute.xlu0 %2207  ;;  %v2251_v61 = vsel %vm1377_vm1, %v2210_v44, 0 }
 0x2ef   : > { %7511 = vmatprep.subr.msk.bf16.mxu1 %vm1377_vm1, %v2208_v37  ;;  %v2248_v23 = vsel %vm1377_vm1, %v2208_v37, 0 }
 0x2f0   : > { %7250 = vmatpush3.bf16.xpose.msra.mxu1 %v2248_v23 }
 0x2f1   : > { %7512 = vmatprep.subr.msk.bf16.mxu1 %vm1377_vm1, %v2210_v44 }
 0x2f6   : > { %v2212_v13 = vpop.permute.xlu1 %2211 }
 0x2f7   : > { %v2254_v16 = vsel %vm1377_vm1, %v2212_v13, 0 }
 0x2f8   : > { %7252 = vmatpush3.bf16.xpose.msra.mxu1 %v2251_v61 }
 0x2f9   : > { %7513 = vmatprep.subr.msk.bf16.mxu1 %vm1377_vm1, %v2212_v13 }
 0x2fa   : > { %v2214_v42 = vpop.permute.xlu1 %2213 }
 0x2fb   : > { %v2257_v52 = vsel %vm1377_vm1, %v2214_v42, 0 }
 0x2fe   : > { %v2216_v15 = vpop.permute.xlu0 %2215  ;;  %v2218_v22 = vpop.permute.xlu1 %2217 }
 0x2ff   : > { %v2260_v21 = vsel %vm1377_vm1, %v2216_v15, 0  ;;  %v2263_v25 = vsel %vm1377_vm1, %v2218_v22, 0 }
 0x300   : > { %7254 = vmatpush3.bf16.xpose.msra.mxu1 %v2254_v16 }
 0x301   : > { %7514 = vmatprep.subr.msk.bf16.mxu1 %vm1377_vm1, %v2214_v42 }
 0x302   : > { %v2184_v18 = vpop.permute.xlu0 %2183  ;;  %v2186_v27 = vpop.permute.xlu1 %2185 }
 0x303   : > { %7265 = vmatprep.mubr.msk.bf16.mxu1 %vm1377_vm1, %v2184_v18 }
 0x306   : > { %v2220_v26 = vpop.permute.xlu0 %2219  ;;  %v2222_v32 = vpop.permute.xlu1 %2221 }
 0x307   : > { %v2266_v9 = vsel %vm1377_vm1, %v2220_v26, 0  ;;  %v2269_v35 = vsel %vm1377_vm1, %v2222_v32, 0 }
 0x308   : > { %7256 = vmatpush3.bf16.xpose.msra.mxu1 %v2257_v52 }
 0x309   : > { %7515 = vmatprep.subr.msk.bf16.mxu1 %vm1377_vm1, %v2216_v15 }
 0x30a   : > { %v2188_v39 = vpop.permute.xlu0 %2187  ;;  %v2190_v40 = vpop.permute.xlu1 %2189 }
 0x30e   : > { %v2194_v19 = vpop.permute.xlu1 %2193 }
 0x30f   : > { %v2192_v43 = vpop.permute.xlu0 %2191 }
 0x310   : > { %7258 = vmatpush3.bf16.xpose.msra.mxu1 %v2260_v21 }
 0x311   : > { %7516 = vmatprep.subr.msk.bf16.mxu1 %vm1377_vm1, %v2218_v22 }
 0x312   : > { %v2198_v34 = vpop.permute.xlu1 %2197 }
 0x313   : > { %v2196_v12 = vpop.permute.xlu0 %2195 }
 0x318   : > { %7260 = vmatpush3.bf16.xpose.msra.mxu1 %v2263_v25 }
 0x319   : > { %7517 = vmatprep.subr.msk.bf16.mxu1 %vm1377_vm1, %v2220_v26 }
 0x320   : > { %7262 = vmatpush3.bf16.xpose.msra.mxu1 %v2266_v9 }
 0x321   : > { %7518 = vmatprep.subr.msk.bf16.mxu1 %vm1377_vm1, %v2222_v32 }
 0x328   : > { %7264 = vmatpush3.bf16.xpose.msra.mxu1 %v2269_v35 }
 0x32f   : > { %7266 = vmatmul.mubr.msk.bf16.vlgmr.msra.gmra.mrb[40].mxu1 %vm1377_vm1, %v2186_v27 }
 0x330   : > { %7269 = vmatprep.mubr.msk.bf16.mxu1 %vm1377_vm1, %v2188_v39 }
 0x337   : > { %7270 = vmatmul.mubr.msk.bf16.gmra.mrb[44].mxu1 %vm1377_vm1, %v2190_v40 }
 0x338   : > { %7273 = vmatprep.mubr.msk.bf16.mxu1 %vm1377_vm1, %v2192_v43 }
 0x33f   : > { %7274 = vmatmul.mubr.msk.bf16.gmra.mrb[48].mxu1 %vm1377_vm1, %v2194_v19 }
 0x340   : > { %7277 = vmatprep.mubr.msk.bf16.mxu1 %vm1377_vm1, %v2196_v12 }
 0x347   : > { %7278 = vmatmul.mubr.msk.bf16.gmra.mrb[52].mxu1 %vm1377_vm1, %v2198_v34 }
 0x38f   : > { %v7185_v3 = vpop.f32.mrb[24].mxu1 }
 0x390   : > { %v8877_v47 = vmul.f32 0.25, %v7185_v3  ;;  %v1460_v48 = vpop.f32.mrb[25].mxu1 }
 0x391   : > { %v7186_v24 = vpop.f32.mrb[26].mxu1  ;;  %v8882_v4 = vmul.f32 0.25, %v1460_v48 }
 0x392   : > { %v1463_v33 = vpop.f32.mrb[27].mxu1  ;;  %1543 = vmax.xlane.f32.xlu0 %v8877_v47  ;;  %v8886_v29 = vmul.f32 0.25, %v7186_v24 }
 0x393   : > { %v8880_v14 = vmul.f32 0.25, %v1463_v33 }
 0x395   : > { %1541 = vmax.xlane.f32.xlu1 %v8880_v14 }
 0x396   : > { %1539 = vmax.xlane.f32.xlu0 %v8882_v4 }
 0x397   : > { %v7189_v54 = vpop.f32.mrb[28].mxu1 }
 0x398   : > { %v1476_v51 = vpop.f32.mrb[29].mxu1  ;;  %v8897_v37 = vmul.f32 0.25, %v7189_v54 }
 0x399   : > { %v7190_v57 = vpop.f32.mrb[30].mxu1  ;;  %v8891_v0 = vmul.f32 0.25, %v1476_v51 }
 0x39a   : > { %v8888_v58 = vmul.f32 0.25, %v7190_v57  ;;  %1545 = vmax.xlane.f32.xlu0 %v8886_v29  ;;  %v1479_v59 = vpop.f32.mrb[31].mxu1 }
 0x39b   : > { %v8894_v7 = vmul.f32 0.25, %v1479_v59 }
 0x39c   : > { %1553 = vmax.xlane.f32.xlu1 %v8888_v58 }
 0x39e   : > { %1547 = vmax.xlane.f32.xlu0 %v8891_v0 }
 0x39f   : > { %v7193_v8 = vpop.f32.mrb[32].mxu1 }
 0x3a0   : > { %1549 = vmax.xlane.f32.xlu1 %v8894_v7  ;;  %v1492_v23 = vpop.f32.mrb[33].mxu1  ;;  %v8909_v18 = vmul.f32 0.25, %v7193_v8 }
 0x3a1   : > { %v7194_v44 = vpop.f32.mrb[34].mxu1  ;;  %v8903_v15 = vmul.f32 0.25, %v1492_v23 }
 0x3a2   : > { %v8900_v61 = vmul.f32 0.25, %v7194_v44  ;;  %1551 = vmax.xlane.f32.xlu0 %v8897_v37  ;;  %v1495_v13 = vpop.f32.mrb[35].mxu1 }
 0x3a3   : > { %v8906_v16 = vmul.f32 0.25, %v1495_v13 }
 0x3a4   : > { %1561 = vmax.xlane.f32.xlu1 %v8900_v61 }
 0x3a6   : > { %1555 = vmax.xlane.f32.xlu0 %v8903_v15 }
 0x3a7   : > { %v7197_v42 = vpop.f32.mrb[36].mxu1 }
 0x3a8   : > { %1557 = vmax.xlane.f32.xlu1 %v8906_v16  ;;  %v1508_v52 = vpop.f32.mrb[37].mxu1  ;;  %v8921_v9 = vmul.f32 0.25, %v7197_v42 }
 0x3a9   : > { %v7198_v21 = vpop.f32.mrb[38].mxu1  ;;  %v8915_v26 = vmul.f32 0.25, %v1508_v52 }
 0x3aa   : > { %v8912_v22 = vmul.f32 0.25, %v7198_v21  ;;  %1559 = vmax.xlane.f32.xlu0 %v8909_v18  ;;  %v1511_v25 = vpop.f32.mrb[39].mxu1 }
 0x3ab   : > { %v8918_v27 = vmul.f32 0.25, %v1511_v25 }
 0x3ac   : > { %1569 = vmax.xlane.f32.xlu1 %v8912_v22 }
 0x3ae   : > { %1563 = vmax.xlane.f32.xlu0 %v8915_v26 }
 0x3b0   : > { %1565 = vmax.xlane.f32.xlu1 %v8918_v27 }
 0x3b2   : > { %1567 = vmax.xlane.f32.xlu0 %v8921_v9 }
 0x402   : > { %v8925_v32 = vpop.f32.mrb[40].mxu1 }
 0x403   : > { %v8927_v35 = vpop.f32.mrb[41].mxu1 }
 0x404   : > { %v8929_v39 = vpop.f32.mrb[42].mxu1 }
 0x405   : > { %v8931_v40 = vpop.f32.mrb[43].mxu1 }
 0x40a   : > { %v8933_v43 = vpop.f32.mrb[44].mxu1 }
 0x40b   : > { %v8935_v19 = vpop.f32.mrb[45].mxu1 }
 0x40c   : > { %v8937_v12 = vpop.f32.mrb[46].mxu1 }
 0x40d   : > { %v8939_v34 = vpop.f32.mrb[47].mxu1 }
 0x412   : > { %v8941_v3 = vpop.f32.mrb[48].mxu1 }
 0x413   : > { %v8943_v48 = vpop.f32.mrb[49].mxu1 }
 0x414   : > { %v8945_v24 = vpop.f32.mrb[50].mxu1 }
 0x415   : > { %v8947_v33 = vpop.f32.mrb[51].mxu1 }
 0x41a   : > { %v8949_v54 = vpop.f32.mrb[52].mxu1 }
 0x41b   : > { %v8951_v51 = vpop.f32.mrb[53].mxu1 }
 0x41c   : > { %v8953_v57 = vpop.f32.mrb[54].mxu1 }
 0x41d   : > { %10853 = vst [vmem:[#allocation28_spill] sm:$0xff] %v8953_v57  ;;  %v8955_v59 = vpop.f32.mrb[55].mxu1 }
 0x41f   : > { %v1544_v8 = vpop.xlane.xlu0 %1543 }
 0x420   : > { %v1573_v23 = vsub.f32 %v8877_v47, %v1544_v8 }
 0x422   : > { %v1591_v44 = vmul.f32 1.442695, %v1573_v23  ;;  %v1542_v52 = vpop.xlane.xlu1 %1541 }
 0x423   : > { %v1540_v13 = vpop.xlane.xlu0 %1539  ;;  %v1572_v63 = vsub.f32 %v8880_v14, %v1542_v52 }
 0x424   : > { %7665 = vpow2.f32 %v1591_v44  ;;  %v1571_v42 = vsub.f32 %v8882_v4, %v1540_v13 }
 0x425   : > { %v1589_v55 = vmul.f32 1.442695, %v1572_v63 }
 0x426   : > { %v1587_v21 = vmul.f32 1.442695, %v1571_v42 }
 0x427   : > { %v1546_v25 = vpop.xlane.xlu0 %1545 }
 0x428   : > { %7667 = vpow2.f32 %v1587_v21  ;;  %v1574_v46 = vsub.f32 %v8886_v29, %v1546_v25 }
 0x429   : > { %v1554_v30 = vpop.xlane.xlu1 %1553 }
 0x42a   : > { %v1593_v57 = vmul.f32 1.442695, %v1574_v46  ;;  %v1578_v28 = vsub.f32 %v8888_v58, %v1554_v30 }
 0x42b   : > { %v1548_v31 = vpop.xlane.xlu0 %1547 }
 0x42c   : > { %7669 = vpow2.f32 %v1593_v57  ;;  %v1601_v23 = vmul.f32 1.442695, %v1578_v28  ;;  %v1575_v4 = vsub.f32 %v8891_v0, %v1548_v31 }
 0x42d   : > { %v1550_v47 = vpop.xlane.xlu1 %1549  ;;  %7671 = vpow2.f32 %v1589_v55 }
 0x42e   : > { %v8962_v8 = vpop.eup %7665  ;;  %v1576_v14 = vsub.f32 %v8894_v7, %v1550_v47  ;;  %7673 = vpow2.f32 %v1601_v23  ;;  %v1595_v63 = vmul.f32 1.442695, %v1575_v4 }
 0x42f   : > { %1623 = vadd.xlane.f32.xlu0 %v8962_v8  ;;  %v1552_v44 = vpop.xlane.xlu0 %1551 }
 0x430   : > { %v1577_v29 = vsub.f32 %v8897_v37, %v1552_v44  ;;  %v1597_v31 = vmul.f32 1.442695, %v1576_v14 }
 0x431   : > { %v1562_v46 = vpop.xlane.xlu1 %1561 }
 0x432   : > { %v8968_v13 = vpop.eup %7667  ;;  %v1599_v30 = vmul.f32 1.442695, %v1577_v29  ;;  %v1582_v58 = vsub.f32 %v8900_v61, %v1562_v46 }
 0x433   : > { %1619 = vadd.xlane.f32.xlu0 %v8968_v13  ;;  %v1556_v28 = vpop.xlane.xlu0 %1555 }
 0x434   : > { %7675 = vpow2.f32 %v1599_v30  ;;  %v1609_v55 = vmul.f32 1.442695, %v1582_v58  ;;  %v1579_v7 = vsub.f32 %v8903_v15, %v1556_v28 }
 0x435   : > { %v1558_v0 = vpop.xlane.xlu1 %1557  ;;  %7677 = vpow2.f32 %v1595_v63 }
 0x436   : > { %v8972_v57 = vpop.eup %7669  ;;  %7679 = vpow2.f32 %v1597_v31  ;;  %v1580_v42 = vsub.f32 %v8906_v16, %v1558_v0  ;;  %v1603_v25 = vmul.f32 1.442695, %v1579_v7 }
 0x437   : > { %1625 = vadd.xlane.f32.xlu1 %v8972_v57  ;;  %v1560_v37 = vpop.xlane.xlu0 %1559  ;;  %v8978_v52 = vpop.eup %7671  ;;  %7681 = vpow2.f32 %v1609_v55 }
 0x438   : > { %v1581_v61 = vsub.f32 %v8909_v18, %v1560_v37  ;;  %v1605_v23 = vmul.f32 1.442695, %v1580_v42  ;;  %v8981_v4 = vpop.eup %7673 }
 0x439   : > { %v1570_v0 = vpop.xlane.xlu1 %1569 }
 0x43a   : > { %v1607_v21 = vmul.f32 1.442695, %v1581_v61  ;;  %v1586_v55 = vsub.f32 %v8912_v22, %v1570_v0  ;;  %v9048_v22 = vmul.f32 0.25, %v8927_v35  ;;  %v9074_v35 = vmul.f32 0.25, %v8943_v48 }
 0x43b   : > { %1621 = vadd.xlane.f32.xlu1 %v8978_v52  ;;  %v1564_v47 = vpop.xlane.xlu0 %1563 }
 0x43c   : > { %7683 = vpow2.f32 %v1607_v21  ;;  %v1583_v18 = vsub.f32 %v8915_v26, %v1564_v47  ;;  %v1617_v37 = vmul.f32 1.442695, %v1586_v55  ;;  %v9052_v47 = vmul.f32 0.25, %v8925_v32  ;;  %10859 = vst [vmem:[#allocation34_spill] sm:$0xff] %v9074_v35 }
 0x43d   : > { %7685 = vpow2.f32 %v1603_v25  ;;  %v1566_v7 = vpop.xlane.xlu1 %1565  ;;  %v9068_v32 = vmul.f32 0.25, %v8933_v43 }
 0x43e   : > { %v8983_v15 = vpop.eup %7675  ;;  %7687 = vpow2.f32 %v1605_v23  ;;  %v1611_v30 = vmul.f32 1.442695, %v1583_v18  ;;  %v1584_v42 = vsub.f32 %v8918_v27, %v1566_v7  ;;  %v9056_v27 = vmul.f32 0.25, %v8929_v39 }
 0x43f   : > { %1633 = vadd.xlane.f32.xlu1 %v8981_v4  ;;  %1631 = vadd.xlane.f32.xlu0 %v8983_v15  ;;  %v1568_v16 = vpop.xlane.xlu0 %1567  ;;  %v8989_v14 = vpop.eup %7677  ;;  %v9062_v23 = vmul.f32 0.25, %v8935_v19  ;;  %10858 = vst [vmem:[#allocation33_spill] sm:$0xff] %v9068_v32  ;;  %v9078_v39 = vmul.f32 0.25, %v8941_v3  ;;  %v9082_v19 = vmul.f32 0.25, %v8951_v51 }
 0x440   : > { %v1585_v44 = vsub.f32 %v8921_v9, %v1568_v16  ;;  %v8991_v29 = vpop.eup %7679  ;;  %v1613_v61 = vmul.f32 1.442695, %v1584_v42  ;;  %10856 = vst [vmem:[#allocation31_spill] sm:$0xff] %v9056_v27  ;;  %v9086_v16 = vmul.f32 0.25, %v8949_v54  ;;  %v6769_v54 = vld [vmem:[%s8343_s22 + $0x8] sm:$0xff]  }
 0x441   : > { %v8995_v63 = vpop.eup %7681  ;;  %10857 = vst [vmem:[#allocation32_spill] sm:$0xff] %v9062_v23  ;;  %10860 = vst [vmem:[#allocation35_spill] sm:$0xff] %v9078_v39 }
 0x442   : > { %v1615_v46 = vmul.f32 1.442695, %v1585_v44  ;;  %10861 = vst [vmem:[#allocation36_spill] sm:$0xff] %v9082_v19  ;;  %10862 = vst [vmem:[#allocation37_spill] sm:$0xff] %v9086_v16 }
 0x443   : > { %1629 = vadd.xlane.f32.xlu1 %v8991_v29  ;;  %1627 = vadd.xlane.f32.xlu0 %v8989_v14 }
 0x444   : > { %7689 = vpow2.f32 %v1615_v46 }
 0x445   : > { %7691 = vpow2.f32 %v1611_v30 }
 0x446   : > { %v8997_v58 = vpop.eup %7683  ;;  %7693 = vpow2.f32 %v1617_v37 }
 0x447   : > { %1641 = vadd.xlane.f32.xlu1 %v8995_v63  ;;  %1639 = vadd.xlane.f32.xlu0 %v8997_v58  ;;  %v9001_v26 = vpop.eup %7685  ;;  %7695 = vpow2.f32 %v1613_v61 }
 0x448   : > { %v9003_v9 = vpop.eup %7687 }
 0x44b   : > { %1637 = vadd.xlane.f32.xlu1 %v9003_v9  ;;  %1635 = vadd.xlane.f32.xlu0 %v9001_v26 }
 0x44e   : > { %v9007_v28 = vpop.eup %7689 }
 0x44f   : > { %1647 = vadd.xlane.f32.xlu0 %v9007_v28  ;;  %v9010_v31 = vpop.eup %7691 }
 0x450   : > { %v9041_v21 = vpop.eup %7693 }
 0x451   : > { %10854 = vst [vmem:[#allocation29_spill] sm:$0xff] %v9041_v21  ;;  %v9044_v25 = vpop.eup %7695 }
 0x452   : > { %10855 = vst [vmem:[#allocation30_spill] sm:$0xff] %v9044_v25 }
 0x453   : > { %1643 = vadd.xlane.f32.xlu0 %v9010_v31 }
 0x45c   : > { %3071 = vrot.lane.b32.xlu1 %v8719_v6, %s8135_s27 }
 0x460   : > { %3073 = vrot.lane.b32.xlu1 %v8743_v11, %s8135_s27 }
 0x464   : > { %3075 = vrot.lane.b32.xlu1 %v8739_v41, %s8135_s27 }
 0x468   : > { %3079 = vrot.lane.b32.xlu1 %v8753_v62, %s8135_s27 }
 0x469   : > { %3069 = vrot.lane.b32.xlu0 %v8723_v10, %s8135_s27 }
 0x46c   : > { %3083 = vrot.lane.b32.xlu1 %v8776_v45, %s8135_s27 }
 0x46d   : > { %3077 = vrot.lane.b32.xlu0 %v8757_v60, %s8135_s27 }
 0x470   : > { %3055 = vrot.lane.b32.xlu1 %v8717_v1, %s8135_s27 }
 0x471   : > { %3081 = vrot.lane.b32.xlu0 %v8780_v38, %s8135_s27 }
 0x475   : > { %3053 = vrot.lane.b32.xlu0 %v8721_v2, %s8135_s27 }
 0x479   : > { %3057 = vrot.lane.b32.xlu0 %v8741_v20, %s8135_s27  ;;  %v9112_v20 = vmul.f32 0.25, %v8937_v12 }
 0x47d   : > { %3061 = vrot.lane.b32.xlu0 %v8711_v53, %s8135_s27 }
 0x481   : > { %3065 = vrot.lane.b32.xlu0 %v8715_v5, %s8135_s27  ;;  %v9091_v5 = vmul.f32 0.25, %v8931_v40  ;;  %v9107_v40 = vstv %s1376_s20 }
 0x483   : > { %10863 = vst [vmem:[#allocation38_spill] sm:$0xff] %v9091_v5 }
 0x494   : > { %1649 = vadd.xlane.f32.xlu1 %v9041_v21  ;;  %v10865_v21 = vld [vmem:[#allocation25_spill] sm:$0xff] }
 0x498   : > { %1645 = vadd.xlane.f32.xlu1 %v9044_v25 }
 0x4a0   : > { %2384 = vmax.xlane.f32.xlu0 %v9048_v22 }
 0x4a4   : > { %2388 = vmax.xlane.f32.xlu0 %v9052_v47 }
 0x4a8   : > { %2390 = vmax.xlane.f32.xlu0 %v9056_v27 }
 0x4a9   : > { %3059 = vrot.lane.b32.xlu1 %v8737_v17, %s8135_s27 }
 0x4ac   : > { %2392 = vmax.xlane.f32.xlu0 %v9062_v23 }
 0x4ad   : > { %3063 = vrot.lane.b32.xlu1 %v8709_v50, %s8135_s27  ;;  %v6475_v50 = vld [vmem:[%s8343_s22] sm:$0xff]  }
 0x4b0   : > { %2396 = vmax.xlane.f32.xlu0 %v9068_v32 }
 0x4b1   : > { %3067 = vrot.lane.b32.xlu1 %v8713_v56, %s8135_s27  ;;  %v6480_v56 = vunpack.c.l.bf16 %v6769_v54 }
 0x4b3   : > { %v1783_v12 = vmul.f32 %v6480_v56, %v9107_v40  ;;  %v9139_v56 = vmul.f32 0.25, %v8955_v59 }
 0x4b4   : > { %2400 = vmax.xlane.f32.xlu0 %v9074_v35  ;;  %v6771_v35 = vld [vmem:[%s8343_s22 + $0x18] sm:$0xff]  }
 0x4b8   : > { %2404 = vmax.xlane.f32.xlu0 %v9078_v39  ;;  %v9115_v39 = vmul.f32 0.25, %v8939_v34 }
 0x4ba   : > { %10864 = vst [vmem:[#allocation39_spill] sm:$0xff] %v9115_v39 }
 0x4bc   : > { %2408 = vmax.xlane.f32.xlu0 %v9082_v19  ;;  %v1624_v43 = vpop.xlane.xlu0 %1623  ;;  %v6477_v19 = vunpack.c.h.bf16 %v6475_v50 }
 0x4bd   : > { %7697 = vrcp.f32 %v1624_v43 }
 0x4c0   : > { %2412 = vmax.xlane.f32.xlu0 %v9086_v16  ;;  %v1620_v48 = vpop.xlane.xlu0 %1619 }
 0x4c1   : > { %7699 = vrcp.f32 %v1620_v48 }
 0x4c4   : > { %v1626_v18 = vpop.xlane.xlu1 %1625 }
 0x4c5   : > { %7701 = vrcp.f32 %v1626_v18 }
 0x4c7   : > { %v7698_v3 = vpop.eup %7697 }
 0x4c8   : > { %v1669_v44 = vmul.f32 %v7698_v3, %v1624_v43  ;;  %v1622_v46 = vpop.xlane.xlu1 %1621 }
 0x4c9   : > { %7703 = vrcp.f32 %v1622_v46 }
 0x4ca   : > { %v1685_v51 = vsub.f32 2.0, %v1669_v44 }
 0x4cb   : > { %v7700_v30 = vpop.eup %7699 }
 0x4cc   : > { %v1667_v0 = vmul.f32 %v7700_v30, %v1620_v48  ;;  %v1634_v55 = vpop.xlane.xlu1 %1633  ;;  %v1632_v7 = vpop.xlane.xlu0 %1631  ;;  %v1701_v37 = vmul.f32 %v7698_v3, %v1685_v51  ;;  %v9101_v48 = vld [vmem:[%s10768_s7] sm:$0xff]   ;;  %v9103_v3 = vstv %s1375_s29 }
 0x4cd   : > { %7705 = vrcp.f32 %v1634_v55  ;;  %7231 = vmatprep.subr.bf16.mxu0 %v9101_v48 }
 0x4ce   : > { %v1683_v42 = vsub.f32 2.0, %v1667_v0  ;;  %7707 = vrcp.f32 %v1632_v7  ;;  %v1717_v51 = vmul.f32 %v8962_v8, %v1701_v37  ;;  %v9118_v8 = vmul.f32 0.25, %v8945_v24 }
 0x4cf   : > { %v7702_v61 = vpop.eup %7701  ;;  %v9121_v37 = vmul.f32 0.25, %v8947_v33 }
 0x4d0   : > { %v1670_v43 = vmul.f32 %v7702_v61, %v1626_v18  ;;  %v9093_v53 = vpop.xlane.xlu1 %1629  ;;  %v9095_v44 = vpop.xlane.xlu0 %1627  ;;  %v1699_v0 = vmul.f32 %v7700_v30, %v1683_v42  ;;  %v6481_v18 = vunpack.c.h.bf16 %v6769_v54  ;;  %v6476_v30 = vunpack.c.l.bf16 %v6475_v50 }
 0x4d1   : > { %7709 = vrcp.f32 %v9093_v53  ;;  %v1734_v34 = vmul.f32 %v9103_v3, %v1717_v51 }
 0x4d2   : > { %v1686_v17 = vsub.f32 2.0, %v1670_v43  ;;  %7711 = vrcp.f32 %v9095_v44  ;;  %v1715_v23 = vmul.f32 %v8968_v13, %v1699_v0  ;;  %v1784_v24 = vmul.f32 %v6481_v18, %v9107_v40 }
 0x4d3   : > { %v7704_v16 = vpop.eup %7703  ;;  %v1781_v13 = vmul.f32 %v6476_v30, %v9107_v40  ;;  %v1799_v25 = vadd.f32 %v1783_v12, %v1734_v34 }
 0x4d4   : > { %v1702_v54 = vmul.f32 %v7702_v61, %v1686_v17  ;;  %v1668_v42 = vmul.f32 %v7704_v16, %v1622_v46  ;;  %v9123_v43 = vpop.xlane.xlu1 %1641  ;;  %v9125_v32 = vpop.xlane.xlu0 %1639  ;;  %v6488_v46 = vunpack.c.l.bf16 %v6771_v35  ;;  %v6489_v61 = vunpack.c.h.bf16 %v6771_v35 }
 0x4d5   : > { %7713 = vrcp.f32 %v9123_v43  ;;  %2386 = vmax.xlane.f32.xlu1 %v9091_v5  ;;  %v6770_v5 = vld [vmem:[%s8343_s22 + $0x10] sm:$0xff]   ;;  %v1732_v35 = vmul.f32 %v9103_v3, %v1715_v23 }
 0x4d6   : > { %v1718_v17 = vmul.f32 %v8972_v57, %v1702_v54  ;;  %v1684_v33 = vsub.f32 2.0, %v1668_v42  ;;  %7715 = vrcp.f32 %v9125_v32  ;;  %2746 = vrot.lane.b32.xlu0 %v8759_v36, %s8134_s21  ;;  %v1782_v36 = vmul.f32 %v6477_v19, %v9107_v40 }
 0x4d7   : > { %v7706_v50 = vpop.eup %7705  ;;  %v6484_v12 = vunpack.c.l.bf16 %v6770_v5  ;;  %v1788_v34 = vmul.f32 %v6489_v61, %v9107_v40 }
 0x4d8   : > { %v7708_v51 = vpop.eup %7707  ;;  %v1735_v0 = vmul.f32 %v9103_v3, %v1718_v17  ;;  %v1700_v18 = vmul.f32 %v7704_v16, %v1684_v33  ;;  %v1674_v57 = vmul.f32 %v7706_v50, %v1634_v55  ;;  %v9143_v54 = vpop.xlane.xlu1 %1637  ;;  %v6773_v55 = vld [vmem:[%s8343_s22 + $0x28] sm:$0xff]  }
 0x4d9   : > { %v9145_v42 = vpop.xlane.xlu0 %1635  ;;  %v1673_v59 = vmul.f32 %v7708_v51, %v1632_v7  ;;  %7717 = vrcp.f32 %v9143_v54  ;;  %2394 = vmax.xlane.f32.xlu1 %v9115_v39  ;;  %v1787_v7 = vmul.f32 %v6488_v46, %v9107_v40  ;;  %v6496_v27 = vunpack.c.l.bf16 %v6773_v55 }
 0x4da   : > { %v1800_v30 = vadd.f32 %v1784_v24, %v1735_v0  ;;  %v1716_v16 = vmul.f32 %v8978_v52, %v1700_v18  ;;  %v1690_v17 = vsub.f32 2.0, %v1674_v57  ;;  %7719 = vrcp.f32 %v9145_v42  ;;  %2750 = vrot.lane.b32.xlu0 %v8782_v49, %s8134_s21 }
 0x4db   : > { %v7710_v19 = vpop.eup %7709  ;;  %v1689_v33 = vsub.f32 2.0, %v1673_v59  ;;  %v6485_v59 = vunpack.c.h.bf16 %v6770_v5  ;;  %v1785_v5 = vmul.f32 %v6484_v12, %v9107_v40 }
 0x4dc   : > { %v7712_v39 = vpop.eup %7711  ;;  %v1706_v23 = vmul.f32 %v7706_v50, %v1690_v17  ;;  %v1672_v24 = vmul.f32 %v7710_v19, %v9093_v53  ;;  %v1733_v0 = vmul.f32 %v9103_v3, %v1716_v16  ;;  %v1814_v18 = vpack.c.bf16 %v1800_v30, %v1799_v25 }
 0x4dd   : > { %v9160_v52 = vpop.xlane.xlu0 %1647  ;;  %v1705_v57 = vmul.f32 %v7708_v51, %v1689_v33  ;;  %v1671_v49 = vmul.f32 %v7712_v39, %v9095_v44  ;;  %2398 = vmax.xlane.f32.xlu1 %v9112_v20  ;;  %v1797_v50 = vadd.f32 %v1781_v13, %v1732_v35  ;;  %v6497_v30 = vunpack.c.h.bf16 %v6773_v55  ;;  %v6772_v55 = vld [vmem:[%s8343_s22 + $0x20] sm:$0xff]  }
 0x4de   : > { %v1722_v46 = vmul.f32 %v8981_v4, %v1706_v23  ;;  %v1688_v61 = vsub.f32 2.0, %v1672_v24  ;;  %2754 = vrot.lane.b32.xlu0 %v10865_v21, %s8134_s21  ;;  %v1798_v53 = vadd.f32 %v1782_v36, %v1733_v0  ;;  %6776 = vst [vmem:[%s9170_s1 + $0x8] sm:$0xff] %v1814_v18   ;;  %7721 = vrcp.f32 %v9160_v52 }
 0x4df   : > { %v7714_v25 = vpop.eup %7713  ;;  %v1721_v44 = vmul.f32 %v8983_v15, %v1705_v57  ;;  %v1687_v51 = vsub.f32 2.0, %v1671_v49  ;;  %v1786_v49 = vmul.f32 %v6485_v59, %v9107_v40 }
 0x4e0   : > { %v7716_v4 = vpop.eup %7715  ;;  %v1704_v16 = vmul.f32 %v7710_v19, %v1688_v61  ;;  %v1678_v17 = vmul.f32 %v7714_v25, %v9123_v43  ;;  %v1813_v36 = vpack.c.bf16 %v1798_v53, %v1797_v50  ;;  %v1739_v35 = vmul.f32 %v9103_v3, %v1722_v46  ;;  %v10866_v43 = vld [vmem:[#allocation24_spill] sm:$0xff] }
 0x4e1   : > { %v9176_v13 = vpop.xlane.xlu0 %1643  ;;  %v1703_v33 = vmul.f32 %v7712_v39, %v1687_v51  ;;  %v1677_v23 = vmul.f32 %v7716_v4, %v9125_v32  ;;  %2402 = vmax.xlane.f32.xlu1 %v9121_v37  ;;  %v1738_v15 = vmul.f32 %v9103_v3, %v1721_v44  ;;  %v1791_v39 = vmul.f32 %v6496_v27, %v9107_v40 }
 0x4e2   : > { %v1720_v12 = vmul.f32 %v8991_v29, %v1704_v16  ;;  %v1694_v19 = vsub.f32 2.0, %v1678_v17  ;;  %2756 = vrot.lane.b32.xlu0 %v10866_v43, %s8134_s21  ;;  %6510 = vst [vmem:[%s9170_s1] sm:$0xff] %v1813_v36   ;;  %7215 = vmatprep.mubr.bf16.mxu0 %v1813_v36  ;;  %v1804_v24 = vadd.f32 %v1788_v34, %v1739_v35  ;;  %v6493_v51 = vunpack.c.h.bf16 %v6772_v55 }
 0x4e3   : > { %v7718_v0 = vpop.eup %7717  ;;  %v1719_v32 = vmul.f32 %v8989_v14, %v1703_v33  ;;  %v1693_v57 = vsub.f32 2.0, %v1677_v23  ;;  %7216 = vmatmul.mubr.bf16.vlgmr.msra.gmra.mrb[24].mxu0 %v1814_v18  ;;  %v1803_v59 = vadd.f32 %v1787_v7, %v1738_v15  ;;  %v1792_v46 = vmul.f32 %v6497_v30, %v9107_v40  ;;  %v10867_v30 = vld [vmem:[#allocation26_spill] sm:$0xff] }
 0x4e4   : > { %v7720_v61 = vpop.eup %7719  ;;  %v1710_v50 = vmul.f32 %v7714_v25, %v1694_v19  ;;  %v1676_v29 = vmul.f32 %v7718_v0, %v9143_v54  ;;  %v1737_v44 = vmul.f32 %v9103_v3, %v1720_v12  ;;  %7232 = vmatpush3.bf16.msra.mxu0 %v9101_v48  ;;  %v3072_v25 = vpop.permute.xlu1 %3071  ;;  %v6492_v36 = vunpack.c.l.bf16 %v6772_v55  ;;  %v10868_v55 = vld [vmem:[#allocation28_spill] sm:$0xff] }
 0x4e5   : > { %v3070_v53 = vpop.permute.xlu0 %3069  ;;  %v1709_v34 = vmul.f32 %v7716_v4, %v1693_v57  ;;  %v1675_v27 = vmul.f32 %v7720_v61, %v9145_v42  ;;  %2406 = vmax.xlane.f32.xlu1 %v9118_v8  ;;  %v1736_v7 = vmul.f32 %v9103_v3, %v1719_v32  ;;  %v1816_v4 = vpack.c.bf16 %v1804_v24, %v1803_v59 }
 0x4e6   : > { %7519 = vmatprep.subr.msk.bf16.mxu1 %vm1377_vm1, %v3070_v53  ;;  %v3110_v14 = vsel %vm1377_vm1, %v3070_v53, 0  ;;  %v1726_v54 = vmul.f32 %v8995_v63, %v1710_v50  ;;  %v1692_v18 = vsub.f32 2.0, %v1676_v29  ;;  %2760 = vrot.lane.b32.xlu0 %v10867_v30, %s8134_s21  ;;  %v1802_v48 = vadd.f32 %v1786_v49, %v1737_v44 }
 0x4e7   : > { %7332 = vmatpush3.bf16.xpose.msra.mxu1 %v3110_v14  ;;  %v1725_v42 = vmul.f32 %v8997_v58, %v1709_v34  ;;  %v1691_v16 = vsub.f32 2.0, %v1675_v27  ;;  %v1801_v17 = vadd.f32 %v1785_v5, %v1736_v7  ;;  %6778 = vst [vmem:[%s9170_s1 + $0x18] sm:$0xff] %v1816_v4   ;;  %v1790_v58 = vmul.f32 %v6493_v51, %v9107_v40  ;;  %v10870_v51 = vld [vmem:[#allocation22_spill] sm:$0xff] }
 0x4e8   : > { %7520 = vmatprep.subr.msk.bf16.mxu1 %vm1377_vm1, %v3072_v25  ;;  %v1708_v35 = vmul.f32 %v7718_v0, %v1692_v18  ;;  %v1743_v63 = vmul.f32 %v9103_v3, %v1726_v54  ;;  %v9213_v19 = vmul.f32 0.25, %v10868_v55  ;;  %v1789_v0 = vmul.f32 %v6492_v36, %v9107_v40 }
 0x4e9   : > { %v3078_v33 = vpop.permute.xlu0 %3077  ;;  %v1707_v23 = vmul.f32 %v7720_v61, %v1691_v16  ;;  %2410 = vmax.xlane.f32.xlu1 %v9139_v56  ;;  %v1815_v15 = vpack.c.bf16 %v1802_v48, %v1801_v17  ;;  %v1742_v49 = vmul.f32 %v9103_v3, %v1725_v42  ;;  %v3074_v61 = vpop.permute.xlu1 %3073  ;;  %7723 = vrcp.f32 %v9176_v13  ;;  %v6775_v17 = vld [vmem:[%s8343_s22 + $0x38] sm:$0xff]  }
 0x4ea   : > { %v1724_v12 = vmul.f32 %v9003_v9, %v1708_v35  ;;  %3923 = vrot.lane.b32.xlu0 %v8723_v10, %s8136_s26  ;;  %v1808_v5 = vadd.f32 %v1792_v46, %v1743_v63  ;;  %v3113_v10 = vsel %vm1377_vm1, %v3072_v25, 0  ;;  %v3116_v53 = vsel %vm1377_vm1, %v3074_v61, 0 }
 0x4eb   : > { %v1723_v24 = vmul.f32 %v9001_v26, %v1707_v23  ;;  %6777 = vst [vmem:[%s9170_s1 + $0x10] sm:$0xff] %v1815_v15   ;;  %7219 = vmatprep.mubr.bf16.mxu0 %v1815_v15  ;;  %v1807_v32 = vadd.f32 %v1791_v39, %v1742_v49  ;;  %v3122_v34 = vsel %vm1377_vm1, %v3078_v33, 0  ;;  %v6504_v15 = vunpack.c.l.bf16 %v6775_v17 }
 0x4ec   : > { %7220 = vmatmul.mubr.bf16.gmra.mrb[28].mxu0 %v1816_v4  ;;  %v1741_v57 = vmul.f32 %v9103_v3, %v1724_v12  ;;  %v6505_v49 = vunpack.c.h.bf16 %v6775_v17 }
 0x4ed   : > { %v3082_v9 = vpop.permute.xlu0 %3081  ;;  %2414 = vmax.xlane.f32.xlu1 %v9213_v19  ;;  %v1740_v59 = vmul.f32 %v9103_v3, %v1723_v24  ;;  %v1818_v46 = vpack.c.bf16 %v1808_v5, %v1807_v32  ;;  %v3076_v44 = vpop.permute.xlu1 %3075 }
 0x4ee   : > { %3925 = vrot.lane.b32.xlu0 %v8719_v6, %s8136_s26  ;;  %v1806_v26 = vadd.f32 %v1790_v58, %v1741_v57  ;;  %v10869_v6 = vld [vmem:[#allocation20_spill] sm:$0xff]  ;;  %v3128_v27 = vsel %vm1377_vm1, %v3082_v9, 0  ;;  %v1795_v57 = vmul.f32 %v6504_v15, %v9107_v40 }
 0x4ef   : > { %7334 = vmatpush3.bf16.xpose.msra.mxu1 %v3113_v10  ;;  %v1805_v39 = vadd.f32 %v1789_v0, %v1740_v59  ;;  %6780 = vst [vmem:[%s9170_s1 + $0x28] sm:$0xff] %v1818_v46  }
 0x4f0   : > { %7521 = vmatprep.subr.msk.bf16.mxu1 %vm1377_vm1, %v3074_v61  ;;  %v1796_v61 = vmul.f32 %v6505_v49, %v9107_v40 }
 0x4f1   : > { %v3054_v50 = vpop.permute.xlu0 %3053  ;;  %v1817_v29 = vpack.c.bf16 %v1806_v26, %v1805_v39  ;;  %v10872_v26 = vld [vmem:[#allocation29_spill] sm:$0xff] }
 0x4f2   : > { %7347 = vmatprep.mubr.msk.bf16.mxu1 %vm1377_vm1, %v3054_v50  ;;  %3927 = vrot.lane.b32.xlu0 %v8743_v11, %s8136_s26  ;;  %v3119_v11 = vsel %vm1377_vm1, %v3076_v44, 0 }
 0x4f3   : > { %6779 = vst [vmem:[%s9170_s1 + $0x20] sm:$0xff] %v1817_v29   ;;  %7223 = vmatprep.mubr.bf16.mxu0 %v1817_v29 }
 0x4f4   : > { %7224 = vmatmul.mubr.bf16.gmra.mrb[32].mxu0 %v1818_v46 }
 0x4f6   : > { %3931 = vrot.lane.b32.xlu0 %v8757_v60, %s8136_s26  ;;  %v10871_v60 = vld [vmem:[#allocation27_spill] sm:$0xff] }
 0x4f7   : > { %7336 = vmatpush3.bf16.xpose.msra.mxu1 %v3116_v53 }
 0x4f8   : > { %7522 = vmatprep.subr.msk.bf16.mxu1 %vm1377_vm1, %v3076_v44 }
 0x4fa   : > { %3935 = vrot.lane.b32.xlu0 %v8780_v38, %s8136_s26  ;;  %v3080_v38 = vpop.permute.xlu1 %3079 }
 0x4fe   : > { %2748 = vrot.lane.b32.xlu1 %v10869_v6, %s8134_s21  ;;  %3907 = vrot.lane.b32.xlu0 %v8721_v2, %s8136_s26  ;;  %v3125_v2 = vsel %vm1377_vm1, %v3080_v38, 0  ;;  %v3084_v14 = vpop.permute.xlu1 %3083 }
 0x4ff   : > { %7338 = vmatpush3.bf16.xpose.msra.mxu1 %v3119_v11  ;;  %v3131_v7 = vsel %vm1377_vm1, %v3084_v14, 0 }
 0x500   : > { %7523 = vmatprep.subr.msk.bf16.mxu1 %vm1377_vm1, %v3078_v33 }
 0x502   : > { %2752 = vrot.lane.b32.xlu1 %v10870_v51, %s8134_s21 }
 0x506   : > { %2758 = vrot.lane.b32.xlu1 %v10871_v60, %s8134_s21 }
 0x507   : > { %7340 = vmatpush3.bf16.xpose.msra.mxu1 %v3122_v34 }
 0x508   : > { %7524 = vmatprep.subr.msk.bf16.mxu1 %vm1377_vm1, %v3080_v38 }
 0x50a   : > { %3929 = vrot.lane.b32.xlu1 %v8739_v41, %s8136_s26  ;;  %v3056_v41 = vpop.permute.xlu1 %3055 }
 0x50e   : > { %3933 = vrot.lane.b32.xlu1 %v8753_v62, %s8136_s26  ;;  %v3058_v62 = vpop.permute.xlu0 %3057 }
 0x50f   : > { %7342 = vmatpush3.bf16.xpose.msra.mxu1 %v3125_v2 }
 0x510   : > { %7525 = vmatprep.subr.msk.bf16.mxu1 %vm1377_vm1, %v3082_v9 }
 0x512   : > { %3937 = vrot.lane.b32.xlu1 %v8776_v45, %s8136_s26  ;;  %v7722_v45 = vpop.eup %7721 }
 0x513   : > { %v1681_v18 = vmul.f32 %v7722_v45, %v9160_v52  ;;  %v7724_v25 = vpop.eup %7723 }
 0x514   : > { %v1679_v42 = vmul.f32 %v7724_v25, %v9176_v13  ;;  %v6774_v13 = vld [vmem:[%s8343_s22 + $0x30] sm:$0xff]  }
 0x515   : > { %v1697_v4 = vsub.f32 2.0, %v1681_v18  ;;  %v6500_v59 = vunpack.c.l.bf16 %v6774_v13  ;;  %v6501_v46 = vunpack.c.h.bf16 %v6774_v13 }
 0x516   : > { %3909 = vrot.lane.b32.xlu1 %v8717_v1, %s8136_s26  ;;  %v3062_v1 = vpop.permute.xlu0 %3061  ;;  %v1695_v35 = vsub.f32 2.0, %v1679_v42 }
 0x517   : > { %7344 = vmatpush3.bf16.xpose.msra.mxu1 %v3128_v27  ;;  %v1713_v36 = vmul.f32 %v7722_v45, %v1697_v4  ;;  %v1793_v27 = vmul.f32 %v6500_v59, %v9107_v40 }
 0x518   : > { %7526 = vmatprep.subr.msk.bf16.mxu1 %vm1377_vm1, %v3084_v14  ;;  %v1711_v58 = vmul.f32 %v7724_v25, %v1695_v35  ;;  %v10874_v14 = vld [vmem:[#allocation30_spill] sm:$0xff] }
 0x519   : > { %v1729_v12 = vmul.f32 %v9007_v28, %v1713_v36 }
 0x51a   : > { %v3066_v16 = vpop.permute.xlu0 %3065  ;;  %v1727_v28 = vmul.f32 %v9010_v31, %v1711_v58  ;;  %v1794_v31 = vmul.f32 %v6501_v46, %v9107_v40 }
 0x51b   : > { %v1746_v29 = vmul.f32 %v9103_v3, %v1729_v12 }
 0x51f   : > { %7346 = vmatpush3.bf16.xpose.msra.mxu1 %v3131_v7  ;;  %v1811_v7 = vadd.f32 %v1795_v57, %v1746_v29 }
 0x521   : > { %v1650_v54 = vpop.xlane.xlu1 %1649 }
 0x522   : > { %7725 = vrcp.f32 %v1650_v54 }
 0x525   : > { %v1646_v48 = vpop.xlane.xlu1 %1645 }
 0x526   : > { %7727 = vrcp.f32 %v1646_v48  ;;  %7348 = vmatmul.mubr.msk.bf16.vlgmr.msra.gmra.mrb[56].mxu1 %vm1377_vm1, %v3056_v41 }
 0x527   : > { %7351 = vmatprep.mubr.msk.bf16.mxu1 %vm1377_vm1, %v3058_v62  ;;  %v1744_v62 = vmul.f32 %v9103_v3, %v1727_v28 }
 0x529   : > { %v3060_v23 = vpop.permute.xlu1 %3059  ;;  %v1809_v42 = vadd.f32 %v1793_v27, %v1744_v62 }
 0x52c   : > { %v7726_v33 = vpop.eup %7725 }
 0x52d   : > { %v1682_v63 = vmul.f32 %v7726_v33, %v1650_v54  ;;  %v2385_v52 = vpop.xlane.xlu0 %2384  ;;  %v3064_v11 = vpop.permute.xlu1 %3063 }
 0x52e   : > { %7352 = vmatmul.mubr.msk.bf16.gmra.mrb[60].mxu1 %vm1377_vm1, %v3060_v23  ;;  %v2416_v32 = vsub.f32 %v9048_v22, %v2385_v52  ;;  %v10876_v52 = vld [vmem:[#allocation34_spill] sm:$0xff] }
 0x52f   : > { %v1698_v5 = vsub.f32 2.0, %v1682_v63  ;;  %7355 = vmatprep.mubr.msk.bf16.mxu1 %vm1377_vm1, %v3062_v1 }
 0x530   : > { %v7728_v55 = vpop.eup %7727  ;;  %v2432_v22 = vmul.f32 1.442695, %v2416_v32 }
 0x531   : > { %v1714_v24 = vmul.f32 %v7726_v33, %v1698_v5  ;;  %v1680_v0 = vmul.f32 %v7728_v55, %v1646_v48  ;;  %v2389_v9 = vpop.xlane.xlu0 %2388  ;;  %v10875_v48 = vld [vmem:[#allocation32_spill] sm:$0xff]  ;;  %v3068_v35 = vpop.permute.xlu1 %3067 }
 0x532   : > { %v2418_v10 = vsub.f32 %v9052_v47, %v2389_v9  ;;  %v10873_v47 = vld [vmem:[#allocation31_spill] sm:$0xff] }
 0x533   : > { %v1730_v39 = vmul.f32 %v10872_v26, %v1714_v24  ;;  %v1696_v50 = vsub.f32 2.0, %v1680_v0  ;;  %v10877_v24 = vld [vmem:[#allocation36_spill] sm:$0xff] }
 0x534   : > { %v2436_v53 = vmul.f32 1.442695, %v2418_v10 }
 0x535   : > { %v1712_v44 = vmul.f32 %v7728_v55, %v1696_v50  ;;  %v2391_v34 = vpop.xlane.xlu0 %2390  ;;  %v1747_v38 = vmul.f32 %v9103_v3, %v1730_v39  ;;  %v10878_v50 = vld [vmem:[#allocation33_spill] sm:$0xff] }
 0x536   : > { %7729 = vpow2.f32 %v2436_v53  ;;  %7356 = vmatmul.mubr.msk.bf16.gmra.mrb[64].mxu1 %vm1377_vm1, %v3064_v11  ;;  %v2419_v2 = vsub.f32 %v10873_v47, %v2391_v34  ;;  %v10879_v53 = vld [vmem:[#allocation38_spill] sm:$0xff] }
 0x537   : > { %v1728_v41 = vmul.f32 %v10874_v14, %v1712_v44  ;;  %7359 = vmatprep.mubr.msk.bf16.mxu1 %vm1377_vm1, %v3066_v16  ;;  %v1812_v45 = vadd.f32 %v1796_v61, %v1747_v38  ;;  %7731 = vpow2.f32 %v2432_v22 }
 0x538   : > { %v2438_v54 = vmul.f32 1.442695, %v2419_v2 }
 0x539   : > { %v2393_v18 = vpop.xlane.xlu0 %2392  ;;  %v1745_v1 = vmul.f32 %v9103_v3, %v1728_v41  ;;  %v1820_v25 = vpack.c.bf16 %v1812_v45, %v1811_v7 }
 0x53a   : > { %7733 = vpow2.f32 %v2438_v54  ;;  %v2420_v4 = vsub.f32 %v10875_v48, %v2393_v18  ;;  %v10881_v18 = vld [vmem:[#allocation35_spill] sm:$0xff] }
 0x53b   : > { %v1810_v17 = vadd.f32 %v1794_v31, %v1745_v1  ;;  %6782 = vst [vmem:[%s9170_s1 + $0x38] sm:$0xff] %v1820_v25   ;;  %v10880_v31 = vld [vmem:[#allocation39_spill] sm:$0xff] }
 0x53c   : > { %v2440_v36 = vmul.f32 1.442695, %v2420_v4  ;;  %v10882_v48 = vld [vmem:[#allocation19_spill] sm:$0xff] }
 0x53d   : > { %v2397_v16 = vpop.xlane.xlu0 %2396  ;;  %v1819_v33 = vpack.c.bf16 %v1810_v17, %v1809_v42 }
 0x53e   : > { %7735 = vpow2.f32 %v2440_v36  ;;  %7360 = vmatmul.mubr.msk.bf16.gmra.mrb[68].mxu1 %vm1377_vm1, %v3068_v35  ;;  %v2422_v29 = vsub.f32 %v10878_v50, %v2397_v16 }
 0x53f   : > { %6781 = vst [vmem:[%s9170_s1 + $0x30] sm:$0xff] %v1819_v33   ;;  %7227 = vmatprep.mubr.bf16.mxu0 %v1819_v33 }
 0x540   : > { %v9292_v63 = vpop.eup %7729  ;;  %7228 = vmatmul.mubr.bf16.gmra.mrb[36].mxu0 %v1820_v25  ;;  %v2444_v47 = vmul.f32 1.442695, %v2422_v29 }
 0x541   : > { %2468 = vadd.xlane.f32.xlu0 %v9292_v63  ;;  %v2401_v23 = vpop.xlane.xlu0 %2400  ;;  %v9296_v49 = vpop.eup %7731 }
 0x542   : > { %v2424_v15 = vsub.f32 %v10876_v52, %v2401_v23 }
 0x544   : > { %v9298_v12 = vpop.eup %7733  ;;  %v2448_v58 = vmul.f32 1.442695, %v2424_v15 }
 0x545   : > { %2464 = vadd.xlane.f32.xlu0 %v9296_v49  ;;  %2470 = vadd.xlane.f32.xlu1 %v9298_v12  ;;  %v2405_v5 = vpop.xlane.xlu0 %2404 }
 0x546   : > { %7737 = vpow2.f32 %v2448_v58  ;;  %v2426_v1 = vsub.f32 %v10881_v18, %v2405_v5 }
 0x548   : > { %v9302_v13 = vpop.eup %7735 }
 0x549   : > { %2472 = vadd.xlane.f32.xlu0 %v9302_v13  ;;  %v2409_v55 = vpop.xlane.xlu0 %2408 }
 0x54a   : > { %v2428_v0 = vsub.f32 %v10877_v24, %v2409_v55 }
 0x54c   : > { %v2456_v32 = vmul.f32 1.442695, %v2428_v0 }
 0x54d   : > { %v9306_v9 = vpop.xlane.xlu0 %2412 }
 0x54e   : > { %7739 = vpow2.f32 %v2456_v32 }
 0x550   : > { %v9308_v57 = vpop.eup %7737 }
 0x551   : > { %2480 = vadd.xlane.f32.xlu0 %v9308_v57  ;;  %v9311_v10 = vpop.permute.xlu0 %2746 }
 0x552   : > { %7281 = vmatprep.subr.bf16.mxu0 %v9311_v10 }
 0x555   : > { %v9314_v59 = vpop.permute.xlu0 %2750 }
 0x558   : > { %v9316_v46 = vpop.eup %7739 }
 0x559   : > { %2488 = vadd.xlane.f32.xlu0 %v9316_v46  ;;  %v9319_v61 = vpop.permute.xlu0 %2754 }
 0x55d   : > { %v9321_v28 = vpop.permute.xlu0 %2756 }
 0x561   : > { %v9323_v26 = vpop.permute.xlu0 %2760 }
 0x562   : > { %v2387_v39 = vpop.xlane.xlu1 %2386 }
 0x563   : > { %v2417_v44 = vsub.f32 %v10879_v53, %v2387_v39 }
 0x565   : > { %v2434_v11 = vmul.f32 1.442695, %v2417_v44  ;;  %v3924_v22 = vpop.permute.xlu0 %3923 }
 0x566   : > { %v2395_v34 = vpop.xlane.xlu1 %2394  ;;  %7527 = vmatprep.subr.msk.bf16.mxu1 %vm1377_vm1, %v3924_v22  ;;  %v3964_v38 = vsel %vm1377_vm1, %v3924_v22, 0 }
 0x567   : > { %7741 = vpow2.f32 %v2434_v11  ;;  %7414 = vmatpush3.bf16.xpose.msra.mxu1 %v3964_v38  ;;  %v2421_v14 = vsub.f32 %v10880_v31, %v2395_v34 }
 0x568   : > { %7743 = vpow2.f32 %v2444_v47 }
 0x569   : > { %v3926_v2 = vpop.permute.xlu0 %3925  ;;  %v2442_v25 = vmul.f32 1.442695, %v2421_v14 }
 0x56a   : > { %v2399_v27 = vpop.xlane.xlu1 %2398  ;;  %7528 = vmatprep.subr.msk.bf16.mxu1 %vm1377_vm1, %v3926_v2  ;;  %v3967_v54 = vsel %vm1377_vm1, %v3926_v2, 0 }
 0x56b   : > { %v2423_v41 = vsub.f32 %v9112_v20, %v2399_v27  ;;  %v2452_v20 = vmul.f32 1.442695, %v2426_v1  ;;  %v10884_v27 = vld [vmem:[#allocation18_spill] sm:$0xff] }
 0x56d   : > { %v2446_v62 = vmul.f32 1.442695, %v2423_v41  ;;  %v3928_v7 = vpop.permute.xlu0 %3927 }
 0x56e   : > { %v2403_v45 = vpop.xlane.xlu1 %2402  ;;  %v3970_v23 = vsel %vm1377_vm1, %v3928_v7, 0 }
 0x56f   : > { %7745 = vpow2.f32 %v2446_v62  ;;  %3911 = vrot.lane.b32.xlu0 %v10882_v48, %s8136_s26  ;;  %7416 = vmatpush3.bf16.xpose.msra.mxu1 %v3967_v54  ;;  %v2425_v52 = vsub.f32 %v9121_v37, %v2403_v45 }
 0x570   : > { %7529 = vmatprep.subr.msk.bf16.mxu1 %vm1377_vm1, %v3928_v7  ;;  %7747 = vpow2.f32 %v2442_v25 }
 0x571   : > { %v9337_v4 = vpop.eup %7741  ;;  %v3932_v42 = vpop.permute.xlu0 %3931  ;;  %7749 = vpow2.f32 %v2452_v20  ;;  %v2450_v0 = vmul.f32 1.442695, %v2425_v52 }
 0x572   : > { %v2407_v17 = vpop.xlane.xlu1 %2406  ;;  %2466 = vadd.xlane.f32.xlu1 %v9337_v4  ;;  %v9341_v35 = vpop.eup %7743  ;;  %v3976_v38 = vsel %vm1377_vm1, %v3932_v42, 0 }
 0x573   : > { %v2427_v36 = vsub.f32 %v9118_v8, %v2407_v17  ;;  %v10883_v8 = vld [vmem:[#allocation37_spill] sm:$0xff] }
 0x574   : > { %v2430_v24 = vsub.f32 %v10883_v8, %v9306_v9 }
 0x575   : > { %v3936_v16 = vpop.permute.xlu0 %3935  ;;  %v2454_v15 = vmul.f32 1.442695, %v2427_v36 }
 0x576   : > { %v2411_v33 = vpop.xlane.xlu1 %2410  ;;  %2476 = vadd.xlane.f32.xlu1 %v9341_v35  ;;  %v2460_v37 = vmul.f32 1.442695, %v2430_v24  ;;  %v3982_v31 = vsel %vm1377_vm1, %v3936_v16, 0 }
 0x577   : > { %7418 = vmatpush3.bf16.xpose.msra.mxu1 %v3970_v23  ;;  %7751 = vpow2.f32 %v2454_v15  ;;  %v2429_v45 = vsub.f32 %v9139_v56, %v2411_v33 }
 0x578   : > { %7753 = vpow2.f32 %v2450_v0 }
 0x579   : > { %v9346_v58 = vpop.eup %7745  ;;  %v3908_v5 = vpop.permute.xlu0 %3907  ;;  %7755 = vpow2.f32 %v2460_v37  ;;  %v2458_v25 = vmul.f32 1.442695, %v2429_v45 }
 0x57a   : > { %v2415_v55 = vpop.xlane.xlu1 %2414  ;;  %2478 = vadd.xlane.f32.xlu1 %v9346_v58  ;;  %7429 = vmatprep.mubr.msk.bf16.mxu1 %vm1377_vm1, %v3908_v5  ;;  %v9352_v32 = vpop.eup %7747 }
 0x57b   : > { %v9355_v50 = vpop.eup %7749  ;;  %v2431_v62 = vsub.f32 %v9213_v19, %v2415_v55 }
 0x57d   : > { %v2462_v54 = vmul.f32 1.442695, %v2431_v62 }
 0x57e   : > { %v2749_v39 = vpop.permute.xlu1 %2748  ;;  %2474 = vadd.xlane.f32.xlu1 %v9352_v32 }
 0x57f   : > { %7757 = vpow2.f32 %v2462_v54 }
 0x580   : > { %7759 = vpow2.f32 %v2458_v25 }
 0x581   : > { %v9360_v53 = vpop.eup %7751 }
 0x582   : > { %v9357_v29 = vpop.permute.xlu1 %2752  ;;  %2484 = vadd.xlane.f32.xlu1 %v9355_v50  ;;  %v9365_v9 = vpop.eup %7753 }
 0x583   : > { %v9370_v34 = vpop.eup %7755 }
 0x586   : > { %v9362_v44 = vpop.permute.xlu1 %2758  ;;  %2486 = vadd.xlane.f32.xlu1 %v9360_v53 }
 0x58a   : > { %v3930_v11 = vpop.permute.xlu1 %3929  ;;  %2482 = vadd.xlane.f32.xlu1 %v9365_v9 }
 0x58b   : > { %7530 = vmatprep.subr.msk.bf16.mxu1 %vm1377_vm1, %v3930_v11  ;;  %v3973_v22 = vsel %vm1377_vm1, %v3930_v11, 0 }
 0x58c   : > { %7420 = vmatpush3.bf16.xpose.msra.mxu1 %v3973_v22 }
 0x58d   : > { %7531 = vmatprep.subr.msk.bf16.mxu1 %vm1377_vm1, %v3932_v42 }
 0x58e   : > { %2492 = vadd.xlane.f32.xlu1 %v9370_v34  ;;  %v3934_v47 = vpop.permute.xlu1 %3933 }
 0x58f   : > { %v3979_v2 = vsel %vm1377_vm1, %v3934_v47, 0 }
 0x592   : > { %v3938_v14 = vpop.permute.xlu1 %3937 }
 0x593   : > { %v3985_v41 = vsel %vm1377_vm1, %v3938_v14, 0 }
 0x594   : > { %7422 = vmatpush3.bf16.xpose.msra.mxu1 %v3976_v38  ;;  %v6784_v38 = vld [vmem:[%s8343_s22 + $0x48] sm:$0xff]  }
 0x595   : > { %7532 = vmatprep.subr.msk.bf16.mxu1 %vm1377_vm1, %v3934_v47 }
 0x596   : > { %v3910_v7 = vpop.permute.xlu1 %3909 }
 0x59c   : > { %7424 = vmatpush3.bf16.xpose.msra.mxu1 %v3979_v2 }
 0x59d   : > { %7533 = vmatprep.subr.msk.bf16.mxu1 %vm1377_vm1, %v3936_v16  ;;  %v9389_v16 = vpop.eup %7757 }
 0x59e   : > { %v9394_v15 = vpop.eup %7759 }
 0x59f   : > { %3913 = vrot.lane.b32.xlu1 %v10884_v27, %s8136_s26 }
 0x5a4   : > { %7426 = vmatpush3.bf16.xpose.msra.mxu1 %v3982_v31  ;;  %v6552_v31 = vunpack.c.l.bf16 %v6784_v38 }
 0x5a5   : > { %7534 = vmatprep.subr.msk.bf16.mxu1 %vm1377_vm1, %v3938_v14  ;;  %v6553_v14 = vunpack.c.h.bf16 %v6784_v38 }
 0x5ac   : > { %7428 = vmatpush3.bf16.xpose.msra.mxu1 %v3985_v41 }
 0x5b3   : > { %7430 = vmatmul.mubr.msk.bf16.vlgmr.msra.gmra.mrb[72].mxu1 %vm1377_vm1, %v3910_v7  ;;  %v2627_v7 = vmul.f32 %v6552_v31, %v9107_v40 }
 0x5b6   : > { %v7217_v18 = vpop.f32.mrb[24].mxu0 }
 0x5b7   : > { %v1927_v1 = vpop.f32.mrb[25].mxu0 }
 0x5b8   : > { %v7218_v48 = vpop.f32.mrb[26].mxu0 }
 0x5b9   : > { %v2007_v42 = vpack.c.bf16 %v7218_v48, %v7217_v18  ;;  %v1930_v17 = vpop.f32.mrb[27].mxu0 }
 0x5ba   : > { %v2006_v20 = vpack.c.bf16 %v1930_v17, %v1927_v1 }
 0x5bc   : > { %7233 = vmatprep.mubr.msk.bf16.mxu0 %vm1377_vm1, %v2006_v20 }
 0x5bd   : > { %7234 = vmatmul.mubr.msk.bf16.vlgmr.msra.gmra.mrb[40].mxu0 %vm1377_vm1, %v2007_v42 }
 0x5be   : > { %7282 = vmatpush3.bf16.msra.mxu0 %v9311_v10 }
 0x5bf   : > { %v7221_v19 = vpop.f32.mrb[28].mxu0  ;;  %7283 = vmatprep.subr.bf16.mxu0 %v2749_v39 }
 0x5c0   : > { %v1943_v36 = vpop.f32.mrb[29].mxu0 }
 0x5c1   : > { %v7222_v56 = vpop.f32.mrb[30].mxu0 }
 0x5c2   : > { %v2009_v33 = vpack.c.bf16 %v7222_v56, %v7221_v19  ;;  %v1946_v23 = vpop.f32.mrb[31].mxu0  ;;  %7284 = vmatpush3.bf16.msra.mxu0 %v2749_v39 }
 0x5c3   : > { %v2008_v52 = vpack.c.bf16 %v1946_v23, %v1943_v36  ;;  %7285 = vmatprep.subr.bf16.mxu0 %v9314_v59  ;;  %2494 = vadd.xlane.f32.xlu1 %v9389_v16 }
 0x5c5   : > { %7237 = vmatprep.mubr.msk.bf16.mxu0 %vm1377_vm1, %v2008_v52 }
 0x5c6   : > { %7238 = vmatmul.mubr.msk.bf16.gmra.mrb[44].mxu0 %vm1377_vm1, %v2009_v33 }
 0x5c7   : > { %7286 = vmatpush3.bf16.msra.mxu0 %v9314_v59  ;;  %v7225_v10 = vpop.f32.mrb[32].mxu0  ;;  %2490 = vadd.xlane.f32.xlu1 %v9394_v15 }
 0x5c8   : > { %7287 = vmatprep.subr.bf16.mxu0 %v9357_v29  ;;  %v1959_v5 = vpop.f32.mrb[33].mxu0 }
 0x5c9   : > { %v7226_v55 = vpop.f32.mrb[34].mxu0 }
 0x5ca   : > { %v2011_v8 = vpack.c.bf16 %v7226_v55, %v7225_v10  ;;  %v1962_v24 = vpop.f32.mrb[35].mxu0 }
 0x5cb   : > { %v2010_v0 = vpack.c.bf16 %v1962_v24, %v1959_v5  ;;  %7288 = vmatpush3.bf16.msra.mxu0 %v9357_v29 }
 0x5cc   : > { %7289 = vmatprep.subr.bf16.mxu0 %v9319_v61 }
 0x5cd   : > { %7241 = vmatprep.mubr.msk.bf16.mxu0 %vm1377_vm1, %v2010_v0 }
 0x5ce   : > { %7242 = vmatmul.mubr.msk.bf16.gmra.mrb[48].mxu0 %vm1377_vm1, %v2011_v8  ;;  %v2469_v39 = vpop.xlane.xlu0 %2468 }
 0x5cf   : > { %7290 = vmatpush3.bf16.msra.mxu0 %v9319_v61  ;;  %7761 = vrcp.f32 %v2469_v39 }
 0x5d0   : > { %7291 = vmatprep.subr.bf16.mxu0 %v9321_v28 }
 0x5d2   : > { %v2471_v59 = vpop.xlane.xlu1 %2470  ;;  %v2465_v37 = vpop.xlane.xlu0 %2464 }
 0x5d3   : > { %7292 = vmatpush3.bf16.msra.mxu0 %v9321_v28  ;;  %7763 = vrcp.f32 %v2471_v59 }
 0x5d4   : > { %7293 = vmatprep.subr.bf16.mxu0 %v9362_v44  ;;  %7765 = vrcp.f32 %v2465_v37 }
 0x5d6   : > { %v2473_v27 = vpop.xlane.xlu0 %2472 }
 0x5d7   : > { %7294 = vmatpush3.bf16.msra.mxu0 %v9362_v44  ;;  %7767 = vrcp.f32 %v2473_v27 }
 0x5d8   : > { %7295 = vmatprep.subr.bf16.mxu0 %v9323_v26 }
 0x5d9   : > { %v7762_v29 = vpop.eup %7761 }
 0x5da   : > { %v2514_v11 = vmul.f32 %v7762_v29, %v2469_v39 }
 0x5db   : > { %7296 = vmatpush3.bf16.msra.mxu0 %v9323_v26  ;;  %v2628_v26 = vmul.f32 %v6553_v14, %v9107_v40 }
 0x5dc   : > { %v2530_v22 = vsub.f32 2.0, %v2514_v11 }
 0x5dd   : > { %v7764_v61 = vpop.eup %7763 }
 0x5de   : > { %v2546_v47 = vmul.f32 %v7762_v29, %v2530_v22  ;;  %v2515_v2 = vmul.f32 %v7764_v61, %v2471_v59  ;;  %v9413_v62 = vpop.xlane.xlu0 %2480  ;;  %v7766_v33 = vpop.eup %7765 }
 0x5df   : > { %v2512_v5 = vmul.f32 %v7766_v33, %v2465_v37 }
 0x5e0   : > { %v2562_v28 = vmul.f32 %v9292_v63, %v2546_v47  ;;  %v2531_v41 = vsub.f32 2.0, %v2515_v2 }
 0x5e1   : > { %v2528_v59 = vsub.f32 2.0, %v2512_v5  ;;  %v7768_v11 = vpop.eup %7767 }
 0x5e2   : > { %v2547_v44 = vmul.f32 %v7764_v61, %v2531_v41  ;;  %v2578_v45 = vmul.f32 %v2562_v28, %v9103_v3  ;;  %v6783_v28 = vld [vmem:[%s8343_s22 + $0x40] sm:$0xff]   ;;  %v2516_v14 = vmul.f32 %v7768_v11, %v2473_v27 }
 0x5e3   : > { %v2544_v61 = vmul.f32 %v7766_v33, %v2528_v59 }
 0x5e4   : > { %v2563_v54 = vmul.f32 %v9298_v12, %v2547_v44  ;;  %v2643_v25 = vadd.f32 %v2627_v7, %v2578_v45 }
 0x5e5   : > { %v2560_v45 = vmul.f32 %v9296_v49, %v2544_v61 }
 0x5e6   : > { %v2579_v18 = vmul.f32 %v2563_v54, %v9103_v3  ;;  %v9420_v1 = vpop.xlane.xlu0 %2488  ;;  %v6549_v54 = vunpack.c.h.bf16 %v6783_v28 }
 0x5e7   : > { %v2576_v49 = vmul.f32 %v2560_v45, %v9103_v3 }
 0x5e8   : > { %v2644_v63 = vadd.f32 %v2628_v26, %v2579_v18  ;;  %v6548_v26 = vunpack.c.l.bf16 %v6783_v28 }
 0x5ea   : > { %v3912_v48 = vpop.permute.xlu0 %3911  ;;  %v9422_v42 = vpack.c.bf16 %v2644_v63, %v2643_v25  ;;  %v2625_v5 = vmul.f32 %v6548_v26, %v9107_v40 }
 0x5eb   : > { %7433 = vmatprep.mubr.msk.bf16.mxu1 %vm1377_vm1, %v3912_v48  ;;  %v6786_v48 = vld [vmem:[%s8343_s22 + $0x58] sm:$0xff]  }
 0x5ec   : > { %6792 = vst [vmem:[%s9170_s1 + $0x48] sm:$0xff] %v9422_v42   ;;  %v6560_v59 = vunpack.c.l.bf16 %v6786_v48 }
 0x5f9   : > { %v7349_v17 = vpop.f32.mrb[56].mxu1 }
 0x5fa   : > { %v3167_v20 = vpop.f32.mrb[57].mxu1  ;;  %v9432_v23 = vmul.f32 0.25, %v7349_v17  ;;  %v2532_v17 = vsub.f32 2.0, %v2516_v14  ;;  %v6785_v14 = vld [vmem:[%s8343_s22 + $0x50] sm:$0xff]  }
 0x5fb   : > { %v9427_v19 = vmul.f32 0.25, %v3167_v20  ;;  %v7350_v36 = vpop.f32.mrb[58].mxu1  ;;  %v10889_v20 = vld [vmem:[#allocation14_spill] sm:$0xff] }
 0x5fc   : > { %v3170_v12 = vpop.f32.mrb[59].mxu1  ;;  %10887 = vst [vmem:[#allocation20_spill] sm:$0xff] %v9432_v23  ;;  %v9440_v8 = vmul.f32 0.25, %v7350_v36 }
 0x5fd   : > { %10885 = vst [vmem:[#allocation25_spill] sm:$0xff] %v9427_v19  ;;  %v9429_v56 = vmul.f32 0.25, %v3170_v12  ;;  %3246 = vmax.xlane.f32.xlu0 %v9427_v19  ;;  %v2631_v19 = vmul.f32 %v6560_v59, %v9107_v40 }
 0x5fe   : > { %10888 = vst [vmem:[#allocation22_spill] sm:$0xff] %v9440_v8 }
 0x5ff   : > { %10886 = vst [vmem:[#allocation28_spill] sm:$0xff] %v9429_v56  ;;  %3248 = vmax.xlane.f32.xlu1 %v9429_v56  ;;  %v2467_v52 = vpop.xlane.xlu1 %2466 }
 0x600   : > { %7769 = vrcp.f32 %v2467_v52 }
 0x601   : > { %v9435_v10 = vpop.f32.mrb[60].mxu1  ;;  %3250 = vmax.xlane.f32.xlu0 %v9432_v23 }
 0x602   : > { %v9438_v55 = vpop.f32.mrb[61].mxu1 }
 0x603   : > { %v9442_v24 = vpop.f32.mrb[62].mxu1  ;;  %v2477_v0 = vpop.xlane.xlu1 %2476 }
 0x604   : > { %v9444_v39 = vpop.f32.mrb[63].mxu1  ;;  %7771 = vrcp.f32 %v2477_v0 }
 0x605   : > { %3252 = vmax.xlane.f32.xlu0 %v9440_v8  ;;  %v6557_v8 = vunpack.c.h.bf16 %v6785_v14 }
 0x607   : > { %v2479_v29 = vpop.xlane.xlu1 %2478 }
 0x608   : > { %7773 = vrcp.f32 %v2479_v29 }
 0x609   : > { %v9447_v22 = vpop.f32.mrb[64].mxu1 }
 0x60a   : > { %v7770_v37 = vpop.eup %7769  ;;  %v9449_v38 = vpop.f32.mrb[65].mxu1 }
 0x60b   : > { %v2513_v47 = vmul.f32 %v7770_v37, %v2467_v52  ;;  %v9451_v2 = vpop.f32.mrb[66].mxu1  ;;  %v2475_v31 = vpop.xlane.xlu1 %2474 }
 0x60c   : > { %v9454_v41 = vpop.f32.mrb[67].mxu1  ;;  %7775 = vrcp.f32 %v2475_v31 }
 0x60d   : > { %7777 = vrcp.f32 %v9413_v62  ;;  %v2529_v44 = vsub.f32 2.0, %v2513_v47 }
 0x60e   : > { %v7772_v7 = vpop.eup %7771 }
 0x60f   : > { %v2545_v18 = vmul.f32 %v7770_v37, %v2529_v44  ;;  %v2518_v25 = vmul.f32 %v7772_v7, %v2477_v0  ;;  %v2485_v63 = vpop.xlane.xlu1 %2484  ;;  %v2626_v0 = vmul.f32 %v6549_v54, %v9107_v40  ;;  %v6561_v44 = vunpack.c.h.bf16 %v6786_v48 }
 0x610   : > { %7779 = vrcp.f32 %v2485_v63  ;;  %3917 = vrot.lane.b32.xlu1 %v10889_v20, %s8136_s26 }
 0x611   : > { %v2561_v27 = vmul.f32 %v9337_v4, %v2545_v18  ;;  %v2534_v36 = vsub.f32 2.0, %v2518_v25  ;;  %v9462_v12 = vpop.f32.mrb[68].mxu1  ;;  %v2548_v18 = vmul.f32 %v7768_v11, %v2532_v17  ;;  %v2632_v17 = vmul.f32 %v6561_v44, %v9107_v40 }
 0x612   : > { %v7774_v33 = vpop.eup %7773  ;;  %v9464_v52 = vpop.f32.mrb[69].mxu1 }
 0x613   : > { %v2550_v37 = vmul.f32 %v7772_v7, %v2534_v36  ;;  %v2519_v61 = vmul.f32 %v7774_v33, %v2479_v29  ;;  %v9469_v47 = vpop.f32.mrb[70].mxu1  ;;  %v7229_v28 = vpop.f32.mrb[36].mxu0  ;;  %v2577_v4 = vmul.f32 %v2561_v27, %v9103_v3  ;;  %v2641_v7 = vadd.f32 %v2625_v5, %v2576_v49 }
 0x614   : > { %v9473_v25 = vpop.f32.mrb[71].mxu1  ;;  %v2487_v20 = vpop.xlane.xlu1 %2486  ;;  %v6556_v36 = vunpack.c.l.bf16 %v6785_v14 }
 0x615   : > { %v2566_v45 = vmul.f32 %v9341_v35, %v2550_v37  ;;  %v2535_v60 = vsub.f32 2.0, %v2519_v61  ;;  %7781 = vrcp.f32 %v2487_v20  ;;  %v1975_v26 = vpop.f32.mrb[37].mxu0  ;;  %v2642_v29 = vadd.f32 %v2626_v0, %v2577_v4 }
 0x616   : > { %v7776_v54 = vpop.eup %7775  ;;  %v7230_v30 = vpop.f32.mrb[38].mxu0  ;;  %v2564_v35 = vmul.f32 %v9302_v13, %v2548_v18  ;;  %v10890_v13 = vld [vmem:[#allocation15_spill] sm:$0xff] }
 0x617   : > { %v7778_v23 = vpop.eup %7777  ;;  %v2551_v27 = vmul.f32 %v7774_v33, %v2535_v60  ;;  %v2517_v56 = vmul.f32 %v7776_v54, %v2475_v31  ;;  %v2013_v11 = vpack.c.bf16 %v7230_v30, %v7229_v28  ;;  %v1978_v48 = vpop.f32.mrb[39].mxu0  ;;  %v2657_v43 = vpack.c.bf16 %v2642_v29, %v2641_v7 }
 0x618   : > { %v2012_v37 = vpack.c.bf16 %v1978_v48, %v1975_v26  ;;  %v2483_v61 = vpop.xlane.xlu1 %2482  ;;  %v2582_v0 = vmul.f32 %v2566_v45, %v9103_v3  ;;  %v2520_v60 = vmul.f32 %v7778_v23, %v9413_v62  ;;  %v2580_v33 = vmul.f32 %v2564_v35, %v9103_v3  ;;  %v6788_v45 = vld [vmem:[%s8343_s22 + $0x68] sm:$0xff]   ;;  %v6787_v35 = vld [vmem:[%s8343_s22 + $0x60] sm:$0xff]  }
 0x619   : > { %v2567_v49 = vmul.f32 %v9346_v58, %v2551_v27  ;;  %v2533_v5 = vsub.f32 2.0, %v2517_v56  ;;  %7783 = vrcp.f32 %v2483_v61  ;;  %6791 = vst [vmem:[%s9170_s1 + $0x40] sm:$0xff] %v2657_v43   ;;  %v2629_v62 = vmul.f32 %v6556_v36, %v9107_v40 }
 0x61a   : > { %v7780_v59 = vpop.eup %7779  ;;  %7245 = vmatprep.mubr.msk.bf16.mxu0 %vm1377_vm1, %v2012_v37  ;;  %v2630_v28 = vmul.f32 %v6557_v8, %v9107_v40  ;;  %v2647_v14 = vadd.f32 %v2631_v19, %v2582_v0  ;;  %v2536_v18 = vsub.f32 2.0, %v2520_v60  ;;  %v6564_v0 = vunpack.c.l.bf16 %v6787_v35 }
 0x61b   : > { %v2549_v30 = vmul.f32 %v7776_v54, %v2533_v5  ;;  %v2522_v31 = vmul.f32 %v7780_v59, %v2485_v63  ;;  %7246 = vmatmul.mubr.msk.bf16.gmra.mrb[52].mxu0 %vm1377_vm1, %v2013_v11  ;;  %3915 = vrot.lane.b32.xlu0 %v10890_v13, %s8136_s26  ;;  %v2583_v58 = vmul.f32 %v2567_v49, %v9103_v3  ;;  %v6569_v11 = vunpack.c.h.bf16 %v6788_v45 }
 0x61c   : > { %v9488_v56 = vpop.xlane.xlu1 %2492  ;;  %7297 = vmatprep.mubr.bf16.mxu0 %v2657_v43  ;;  %v2645_v8 = vadd.f32 %v2629_v62, %v2580_v33  ;;  %v2552_v19 = vmul.f32 %v7778_v23, %v2536_v18 }
 0x61d   : > { %v2565_v4 = vmul.f32 %v9352_v32, %v2549_v30  ;;  %v2538_v63 = vsub.f32 2.0, %v2522_v31  ;;  %v2648_v44 = vadd.f32 %v2632_v17, %v2583_v58  ;;  %v6568_v32 = vunpack.c.l.bf16 %v6788_v45 }
 0x61e   : > { %v2636_v30 = vmul.f32 %v6569_v11, %v9107_v40  ;;  %v2568_v23 = vmul.f32 %v9308_v57, %v2552_v19  ;;  %v2633_v58 = vmul.f32 %v6564_v0, %v9107_v40  ;;  %v9515_v45 = vmul.f32 0.25, %v9438_v55 }
 0x61f   : > { %v7782_v26 = vpop.eup %7781  ;;  %v2554_v54 = vmul.f32 %v7780_v59, %v2538_v63  ;;  %v2581_v7 = vmul.f32 %v2565_v4, %v9103_v3  ;;  %v2660_v43 = vpack.c.bf16 %v2648_v44, %v2647_v14  ;;  %v6565_v59 = vunpack.c.h.bf16 %v6787_v35 }
 0x620   : > { %v2523_v29 = vmul.f32 %v7782_v26, %v2487_v20  ;;  %v3914_v27 = vpop.permute.xlu1 %3913  ;;  %v2635_v60 = vmul.f32 %v6568_v32, %v9107_v40  ;;  %v9531_v55 = vmul.f32 0.25, %v9435_v10  ;;  %7785 = vrcp.f32 %v9488_v56  ;;  %v6790_v32 = vld [vmem:[%s8343_s22 + $0x78] sm:$0xff]  }
 0x621   : > { %7434 = vmatmul.mubr.msk.bf16.gmra.mrb[76].mxu1 %vm1377_vm1, %v3914_v27  ;;  %v2646_v36 = vadd.f32 %v2630_v28, %v2581_v7  ;;  %6794 = vst [vmem:[%s9170_s1 + $0x58] sm:$0xff] %v2660_v43   ;;  %v2570_v48 = vmul.f32 %v9355_v50, %v2554_v54  ;;  %v2634_v33 = vmul.f32 %v6565_v59, %v9107_v40  ;;  %v9527_v54 = vmul.f32 0.25, %v9454_v41  ;;  %v10891_v41 = vld [vmem:[#allocation16_spill] sm:$0xff] }
 0x622   : > { %v2539_v17 = vsub.f32 2.0, %v2523_v29  ;;  %v2584_v28 = vmul.f32 %v2568_v23, %v9103_v3  ;;  %v9535_v7 = vmul.f32 0.25, %v9451_v2  ;;  %7787 = vrcp.f32 %v9420_v1 }
 0x623   : > { %v7784_v37 = vpop.eup %7783  ;;  %7298 = vmatmul.mubr.bf16.vlgmr.msra.gmra.mrb[56].mxu0 %v9422_v42  ;;  %v2659_v49 = vpack.c.bf16 %v2646_v36, %v2645_v8  ;;  %v2586_v13 = vmul.f32 %v2570_v48, %v9103_v3  ;;  %v10892_v48 = vld [vmem:[#allocation17_spill] sm:$0xff]  ;;  %v6577_v35 = vunpack.c.h.bf16 %v6790_v32 }
 0x624   : > { %v2555_v5 = vmul.f32 %v7782_v26, %v2539_v17  ;;  %v2521_v20 = vmul.f32 %v7784_v37, %v2483_v61  ;;  %v2649_v14 = vadd.f32 %v2633_v58, %v2584_v28  ;;  %v9523_v26 = vmul.f32 0.25, %v9444_v39 }
 0x625   : > { %6793 = vst [vmem:[%s9170_s1 + $0x50] sm:$0xff] %v2659_v49   ;;  %7301 = vmatprep.mubr.bf16.mxu0 %v2659_v49  ;;  %v2651_v4 = vadd.f32 %v2635_v60, %v2586_v13  ;;  %v9544_v39 = vmul.f32 0.25, %v9447_v22  ;;  %v6576_v17 = vunpack.c.l.bf16 %v6790_v32  ;;  %v2640_v23 = vmul.f32 %v6577_v35, %v9107_v40 }
 0x626   : > { %v2571_v50 = vmul.f32 %v9360_v53, %v2555_v5  ;;  %v2537_v31 = vsub.f32 2.0, %v2521_v20  ;;  %v6789_v5 = vld [vmem:[%s8343_s22 + $0x70] sm:$0xff]  }
 0x627   : > { %v6573_v60 = vunpack.c.h.bf16 %v6789_v5 }
 0x628   : > { %v2553_v42 = vmul.f32 %v7784_v37, %v2537_v31  ;;  %v2587_v61 = vmul.f32 %v2571_v50, %v9103_v3 }
 0x62a   : > { %v2569_v62 = vmul.f32 %v9365_v9, %v2553_v42  ;;  %v2652_v57 = vadd.f32 %v2636_v30, %v2587_v61  ;;  %v9520_v9 = vmul.f32 0.25, %v9442_v24  ;;  %v9539_v24 = vmul.f32 0.25, %v9449_v38  ;;  %v7786_v10 = vpop.eup %7785 }
 0x62b   : > { %7302 = vmatmul.mubr.bf16.gmra.mrb[60].mxu0 %v2660_v43  ;;  %v2526_v38 = vmul.f32 %v7786_v10, %v9488_v56  ;;  %v2639_v30 = vmul.f32 %v6576_v17, %v9107_v40 }
 0x62c   : > { %v2585_v53 = vmul.f32 %v2569_v62, %v9103_v3  ;;  %v2662_v63 = vpack.c.bf16 %v2652_v57, %v2651_v4  ;;  %v7788_v43 = vpop.eup %7787 }
 0x62d   : > { %v2524_v22 = vmul.f32 %v7788_v43, %v9420_v1  ;;  %v2542_v27 = vsub.f32 2.0, %v2526_v38  ;;  %v6572_v1 = vunpack.c.l.bf16 %v6789_v5 }
 0x62e   : > { %v2650_v44 = vadd.f32 %v2634_v33, %v2585_v53  ;;  %6796 = vst [vmem:[%s9170_s1 + $0x68] sm:$0xff] %v2662_v63   ;;  %v2638_v33 = vmul.f32 %v6573_v60, %v9107_v40  ;;  %v10894_v60 = vld [vmem:[#allocation23_spill] sm:$0xff] }
 0x62f   : > { %v2540_v8 = vsub.f32 2.0, %v2524_v22  ;;  %v2558_v36 = vmul.f32 %v7786_v10, %v2542_v27  ;;  %v2637_v58 = vmul.f32 %v6572_v1, %v9107_v40  ;;  %v9582_v10 = vmul.f32 0.25, %v9473_v25  ;;  %v1993_v27 = vld [vmem:[#allocation2 + $0x18] sm:$0xff] }
 0x630   : > { %v2661_v18 = vpack.c.bf16 %v2650_v44, %v2649_v14  ;;  %v9572_v44 = vmul.f32 0.25, %v9464_v52  ;;  %v9587_v52 = vmul.f32 0.25, %v9462_v12 }
 0x631   : > { %v2556_v37 = vmul.f32 %v7788_v43, %v2540_v8  ;;  %v2574_v56 = vmul.f32 %v9370_v34, %v2558_v36  ;;  %v1992_v43 = vld [vmem:[#allocation2 + $0x10] sm:$0xff] }
 0x632   : > { %6795 = vst [vmem:[%s9170_s1 + $0x60] sm:$0xff] %v2661_v18   ;;  %7305 = vmatprep.mubr.bf16.mxu0 %v2661_v18  ;;  %v7602_v18 = vld [vmem:[%s10768_s7 + $0x8] sm:$0xff]  }
 0x633   : > { %7306 = vmatmul.mubr.bf16.gmra.mrb[64].mxu0 %v2662_v63  ;;  %v2572_v50 = vmul.f32 %v9316_v46, %v2556_v37  ;;  %v2590_v34 = vmul.f32 %v2574_v56, %v9103_v3  ;;  %7313 = vmatprep.subr.bf16.mxu0 %v7602_v18 }
 0x634   : > { %3254 = vmax.xlane.f32.xlu1 %v9515_v45  ;;  %7314 = vmatpush3.bf16.msra.mxu0 %v7602_v18  ;;  %v10897_v18 = vld [vmem:[#allocation28_spill] sm:$0xff] }
 0x635   : > { %v2588_v28 = vmul.f32 %v2572_v50, %v9103_v3  ;;  %v2655_v4 = vadd.f32 %v2639_v30, %v2590_v34  ;;  %v1997_v30 = vld [vmem:[#allocation2 + $0x38] sm:$0xff] }
 0x637   : > { %v2653_v53 = vadd.f32 %v2637_v58, %v2588_v28  ;;  %v2000_v28 = vld [vmem:[#allocation2 + $0x50] sm:$0xff] }
 0x638   : > { %3260 = vmax.xlane.f32.xlu1 %v9520_v9 }
 0x63a   : > { %3256 = vmax.xlane.f32.xlu0 %v9523_v26 }
 0x63c   : > { %3264 = vmax.xlane.f32.xlu1 %v9527_v54 }
 0x63e   : > { %3258 = vmax.xlane.f32.xlu0 %v9531_v55 }
 0x640   : > { %3268 = vmax.xlane.f32.xlu1 %v9535_v7 }
 0x642   : > { %3262 = vmax.xlane.f32.xlu0 %v9539_v24 }
 0x646   : > { %3266 = vmax.xlane.f32.xlu0 %v9544_v39 }
 0x650   : > { %v2495_v2 = vpop.xlane.xlu1 %2494 }
 0x651   : > { %3921 = vrot.lane.b32.xlu1 %v10891_v41, %s8136_s26  ;;  %7789 = vrcp.f32 %v2495_v2 }
 0x654   : > { %v2491_v29 = vpop.xlane.xlu1 %2490 }
 0x655   : > { %7791 = vrcp.f32 %v2491_v29 }
 0x65b   : > { %v7790_v11 = vpop.eup %7789 }
 0x65c   : > { %v2527_v19 = vmul.f32 %v7790_v11, %v2495_v2  ;;  %3919 = vrot.lane.b32.xlu0 %v10892_v48, %s8136_s26 }
 0x65e   : > { %v2543_v49 = vsub.f32 2.0, %v2527_v19 }
 0x65f   : > { %v7792_v20 = vpop.eup %7791 }
 0x660   : > { %v2559_v0 = vmul.f32 %v7790_v11, %v2543_v49  ;;  %v2525_v59 = vmul.f32 %v7792_v20, %v2491_v29  ;;  %v1990_v29 = vld [vmem:[#allocation2] sm:$0xff]  ;;  %v1991_v11 = vld [vmem:[#allocation2 + $0x8] sm:$0xff]  ;;  %v10893_v49 = vld [vmem:[#allocation21_spill] sm:$0xff] }
 0x662   : > { %v2575_v31 = vmul.f32 %v9389_v16, %v2559_v0  ;;  %v2541_v13 = vsub.f32 2.0, %v2525_v59  ;;  %v1996_v0 = vld [vmem:[#allocation2 + $0x30] sm:$0xff]  ;;  %v1994_v59 = vld [vmem:[#allocation2 + $0x20] sm:$0xff] }
 0x664   : > { %v2557_v42 = vmul.f32 %v7792_v20, %v2541_v13  ;;  %v2591_v61 = vmul.f32 %v2575_v31, %v9103_v3  ;;  %v1995_v31 = vld [vmem:[#allocation2 + $0x28] sm:$0xff] }
 0x666   : > { %v2573_v62 = vmul.f32 %v9394_v15, %v2557_v42  ;;  %v2656_v46 = vadd.f32 %v2640_v23, %v2591_v61  ;;  %v9576_v15 = vmul.f32 0.25, %v9469_v47 }
 0x668   : > { %v2589_v57 = vmul.f32 %v2573_v62, %v9103_v3  ;;  %v2664_v16 = vpack.c.bf16 %v2656_v46, %v2655_v4  ;;  %v1998_v4 = vld [vmem:[#allocation2 + $0x40] sm:$0xff] }
 0x66a   : > { %v2654_v63 = vadd.f32 %v2638_v33, %v2589_v57  ;;  %6798 = vst [vmem:[%s9170_s1 + $0x78] sm:$0xff] %v2664_v16   ;;  %v10895_v33 = vld [vmem:[#allocation22_spill] sm:$0xff]  ;;  %v10896_v57 = vld [vmem:[#allocation24_spill] sm:$0xff] }
 0x66c   : > { %v2663_v14 = vpack.c.bf16 %v2654_v63, %v2653_v53 }
 0x66e   : > { %6797 = vst [vmem:[%s9170_s1 + $0x70] sm:$0xff] %v2663_v14   ;;  %7309 = vmatprep.mubr.bf16.mxu0 %v2663_v14  ;;  %v1999_v14 = vld [vmem:[#allocation2 + $0x48] sm:$0xff] }
 0x66f   : > { %7310 = vmatmul.mubr.bf16.gmra.mrb[68].mxu0 %v2664_v16  ;;  %v2001_v16 = vld [vmem:[#allocation2 + $0x58] sm:$0xff] }
 0x675   : > { %3270 = vmax.xlane.f32.xlu1 %v9572_v44 }
 0x679   : > { %3276 = vmax.xlane.f32.xlu1 %v9576_v15 }
 0x67b   : > { %3272 = vmax.xlane.f32.xlu0 %v9582_v10 }
 0x67f   : > { %3274 = vmax.xlane.f32.xlu0 %v9587_v52 }
 0x686   : > { %v9590_v47 = vpop.f32.mrb[72].mxu1 }
 0x687   : > { %v9592_v2 = vpop.f32.mrb[73].mxu1 }
 0x688   : > { %v9594_v41 = vpop.f32.mrb[74].mxu1 }
 0x689   : > { %v9596_v38 = vpop.f32.mrb[75].mxu1 }
 0x68a   : > { %3602 = vrot.lane.b32.xlu1 %v10869_v6, %s8135_s27  ;;  %v9600_v25 = vpop.xlane.xlu0 %3246 }
 0x68c   : > { %v3249_v8 = vpop.xlane.xlu1 %3248 }
 0x68e   : > { %3606 = vrot.lane.b32.xlu1 %v10870_v51, %s8135_s27  ;;  %v9604_v12 = vpop.xlane.xlu0 %3250 }
 0x690   : > { %v7235_v22 = vpop.f32.mrb[40].mxu0  ;;  %v3918_v20 = vpop.permute.xlu1 %3917 }
 0x691   : > { %v2145_v36 = vadd.f32 %v7235_v22, %v1992_v43  ;;  %v2080_v32 = vpop.f32.mrb[41].mxu0  ;;  %v3279_v43 = vsub.f32 %v10897_v18, %v3249_v8 }
 0x692   : > { %v2143_v19 = vadd.f32 %v2080_v32, %v1990_v29  ;;  %v3253_v48 = vpop.xlane.xlu0 %3252  ;;  %v7236_v17 = vpop.f32.mrb[42].mxu0 }
 0x693   : > { %2161 = vst.msk [vmem:[#allocation2 + $0x10] sm:$0xff] %vm639_vm0, %v2145_v36  ;;  %v2146_v35 = vadd.f32 %v7236_v17, %v1993_v27  ;;  %v2083_v37 = vpop.f32.mrb[43].mxu0  ;;  %v3281_v62 = vsub.f32 %v10895_v33, %v3253_v48  ;;  %v10898_v48 = vld [vmem:[#allocation20_spill] sm:$0xff] }
 0x694   : > { %2159 = vst.msk [vmem:[#allocation2] sm:$0xff] %vm639_vm0, %v2143_v19  ;;  %v2144_v56 = vadd.f32 %v2083_v37, %v1991_v11  ;;  %v3296_v19 = vmul.f32 1.442695, %v3279_v43  ;;  %v3280_v8 = vsub.f32 %v10898_v48, %v9604_v12 }
 0x695   : > { %2162 = vst.msk [vmem:[#allocation2 + $0x18] sm:$0xff] %vm639_vm0, %v2146_v35  ;;  %3600 = vrot.lane.b32.xlu0 %v10893_v49, %s8135_s27  ;;  %v3300_v29 = vmul.f32 1.442695, %v3281_v62  ;;  %v10899_v35 = vld [vmem:[#allocation25_spill] sm:$0xff] }
 0x696   : > { %2160 = vst.msk [vmem:[#allocation2 + $0x8] sm:$0xff] %vm639_vm0, %v2144_v56  ;;  %v3916_v5 = vpop.permute.xlu0 %3915  ;;  %v3278_v37 = vsub.f32 %v10899_v35, %v9600_v25  ;;  %v3298_v56 = vmul.f32 1.442695, %v3280_v8  ;;  %v2003_v35 = vld [vmem:[#allocation2 + $0x68] sm:$0xff] }
 0x697   : > { %7437 = vmatprep.mubr.msk.bf16.mxu1 %vm1377_vm1, %v3916_v5  ;;  %7793 = vpow2.f32 %v3300_v29 }
 0x698   : > { %7438 = vmatmul.mubr.msk.bf16.gmra.mrb[80].mxu1 %vm1377_vm1, %v3918_v20  ;;  %7795 = vpow2.f32 %v3296_v19  ;;  %v3294_v20 = vmul.f32 1.442695, %v3278_v37  ;;  %v2005_v19 = vld [vmem:[#allocation2 + $0x78] sm:$0xff] }
 0x699   : > { %v7239_v1 = vpop.f32.mrb[44].mxu0  ;;  %3604 = vrot.lane.b32.xlu0 %v10894_v60, %s8135_s27  ;;  %7797 = vpow2.f32 %v3298_v56 }
 0x69a   : > { %v2149_v23 = vadd.f32 %v7239_v1, %v1996_v0  ;;  %v2096_v50 = vpop.f32.mrb[45].mxu0  ;;  %7799 = vpow2.f32 %v3294_v20 }
 0x69b   : > { %v2147_v13 = vadd.f32 %v2096_v50, %v1994_v59  ;;  %v7240_v34 = vpop.f32.mrb[46].mxu0 }
 0x69c   : > { %2165 = vst.msk [vmem:[#allocation2 + $0x30] sm:$0xff] %vm639_vm0, %v2149_v23  ;;  %v2150_v42 = vadd.f32 %v7240_v34, %v1997_v30  ;;  %v2099_v61 = vpop.f32.mrb[47].mxu0 }
 0x69d   : > { %2163 = vst.msk [vmem:[#allocation2 + $0x20] sm:$0xff] %vm639_vm0, %v2147_v13  ;;  %v2148_v58 = vadd.f32 %v2099_v61, %v1995_v31  ;;  %3608 = vrot.lane.b32.xlu0 %v10865_v21, %s8135_s27 }
 0x69e   : > { %2166 = vst.msk [vmem:[#allocation2 + $0x38] sm:$0xff] %vm639_vm0, %v2150_v42 }
 0x69f   : > { %2164 = vst.msk [vmem:[#allocation2 + $0x28] sm:$0xff] %vm639_vm0, %v2148_v58 }
 0x6a1   : > { %v7243_v46 = vpop.f32.mrb[48].mxu0  ;;  %3610 = vrot.lane.b32.xlu0 %v10896_v57, %s8135_s27  ;;  %v9632_v17 = vpop.eup %7793 }
 0x6a2   : > { %v2153_v53 = vadd.f32 %v7243_v46, %v2000_v28  ;;  %v2112_v63 = vpop.f32.mrb[49].mxu0  ;;  %v9637_v5 = vpop.eup %7795 }
 0x6a3   : > { %v2151_v22 = vadd.f32 %v2112_v63, %v1998_v4  ;;  %v7244_v27 = vpop.f32.mrb[50].mxu0  ;;  %v9640_v0 = vpop.eup %7797 }
 0x6a4   : > { %2169 = vst.msk [vmem:[#allocation2 + $0x50] sm:$0xff] %vm639_vm0, %v2153_v53  ;;  %v2154_v36 = vadd.f32 %v7244_v27, %v2001_v16  ;;  %v2115_v32 = vpop.f32.mrb[51].mxu0  ;;  %v9644_v1 = vpop.eup %7799  ;;  %v2004_v27 = vld [vmem:[#allocation2 + $0x70] sm:$0xff] }
 0x6a5   : > { %2167 = vst.msk [vmem:[#allocation2 + $0x40] sm:$0xff] %vm639_vm0, %v2151_v22  ;;  %v2152_v11 = vadd.f32 %v2115_v32, %v1999_v14 }
 0x6a6   : > { %2170 = vst.msk [vmem:[#allocation2 + $0x58] sm:$0xff] %vm639_vm0, %v2154_v36  ;;  %v2002_v36 = vld [vmem:[#allocation2 + $0x60] sm:$0xff] }
 0x6a7   : > { %2168 = vst.msk [vmem:[#allocation2 + $0x48] sm:$0xff] %vm639_vm0, %v2152_v11 }
 0x6b2   : > { %3332 = vadd.xlane.f32.xlu1 %v9632_v17 }
 0x6b6   : > { %3328 = vadd.xlane.f32.xlu1 %v9637_v5 }
 0x6c0   : > { %3330 = vadd.xlane.f32.xlu0 %v9640_v0 }
 0x6c1   : > { %v3255_v12 = vpop.xlane.xlu1 %3254 }
 0x6c2   : > { %v3282_v59 = vsub.f32 %v9515_v45, %v3255_v12 }
 0x6c4   : > { %v3302_v25 = vmul.f32 1.442695, %v3282_v59  ;;  %3326 = vadd.xlane.f32.xlu0 %v9644_v1 }
 0x6c5   : > { %v3261_v30 = vpop.xlane.xlu1 %3260 }
 0x6c6   : > { %7801 = vpow2.f32 %v3302_v25  ;;  %v3285_v50 = vsub.f32 %v9520_v9, %v3261_v30 }
 0x6c7   : > { %v3257_v23 = vpop.xlane.xlu0 %3256 }
 0x6c8   : > { %v3308_v61 = vmul.f32 1.442695, %v3285_v50  ;;  %v3283_v45 = vsub.f32 %v9523_v26, %v3257_v23 }
 0x6c9   : > { %v3265_v13 = vpop.xlane.xlu1 %3264 }
 0x6ca   : > { %v3304_v46 = vmul.f32 1.442695, %v3283_v45 }
 0x6cb   : > { %v3259_v31 = vpop.xlane.xlu0 %3258 }
 0x6cc   : > { %v3284_v34 = vsub.f32 %v9531_v55, %v3259_v31 }
 0x6cd   : > { %v3269_v28 = vpop.xlane.xlu1 %3268 }
 0x6ce   : > { %v3306_v42 = vmul.f32 1.442695, %v3284_v34  ;;  %v3289_v53 = vsub.f32 %v9535_v7, %v3269_v28 }
 0x6cf   : > { %v3263_v58 = vpop.xlane.xlu0 %3262 }
 0x6d0   : > { %v9649_v33 = vpop.eup %7801  ;;  %7803 = vpow2.f32 %v3306_v42  ;;  %v3286_v62 = vsub.f32 %v9539_v24, %v3263_v58  ;;  %v3287_v24 = vsub.f32 %v9527_v54, %v3265_v13  ;;  %v3316_v18 = vmul.f32 1.442695, %v3289_v53 }
 0x6d1   : > { %3334 = vadd.xlane.f32.xlu0 %v9649_v33  ;;  %7805 = vpow2.f32 %v3308_v61  ;;  %v3922_v63 = vpop.permute.xlu1 %3921 }
 0x6d2   : > { %v3310_v4 = vmul.f32 1.442695, %v3286_v62  ;;  %v3312_v7 = vmul.f32 1.442695, %v3287_v24 }
 0x6d3   : > { %v3267_v9 = vpop.xlane.xlu0 %3266 }
 0x6d4   : > { %7807 = vpow2.f32 %v3310_v4  ;;  %v3288_v55 = vsub.f32 %v9544_v39, %v3267_v9 }
 0x6d5   : > { %7809 = vpow2.f32 %v3304_v46 }
 0x6d6   : > { %v3314_v14 = vmul.f32 1.442695, %v3288_v55 }
 0x6d7   : > { %v3920_v16 = vpop.permute.xlu0 %3919 }
 0x6d8   : > { %7441 = vmatprep.mubr.msk.bf16.mxu1 %vm1377_vm1, %v3920_v16  ;;  %7811 = vpow2.f32 %v3314_v14 }
 0x6d9   : > { %7442 = vmatmul.mubr.msk.bf16.gmra.mrb[84].mxu1 %vm1377_vm1, %v3922_v63  ;;  %7813 = vpow2.f32 %v3316_v18 }
 0x6da   : > { %v9658_v26 = vpop.eup %7803  ;;  %7815 = vpow2.f32 %v3312_v7 }
 0x6db   : > { %3338 = vadd.xlane.f32.xlu1 %v9658_v26  ;;  %v9662_v43 = vpop.eup %7805 }
 0x6de   : > { %v9664_v39 = vpop.eup %7807 }
 0x6df   : > { %3340 = vadd.xlane.f32.xlu1 %v9662_v43  ;;  %3342 = vadd.xlane.f32.xlu0 %v9664_v39  ;;  %v9668_v29 = vpop.eup %7809 }
 0x6e2   : > { %v9671_v22 = vpop.eup %7811 }
 0x6e3   : > { %3336 = vadd.xlane.f32.xlu1 %v9668_v29  ;;  %v9674_v54 = vpop.eup %7813 }
 0x6e4   : > { %v9677_v32 = vpop.eup %7815 }
 0x6e7   : > { %3346 = vadd.xlane.f32.xlu1 %v9671_v22 }
 0x6eb   : > { %3348 = vadd.xlane.f32.xlu1 %v9674_v54 }
 0x6ee   : > { %v7247_v11 = vpop.f32.mrb[52].mxu0 }
 0x6ef   : > { %v2157_v48 = vadd.f32 %v7247_v11, %v2004_v27  ;;  %v2128_v8 = vpop.f32.mrb[53].mxu0  ;;  %3344 = vadd.xlane.f32.xlu1 %v9677_v32 }
 0x6f0   : > { %v2155_v37 = vadd.f32 %v2128_v8, %v2002_v36  ;;  %v7248_v56 = vpop.f32.mrb[54].mxu0 }
 0x6f1   : > { %2173 = vst.msk [vmem:[#allocation2 + $0x70] sm:$0xff] %vm639_vm0, %v2157_v48  ;;  %v2158_v20 = vadd.f32 %v7248_v56, %v2005_v19  ;;  %v2131_v12 = vpop.f32.mrb[55].mxu0 }
 0x6f2   : > { %2171 = vst.msk [vmem:[#allocation2 + $0x60] sm:$0xff] %vm639_vm0, %v2155_v37  ;;  %v2156_v59 = vadd.f32 %v2131_v12, %v2003_v35 }
 0x6f3   : > { %2174 = vst.msk [vmem:[#allocation2 + $0x78] sm:$0xff] %vm639_vm0, %v2158_v20 }
 0x6f4   : > { %2172 = vst.msk [vmem:[#allocation2 + $0x68] sm:$0xff] %vm639_vm0, %v2156_v59  ;;  %v9684_v25 = vpop.f32.mrb[76].mxu1 }
 0x6f5   : > { %v9686_v30 = vpop.f32.mrb[77].mxu1 }
 0x6f6   : > { %v7299_v23 = vpop.f32.mrb[56].mxu0  ;;  %v9688_v50 = vpop.f32.mrb[78].mxu1 }
 0x6f7   : > { %v2804_v31 = vpop.f32.mrb[57].mxu0  ;;  %v9690_v13 = vpop.f32.mrb[79].mxu1 }
 0x6f8   : > { %v7300_v34 = vpop.f32.mrb[58].mxu0 }
 0x6f9   : > { %v2884_v42 = vpack.c.bf16 %v7300_v34, %v7299_v23  ;;  %v2807_v61 = vpop.f32.mrb[59].mxu0 }
 0x6fa   : > { %v2883_v58 = vpack.c.bf16 %v2807_v61, %v2804_v31  ;;  %v10900_v61 = vld [vmem:[#allocation26_spill] sm:$0xff] }
 0x6fc   : > { %7315 = vmatprep.mubr.msk.bf16.mxu0 %vm1377_vm1, %v2883_v58  ;;  %v10901_v58 = vld [vmem:[#allocation27_spill] sm:$0xff] }
 0x6fd   : > { %7316 = vmatmul.mubr.msk.bf16.vlgmr.msra.gmra.mrb[72].mxu0 %vm1377_vm1, %v2884_v42 }
 0x6fe   : > { %v7303_v45 = vpop.f32.mrb[60].mxu0 }
 0x6ff   : > { %v2820_v62 = vpop.f32.mrb[61].mxu0 }
 0x700   : > { %v7304_v28 = vpop.f32.mrb[62].mxu0 }
 0x701   : > { %v2886_v4 = vpack.c.bf16 %v7304_v28, %v7303_v45  ;;  %v2823_v9 = vpop.f32.mrb[63].mxu0 }
 0x702   : > { %v2885_v46 = vpack.c.bf16 %v2823_v9, %v2820_v62  ;;  %v3271_v55 = vpop.xlane.xlu1 %3270 }
 0x703   : > { %v3290_v16 = vsub.f32 %v9572_v44, %v3271_v55 }
 0x704   : > { %7319 = vmatprep.mubr.msk.bf16.mxu0 %vm1377_vm1, %v2885_v46  ;;  %v9719_v46 = vmul.f32 0.25, %v9592_v2  ;;  %v9729_v2 = vmul.f32 0.25, %v9594_v41  ;;  %v9740_v41 = vmul.f32 0.25, %v9596_v38 }
 0x705   : > { %v3318_v53 = vmul.f32 1.442695, %v3290_v16  ;;  %7320 = vmatmul.mubr.msk.bf16.gmra.mrb[76].mxu0 %vm1377_vm1, %v2886_v4 }
 0x706   : > { %v7307_v63 = vpop.f32.mrb[64].mxu0  ;;  %v3277_v36 = vpop.xlane.xlu1 %3276 }
 0x707   : > { %7817 = vpow2.f32 %v3318_v53  ;;  %v2836_v14 = vpop.f32.mrb[65].mxu0  ;;  %v3293_v48 = vsub.f32 %v9576_v15, %v3277_v36 }
 0x708   : > { %v7308_v24 = vpop.f32.mrb[66].mxu0  ;;  %v3273_v18 = vpop.xlane.xlu0 %3272 }
 0x709   : > { %v2888_v7 = vpack.c.bf16 %v7308_v24, %v7307_v63  ;;  %v2839_v27 = vpop.f32.mrb[67].mxu0  ;;  %v3324_v56 = vmul.f32 1.442695, %v3293_v48  ;;  %v3291_v20 = vsub.f32 %v9582_v10, %v3273_v18  ;;  %v9724_v63 = vmul.f32 0.25, %v9590_v47  ;;  %v6800_v48 = vld [vmem:[%s8343_s22 + $0x88] sm:$0xff]  }
 0x70a   : > { %v2887_v11 = vpack.c.bf16 %v2839_v27, %v2836_v14  ;;  %v3603_v12 = vpop.permute.xlu1 %3602  ;;  %v9733_v27 = vmul.f32 0.25, %v9686_v30 }
 0x70b   : > { %v3320_v15 = vmul.f32 1.442695, %v3291_v20  ;;  %v6625_v20 = vunpack.c.h.bf16 %v6800_v48 }
 0x70c   : > { %7323 = vmatprep.mubr.msk.bf16.mxu0 %vm1377_vm1, %v2887_v11  ;;  %v3275_v19 = vpop.xlane.xlu0 %3274 }
 0x70d   : > { %v3292_v44 = vsub.f32 %v9587_v52, %v3275_v19  ;;  %7324 = vmatmul.mubr.msk.bf16.gmra.mrb[80].mxu0 %vm1377_vm1, %v2888_v7  ;;  %v9737_v19 = vmul.f32 0.25, %v9690_v13  ;;  %v9749_v13 = vmul.f32 0.25, %v9688_v50 }
 0x70e   : > { %v3607_v52 = vpop.permute.xlu1 %3606 }
 0x70f   : > { %v3322_v8 = vmul.f32 1.442695, %v3292_v44 }
 0x710   : > { %v3601_v35 = vpop.permute.xlu0 %3600 }
 0x711   : > { %v9701_v37 = vpop.eup %7817  ;;  %7819 = vpow2.f32 %v3322_v8  ;;  %7363 = vmatprep.subr.bf16.mxu0 %v3601_v35 }
 0x712   : > { %3350 = vadd.xlane.f32.xlu0 %v9701_v37  ;;  %7364 = vmatpush3.bf16.msra.mxu0 %v3601_v35  ;;  %7821 = vpow2.f32 %v3324_v56  ;;  %v9745_v35 = vmul.f32 0.25, %v9684_v25  ;;  %v3490_v25 = vmul.f32 %v6625_v20, %v9107_v40 }
 0x713   : > { %7365 = vmatprep.subr.bf16.mxu0 %v3603_v12  ;;  %7823 = vpow2.f32 %v3320_v15 }
 0x714   : > { %v3605_v59 = vpop.permute.xlu0 %3604 }
 0x716   : > { %7366 = vmatpush3.bf16.msra.mxu0 %v3603_v12  ;;  %v6624_v12 = vunpack.c.l.bf16 %v6800_v48 }
 0x717   : > { %7367 = vmatprep.subr.bf16.mxu0 %v3605_v59 }
 0x718   : > { %v3609_v31 = vpop.permute.xlu0 %3608 }
 0x71a   : > { %7368 = vmatpush3.bf16.msra.mxu0 %v3605_v59 }
 0x71b   : > { %v9705_v23 = vpop.eup %7819  ;;  %7369 = vmatprep.subr.bf16.mxu0 %v3607_v52 }
 0x71c   : > { %3354 = vadd.xlane.f32.xlu1 %v9705_v23  ;;  %v9708_v10 = vpop.eup %7821  ;;  %v3611_v34 = vpop.permute.xlu0 %3610 }
 0x71d   : > { %v9711_v42 = vpop.eup %7823 }
 0x71e   : > { %7370 = vmatpush3.bf16.msra.mxu0 %v3607_v52  ;;  %v6799_v52 = vld [vmem:[%s8343_s22 + $0x80] sm:$0xff]  }
 0x71f   : > { %7371 = vmatprep.subr.bf16.mxu0 %v3609_v31 }
 0x720   : > { %3356 = vadd.xlane.f32.xlu1 %v9708_v10 }
 0x722   : > { %7372 = vmatpush3.bf16.msra.mxu0 %v3609_v31 }
 0x723   : > { %7373 = vmatprep.subr.bf16.mxu0 %v3611_v34 }
 0x724   : > { %3352 = vadd.xlane.f32.xlu1 %v9711_v42 }
 0x726   : > { %7374 = vmatpush3.bf16.msra.mxu0 %v3611_v34 }
 0x728   : > { %3614 = vrot.lane.b32.xlu0 %v10900_v61, %s8135_s27 }
 0x735   : > { %3612 = vrot.lane.b32.xlu1 %v10901_v58, %s8135_s27  ;;  %s6441_s27 = sshll.u32 %s8255_s30, 12 }
 0x736   : > { %s10655_s16 = scalar_lea.hbm %s10778_s17, %s6441_s27 }
 0x73f   : > { %v3333_v45 = vpop.xlane.xlu1 %3332 }
 0x740   : > { %7825 = vrcp.f32 %v3333_v45 }
 0x742   : > { %v7311_v62 = vpop.f32.mrb[68].mxu0 }
 0x743   : > { %v3329_v28 = vpop.xlane.xlu1 %3328  ;;  %v2852_v4 = vpop.f32.mrb[69].mxu0 }
 0x744   : > { %v7312_v9 = vpop.f32.mrb[70].mxu0  ;;  %7827 = vrcp.f32 %v3329_v28 }
 0x745   : > { %v2890_v55 = vpack.c.bf16 %v7312_v9, %v7311_v62  ;;  %v2855_v16 = vpop.f32.mrb[71].mxu0  ;;  %v3489_v62 = vmul.f32 %v6624_v12, %v9107_v40 }
 0x746   : > { %v2889_v53 = vpack.c.bf16 %v2855_v16, %v2852_v4  ;;  %v6621_v4 = vunpack.c.h.bf16 %v6799_v52 }
 0x747   : > { %4100 = vmax.xlane.f32.xlu0 %v9719_v46 }
 0x748   : > { %7327 = vmatprep.mubr.msk.bf16.mxu0 %vm1377_vm1, %v2889_v53 }
 0x749   : > { %7328 = vmatmul.mubr.msk.bf16.gmra.mrb[84].mxu0 %vm1377_vm1, %v2890_v55 }
 0x74a   : > { %v7826_v14 = vpop.eup %7825 }
 0x74b   : > { %4104 = vmax.xlane.f32.xlu0 %v9724_v63  ;;  %v3377_v18 = vmul.f32 %v7826_v14, %v3333_v45 }
 0x74d   : > { %v3331_v24 = vpop.xlane.xlu0 %3330  ;;  %v3393_v36 = vsub.f32 2.0, %v3377_v18  ;;  %v3488_v18 = vmul.f32 %v6621_v4, %v9107_v40 }
 0x74e   : > { %7829 = vrcp.f32 %v3331_v24  ;;  %v7828_v7 = vpop.eup %7827 }
 0x74f   : > { %4106 = vmax.xlane.f32.xlu0 %v9729_v2  ;;  %v3375_v11 = vmul.f32 %v7828_v7, %v3329_v28  ;;  %v3409_v44 = vmul.f32 %v7826_v14, %v3393_v36  ;;  %v6620_v28 = vunpack.c.l.bf16 %v6799_v52 }
 0x751   : > { %v3327_v47 = vpop.xlane.xlu0 %3326  ;;  %v3391_v8 = vsub.f32 2.0, %v3375_v11  ;;  %v3425_v38 = vmul.f32 %v9632_v17, %v3409_v44 }
 0x752   : > { %7831 = vrcp.f32 %v3327_v47 }
 0x753   : > { %4108 = vmax.xlane.f32.xlu0 %v9733_v27  ;;  %v3407_v15 = vmul.f32 %v7828_v7, %v3391_v8  ;;  %v3441_v50 = vmul.f32 %v3425_v38, %v9103_v3 }
 0x755   : > { %v3423_v17 = vmul.f32 %v9637_v5, %v3407_v15  ;;  %v3506_v7 = vadd.f32 %v3490_v25, %v3441_v50 }
 0x757   : > { %4110 = vmax.xlane.f32.xlu0 %v9737_v19  ;;  %v3439_v11 = vmul.f32 %v3423_v17, %v9103_v3 }
 0x758   : > { %v7830_v30 = vpop.eup %7829 }
 0x759   : > { %v3376_v56 = vmul.f32 %v7830_v30, %v3331_v24  ;;  %4102 = vmax.xlane.f32.xlu1 %v9740_v41  ;;  %v3487_v24 = vmul.f32 %v6620_v28, %v9107_v40  ;;  %v3504_v44 = vadd.f32 %v3488_v18, %v3439_v11 }
 0x75b   : > { %v3392_v59 = vsub.f32 2.0, %v3376_v56  ;;  %4112 = vmax.xlane.f32.xlu0 %v9745_v35 }
 0x75c   : > { %v7832_v31 = vpop.eup %7831 }
 0x75d   : > { %v3408_v34 = vmul.f32 %v7830_v30, %v3392_v59  ;;  %v3374_v45 = vmul.f32 %v7832_v31, %v3327_v47  ;;  %4114 = vmax.xlane.f32.xlu1 %v9749_v13 }
 0x75e   : > { %v3335_v14 = vpop.xlane.xlu0 %3334 }
 0x75f   : > { %v3424_v9 = vmul.f32 %v9640_v0, %v3408_v34  ;;  %v3390_v55 = vsub.f32 2.0, %v3374_v45  ;;  %7833 = vrcp.f32 %v3335_v14 }
 0x761   : > { %v3440_v16 = vmul.f32 %v3424_v9, %v9103_v3  ;;  %v3406_v53 = vmul.f32 %v7832_v31, %v3390_v55  ;;  %v6802_v9 = vld [vmem:[%s8343_s22 + $0x98] sm:$0xff]  }
 0x762   : > { %v6632_v18 = vunpack.c.l.bf16 %v6802_v9 }
 0x763   : > { %v3505_v47 = vadd.f32 %v3489_v62, %v3440_v16  ;;  %v3422_v36 = vmul.f32 %v9644_v1, %v3406_v53 }
 0x765   : > { %v3438_v5 = vmul.f32 %v3422_v36, %v9103_v3  ;;  %v9766_v0 = vpack.c.bf16 %v3506_v7, %v3505_v47  ;;  %v6801_v47 = vld [vmem:[%s8343_s22 + $0x90] sm:$0xff]  }
 0x767   : > { %v3503_v48 = vadd.f32 %v3487_v24, %v3438_v5  ;;  %6808 = vst [vmem:[%s9170_s1 + $0x88] sm:$0xff] %v9766_v0  }
 0x768   : > { %v3339_v8 = vpop.xlane.xlu1 %3338 }
 0x769   : > { %7835 = vrcp.f32 %v3339_v8  ;;  %v3519_v30 = vpack.c.bf16 %v3504_v44, %v3503_v48  ;;  %v7834_v59 = vpop.eup %7833  ;;  %v6633_v48 = vunpack.c.h.bf16 %v6802_v9 }
 0x76a   : > { %v3378_v45 = vmul.f32 %v7834_v59, %v3335_v14 }
 0x76b   : > { %6807 = vst [vmem:[%s9170_s1 + $0x80] sm:$0xff] %v3519_v30   ;;  %7379 = vmatprep.mubr.bf16.mxu0 %v3519_v30  ;;  %v7439_v56 = vpop.f32.mrb[80].mxu1 }
 0x76c   : > { %v4053_v20 = vpop.f32.mrb[81].mxu1  ;;  %v3341_v12 = vpop.xlane.xlu1 %3340  ;;  %v9776_v25 = vmul.f32 0.25, %v7439_v56  ;;  %v3394_v17 = vsub.f32 2.0, %v3378_v45  ;;  %v6629_v45 = vunpack.c.h.bf16 %v6801_v47 }
 0x76d   : > { %v9771_v1 = vmul.f32 0.25, %v4053_v20  ;;  %7837 = vrcp.f32 %v3341_v12  ;;  %v3343_v38 = vpop.xlane.xlu0 %3342  ;;  %v7440_v15 = vpop.f32.mrb[82].mxu1  ;;  %v6628_v20 = vunpack.c.l.bf16 %v6801_v47  ;;  %v6804_v47 = vld [vmem:[%s8343_s22 + $0xa8] sm:$0xff]  }
 0x76e   : > { %v4056_v52 = vpop.f32.mrb[83].mxu1  ;;  %7839 = vrcp.f32 %v3343_v38  ;;  %v9779_v28 = vmul.f32 0.25, %v7440_v15  ;;  %v3410_v7 = vmul.f32 %v7834_v59, %v3394_v17  ;;  %v3493_v15 = vmul.f32 %v6632_v18, %v9107_v40 }
 0x76f   : > { %v9773_v31 = vmul.f32 0.25, %v4056_v52  ;;  %4116 = vmax.xlane.f32.xlu0 %v9771_v1 }
 0x770   : > { %v3337_v34 = vpop.xlane.xlu1 %3336  ;;  %v3426_v52 = vmul.f32 %v9649_v33, %v3410_v7  ;;  %v3491_v33 = vmul.f32 %v6628_v20, %v9107_v40  ;;  %v6641_v20 = vunpack.c.h.bf16 %v6804_v47 }
 0x771   : > { %7841 = vrcp.f32 %v3337_v34  ;;  %4118 = vmax.xlane.f32.xlu1 %v9773_v31 }
 0x773   : > { %v7836_v62 = vpop.eup %7835  ;;  %4120 = vmax.xlane.f32.xlu0 %v9776_v25 }
 0x774   : > { %v3380_v4 = vmul.f32 %v7836_v62, %v3339_v8  ;;  %v3347_v50 = vpop.xlane.xlu1 %3346 }
 0x775   : > { %7843 = vrcp.f32 %v3347_v50  ;;  %4122 = vmax.xlane.f32.xlu1 %v9779_v28 }
 0x776   : > { %v3396_v55 = vsub.f32 2.0, %v3380_v4  ;;  %v3494_v4 = vmul.f32 %v6633_v48, %v9107_v40 }
 0x777   : > { %v7838_v16 = vpop.eup %7837 }
 0x778   : > { %v3412_v53 = vmul.f32 %v7836_v62, %v3396_v55  ;;  %v3381_v14 = vmul.f32 %v7838_v16, %v3341_v12  ;;  %v3349_v24 = vpop.xlane.xlu1 %3348  ;;  %v7840_v36 = vpop.eup %7839 }
 0x779   : > { %7845 = vrcp.f32 %v3349_v24  ;;  %v3382_v12 = vmul.f32 %v7840_v36, %v3343_v38  ;;  %v3492_v38 = vmul.f32 %v6629_v45, %v9107_v40 }
 0x77a   : > { %v3428_v11 = vmul.f32 %v9658_v26, %v3412_v53  ;;  %v3397_v5 = vsub.f32 2.0, %v3381_v14  ;;  %v3442_v53 = vmul.f32 %v3426_v52, %v9103_v3 }
 0x77b   : > { %v7842_v44 = vpop.eup %7841 }
 0x77c   : > { %v3413_v8 = vmul.f32 %v7838_v16, %v3397_v5  ;;  %v3379_v30 = vmul.f32 %v7842_v44, %v3337_v34  ;;  %v3345_v56 = vpop.xlane.xlu1 %3344  ;;  %v3444_v26 = vmul.f32 %v3428_v11, %v9103_v3  ;;  %v3398_v16 = vsub.f32 2.0, %v3382_v12 }
 0x77d   : > { %7847 = vrcp.f32 %v3345_v56 }
 0x77e   : > { %v3429_v59 = vmul.f32 %v9662_v43, %v3413_v8  ;;  %v3395_v62 = vsub.f32 2.0, %v3379_v30  ;;  %v3509_v18 = vadd.f32 %v3493_v15, %v3444_v26  ;;  %v3507_v8 = vadd.f32 %v3491_v33, %v3442_v53  ;;  %v6803_v15 = vld [vmem:[%s8343_s22 + $0xa0] sm:$0xff]  }
 0x77f   : > { %v7844_v17 = vpop.eup %7843  ;;  %v6640_v30 = vunpack.c.l.bf16 %v6804_v47  ;;  %v3414_v52 = vmul.f32 %v7840_v36, %v3398_v16 }
 0x780   : > { %v3411_v9 = vmul.f32 %v7842_v44, %v3395_v62  ;;  %v3384_v34 = vmul.f32 %v7844_v17, %v3347_v50  ;;  %v3445_v55 = vmul.f32 %v3429_v59, %v9103_v3 }
 0x781   : > { %v3430_v36 = vmul.f32 %v9664_v39, %v3414_v52 }
 0x782   : > { %v3427_v43 = vmul.f32 %v9668_v29, %v3411_v9  ;;  %v3400_v14 = vsub.f32 2.0, %v3384_v34  ;;  %v3510_v7 = vadd.f32 %v3494_v4, %v3445_v55  ;;  %v6636_v4 = vunpack.c.l.bf16 %v6803_v15 }
 0x783   : > { %v7846_v11 = vpop.eup %7845  ;;  %v3497_v9 = vmul.f32 %v6640_v30, %v9107_v40  ;;  %v3498_v34 = vmul.f32 %v6641_v20, %v9107_v40  ;;  %v3446_v39 = vmul.f32 %v3430_v36, %v9103_v3 }
 0x784   : > { %v3416_v5 = vmul.f32 %v7844_v17, %v3400_v14  ;;  %v3385_v50 = vmul.f32 %v7846_v11, %v3349_v24  ;;  %v3443_v48 = vmul.f32 %v3427_v43, %v9103_v3  ;;  %v9798_v44 = vpack.c.bf16 %v3510_v7, %v3509_v18 }
 0x785   : > { %v6637_v17 = vunpack.c.h.bf16 %v6803_v15  ;;  %v3495_v33 = vmul.f32 %v6636_v4, %v9107_v40 }
 0x786   : > { %v3432_v12 = vmul.f32 %v9671_v22, %v3416_v5  ;;  %v3401_v29 = vsub.f32 2.0, %v3385_v50  ;;  %v3508_v45 = vadd.f32 %v3492_v38, %v3443_v48  ;;  %6810 = vst [vmem:[%s9170_s1 + $0x98] sm:$0xff] %v9798_v44  }
 0x787   : > { %v7848_v59 = vpop.eup %7847  ;;  %v3496_v38 = vmul.f32 %v6637_v17, %v9107_v40  ;;  %v3511_v47 = vadd.f32 %v3495_v33, %v3446_v39 }
 0x788   : > { %v3417_v62 = vmul.f32 %v7846_v11, %v3401_v29  ;;  %v3383_v26 = vmul.f32 %v7848_v59, %v3345_v56  ;;  %v9804_v24 = vpack.c.bf16 %v3508_v45, %v3507_v8  ;;  %v3448_v16 = vmul.f32 %v3432_v12, %v9103_v3 }
 0x78a   : > { %v3433_v22 = vmul.f32 %v9674_v54, %v3417_v62  ;;  %v3399_v55 = vsub.f32 2.0, %v3383_v26  ;;  %6809 = vst [vmem:[%s9170_s1 + $0x90] sm:$0xff] %v9804_v24   ;;  %v3513_v14 = vadd.f32 %v3497_v9, %v3448_v16 }
 0x78c   : > { %v3415_v56 = vmul.f32 %v7848_v59, %v3399_v55  ;;  %v3449_v53 = vmul.f32 %v3433_v22, %v9103_v3  ;;  %v6806_v55 = vld [vmem:[%s8343_s22 + $0xb8] sm:$0xff]  }
 0x78d   : > { %v6648_v33 = vunpack.c.l.bf16 %v6806_v55 }
 0x78e   : > { %v3431_v43 = vmul.f32 %v9677_v32, %v3415_v56  ;;  %v3514_v54 = vadd.f32 %v3498_v34, %v3449_v53 }
 0x790   : > { %v3447_v18 = vmul.f32 %v3431_v43, %v9103_v3  ;;  %v9819_v7 = vpack.c.bf16 %v3514_v54, %v3513_v14  ;;  %v6805_v54 = vld [vmem:[%s8343_s22 + $0xb0] sm:$0xff]  }
 0x792   : > { %v3512_v11 = vadd.f32 %v3496_v38, %v3447_v18  ;;  %6812 = vst [vmem:[%s9170_s1 + $0xa8] sm:$0xff] %v9819_v7   ;;  %v6649_v38 = vunpack.c.h.bf16 %v6806_v55  ;;  %v2867_v55 = vld [vmem:[#allocation2] sm:$0xff] }
 0x794   : > { %v9823_v5 = vpack.c.bf16 %v3512_v11, %v3511_v47 }
 0x796   : > { %6811 = vst [vmem:[%s9170_s1 + $0xa0] sm:$0xff] %v9823_v5  }
 0x79f   : > { %v3351_v50 = vpop.xlane.xlu0 %3350 }
 0x7a0   : > { %7849 = vrcp.f32 %v3351_v50 }
 0x7a3   : > { %v3615_v36 = vpop.permute.xlu0 %3614 }
 0x7a9   : > { %v3355_v48 = vpop.xlane.xlu1 %3354 }
 0x7aa   : > { %7851 = vrcp.f32 %v3355_v48  ;;  %v7850_v29 = vpop.eup %7849 }
 0x7ab   : > { %v3386_v62 = vmul.f32 %v7850_v29, %v3351_v50  ;;  %v6644_v50 = vunpack.c.l.bf16 %v6805_v54 }
 0x7ac   : > { %v7443_v32 = vpop.f32.mrb[84].mxu1 }
 0x7ad   : > { %v4069_v8 = vpop.f32.mrb[85].mxu1  ;;  %v3357_v30 = vpop.xlane.xlu1 %3356  ;;  %v9832_v59 = vmul.f32 0.25, %v7443_v32  ;;  %v3402_v34 = vsub.f32 2.0, %v3386_v62  ;;  %v3501_v32 = vmul.f32 %v6648_v33, %v9107_v40 }
 0x7ae   : > { %v9827_v20 = vmul.f32 0.25, %v4069_v8  ;;  %7853 = vrcp.f32 %v3357_v30  ;;  %v7444_v52 = vpop.f32.mrb[86].mxu1  ;;  %v3502_v8 = vmul.f32 %v6649_v38, %v9107_v40  ;;  %v2873_v38 = vld [vmem:[#allocation2 + $0x30] sm:$0xff] }
 0x7af   : > { %v4072_v12 = vpop.f32.mrb[87].mxu1  ;;  %v9835_v4 = vmul.f32 0.25, %v7444_v52  ;;  %v3418_v43 = vmul.f32 %v7850_v29, %v3402_v34 }
 0x7b0   : > { %v9829_v45 = vmul.f32 0.25, %v4072_v12  ;;  %4124 = vmax.xlane.f32.xlu0 %v9827_v20 }
 0x7b1   : > { %v3353_v15 = vpop.xlane.xlu1 %3352 }
 0x7b2   : > { %7855 = vrcp.f32 %v3353_v15  ;;  %4126 = vmax.xlane.f32.xlu1 %v9829_v45 }
 0x7b4   : > { %v7852_v26 = vpop.eup %7851  ;;  %4128 = vmax.xlane.f32.xlu0 %v9832_v59 }
 0x7b5   : > { %v3388_v17 = vmul.f32 %v7852_v26, %v3355_v48  ;;  %v3613_v9 = vpop.permute.xlu1 %3612  ;;  %v6645_v48 = vunpack.c.h.bf16 %v6805_v54  ;;  %v2871_v54 = vld [vmem:[#allocation2 + $0x20] sm:$0xff] }
 0x7b6   : > { %4130 = vmax.xlane.f32.xlu1 %v9835_v4  ;;  %7375 = vmatprep.subr.bf16.mxu0 %v3613_v9 }
 0x7b7   : > { %v3404_v22 = vsub.f32 2.0, %v3388_v17  ;;  %7376 = vmatpush3.bf16.msra.mxu0 %v3613_v9  ;;  %v3500_v62 = vmul.f32 %v6645_v48, %v9107_v40  ;;  %v2872_v48 = vld [vmem:[#allocation2 + $0x28] sm:$0xff] }
 0x7b8   : > { %v7854_v16 = vpop.eup %7853  ;;  %7377 = vmatprep.subr.bf16.mxu0 %v3615_v36 }
 0x7b9   : > { %v3420_v56 = vmul.f32 %v7852_v26, %v3404_v22  ;;  %v3389_v53 = vmul.f32 %v7854_v16, %v3357_v30  ;;  %v3434_v30 = vmul.f32 %v9701_v37, %v3418_v43 }
 0x7bb   : > { %v3436_v39 = vmul.f32 %v9705_v23, %v3420_v56  ;;  %v3405_v14 = vsub.f32 2.0, %v3389_v53  ;;  %7378 = vmatpush3.bf16.msra.mxu0 %v3615_v36  ;;  %v3450_v17 = vmul.f32 %v3434_v30, %v9103_v3 }
 0x7bc   : > { %v7856_v18 = vpop.eup %7855 }
 0x7bd   : > { %v3421_v47 = vmul.f32 %v7854_v16, %v3405_v14  ;;  %v3387_v11 = vmul.f32 %v7856_v18, %v3353_v15  ;;  %v3452_v23 = vmul.f32 %v3436_v39, %v9103_v3 }
 0x7be   : > { %7380 = vmatmul.mubr.bf16.vlgmr.msra.gmra.mrb[88].mxu0 %v9766_v0  ;;  %v3499_v0 = vmul.f32 %v6644_v50, %v9107_v40 }
 0x7bf   : > { %v3437_v52 = vmul.f32 %v9708_v10, %v3421_v47  ;;  %v3403_v12 = vsub.f32 2.0, %v3387_v11  ;;  %7383 = vmatprep.mubr.bf16.mxu0 %v9804_v24  ;;  %v3517_v37 = vadd.f32 %v3501_v32, %v3452_v23  ;;  %v7603_v24 = vld [vmem:[%s10768_s7 + $0x10] sm:$0xff]   ;;  %v2874_v47 = vld [vmem:[#allocation2 + $0x38] sm:$0xff] }
 0x7c0   : > { %7395 = vmatprep.subr.bf16.mxu0 %v7603_v24  ;;  %v2877_v23 = vld [vmem:[#allocation2 + $0x50] sm:$0xff] }
 0x7c1   : > { %v3419_v29 = vmul.f32 %v7856_v18, %v3403_v12  ;;  %v3453_v15 = vmul.f32 %v3437_v52, %v9103_v3  ;;  %7396 = vmatpush3.bf16.msra.mxu0 %v7603_v24  ;;  %v2878_v24 = vld [vmem:[#allocation2 + $0x58] sm:$0xff] }
 0x7c3   : > { %v3435_v26 = vmul.f32 %v9711_v42, %v3419_v29  ;;  %v3518_v10 = vadd.f32 %v3502_v8, %v3453_v15  ;;  %v3515_v42 = vadd.f32 %v3499_v0, %v3450_v17 }
 0x7c5   : > { %v3451_v9 = vmul.f32 %v3435_v26, %v9103_v3  ;;  %v3526_v34 = vpack.c.bf16 %v3518_v10, %v3517_v37 }
 0x7c6   : > { %7384 = vmatmul.mubr.bf16.gmra.mrb[92].mxu0 %v9798_v44 }
 0x7c7   : > { %4456 = vrot.lane.b32.xlu1 %v10869_v6, %s8136_s26  ;;  %7387 = vmatprep.mubr.bf16.mxu0 %v9823_v5  ;;  %v3516_v36 = vadd.f32 %v3500_v62, %v3451_v9  ;;  %6814 = vst [vmem:[%s9170_s1 + $0xb8] sm:$0xff] %v3526_v34   ;;  %v2869_v6 = vld [vmem:[#allocation2 + $0x10] sm:$0xff]  ;;  %v2875_v62 = vld [vmem:[#allocation2 + $0x40] sm:$0xff] }
 0x7c9   : > { %v3525_v22 = vpack.c.bf16 %v3516_v36, %v3515_v42 }
 0x7ca   : > { %4454 = vrot.lane.b32.xlu0 %v10893_v49, %s8136_s26  ;;  %v2870_v49 = vld [vmem:[#allocation2 + $0x18] sm:$0xff] }
 0x7cb   : > { %4460 = vrot.lane.b32.xlu1 %v10870_v51, %s8136_s26  ;;  %6813 = vst [vmem:[%s9170_s1 + $0xb0] sm:$0xff] %v3525_v22  }
 0x7ce   : > { %4458 = vrot.lane.b32.xlu0 %v10894_v60, %s8136_s26  ;;  %7388 = vmatmul.mubr.bf16.gmra.mrb[96].mxu0 %v9819_v7  ;;  %v2868_v60 = vld [vmem:[#allocation2 + $0x8] sm:$0xff] }
 0x7cf   : > { %4464 = vrot.lane.b32.xlu1 %v10896_v57, %s8136_s26  ;;  %7391 = vmatprep.mubr.bf16.mxu0 %v3525_v22 }
 0x7d0   : > { %v7317_v44 = vpop.f32.mrb[72].mxu0 }
 0x7d1   : > { %v3023_v5 = vadd.f32 %v7317_v44, %v2869_v6  ;;  %v2958_v16 = vpop.f32.mrb[73].mxu0 }
 0x7d2   : > { %v3021_v56 = vadd.f32 %v2958_v16, %v2867_v55  ;;  %v7318_v53 = vpop.f32.mrb[74].mxu0  ;;  %4462 = vrot.lane.b32.xlu0 %v10865_v21, %s8136_s26 }
 0x7d3   : > { %3039 = vst.msk [vmem:[#allocation2 + $0x10] sm:$0xff] %vm639_vm0, %v3023_v5  ;;  %v3024_v51 = vadd.f32 %v7318_v53, %v2870_v49  ;;  %v2961_v7 = vpop.f32.mrb[75].mxu0 }
 0x7d4   : > { %3037 = vst.msk [vmem:[#allocation2] sm:$0xff] %vm639_vm0, %v3021_v56  ;;  %v3022_v57 = vadd.f32 %v2961_v7, %v2868_v60  ;;  %v4101_v33 = vpop.xlane.xlu0 %4100 }
 0x7d5   : > { %3040 = vst.msk [vmem:[#allocation2 + $0x18] sm:$0xff] %vm639_vm0, %v3024_v51  ;;  %v4132_v17 = vsub.f32 %v9719_v46, %v4101_v33 }
 0x7d6   : > { %3038 = vst.msk [vmem:[#allocation2 + $0x8] sm:$0xff] %vm639_vm0, %v3022_v57  ;;  %7392 = vmatmul.mubr.bf16.gmra.mrb[100].mxu0 %v3526_v34 }
 0x7d7   : > { %v4148_v6 = vmul.f32 1.442695, %v4132_v17 }
 0x7d8   : > { %v7321_v43 = vpop.f32.mrb[76].mxu0  ;;  %v4105_v39 = vpop.xlane.xlu0 %4104 }
 0x7d9   : > { %v3027_v14 = vadd.f32 %v7321_v43, %v2873_v38  ;;  %v2974_v21 = vpop.f32.mrb[77].mxu0  ;;  %v4134_v52 = vsub.f32 %v9724_v63, %v4105_v39  ;;  %v2876_v63 = vld [vmem:[#allocation2 + $0x48] sm:$0xff] }
 0x7da   : > { %v3025_v18 = vadd.f32 %v2974_v21, %v2871_v54  ;;  %v7322_v11 = vpop.f32.mrb[78].mxu0 }
 0x7db   : > { %3043 = vst.msk [vmem:[#allocation2 + $0x30] sm:$0xff] %vm639_vm0, %v3027_v14  ;;  %v3028_v50 = vadd.f32 %v7322_v11, %v2874_v47  ;;  %v2977_v32 = vpop.f32.mrb[79].mxu0  ;;  %v4152_v37 = vmul.f32 1.442695, %v4134_v52 }
 0x7dc   : > { %3041 = vst.msk [vmem:[#allocation2 + $0x20] sm:$0xff] %vm639_vm0, %v3025_v18  ;;  %v3026_v8 = vadd.f32 %v2977_v32, %v2872_v48  ;;  %v4107_v30 = vpop.xlane.xlu0 %4106 }
 0x7dd   : > { %3044 = vst.msk [vmem:[#allocation2 + $0x38] sm:$0xff] %vm639_vm0, %v3028_v50  ;;  %v4135_v12 = vsub.f32 %v9729_v2, %v4107_v30  ;;  %7857 = vpow2.f32 %v4152_v37 }
 0x7de   : > { %3042 = vst.msk [vmem:[#allocation2 + $0x28] sm:$0xff] %vm639_vm0, %v3026_v8 }
 0x7df   : > { %v4154_v36 = vmul.f32 1.442695, %v4135_v12 }
 0x7e0   : > { %v7325_v29 = vpop.f32.mrb[80].mxu0  ;;  %v4109_v15 = vpop.xlane.xlu0 %4108 }
 0x7e1   : > { %v3031_v0 = vadd.f32 %v7325_v29, %v2877_v23  ;;  %v2990_v26 = vpop.f32.mrb[81].mxu0  ;;  %7859 = vpow2.f32 %v4154_v36  ;;  %v4136_v53 = vsub.f32 %v9733_v27, %v4109_v15  ;;  %v2879_v15 = vld [vmem:[#allocation2 + $0x60] sm:$0xff] }
 0x7e2   : > { %v3029_v10 = vadd.f32 %v2990_v26, %v2875_v62  ;;  %v7326_v9 = vpop.f32.mrb[82].mxu0  ;;  %7861 = vpow2.f32 %v4148_v6  ;;  %v2882_v26 = vld [vmem:[#allocation2 + $0x78] sm:$0xff] }
 0x7e3   : > { %3047 = vst.msk [vmem:[#allocation2 + $0x50] sm:$0xff] %vm639_vm0, %v3031_v0  ;;  %v3032_v34 = vadd.f32 %v7326_v9, %v2878_v24  ;;  %v2993_v42 = vpop.f32.mrb[83].mxu0  ;;  %v4156_v57 = vmul.f32 1.442695, %v4136_v53 }
 0x7e4   : > { %3045 = vst.msk [vmem:[#allocation2 + $0x40] sm:$0xff] %vm639_vm0, %v3029_v10  ;;  %v3030_v2 = vadd.f32 %v2993_v42, %v2876_v63  ;;  %v4111_v22 = vpop.xlane.xlu0 %4110  ;;  %v2880_v10 = vld [vmem:[#allocation2 + $0x68] sm:$0xff] }
 0x7e5   : > { %3048 = vst.msk [vmem:[#allocation2 + $0x58] sm:$0xff] %vm639_vm0, %v3032_v34  ;;  %v4137_v46 = vsub.f32 %v9737_v19, %v4111_v22 }
 0x7e6   : > { %3046 = vst.msk [vmem:[#allocation2 + $0x48] sm:$0xff] %vm639_vm0, %v3030_v2  ;;  %v4103_v44 = vpop.xlane.xlu1 %4102 }
 0x7e7   : > { %v4133_v5 = vsub.f32 %v9740_v41, %v4103_v44  ;;  %v4158_v49 = vmul.f32 1.442695, %v4137_v46  ;;  %v9894_v7 = vpop.eup %7857 }
 0x7e8   : > { %v4113_v55 = vpop.xlane.xlu0 %4112 }
 0x7e9   : > { %v4150_v16 = vmul.f32 1.442695, %v4133_v5  ;;  %v4138_v56 = vsub.f32 %v9745_v35, %v4113_v55 }
 0x7ea   : > { %v4115_v60 = vpop.xlane.xlu1 %4114 }
 0x7eb   : > { %7863 = vpow2.f32 %v4150_v16  ;;  %v4160_v51 = vmul.f32 1.442695, %v4138_v56  ;;  %v4139_v19 = vsub.f32 %v9749_v13, %v4115_v60  ;;  %v9898_v41 = vpop.eup %7859 }
 0x7ec   : > { %7865 = vpow2.f32 %v4158_v49  ;;  %v9901_v35 = vpop.eup %7861 }
 0x7ed   : > { %7867 = vpow2.f32 %v4160_v51  ;;  %v4162_v33 = vmul.f32 1.442695, %v4139_v19 }
 0x7ee   : > { %7869 = vpow2.f32 %v4156_v57 }
 0x7ef   : > { %7871 = vpow2.f32 %v4162_v33 }
 0x7f1   : > { %4184 = vadd.xlane.f32.xlu0 %v9894_v7 }
 0x7f3   : > { %4186 = vadd.xlane.f32.xlu1 %v9898_v41 }
 0x7f5   : > { %v9903_v27 = vpop.eup %7863  ;;  %4180 = vadd.xlane.f32.xlu0 %v9901_v35 }
 0x7f6   : > { %v9907_v38 = vpop.eup %7865 }
 0x7f7   : > { %4182 = vadd.xlane.f32.xlu1 %v9903_v27  ;;  %v9910_v13 = vpop.eup %7867 }
 0x7f8   : > { %v9914_v14 = vpop.eup %7869 }
 0x7f9   : > { %4190 = vadd.xlane.f32.xlu0 %v9907_v38  ;;  %v9918_v11 = vpop.eup %7871 }
 0x7fb   : > { %4192 = vadd.xlane.f32.xlu1 %v9910_v13 }
 0x7fc   : > { %v4117_v43 = vpop.xlane.xlu0 %4116 }
 0x7fd   : > { %v4140_v39 = vsub.f32 %v9771_v1, %v4117_v43 }
 0x7fe   : > { %v4119_v54 = vpop.xlane.xlu1 %4118 }
 0x7ff   : > { %v4164_v21 = vmul.f32 1.442695, %v4140_v39  ;;  %4188 = vadd.xlane.f32.xlu1 %v9914_v14  ;;  %v4141_v1 = vsub.f32 %v9773_v31, %v4119_v54  ;;  %v2881_v31 = vld [vmem:[#allocation2 + $0x70] sm:$0xff] }
 0x800   : > { %v4121_v18 = vpop.xlane.xlu0 %4120 }
 0x801   : > { %7873 = vpow2.f32 %v4164_v21  ;;  %v4142_v47 = vsub.f32 %v9776_v25, %v4121_v18  ;;  %v4166_v30 = vmul.f32 1.442695, %v4141_v1  ;;  %v6816_v21 = vld [vmem:[%s8343_s22 + $0xc8] sm:$0xff]   ;;  %v6815_v1 = vld [vmem:[%s8343_s22 + $0xc0] sm:$0xff]  }
 0x802   : > { %v4123_v50 = vpop.xlane.xlu1 %4122 }
 0x803   : > { %v4168_v48 = vmul.f32 1.442695, %v4142_v47  ;;  %v4143_v32 = vsub.f32 %v9779_v28, %v4123_v50  ;;  %4194 = vadd.xlane.f32.xlu1 %v9918_v11 }
 0x805   : > { %7875 = vpow2.f32 %v4168_v48  ;;  %v4170_v8 = vmul.f32 1.442695, %v4143_v32 }
 0x807   : > { %7877 = vpow2.f32 %v4170_v8 }
 0x808   : > { %7879 = vpow2.f32 %v4166_v30  ;;  %v6696_v30 = vunpack.c.l.bf16 %v6816_v21 }
 0x80b   : > { %v9923_v52 = vpop.eup %7873 }
 0x80c   : > { %4196 = vadd.xlane.f32.xlu0 %v9923_v52 }
 0x80f   : > { %v9926_v25 = vpop.eup %7875 }
 0x810   : > { %4200 = vadd.xlane.f32.xlu1 %v9926_v25 }
 0x811   : > { %v9929_v12 = vpop.eup %7877 }
 0x812   : > { %v9932_v28 = vpop.eup %7879 }
 0x814   : > { %4202 = vadd.xlane.f32.xlu1 %v9929_v12 }
 0x818   : > { %4198 = vadd.xlane.f32.xlu1 %v9932_v28 }
 0x81c   : > { %v7329_v23 = vpop.f32.mrb[84].mxu0 }
 0x81d   : > { %v3035_v29 = vadd.f32 %v7329_v23, %v2881_v31  ;;  %v3006_v0 = vpop.f32.mrb[85].mxu0  ;;  %v6697_v31 = vunpack.c.h.bf16 %v6816_v21  ;;  %v6817_v21 = vld [vmem:[%s8343_s22 + $0xd0] sm:$0xff]  }
 0x81e   : > { %v3033_v62 = vadd.f32 %v3006_v0, %v2879_v15  ;;  %v7330_v17 = vpop.f32.mrb[86].mxu0 }
 0x81f   : > { %3051 = vst.msk [vmem:[#allocation2 + $0x70] sm:$0xff] %vm639_vm0, %v3035_v29  ;;  %v3036_v37 = vadd.f32 %v7330_v17, %v2882_v26  ;;  %v3009_v24 = vpop.f32.mrb[87].mxu0  ;;  %v6693_v26 = vunpack.c.h.bf16 %v6815_v1 }
 0x820   : > { %3049 = vst.msk [vmem:[#allocation2 + $0x60] sm:$0xff] %vm639_vm0, %v3033_v62  ;;  %v3034_v9 = vadd.f32 %v3009_v24, %v2880_v10  ;;  %v6692_v62 = vunpack.c.l.bf16 %v6815_v1 }
 0x821   : > { %3052 = vst.msk [vmem:[#allocation2 + $0x78] sm:$0xff] %vm639_vm0, %v3036_v37 }
 0x822   : > { %3050 = vst.msk [vmem:[#allocation2 + $0x68] sm:$0xff] %vm639_vm0, %v3034_v9  ;;  %4466 = vrot.lane.b32.xlu0 %v10901_v58, %s8136_s26 }
 0x829   : > { %4468 = vrot.lane.b32.xlu1 %v10900_v61, %s8136_s26  ;;  %s8138_s26 = smov [#allocation7]  }
 0x82a   : > { %s8067_s21 = sshll.u32 %s8138_s26, 4  ;;  %s8068_s21 = int_to_ptr.vmem [resolvable:$false] %s8067_s21 }
 0x82b   : > { %s8069_s30 = scalar_lea.vmem %s8068_s21, 8192 }
 0x83d   : > { %v4125_v34 = vpop.xlane.xlu0 %4124 }
 0x83e   : > { %v4144_v63 = vsub.f32 %v9827_v20, %v4125_v34 }
 0x83f   : > { %v4127_v42 = vpop.xlane.xlu1 %4126 }
 0x840   : > { %v4172_v36 = vmul.f32 1.442695, %v4144_v63  ;;  %v4145_v2 = vsub.f32 %v9829_v45, %v4127_v42  ;;  %v4343_v63 = vmul.f32 %v6696_v30, %v9107_v40  ;;  %v4344_v42 = vmul.f32 %v6697_v31, %v9107_v40 }
 0x841   : > { %v4129_v22 = vpop.xlane.xlu0 %4128 }
 0x842   : > { %7881 = vpow2.f32 %v4172_v36  ;;  %v4174_v6 = vmul.f32 1.442695, %v4145_v2  ;;  %v4146_v46 = vsub.f32 %v9832_v59, %v4129_v22 }
 0x843   : > { %v4131_v44 = vpop.xlane.xlu1 %4130 }
 0x844   : > { %7883 = vpow2.f32 %v4174_v6  ;;  %v4176_v5 = vmul.f32 1.442695, %v4146_v46  ;;  %v4147_v58 = vsub.f32 %v9835_v4, %v4131_v44 }
 0x845   : > { %v9947_v55 = vpop.permute.xlu0 %4454 }
 0x846   : > { %7885 = vpow2.f32 %v4176_v5  ;;  %v4178_v61 = vmul.f32 1.442695, %v4147_v58  ;;  %7445 = vmatprep.subr.bf16.mxu0 %v9947_v55 }
 0x847   : > { %v9962_v16 = vpop.permute.xlu1 %4456 }
 0x848   : > { %7887 = vpow2.f32 %v4178_v61  ;;  %v4341_v61 = vmul.f32 %v6692_v62, %v9107_v40 }
 0x849   : > { %v9964_v56 = vpop.permute.xlu0 %4458 }
 0x84b   : > { %v9966_v49 = vpop.permute.xlu1 %4460 }
 0x84c   : > { %v9950_v20 = vpop.eup %7881 }
 0x84d   : > { %4204 = vadd.xlane.f32.xlu0 %v9950_v20  ;;  %v9968_v53 = vpop.permute.xlu0 %4462 }
 0x84e   : > { %v9953_v45 = vpop.eup %7883 }
 0x84f   : > { %4206 = vadd.xlane.f32.xlu1 %v9953_v45  ;;  %v9970_v51 = vpop.permute.xlu1 %4464 }
 0x850   : > { %v9956_v59 = vpop.eup %7885 }
 0x851   : > { %4208 = vadd.xlane.f32.xlu0 %v9956_v59 }
 0x852   : > { %v9959_v4 = vpop.eup %7887 }
 0x855   : > { %4210 = vadd.xlane.f32.xlu0 %v9959_v4 }
 0x87e   : > { %v4185_v60 = vpop.xlane.xlu0 %4184 }
 0x87f   : > { %7889 = vrcp.f32 %v4185_v60 }
 0x880   : > { %v4187_v57 = vpop.xlane.xlu1 %4186 }
 0x881   : > { %7891 = vrcp.f32 %v4187_v57 }
 0x882   : > { %v4181_v19 = vpop.xlane.xlu0 %4180 }
 0x883   : > { %7893 = vrcp.f32 %v4181_v19 }
 0x884   : > { %v4183_v33 = vpop.xlane.xlu1 %4182 }
 0x885   : > { %7895 = vrcp.f32 %v4183_v33 }
 0x886   : > { %v4191_v43 = vpop.xlane.xlu0 %4190 }
 0x887   : > { %7897 = vrcp.f32 %v4191_v43 }
 0x888   : > { %v4193_v39 = vpop.xlane.xlu1 %4192 }
 0x889   : > { %v7890_v54 = vpop.eup %7889  ;;  %7899 = vrcp.f32 %v4193_v39 }
 0x88a   : > { %v4230_v18 = vmul.f32 %v7890_v54, %v4185_v60 }
 0x88b   : > { %v7892_v47 = vpop.eup %7891 }
 0x88c   : > { %v4246_v50 = vsub.f32 2.0, %v4230_v18  ;;  %v4231_v48 = vmul.f32 %v7892_v47, %v4187_v57  ;;  %v4189_v32 = vpop.xlane.xlu1 %4188 }
 0x88d   : > { %v7894_v8 = vpop.eup %7893  ;;  %7901 = vrcp.f32 %v4189_v32 }
 0x88e   : > { %v4262_v23 = vmul.f32 %v7890_v54, %v4246_v50  ;;  %v4247_v29 = vsub.f32 2.0, %v4231_v48  ;;  %v4228_v15 = vmul.f32 %v7894_v8, %v4181_v19  ;;  %v4342_v54 = vmul.f32 %v6693_v26, %v9107_v40 }
 0x88f   : > { %v7896_v0 = vpop.eup %7895 }
 0x890   : > { %v4278_v17 = vmul.f32 %v9894_v7, %v4262_v23  ;;  %v4263_v37 = vmul.f32 %v7892_v47, %v4247_v29  ;;  %v4244_v10 = vsub.f32 2.0, %v4228_v15  ;;  %v4229_v24 = vmul.f32 %v7896_v0, %v4183_v33  ;;  %v4195_v9 = vpop.xlane.xlu1 %4194 }
 0x891   : > { %v7898_v34 = vpop.eup %7897  ;;  %7903 = vrcp.f32 %v4195_v9  ;;  %v7381_v36 = vpop.f32.mrb[88].mxu0 }
 0x892   : > { %v4294_v2 = vmul.f32 %v4278_v17, %v9103_v3  ;;  %v4279_v22 = vmul.f32 %v9898_v41, %v4263_v37  ;;  %v4260_v6 = vmul.f32 %v7894_v8, %v4244_v10  ;;  %v4245_v46 = vsub.f32 2.0, %v4229_v24  ;;  %v3658_v44 = vpop.f32.mrb[89].mxu0 }
 0x893   : > { %v7900_v7 = vpop.eup %7899  ;;  %v4233_v5 = vmul.f32 %v7898_v34, %v4191_v43  ;;  %v7382_v58 = vpop.f32.mrb[90].mxu0  ;;  %v6700_v37 = vunpack.c.l.bf16 %v6817_v21 }
 0x894   : > { %v4295_v60 = vmul.f32 %v4279_v22, %v9103_v3  ;;  %v4276_v57 = vmul.f32 %v9901_v35, %v4260_v6  ;;  %v4261_v19 = vmul.f32 %v7896_v0, %v4245_v46  ;;  %v3661_v33 = vpop.f32.mrb[91].mxu0  ;;  %v4234_v47 = vmul.f32 %v7900_v7, %v4193_v39  ;;  %v6818_v0 = vld [vmem:[%s8343_s22 + $0xd8] sm:$0xff]  }
 0x895   : > { %v4249_v18 = vsub.f32 2.0, %v4233_v5  ;;  %v3738_v41 = vpack.c.bf16 %v7382_v58, %v7381_v36  ;;  %v3737_v50 = vpack.c.bf16 %v3661_v33, %v3658_v44  ;;  %v4359_v48 = vadd.f32 %v4343_v63, %v4294_v2 }
 0x896   : > { %v4360_v1 = vadd.f32 %v4344_v42, %v4295_v60  ;;  %v4277_v43 = vmul.f32 %v9903_v27, %v4261_v19  ;;  %v4292_v8 = vmul.f32 %v4276_v57, %v9103_v3  ;;  %v4250_v23 = vsub.f32 2.0, %v4234_v47 }
 0x897   : > { %v7902_v30 = vpop.eup %7901  ;;  %v4265_v31 = vmul.f32 %v7898_v34, %v4249_v18  ;;  %7397 = vmatprep.mubr.msk.bf16.mxu0 %vm1377_vm1, %v3737_v50  ;;  %v6701_v35 = vunpack.c.h.bf16 %v6817_v21  ;;  %v4345_v58 = vmul.f32 %v6700_v37, %v9107_v40 }
 0x898   : > { %v4232_v29 = vmul.f32 %v7902_v30, %v4189_v32  ;;  %7398 = vmatmul.mubr.msk.bf16.vlgmr.msra.gmra.mrb[104].mxu0 %vm1377_vm1, %v3738_v41  ;;  %v4293_v39 = vmul.f32 %v4277_v43, %v9103_v3  ;;  %v9989_v15 = vpack.c.bf16 %v4360_v1, %v4359_v48  ;;  %v4357_v17 = vadd.f32 %v4341_v61, %v4292_v8 }
 0x899   : > { %v4281_v62 = vmul.f32 %v9907_v38, %v4265_v31  ;;  %7446 = vmatpush3.bf16.msra.mxu0 %v9947_v55  ;;  %v7385_v27 = vpop.f32.mrb[92].mxu0  ;;  %v4197_v26 = vpop.xlane.xlu0 %4196  ;;  %v4266_v10 = vmul.f32 %v7900_v7, %v4250_v23  ;;  %v4346_v36 = vmul.f32 %v6701_v35, %v9107_v40  ;;  %v6704_v38 = vunpack.c.l.bf16 %v6818_v0 }
 0x89a   : > { %v4248_v24 = vsub.f32 2.0, %v4232_v29  ;;  %7447 = vmatprep.subr.bf16.mxu0 %v9962_v16  ;;  %7905 = vrcp.f32 %v4197_v26  ;;  %v3674_v32 = vpop.f32.mrb[93].mxu0  ;;  %v4358_v34 = vadd.f32 %v4342_v54, %v4293_v39  ;;  %6824 = vst [vmem:[%s9170_s1 + $0xc8] sm:$0xff] %v9989_v15   ;;  %v6705_v61 = vunpack.c.h.bf16 %v6818_v0 }
 0x89b   : > { %v7904_v63 = vpop.eup %7903  ;;  %v7386_v42 = vpop.f32.mrb[94].mxu0  ;;  %v4297_v5 = vmul.f32 %v4281_v62, %v9103_v3  ;;  %v4282_v60 = vmul.f32 %v9910_v13, %v4266_v10 }
 0x89c   : > { %v4264_v2 = vmul.f32 %v7902_v30, %v4248_v24  ;;  %v4235_v55 = vmul.f32 %v7904_v63, %v4195_v9  ;;  %v3740_v22 = vpack.c.bf16 %v7386_v42, %v7385_v27  ;;  %v3677_v6 = vpop.f32.mrb[95].mxu0  ;;  %v9998_v46 = vpack.c.bf16 %v4358_v34, %v4357_v17  ;;  %v6820_v24 = vld [vmem:[%s8343_s22 + $0xe8] sm:$0xff]  }
 0x89d   : > { %v3739_v44 = vpack.c.bf16 %v3677_v6, %v3674_v32  ;;  %7448 = vmatpush3.bf16.msra.mxu0 %v9962_v16  ;;  %v4201_v7 = vpop.xlane.xlu1 %4200  ;;  %v4362_v13 = vadd.f32 %v4346_v36, %v4297_v5  ;;  %v4348_v21 = vmul.f32 %v6705_v61, %v9107_v40  ;;  %v4298_v50 = vmul.f32 %v4282_v60, %v9103_v3  ;;  %v4467_v42 = vpop.permute.xlu0 %4466 }
 0x89e   : > { %v4280_v57 = vmul.f32 %v9914_v14, %v4264_v2  ;;  %v4251_v19 = vsub.f32 2.0, %v4235_v55  ;;  %7907 = vrcp.f32 %v4201_v7  ;;  %7449 = vmatprep.subr.bf16.mxu0 %v9964_v56  ;;  %6823 = vst [vmem:[%s9170_s1 + $0xc0] sm:$0xff] %v9998_v46   ;;  %v4347_v14 = vmul.f32 %v6704_v38, %v9107_v40 }
 0x89f   : > { %7401 = vmatprep.mubr.msk.bf16.mxu0 %vm1377_vm1, %v3739_v44  ;;  %v6713_v2 = vunpack.c.h.bf16 %v6820_v24  ;;  %v6819_v44 = vld [vmem:[%s8343_s22 + $0xe0] sm:$0xff]  }
 0x8a0   : > { %v4267_v9 = vmul.f32 %v7904_v63, %v4251_v19  ;;  %7402 = vmatmul.mubr.msk.bf16.gmra.mrb[108].mxu0 %vm1377_vm1, %v3740_v22  ;;  %v4296_v16 = vmul.f32 %v4280_v57, %v9103_v3  ;;  %v4363_v23 = vadd.f32 %v4347_v14, %v4298_v50  ;;  %v6709_v60 = vunpack.c.h.bf16 %v6819_v44 }
 0x8a1   : > { %7450 = vmatpush3.bf16.msra.mxu0 %v9964_v56  ;;  %v7389_v33 = vpop.f32.mrb[96].mxu0  ;;  %v4203_v54 = vpop.xlane.xlu1 %4202 }
 0x8a2   : > { %v4283_v18 = vmul.f32 %v9918_v11, %v4267_v9  ;;  %7909 = vrcp.f32 %v4203_v54  ;;  %7451 = vmatprep.subr.bf16.mxu0 %v9966_v49  ;;  %v3690_v47 = vpop.f32.mrb[97].mxu0  ;;  %v4361_v41 = vadd.f32 %v4345_v58, %v4296_v16  ;;  %v4350_v14 = vmul.f32 %v6709_v60, %v9107_v40 }
 0x8a3   : > { %v7390_v48 = vpop.f32.mrb[98].mxu0 }
 0x8a4   : > { %v7906_v1 = vpop.eup %7905  ;;  %v3742_v56 = vpack.c.bf16 %v7390_v48, %v7389_v33  ;;  %v3693_v43 = vpop.f32.mrb[99].mxu0  ;;  %v10017_v8 = vpack.c.bf16 %v4362_v13, %v4361_v41  ;;  %v4299_v30 = vmul.f32 %v4283_v18, %v9103_v3 }
 0x8a5   : > { %v3741_v31 = vpack.c.bf16 %v3693_v43, %v3690_v47  ;;  %7452 = vmatpush3.bf16.msra.mxu0 %v9966_v49  ;;  %v4199_v11 = vpop.xlane.xlu1 %4198  ;;  %v4236_v29 = vmul.f32 %v7906_v1, %v4197_v26 }
 0x8a6   : > { %7911 = vrcp.f32 %v4199_v11  ;;  %7453 = vmatprep.subr.bf16.mxu0 %v9968_v53  ;;  %6825 = vst [vmem:[%s9170_s1 + $0xd0] sm:$0xff] %v10017_v8   ;;  %v4364_v35 = vadd.f32 %v4348_v21, %v4299_v30 }
 0x8a7   : > { %7405 = vmatprep.mubr.msk.bf16.mxu0 %vm1377_vm1, %v3741_v31  ;;  %v4252_v17 = vsub.f32 2.0, %v4236_v29  ;;  %v6821_v31 = vld [vmem:[%s8343_s22 + $0xf0] sm:$0xff]  }
 0x8a8   : > { %v7908_v39 = vpop.eup %7907  ;;  %7406 = vmatmul.mubr.msk.bf16.gmra.mrb[112].mxu0 %vm1377_vm1, %v3742_v56  ;;  %v4376_v0 = vpack.c.bf16 %v4364_v35, %v4363_v23 }
 0x8a9   : > { %v4238_v62 = vmul.f32 %v7908_v39, %v4201_v7  ;;  %7454 = vmatpush3.bf16.msra.mxu0 %v9968_v53  ;;  %v7393_v49 = vpop.f32.mrb[100].mxu0  ;;  %v6712_v53 = vunpack.c.l.bf16 %v6820_v24  ;;  %v4268_v55 = vmul.f32 %v7906_v1, %v4252_v17  ;;  %v4469_v61 = vpop.permute.xlu1 %4468  ;;  %v6822_v24 = vld [vmem:[%s8343_s22 + $0xf8] sm:$0xff]   ;;  %s5908_s22 = sshll.u32 %s9170_s1, 4  ;;  %s10658_s22 = int_to_ptr.vmem [resolvable:$true] %s5908_s22 }
 0x8aa   : > { %7455 = vmatprep.subr.bf16.mxu0 %v9970_v51  ;;  %v3706_v27 = vpop.f32.mrb[101].mxu0  ;;  %6826 = vst [vmem:[%s9170_s1 + $0xd8] sm:$0xff] %v4376_v0   ;;  %s8063_s23 = scalar_lea.vmem %s10658_s22, 4096  ;;  %p8070_p9 = scmp.lt.s32.totalorder %s10658_s22, %s8068_s21 }
 0x8ab   : > { %v4254_v37 = vsub.f32 2.0, %v4238_v62  ;;  %v7394_v10 = vpop.f32.mrb[102].mxu0  ;;  %v4351_v57 = vmul.f32 %v6712_v53, %v9107_v40  ;;  %v4284_v19 = vmul.f32 %v9923_v52, %v4268_v55  ;;  %v6720_v53 = vunpack.c.l.bf16 %v6822_v24  ;;  %p8064_p6 = scmp.ne.s32.totalorder %s10658_s22, %s8063_s23  ;;  %p8071_p13 = scmp.lt.s32.totalorder %s8069_s30, %s8063_s23 }
 0x8ac   : > { %v7910_v26 = vpop.eup %7909  ;;  %v3744_v32 = vpack.c.bf16 %v7394_v10, %v7393_v49  ;;  %v3709_v34 = vpop.f32.mrb[103].mxu0 }
 0x8ad   : > { %v4270_v63 = vmul.f32 %v7908_v39, %v4254_v37  ;;  %v4239_v36 = vmul.f32 %v7910_v26, %v4203_v54  ;;  %v3743_v38 = vpack.c.bf16 %v3709_v34, %v3706_v27  ;;  %7456 = vmatpush3.bf16.msra.mxu0 %v9970_v51  ;;  %v6708_v51 = vunpack.c.l.bf16 %v6819_v44  ;;  %p8065_p12 = pnand %p8064_p6, %p10902_p11  ;;  %p8072_p1 = por %p8071_p13, %p8070_p9 }
 0x8ae   : > { %7457 = vmatprep.subr.bf16.mxu0 %v4467_v42  ;;  %v4300_v18 = vmul.f32 %v4284_v19, %v9103_v3  ;;  %v6716_v39 = vunpack.c.l.bf16 %v6821_v31  ;;  %v7604_v19 = vld [vmem:[%s10768_s7 + $0x18] sm:$0xff]  }
 0x8af   : > { %v4286_v22 = vmul.f32 %v9926_v25, %v4270_v63  ;;  %v4255_v6 = vsub.f32 2.0, %v4239_v36  ;;  %7409 = vmatprep.mubr.msk.bf16.mxu0 %vm1377_vm1, %v3743_v38  ;;  %v4352_v25 = vmul.f32 %v6713_v2, %v9107_v40  ;;  %v4349_v13 = vmul.f32 %v6708_v51, %v9107_v40  ;;  %p8066_p8 = pneg %p8065_p12 }
 0x8b0   : > { %v7912_v7 = vpop.eup %7911  ;;  %7410 = vmatmul.mubr.msk.bf16.gmra.mrb[116].mxu0 %vm1377_vm1, %v3744_v32  ;;  %v4353_v32 = vmul.f32 %v6716_v39, %v9107_v40  ;;  %v3732_v39 = vld [vmem:[#allocation2 + $0x58] sm:$0xff] }
 0x8b1   : > { %v4271_v5 = vmul.f32 %v7910_v26, %v4255_v6  ;;  %v4237_v58 = vmul.f32 %v7912_v7, %v4199_v11  ;;  %7458 = vmatpush3.bf16.msra.mxu0 %v4467_v42  ;;  %7461 = vmatprep.mubr.bf16.mxu0 %v9998_v46  ;;  %v4302_v33 = vmul.f32 %v4286_v22, %v9103_v3  ;;  %v6721_v22 = vunpack.c.h.bf16 %v6822_v24  ;;  %p8073_p3 = pnand %p8072_p1, %p8066_p8 }
 0x8b2   : > { %7459 = vmatprep.subr.bf16.mxu0 %v4469_v61  ;;  %v4365_v50 = vadd.f32 %v4349_v13, %v4300_v18 }
 0x8b3   : > { %v4287_v9 = vmul.f32 %v9929_v12, %v4271_v5  ;;  %v4253_v16 = vsub.f32 2.0, %v4237_v58  ;;  %v4367_v52 = vadd.f32 %v4351_v57, %v4302_v33  ;;  %v4355_v5 = vmul.f32 %v6720_v53, %v9107_v40  ;;  %v3721_v33 = vld [vmem:[#allocation2] sm:$0xff] }
 0x8b4   : > { %v4356_v51 = vmul.f32 %v6721_v22, %v9107_v40 }
 0x8b5   : > { %v4269_v54 = vmul.f32 %v7912_v7, %v4253_v16  ;;  %7460 = vmatpush3.bf16.msra.mxu0 %v4469_v61  ;;  %v4303_v46 = vmul.f32 %v4287_v9, %v9103_v3 }
 0x8b6   : > { %7477 = vmatprep.subr.bf16.mxu0 %v7604_v19 }
 0x8b7   : > { %v4285_v21 = vmul.f32 %v9932_v28, %v4269_v54  ;;  %v4368_v47 = vadd.f32 %v4352_v25, %v4303_v46  ;;  %v3724_v46 = vld [vmem:[#allocation2 + $0x18] sm:$0xff] }
 0x8b8   : > { %7462 = vmatmul.mubr.bf16.vlgmr.msra.gmra.mrb[120].mxu0 %v9989_v15 }
 0x8b9   : > { %7465 = vmatprep.mubr.bf16.mxu0 %v10017_v8  ;;  %v4301_v12 = vmul.f32 %v4285_v21, %v9103_v3  ;;  %v4378_v41 = vpack.c.bf16 %v4368_v47, %v4367_v52  ;;  %7478 = vmatpush3.bf16.msra.mxu0 %v7604_v19  ;;  %v3727_v52 = vld [vmem:[#allocation2 + $0x30] sm:$0xff] }
 0x8bb   : > { %v4366_v48 = vadd.f32 %v4350_v14, %v4301_v12  ;;  %6828 = vst [vmem:[%s9170_s1 + $0xe8] sm:$0xff] %v4378_v41   ;;  %v3722_v14 = vld [vmem:[#allocation2 + $0x8] sm:$0xff] }
 0x8bd   : > { %v4377_v1 = vpack.c.bf16 %v4366_v48, %v4365_v50 }
 0x8bf   : > { %6827 = vst [vmem:[%s9170_s1 + $0xe0] sm:$0xff] %v4377_v1  }
 0x8c0   : > { %7466 = vmatmul.mubr.bf16.gmra.mrb[124].mxu0 %v4376_v0  ;;  %v6717_v0 = vunpack.c.h.bf16 %v6821_v31 }
 0x8c1   : > { %7469 = vmatprep.mubr.bf16.mxu0 %v4377_v1  ;;  %v3728_v1 = vld [vmem:[#allocation2 + $0x38] sm:$0xff] }
 0x8c2   : > { %v4354_v34 = vmul.f32 %v6717_v0, %v9107_v40 }
 0x8c8   : > { %7470 = vmatmul.mubr.bf16.gmra.mrb[128].mxu0 %v4378_v41  ;;  %v3725_v41 = vld [vmem:[#allocation2 + $0x20] sm:$0xff] }
 0x8da   : > { %v4205_v28 = vpop.xlane.xlu0 %4204 }
 0x8db   : > { %7913 = vrcp.f32 %v4205_v28 }
 0x8dc   : > { %v4207_v56 = vpop.xlane.xlu1 %4206 }
 0x8dd   : > { %7915 = vrcp.f32 %v4207_v56 }
 0x8de   : > { %v4209_v43 = vpop.xlane.xlu0 %4208 }
 0x8df   : > { %7917 = vrcp.f32 %v4209_v43 }
 0x8e2   : > { %v4211_v15 = vpop.xlane.xlu0 %4210 }
 0x8e3   : > { %7919 = vrcp.f32 %v4211_v15 }
 0x8e5   : > { %v7914_v8 = vpop.eup %7913 }
 0x8e6   : > { %v4240_v30 = vmul.f32 %v7914_v8, %v4205_v28 }
 0x8e7   : > { %v7916_v11 = vpop.eup %7915 }
 0x8e8   : > { %v4256_v23 = vsub.f32 2.0, %v4240_v30  ;;  %v4241_v35 = vmul.f32 %v7916_v11, %v4207_v56  ;;  %v3731_v30 = vld [vmem:[#allocation2 + $0x50] sm:$0xff] }
 0x8e9   : > { %v7918_v29 = vpop.eup %7917 }
 0x8ea   : > { %v4272_v62 = vmul.f32 %v7914_v8, %v4256_v23  ;;  %v4257_v49 = vsub.f32 2.0, %v4241_v35  ;;  %v4242_v27 = vmul.f32 %v7918_v29, %v4209_v43  ;;  %v3726_v43 = vld [vmem:[#allocation2 + $0x28] sm:$0xff]  ;;  %v3729_v23 = vld [vmem:[#allocation2 + $0x40] sm:$0xff] }
 0x8ec   : > { %v4288_v17 = vmul.f32 %v9950_v20, %v4272_v62  ;;  %v4273_v37 = vmul.f32 %v7916_v11, %v4257_v49  ;;  %v4258_v10 = vsub.f32 2.0, %v4242_v27  ;;  %v3730_v49 = vld [vmem:[#allocation2 + $0x48] sm:$0xff] }
 0x8ed   : > { %v7920_v26 = vpop.eup %7919 }
 0x8ee   : > { %v4289_v63 = vmul.f32 %v9953_v45, %v4273_v37  ;;  %v4274_v42 = vmul.f32 %v7918_v29, %v4258_v10  ;;  %v4243_v36 = vmul.f32 %v7920_v26, %v4211_v15  ;;  %v4304_v38 = vmul.f32 %v4288_v17, %v9103_v3  ;;  %v3735_v37 = vld [vmem:[#allocation2 + $0x70] sm:$0xff] }
 0x8f0   : > { %v4290_v2 = vmul.f32 %v9956_v59, %v4274_v42  ;;  %v4259_v55 = vsub.f32 2.0, %v4243_v36  ;;  %v4305_v20 = vmul.f32 %v4289_v63, %v9103_v3  ;;  %v4369_v44 = vadd.f32 %v4353_v32, %v4304_v38  ;;  %v3736_v63 = vld [vmem:[#allocation2 + $0x78] sm:$0xff]  ;;  %v3734_v38 = vld [vmem:[#allocation2 + $0x68] sm:$0xff] }
 0x8f2   : > { %v4275_v6 = vmul.f32 %v7920_v26, %v4259_v55  ;;  %v4370_v7 = vadd.f32 %v4354_v34, %v4305_v20  ;;  %v4306_v61 = vmul.f32 %v4290_v2, %v9103_v3  ;;  %v3733_v26 = vld [vmem:[#allocation2 + $0x60] sm:$0xff] }
 0x8f4   : > { %v4291_v45 = vmul.f32 %v9959_v4, %v4275_v6  ;;  %v4379_v58 = vpack.c.bf16 %v4370_v7, %v4369_v44  ;;  %v4371_v60 = vadd.f32 %v4355_v5, %v4306_v61  ;;  %v3723_v4 = vld [vmem:[#allocation2 + $0x10] sm:$0xff] }
 0x8f6   : > { %6829 = vst [vmem:[%s9170_s1 + $0xf0] sm:$0xff] %v4379_v58   ;;  %7473 = vmatprep.mubr.bf16.mxu0 %v4379_v58  ;;  %v4307_v59 = vmul.f32 %v4291_v45, %v9103_v3 }
 0x8f8   : > { %v4372_v57 = vadd.f32 %v4356_v51, %v4307_v59 }
 0x8fa   : > { %v4380_v25 = vpack.c.bf16 %v4372_v57, %v4371_v60 }
 0x8fc   : > { %6830 = vst [vmem:[%s9170_s1 + $0xf8] sm:$0xff] %v4380_v25   ;;  %7474 = vmatmul.mubr.bf16.gmra.mrb[132].mxu0 %v4380_v25 }
 0x96b   : > { %v7399_v9 = vpop.f32.mrb[104].mxu0 }
 0x96c   : > { %v3877_v16 = vadd.f32 %v7399_v9, %v3723_v4  ;;  %v3812_v40 = vpop.f32.mrb[105].mxu0 }
 0x96d   : > { %v3875_v54 = vadd.f32 %v3812_v40, %v3721_v33  ;;  %v7400_v13 = vpop.f32.mrb[106].mxu0 }
 0x96e   : > { %3893 = vst.msk [vmem:[#allocation2 + $0x10] sm:$0xff] %vm639_vm0, %v3877_v16  ;;  %v3878_v3 = vadd.f32 %v7400_v13, %v3724_v46  ;;  %v3815_v21 = vpop.f32.mrb[107].mxu0 }
 0x96f   : > { %3891 = vst.msk [vmem:[#allocation2] sm:$0xff] %vm639_vm0, %v3875_v54  ;;  %v3876_v18 = vadd.f32 %v3815_v21, %v3722_v14 }
 0x970   : > { %3894 = vst.msk [vmem:[#allocation2 + $0x18] sm:$0xff] %vm639_vm0, %v3878_v3 }
 0x971   : > { %3892 = vst.msk [vmem:[#allocation2 + $0x8] sm:$0xff] %vm639_vm0, %v3876_v18 }
 0x973   : > { %v7403_v47 = vpop.f32.mrb[108].mxu0 }
 0x974   : > { %v3881_v12 = vadd.f32 %v7403_v47, %v3727_v52  ;;  %v3828_v50 = vpop.f32.mrb[109].mxu0 }
 0x975   : > { %v3879_v48 = vadd.f32 %v3828_v50, %v3725_v41  ;;  %v7404_v28 = vpop.f32.mrb[110].mxu0  ;;  %v4577_v3 = vld [vmem:[#allocation2 + $0x10] sm:$0xff] }
 0x976   : > { %3897 = vst.msk [vmem:[#allocation2 + $0x30] sm:$0xff] %vm639_vm0, %v3881_v12  ;;  %v3882_v56 = vadd.f32 %v7404_v28, %v3728_v1  ;;  %v3831_v15 = vpop.f32.mrb[111].mxu0  ;;  %v4575_v18 = vld [vmem:[#allocation2] sm:$0xff] }
 0x977   : > { %3895 = vst.msk [vmem:[#allocation2 + $0x20] sm:$0xff] %vm639_vm0, %v3879_v48  ;;  %v3880_v8 = vadd.f32 %v3831_v15, %v3726_v43  ;;  %v4578_v12 = vld [vmem:[#allocation2 + $0x18] sm:$0xff] }
 0x978   : > { %3898 = vst.msk [vmem:[#allocation2 + $0x38] sm:$0xff] %vm639_vm0, %v3882_v56  ;;  %v4576_v48 = vld [vmem:[#allocation2 + $0x8] sm:$0xff] }
 0x979   : > { %3896 = vst.msk [vmem:[#allocation2 + $0x28] sm:$0xff] %vm639_vm0, %v3880_v8 }
 0x97b   : > { %v7407_v31 = vpop.f32.mrb[112].mxu0 }
 0x97c   : > { %v3885_v11 = vadd.f32 %v7407_v31, %v3731_v30  ;;  %v3844_v35 = vpop.f32.mrb[113].mxu0 }
 0x97d   : > { %v3883_v29 = vadd.f32 %v3844_v35, %v3729_v23  ;;  %v7408_v0 = vpop.f32.mrb[114].mxu0  ;;  %v4581_v56 = vld [vmem:[#allocation2 + $0x30] sm:$0xff] }
 0x97e   : > { %3901 = vst.msk [vmem:[#allocation2 + $0x50] sm:$0xff] %vm639_vm0, %v3885_v11  ;;  %v3886_v62 = vadd.f32 %v7408_v0, %v3732_v39  ;;  %v3847_v27 = vpop.f32.mrb[115].mxu0  ;;  %v4579_v8 = vld [vmem:[#allocation2 + $0x20] sm:$0xff] }
 0x97f   : > { %3899 = vst.msk [vmem:[#allocation2 + $0x40] sm:$0xff] %vm639_vm0, %v3883_v29  ;;  %v3884_v17 = vadd.f32 %v3847_v27, %v3730_v49  ;;  %v4582_v11 = vld [vmem:[#allocation2 + $0x38] sm:$0xff] }
 0x980   : > { %3902 = vst.msk [vmem:[#allocation2 + $0x58] sm:$0xff] %vm639_vm0, %v3886_v62  ;;  %v4580_v29 = vld [vmem:[#allocation2 + $0x28] sm:$0xff] }
 0x981   : > { %3900 = vst.msk [vmem:[#allocation2 + $0x48] sm:$0xff] %vm639_vm0, %v3884_v17 }
 0x983   : > { %v7411_v10 = vpop.f32.mrb[116].mxu0 }
 0x984   : > { %v3889_v24 = vadd.f32 %v7411_v10, %v3735_v37  ;;  %v3860_v32 = vpop.f32.mrb[117].mxu0 }
 0x985   : > { %v3887_v34 = vadd.f32 %v3860_v32, %v3733_v26  ;;  %v7412_v42 = vpop.f32.mrb[118].mxu0  ;;  %v4585_v10 = vld [vmem:[#allocation2 + $0x50] sm:$0xff] }
 0x986   : > { %3905 = vst.msk [vmem:[#allocation2 + $0x70] sm:$0xff] %vm639_vm0, %v3889_v24  ;;  %v3890_v36 = vadd.f32 %v7412_v42, %v3736_v63  ;;  %v3863_v53 = vpop.f32.mrb[119].mxu0 }
 0x987   : > { %3903 = vst.msk [vmem:[#allocation2 + $0x60] sm:$0xff] %vm639_vm0, %v3887_v34  ;;  %v3888_v2 = vadd.f32 %v3863_v53, %v3734_v38  ;;  %v4583_v34 = vld [vmem:[#allocation2 + $0x40] sm:$0xff]  ;;  %v4586_v38 = vld [vmem:[#allocation2 + $0x58] sm:$0xff] }
 0x988   : > { %3906 = vst.msk [vmem:[#allocation2 + $0x78] sm:$0xff] %vm639_vm0, %v3890_v36 }
 0x989   : > { %3904 = vst.msk [vmem:[#allocation2 + $0x68] sm:$0xff] %vm639_vm0, %v3888_v2 }
 0x98b   : > { %v7463_v55 = vpop.f32.mrb[120].mxu0 }
 0x98c   : > { %v4512_v20 = vpop.f32.mrb[121].mxu0 }
 0x98d   : > { %v7464_v22 = vpop.f32.mrb[122].mxu0 }
 0x98e   : > { %v4592_v6 = vpack.c.bf16 %v7464_v22, %v7463_v55  ;;  %v4515_v44 = vpop.f32.mrb[123].mxu0  ;;  %v4584_v55 = vld [vmem:[#allocation2 + $0x48] sm:$0xff] }
 0x98f   : > { %v4591_v7 = vpack.c.bf16 %v4515_v44, %v4512_v20 }
 0x991   : > { %7479 = vmatprep.mubr.msk.bf16.mxu0 %vm1377_vm1, %v4591_v7 }
 0x992   : > { %7480 = vmatmul.mubr.msk.bf16.vlgmr.msra.gmra.mrb[136].mxu0 %vm1377_vm1, %v4592_v6 }
 0x993   : > { %v7467_v5 = vpop.f32.mrb[124].mxu0 }
 0x994   : > { %v4528_v45 = vpop.f32.mrb[125].mxu0 }
 0x995   : > { %v7468_v58 = vpop.f32.mrb[126].mxu0 }
 0x996   : > { %v4594_v61 = vpack.c.bf16 %v7468_v58, %v7467_v5  ;;  %v4531_v51 = vpop.f32.mrb[127].mxu0 }
 0x997   : > { %v4593_v59 = vpack.c.bf16 %v4531_v51, %v4528_v45 }
 0x999   : > { %7483 = vmatprep.mubr.msk.bf16.mxu0 %vm1377_vm1, %v4593_v59 }
 0x99a   : > { %7484 = vmatmul.mubr.msk.bf16.gmra.mrb[140].mxu0 %vm1377_vm1, %v4594_v61 }
 0x99b   : > { %v7471_v60 = vpop.f32.mrb[128].mxu0 }
 0x99c   : > { %v4544_v57 = vpop.f32.mrb[129].mxu0 }
 0x99d   : > { %v7472_v25 = vpop.f32.mrb[130].mxu0 }
 0x99e   : > { %v4596_v19 = vpack.c.bf16 %v7472_v25, %v7471_v60  ;;  %v4547_v4 = vpop.f32.mrb[131].mxu0 }
 0x99f   : > { %v4595_v9 = vpack.c.bf16 %v4547_v4, %v4544_v57 }
 0x9a1   : > { %7487 = vmatprep.mubr.msk.bf16.mxu0 %vm1377_vm1, %v4595_v9 }
 0x9a2   : > { %7488 = vmatmul.mubr.msk.bf16.gmra.mrb[144].mxu0 %vm1377_vm1, %v4596_v19 }
 0x9cf   : > { %v7475_v16 = vpop.f32.mrb[132].mxu0 }
 0x9d0   : > { %v4560_v33 = vpop.f32.mrb[133].mxu0 }
 0x9d1   : > { %v7476_v40 = vpop.f32.mrb[134].mxu0 }
 0x9d2   : > { %v4598_v54 = vpack.c.bf16 %v7476_v40, %v7475_v16  ;;  %v4563_v46 = vpop.f32.mrb[135].mxu0  ;;  %v4589_v40 = vld [vmem:[#allocation2 + $0x70] sm:$0xff] }
 0x9d3   : > { %v4597_v13 = vpack.c.bf16 %v4563_v46, %v4560_v33 }
 0x9d5   : > { %7491 = vmatprep.mubr.msk.bf16.mxu0 %vm1377_vm1, %v4597_v13  ;;  %v4587_v13 = vld [vmem:[#allocation2 + $0x60] sm:$0xff] }
 0x9d6   : > { %7492 = vmatmul.mubr.msk.bf16.gmra.mrb[148].mxu0 %vm1377_vm1, %v4598_v54 }
 0xa65   : > { %v7481_v14 = vpop.f32.mrb[136].mxu0 }
 0xa66   : > { %v4731_v21 = vadd.f32 %v7481_v14, %v4577_v3  ;;  %v4666_v52 = vpop.f32.mrb[137].mxu0 }
 0xa67   : > { %v4729_v47 = vadd.f32 %v4666_v52, %v4575_v18  ;;  %v7482_v41 = vpop.f32.mrb[138].mxu0 }
 0xa68   : > { %4747 = vst.msk [vmem:[#allocation2 + $0x10] sm:$0xff] %vm639_vm0, %v4731_v21  ;;  %v4732_v50 = vadd.f32 %v7482_v41, %v4578_v12  ;;  %v4669_v1 = vpop.f32.mrb[139].mxu0  ;;  %v4590_v21 = vld [vmem:[#allocation2 + $0x78] sm:$0xff] }
 0xa69   : > { %4745 = vst.msk [vmem:[#allocation2] sm:$0xff] %vm639_vm0, %v4729_v47  ;;  %v4730_v28 = vadd.f32 %v4669_v1, %v4576_v48  ;;  %v4588_v47 = vld [vmem:[#allocation2 + $0x68] sm:$0xff] }
 0xa6a   : > { %4748 = vst.msk [vmem:[#allocation2 + $0x18] sm:$0xff] %vm639_vm0, %v4732_v50 }
 0xa6b   : > { %4746 = vst.msk [vmem:[#allocation2 + $0x8] sm:$0xff] %vm639_vm0, %v4730_v28 }
 0xa6d   : > { %v7485_v43 = vpop.f32.mrb[140].mxu0 }
 0xa6e   : > { %v4735_v15 = vadd.f32 %v7485_v43, %v4581_v56  ;;  %v4682_v30 = vpop.f32.mrb[141].mxu0 }
 0xa6f   : > { %v4733_v31 = vadd.f32 %v4682_v30, %v4579_v8  ;;  %v7486_v23 = vpop.f32.mrb[142].mxu0  ;;  %v10114_v42 = vld [vmem:[#allocation2 + $0x10] sm:$0xff] }
 0xa70   : > { %4751 = vst.msk [vmem:[#allocation2 + $0x30] sm:$0xff] %vm639_vm0, %v4735_v15  ;;  %v4736_v35 = vadd.f32 %v7486_v23, %v4582_v11  ;;  %v4685_v39 = vpop.f32.mrb[143].mxu0  ;;  %v10099_v0 = vld [vmem:[#allocation2] sm:$0xff]  ;;  %v4785_v6 = vsel %vm639_vm0, %v10114_v42, 0.0 }
 0xa71   : > { %4749 = vst.msk [vmem:[#allocation2 + $0x20] sm:$0xff] %vm639_vm0, %v4733_v31  ;;  %v4734_v62 = vadd.f32 %v4685_v39, %v4580_v29  ;;  %v4779_v49 = vsel %vm639_vm0, %v10099_v0, 0.0  ;;  %v10104_v27 = vld [vmem:[#allocation2 + $0x18] sm:$0xff] }
 0xa72   : > { %4752 = vst.msk [vmem:[#allocation2 + $0x38] sm:$0xff] %vm639_vm0, %v4736_v35  ;;  %4780 = vadd.xlane.f32.xlu0 %v4779_v49  ;;  %v4788_v17 = vsel %vm639_vm0, %v10104_v27, 0.0  ;;  %v10109_v37 = vld [vmem:[#allocation2 + $0x8] sm:$0xff] }
 0xa73   : > { %4750 = vst.msk [vmem:[#allocation2 + $0x28] sm:$0xff] %vm639_vm0, %v4734_v62  ;;  %4789 = vadd.xlane.f32.xlu1 %v4788_v17  ;;  %v4782_v26 = vsel %vm639_vm0, %v10109_v37, 0.0 }
 0xa75   : > { %v7489_v24 = vpop.f32.mrb[144].mxu0 }
 0xa76   : > { %v4739_v32 = vadd.f32 %v7489_v24, %v4585_v10  ;;  %4783 = vadd.xlane.f32.xlu0 %v4782_v26  ;;  %v4698_v63 = vpop.f32.mrb[145].mxu0 }
 0xa77   : > { %v4737_v36 = vadd.f32 %v4698_v63, %v4583_v34  ;;  %v7490_v53 = vpop.f32.mrb[146].mxu0  ;;  %v10132_v61 = vld [vmem:[#allocation2 + $0x30] sm:$0xff] }
 0xa78   : > { %4755 = vst.msk [vmem:[#allocation2 + $0x50] sm:$0xff] %vm639_vm0, %v4739_v32  ;;  %v4740_v2 = vadd.f32 %v7490_v53, %v4586_v38  ;;  %v4701_v20 = vpop.f32.mrb[147].mxu0  ;;  %v10123_v7 = vld [vmem:[#allocation2 + $0x20] sm:$0xff]  ;;  %v4797_v59 = vsel %vm639_vm0, %v10132_v61, 0.0 }
 0xa79   : > { %4753 = vst.msk [vmem:[#allocation2 + $0x40] sm:$0xff] %vm639_vm0, %v4737_v36  ;;  %v4738_v22 = vadd.f32 %v4701_v20, %v4584_v55  ;;  %v10128_v45 = vld [vmem:[#allocation2 + $0x38] sm:$0xff]  ;;  %v4791_v58 = vsel %vm639_vm0, %v10123_v7, 0.0 }
 0xa7a   : > { %4756 = vst.msk [vmem:[#allocation2 + $0x58] sm:$0xff] %vm639_vm0, %v4740_v2  ;;  %4786 = vadd.xlane.f32.xlu0 %v4785_v6  ;;  %v10121_v44 = vld [vmem:[#allocation2 + $0x28] sm:$0xff]  ;;  %v4800_v51 = vsel %vm639_vm0, %v10128_v45, 0.0 }
 0xa7b   : > { %4754 = vst.msk [vmem:[#allocation2 + $0x48] sm:$0xff] %vm639_vm0, %v4738_v22  ;;  %v4794_v5 = vsel %vm639_vm0, %v10121_v44, 0.0 }
 0xa7c   : > { %4795 = vadd.xlane.f32.xlu1 %v4794_v5 }
 0xa7e   : > { %4792 = vadd.xlane.f32.xlu0 %v4791_v58 }
 0xa7f   : > { %v10148_v9 = vld [vmem:[#allocation2 + $0x50] sm:$0xff] }
 0xa80   : > { %4801 = vadd.xlane.f32.xlu1 %v4800_v51  ;;  %v10140_v57 = vld [vmem:[#allocation2 + $0x40] sm:$0xff]  ;;  %v4809_v33 = vsel %vm639_vm0, %v10148_v9, 0.0 }
 0xa81   : > { %v10144_v19 = vld [vmem:[#allocation2 + $0x58] sm:$0xff]  ;;  %v4803_v4 = vsel %vm639_vm0, %v10140_v57, 0.0 }
 0xa82   : > { %4798 = vadd.xlane.f32.xlu0 %v4797_v59  ;;  %v10138_v60 = vld [vmem:[#allocation2 + $0x48] sm:$0xff]  ;;  %v4812_v16 = vsel %vm639_vm0, %v10144_v19, 0.0 }
 0xa83   : > { %v4806_v25 = vsel %vm639_vm0, %v10138_v60, 0.0 }
 0xa84   : > { %4807 = vadd.xlane.f32.xlu1 %v4806_v25 }
 0xa86   : > { %4804 = vadd.xlane.f32.xlu0 %v4803_v4 }
 0xa88   : > { %4813 = vadd.xlane.f32.xlu1 %v4812_v16 }
 0xa8a   : > { %4810 = vadd.xlane.f32.xlu0 %v4809_v33 }
 0xaa9   : > { %v7493_v54 = vpop.f32.mrb[148].mxu0 }
 0xaaa   : > { %v4743_v46 = vadd.f32 %v7493_v54, %v4589_v40  ;;  %v4714_v3 = vpop.f32.mrb[149].mxu0 }
 0xaab   : > { %v4741_v14 = vadd.f32 %v4714_v3, %v4587_v13  ;;  %v7494_v18 = vpop.f32.mrb[150].mxu0 }
 0xaac   : > { %4759 = vst.msk [vmem:[#allocation2 + $0x70] sm:$0xff] %vm639_vm0, %v4743_v46  ;;  %v4744_v52 = vadd.f32 %v7494_v18, %v4590_v21  ;;  %v4717_v12 = vpop.f32.mrb[151].mxu0 }
 0xaad   : > { %4757 = vst.msk [vmem:[#allocation2 + $0x60] sm:$0xff] %vm639_vm0, %v4741_v14  ;;  %v4742_v41 = vadd.f32 %v4717_v12, %v4588_v47 }
 0xaae   : > { %4760 = vst.msk [vmem:[#allocation2 + $0x78] sm:$0xff] %vm639_vm0, %v4744_v52 }
 0xaaf   : > { %4758 = vst.msk [vmem:[#allocation2 + $0x68] sm:$0xff] %vm639_vm0, %v4742_v41 }
 0xab3   : > { %v10164_v28 = vld [vmem:[#allocation2 + $0x70] sm:$0xff] }
 0xab4   : > { %v10158_v50 = vld [vmem:[#allocation2 + $0x60] sm:$0xff]  ;;  %v4821_v15 = vsel %vm639_vm0, %v10164_v28, 0.0 }
 0xab5   : > { %v4815_v48 = vsel %vm639_vm0, %v10158_v50, 0.0  ;;  %v10168_v43 = vld [vmem:[#allocation2 + $0x78] sm:$0xff] }
 0xab6   : > { %4816 = vadd.xlane.f32.xlu0 %v4815_v48  ;;  %v10162_v1 = vld [vmem:[#allocation2 + $0x68] sm:$0xff]  ;;  %v4824_v8 = vsel %vm639_vm0, %v10168_v43, 0.0 }
 0xab7   : > { %v4818_v56 = vsel %vm639_vm0, %v10162_v1, 0.0 }
 0xab8   : > { %4819 = vadd.xlane.f32.xlu1 %v4818_v56 }
 0xaba   : > { %4822 = vadd.xlane.f32.xlu0 %v4821_v15 }
 0xabc   : > { %4825 = vadd.xlane.f32.xlu1 %v4824_v8 }
 0xaff   : > { %v4781_v30 = vpop.xlane.xlu0 %4780 }
 0xb00   : > { %v4827_v31 = vmul.f32 0.015625, %v4781_v30  ;;  %v4790_v11 = vpop.xlane.xlu1 %4789 }
 0xb01   : > { %v4830_v23 = vmul.f32 0.015625, %v4790_v11  ;;  %v7610_v11 = vld [vmem:[%s10772_s11 + $0x14] ss:$8 sps:$4 sm:$0xff]  }
 0xb02   : > { %v10175_v35 = vsub.f32 %v10099_v0, %v4827_v31  ;;  %v7605_v31 = vld [vmem:[%s10772_s11] ss:$8 sps:$4 sm:$0xff]  }
 0xb03   : > { %v4784_v29 = vpop.xlane.xlu0 %4783  ;;  %v10180_v49 = vsub.f32 %v10104_v27, %v4830_v23  ;;  %v7608_v23 = vld [vmem:[%s10772_s11 + $0x10] ss:$8 sps:$4 sm:$0xff]  }
 0xb04   : > { %v4828_v39 = vmul.f32 0.015625, %v4784_v29  ;;  %v4859_v62 = vmul.f32 %v10175_v35, %v10175_v35  ;;  %v7613_v29 = vld [vmem:[%s10772_s11 + $0x24] ss:$8 sps:$4 sm:$0xff]  }
 0xb05   : > { %v4862_v34 = vmul.f32 %v10180_v49, %v10180_v49 }
 0xb06   : > { %v10183_v17 = vsub.f32 %v10109_v37, %v4828_v39  ;;  %v4875_v10 = vsel %vm639_vm0, %v4859_v62, 0.0  ;;  %v7611_v39 = vld [vmem:[%s10772_s11 + $0x20] ss:$8 sps:$4 sm:$0xff]   ;;  %v7616_v62 = vld [vmem:[%s10772_s11 + $0x34] ss:$8 sps:$4 sm:$0xff]  }
 0xb07   : > { %v4787_v24 = vpop.xlane.xlu0 %4786  ;;  %4876 = vadd.xlane.f32.xlu0 %v4875_v10  ;;  %v4884_v20 = vsel %vm639_vm0, %v4862_v34, 0.0  ;;  %v7614_v10 = vld [vmem:[%s10772_s11 + $0x30] ss:$8 sps:$4 sm:$0xff]  }
 0xb08   : > { %v4829_v26 = vmul.f32 0.015625, %v4787_v24  ;;  %v4860_v0 = vmul.f32 %v10183_v17, %v10183_v17  ;;  %v8137_v24 = vmov 0  }
 0xb09   : > { %v4796_v32 = vpop.xlane.xlu1 %4795  ;;  %5155 = vmatprep.mubr.bf16.mxu1 %v8137_v24 }
 0xb0a   : > { %v10191_v63 = vsub.f32 %v10114_v42, %v4829_v26  ;;  %v4832_v27 = vmul.f32 0.015625, %v4796_v32  ;;  %v4878_v36 = vsel %vm639_vm0, %v4860_v0, 0.0 }
 0xb0b   : > { %v4793_v37 = vpop.xlane.xlu0 %4792  ;;  %4879 = vadd.xlane.f32.xlu1 %v4878_v36 }
 0xb0c   : > { %v10195_v38 = vsub.f32 %v10121_v44, %v4832_v27  ;;  %v4831_v53 = vmul.f32 0.015625, %v4793_v37  ;;  %v4861_v2 = vmul.f32 %v10191_v63, %v10191_v63 }
 0xb0d   : > { %v4802_v55 = vpop.xlane.xlu1 %4801 }
 0xb0e   : > { %v10201_v22 = vsub.f32 %v10123_v7, %v4831_v53  ;;  %v4834_v42 = vmul.f32 0.015625, %v4802_v55  ;;  %v4881_v6 = vsel %vm639_vm0, %v4861_v2, 0.0  ;;  %v4864_v5 = vmul.f32 %v10195_v38, %v10195_v38 }
 0xb0f   : > { %v4799_v58 = vpop.xlane.xlu0 %4798  ;;  %4882 = vadd.xlane.f32.xlu0 %v4881_v6  ;;  %4885 = vadd.xlane.f32.xlu1 %v4884_v20 }
 0xb10   : > { %v10207_v44 = vsub.f32 %v10128_v45, %v4834_v42  ;;  %v4833_v51 = vmul.f32 0.015625, %v4799_v58  ;;  %v4863_v59 = vmul.f32 %v10201_v22, %v10201_v22  ;;  %v4890_v7 = vsel %vm639_vm0, %v4864_v5, 0.0 }
 0xb11   : > { %v4808_v25 = vpop.xlane.xlu1 %4807 }
 0xb12   : > { %v10213_v4 = vsub.f32 %v10132_v61, %v4833_v51  ;;  %v4836_v16 = vmul.f32 0.015625, %v4808_v25  ;;  %v4887_v33 = vsel %vm639_vm0, %v4863_v59, 0.0  ;;  %v4866_v40 = vmul.f32 %v10207_v44, %v10207_v44 }
 0xb13   : > { %v4805_v54 = vpop.xlane.xlu0 %4804  ;;  %4888 = vadd.xlane.f32.xlu0 %v4887_v33  ;;  %4891 = vadd.xlane.f32.xlu1 %v4890_v7 }
 0xb14   : > { %v10219_v45 = vsub.f32 %v10138_v60, %v4836_v16  ;;  %v4835_v46 = vmul.f32 0.015625, %v4805_v54  ;;  %v4865_v13 = vmul.f32 %v10213_v4, %v10213_v4  ;;  %v4896_v61 = vsel %vm639_vm0, %v4866_v40, 0.0 }
 0xb15   : > { %v4814_v3 = vpop.xlane.xlu1 %4813 }
 0xb16   : > { %v10225_v14 = vsub.f32 %v10140_v57, %v4835_v46  ;;  %v4838_v21 = vmul.f32 0.015625, %v4814_v3  ;;  %v4893_v18 = vsel %vm639_vm0, %v4865_v13, 0.0  ;;  %v4868_v52 = vmul.f32 %v10219_v45, %v10219_v45 }
 0xb17   : > { %v4811_v47 = vpop.xlane.xlu0 %4810  ;;  %4894 = vadd.xlane.f32.xlu0 %v4893_v18  ;;  %4897 = vadd.xlane.f32.xlu1 %v4896_v61 }
 0xb18   : > { %v10231_v60 = vsub.f32 %v10144_v19, %v4838_v21  ;;  %v4837_v12 = vmul.f32 0.015625, %v4811_v47  ;;  %v4867_v41 = vmul.f32 %v10225_v14, %v10225_v14  ;;  %v4902_v56 = vsel %vm639_vm0, %v4868_v52, 0.0 }
 0xb1a   : > { %v10236_v48 = vsub.f32 %v10148_v9, %v4837_v12  ;;  %v4899_v57 = vsel %vm639_vm0, %v4867_v41, 0.0  ;;  %v4870_v15 = vmul.f32 %v10231_v60, %v10231_v60  ;;  %v7607_v9 = vld [vmem:[%s10772_s11 + $0x4] ss:$8 sps:$4 sm:$0xff]  }
 0xb1b   : > { %4900 = vadd.xlane.f32.xlu0 %v4899_v57  ;;  %4903 = vadd.xlane.f32.xlu1 %v4902_v56 }
 0xb1c   : > { %v4869_v19 = vmul.f32 %v10236_v48, %v10236_v48  ;;  %v4908_v30 = vsel %vm639_vm0, %v4870_v15, 0.0  ;;  %5123 = vmatprep.subr.bf16.mxu1 %v7607_v9  ;;  %v10298_v15 = vld [vmem:[%s10770_s9] ss:$0 sm:$0xff] }
 0xb1d   : > { %5124 = vmatpush1.bf16.msra.mxu1 %v7605_v31 }
 0xb1e   : > { %v4905_v8 = vsel %vm639_vm0, %v4869_v19, 0.0  ;;  %5125 = vmatprep.subr.bf16.mxu1 %v7610_v11 }
 0xb1f   : > { %4906 = vadd.xlane.f32.xlu0 %v4905_v8  ;;  %4909 = vadd.xlane.f32.xlu1 %v4908_v30 }
 0xb21   : > { %5126 = vmatpush1.bf16.msra.mxu1 %v7608_v23 }
 0xb22   : > { %5127 = vmatprep.subr.bf16.mxu1 %v7613_v29  ;;  %v10305_v29 = vld [vmem:[%s10771_s10] ss:$0 sm:$0xff] }
 0xb25   : > { %5128 = vmatpush1.bf16.msra.mxu1 %v7611_v39 }
 0xb26   : > { %5129 = vmatprep.subr.bf16.mxu1 %v7616_v62 }
 0xb29   : > { %5130 = vmatpush1.bf16.msra.mxu1 %v7614_v10 }
 0xb43   : > { %v4817_v26 = vpop.xlane.xlu0 %4816 }
 0xb44   : > { %v4839_v0 = vmul.f32 0.015625, %v4817_v26 }
 0xb45   : > { %v4820_v32 = vpop.xlane.xlu1 %4819 }
 0xb46   : > { %v10272_v34 = vsub.f32 %v10158_v50, %v4839_v0  ;;  %v4840_v27 = vmul.f32 0.015625, %v4820_v32 }
 0xb47   : > { %v4823_v36 = vpop.xlane.xlu0 %4822 }
 0xb48   : > { %v10275_v37 = vsub.f32 %v10162_v1, %v4840_v27  ;;  %v4841_v53 = vmul.f32 0.015625, %v4823_v36  ;;  %v4871_v2 = vmul.f32 %v10272_v34, %v10272_v34 }
 0xb49   : > { %v4826_v55 = vpop.xlane.xlu1 %4825 }
 0xb4a   : > { %v10280_v20 = vsub.f32 %v10164_v28, %v4841_v53  ;;  %v4842_v42 = vmul.f32 0.015625, %v4826_v55  ;;  %v4911_v6 = vsel %vm639_vm0, %v4871_v2, 0.0  ;;  %v4872_v50 = vmul.f32 %v10275_v37, %v10275_v37 }
 0xb4b   : > { %4912 = vadd.xlane.f32.xlu0 %v4911_v6 }
 0xb4c   : > { %v10286_v5 = vsub.f32 %v10168_v43, %v4842_v42  ;;  %v4914_v1 = vsel %vm639_vm0, %v4872_v50, 0.0  ;;  %v4873_v58 = vmul.f32 %v10280_v20, %v10280_v20 }
 0xb4d   : > { %4915 = vadd.xlane.f32.xlu1 %v4914_v1 }
 0xb4e   : > { %v4917_v51 = vsel %vm639_vm0, %v4873_v58, 0.0  ;;  %v4874_v28 = vmul.f32 %v10286_v5, %v10286_v5 }
 0xb4f   : > { %4918 = vadd.xlane.f32.xlu0 %v4917_v51 }
 0xb50   : > { %v4920_v59 = vsel %vm639_vm0, %v4874_v28, 0.0 }
 0xb51   : > { %4921 = vadd.xlane.f32.xlu1 %v4920_v59 }
 0xb94   : > { %v4877_v25 = vpop.xlane.xlu0 %4876 }
 0xb95   : > { %v4923_v7 = vmul.f32 0.015625, %v4877_v25 }
 0xb97   : > { %v4939_v16 = vadd.f32 1e-05, %v4923_v7 }
 0xb98   : > { %v4880_v43 = vpop.xlane.xlu1 %4879 }
 0xb99   : > { %7921 = vrsqrt.f32 %v4939_v16  ;;  %v4924_v33 = vmul.f32 0.015625, %v4880_v43 }
 0xb9b   : > { %v4940_v40 = vadd.f32 1e-05, %v4924_v33 }
 0xb9c   : > { %v4883_v54 = vpop.xlane.xlu0 %4882  ;;  %v4886_v46 = vpop.xlane.xlu1 %4885 }
 0xb9d   : > { %7923 = vrsqrt.f32 %v4940_v40  ;;  %v4925_v13 = vmul.f32 0.015625, %v4883_v54  ;;  %v4926_v3 = vmul.f32 0.015625, %v4886_v46 }
 0xb9f   : > { %v4941_v61 = vadd.f32 1e-05, %v4925_v13  ;;  %v4942_v21 = vadd.f32 1e-05, %v4926_v3 }
 0xba0   : > { %v4889_v18 = vpop.xlane.xlu0 %4888  ;;  %v4892_v52 = vpop.xlane.xlu1 %4891 }
 0xba1   : > { %7925 = vrsqrt.f32 %v4941_v61  ;;  %v4927_v47 = vmul.f32 0.015625, %v4889_v18  ;;  %v4928_v12 = vmul.f32 0.015625, %v4892_v52 }
 0xba2   : > { %7927 = vrsqrt.f32 %v4942_v21 }
 0xba3   : > { %v7922_v41 = vpop.eup %7921  ;;  %v4943_v57 = vadd.f32 1e-05, %v4927_v47  ;;  %v4944_v56 = vadd.f32 1e-05, %v4928_v12 }
 0xba4   : > { %v4971_v19 = vmul.f32 %v7922_v41, %v10175_v35  ;;  %v4895_v8 = vpop.xlane.xlu0 %4894  ;;  %v4898_v30 = vpop.xlane.xlu1 %4897 }
 0xba5   : > { %7929 = vrsqrt.f32 %v4943_v57  ;;  %v4929_v9 = vmul.f32 0.015625, %v4895_v8  ;;  %v4930_v31 = vmul.f32 0.015625, %v4898_v30 }
 0xba6   : > { %7931 = vrsqrt.f32 %v4944_v56  ;;  %v4993_v23 = vmul.f32 %v10298_v15, %v4971_v19 }
 0xba7   : > { %v7924_v11 = vpop.eup %7923  ;;  %v4945_v62 = vadd.f32 1e-05, %v4929_v9  ;;  %v4946_v10 = vadd.f32 1e-05, %v4930_v31 }
 0xba8   : > { %v4972_v39 = vmul.f32 %v7924_v11, %v10183_v17  ;;  %v4901_v26 = vpop.xlane.xlu0 %4900  ;;  %v4904_v0 = vpop.xlane.xlu1 %4903  ;;  %v5015_v27 = vadd.f32 %v10305_v29, %v4993_v23 }
 0xba9   : > { %7933 = vrsqrt.f32 %v4945_v62  ;;  %v4931_v55 = vmul.f32 0.015625, %v4901_v26  ;;  %v4932_v17 = vmul.f32 0.015625, %v4904_v0 }
 0xbaa   : > { %v4994_v35 = vmul.f32 %v10298_v15, %v4972_v39  ;;  %7935 = vrsqrt.f32 %v4946_v10 }
 0xbab   : > { %v7926_v32 = vpop.eup %7925  ;;  %v4947_v28 = vadd.f32 1e-05, %v4931_v55  ;;  %v4948_v59 = vadd.f32 1e-05, %v4932_v17 }
 0xbac   : > { %v7928_v36 = vpop.eup %7927  ;;  %v5016_v53 = vadd.f32 %v10305_v29, %v4994_v35  ;;  %v4973_v2 = vmul.f32 %v7926_v32, %v10191_v63  ;;  %v4907_v25 = vpop.xlane.xlu0 %4906 }
 0xbad   : > { %v4974_v42 = vmul.f32 %v7928_v36, %v10180_v49  ;;  %v4910_v7 = vpop.xlane.xlu1 %4909  ;;  %7937 = vrsqrt.f32 %v4947_v28  ;;  %v4933_v33 = vmul.f32 0.015625, %v4907_v25 }
 0xbae   : > { %v5031_v6 = vpack.c.bf16 %v5016_v53, %v5015_v27  ;;  %v4995_v50 = vmul.f32 %v10298_v15, %v4973_v2  ;;  %7939 = vrsqrt.f32 %v4948_v59  ;;  %v4934_v40 = vmul.f32 0.015625, %v4910_v7 }
 0xbaf   : > { %v7930_v1 = vpop.eup %7929  ;;  %v4996_v58 = vmul.f32 %v10298_v15, %v4974_v42  ;;  %v4949_v21 = vadd.f32 1e-05, %v4933_v33 }
 0xbb0   : > { %v7932_v51 = vpop.eup %7931  ;;  %6314 = vmatmul.mubr.msk.bf16.vlgmr.msra.gmra.mrb[88].mxu1 %vm639_vm0, %v5031_v6  ;;  %v4975_v63 = vmul.f32 %v7930_v1, %v10201_v22  ;;  %v5017_v16 = vadd.f32 %v10305_v29, %v4995_v50 }
 0xbb1   : > { %5165 = vmatprep.mubr.bf16.mxu1 %v8137_v24  ;;  %v4976_v49 = vmul.f32 %v7932_v51, %v10195_v38  ;;  %v5018_v43 = vadd.f32 %v10305_v29, %v4996_v58  ;;  %v4950_v38 = vadd.f32 1e-05, %v4934_v40  ;;  %7941 = vrsqrt.f32 %v4949_v21  ;;  %v7618_v21 = vld [vmem:[%s10774_s13] sm:$0xff]  }
 0xbb2   : > { %v4997_v13 = vmul.f32 %v10298_v15, %v4975_v63 }
 0xbb3   : > { %v7934_v54 = vpop.eup %7933  ;;  %v5032_v46 = vpack.c.bf16 %v5018_v43, %v5017_v16  ;;  %v4998_v3 = vmul.f32 %v10298_v15, %v4976_v49  ;;  %7943 = vrsqrt.f32 %v4950_v38  ;;  %v7622_v38 = vld [vmem:[%s10774_s13 + $0x10] sm:$0xff]  }
 0xbb4   : > { %v7936_v61 = vpop.eup %7935  ;;  %v4977_v22 = vmul.f32 %v7934_v54, %v10213_v4  ;;  %v5019_v52 = vadd.f32 %v10305_v29, %v4997_v13 }
 0xbb5   : > { %v4978_v18 = vmul.f32 %v7936_v61, %v10207_v44  ;;  %v5020_v47 = vadd.f32 %v10305_v29, %v4998_v3 }
 0xbb6   : > { %v4999_v57 = vmul.f32 %v10298_v15, %v4977_v22  ;;  %v7623_v22 = vld [vmem:[%s10774_s13 + $0x58] sm:$0xff]  }
 0xbb7   : > { %v7938_v12 = vpop.eup %7937  ;;  %v5033_v41 = vpack.c.bf16 %v5020_v47, %v5019_v52  ;;  %v5000_v56 = vmul.f32 %v10298_v15, %v4978_v18  ;;  %v7624_v18 = vld [vmem:[%s10774_s13 + $0x18] sm:$0xff]   ;;  %v7625_v52 = vld [vmem:[%s10774_s13 + $0x60] sm:$0xff]  }
 0xbb8   : > { %6315 = vmatmul.mubr.msk.bf16.gmra.mrb[92].mxu1 %vm639_vm0, %v5032_v46  ;;  %v7940_v19 = vpop.eup %7939  ;;  %v4979_v4 = vmul.f32 %v7938_v12, %v10225_v14  ;;  %v5021_v8 = vadd.f32 %v10305_v29, %v4999_v57  ;;  %v7626_v47 = vld [vmem:[%s10774_s13 + $0x20] sm:$0xff]   ;;  %v7627_v12 = vld [vmem:[%s10774_s13 + $0x68] sm:$0xff]   ;;  %v7629_v57 = vld [vmem:[%s10774_s13 + $0x70] sm:$0xff]  }
 0xbb9   : > { %5175 = vmatprep.mubr.bf16.mxu1 %v8137_v24  ;;  %v4980_v44 = vmul.f32 %v7940_v19, %v10219_v45  ;;  %v5022_v30 = vadd.f32 %v10305_v29, %v5000_v56  ;;  %v7630_v56 = vld [vmem:[%s10774_s13 + $0x30] sm:$0xff]   ;;  %v7631_v19 = vld [vmem:[%s10774_s13 + $0x78] sm:$0xff]  }
 0xbba   : > { %v5001_v11 = vmul.f32 %v10298_v15, %v4979_v4  ;;  %v7632_v4 = vld [vmem:[%s10774_s13 + $0x38] sm:$0xff]  }
 0xbbb   : > { %v7942_v9 = vpop.eup %7941  ;;  %v5034_v31 = vpack.c.bf16 %v5022_v30, %v5021_v8  ;;  %v5002_v23 = vmul.f32 %v10298_v15, %v4980_v44  ;;  %v5049_v44 = vlaneseq }
 0xbbc   : > { %v4981_v62 = vmul.f32 %v7942_v9, %v10236_v48  ;;  %v5023_v45 = vadd.f32 %v10305_v29, %v5001_v11  ;;  %v5047_v9 = vld [vmem:[%s10773_s12] sm:$0x3] }
 0xbbd   : > { %v7944_v39 = vpop.eup %7943  ;;  %v5024_v10 = vadd.f32 %v10305_v29, %v5002_v23  ;;  %v5050_v8 = vshrl.u32 %v5049_v44, 7 }
 0xbbe   : > { %v4982_v14 = vmul.f32 %v7944_v39, %v10231_v60  ;;  %v5003_v35 = vmul.f32 %v10298_v15, %v4981_v62 }
 0xbbf   : > { %v5035_v26 = vpack.c.bf16 %v5024_v10, %v5023_v45  ;;  %v5051_v30 = vsub.s32 0, %v5050_v8 }
 0xbc0   : > { %6316 = vmatmul.mubr.msk.bf16.gmra.mrb[96].mxu1 %vm639_vm0, %v5033_v41  ;;  %v5004_v0 = vmul.f32 %v10298_v15, %v4982_v14  ;;  %v5025_v32 = vadd.f32 %v10305_v29, %v5003_v35  ;;  %v7628_v41 = vld [vmem:[%s10774_s13 + $0x28] sm:$0xff]  }
 0xbc1   : > { %5185 = vmatprep.mubr.bf16.mxu1 %v8137_v24  ;;  %v10419_v11 = vrot.slane %v5047_v9, %v5051_v30 }
 0xbc2   : > { %v5026_v27 = vadd.f32 %v10305_v29, %v5004_v0 }
 0xbc4   : > { %v5036_v48 = vpack.c.bf16 %v5026_v27, %v5025_v32 }
 0xbc8   : > { %6317 = vmatmul.mubr.msk.bf16.gmra.mrb[100].mxu1 %vm639_vm0, %v5034_v31  ;;  %v5055_v31 = vsub.s32 1, %v5050_v8 }
 0xbc9   : > { %5195 = vmatprep.mubr.bf16.mxu1 %v8137_v24 }
 0xbca   : > { %v10421_v23 = vrot.slane %v5047_v9, %v5055_v31 }
 0xbd0   : > { %6318 = vmatmul.mubr.msk.bf16.gmra.mrb[104].mxu1 %vm639_vm0, %v5035_v26 }
 0xbd1   : > { %5205 = vmatprep.mubr.bf16.mxu1 %v8137_v24 }
 0xbd8   : > { %v4913_v36 = vpop.xlane.xlu0 %4912  ;;  %6319 = vmatmul.mubr.msk.bf16.gmra.mrb[108].mxu1 %vm639_vm0, %v5036_v48 }
 0xbd9   : > { %v4935_v60 = vmul.f32 0.015625, %v4913_v36  ;;  %5215 = vmatprep.mubr.bf16.mxu1 %v8137_v24 }
 0xbda   : > { %v4916_v53 = vpop.xlane.xlu1 %4915 }
 0xbdb   : > { %v4951_v2 = vadd.f32 1e-05, %v4935_v60  ;;  %v4936_v55 = vmul.f32 0.015625, %v4916_v53 }
 0xbdc   : > { %v4919_v42 = vpop.xlane.xlu0 %4918 }
 0xbdd   : > { %7945 = vrsqrt.f32 %v4951_v2  ;;  %v4952_v17 = vadd.f32 1e-05, %v4936_v55  ;;  %v4937_v6 = vmul.f32 0.015625, %v4919_v42 }
 0xbde   : > { %v4922_v50 = vpop.xlane.xlu1 %4921 }
 0xbdf   : > { %7947 = vrsqrt.f32 %v4952_v17  ;;  %v4953_v1 = vadd.f32 1e-05, %v4937_v6  ;;  %v4938_v58 = vmul.f32 0.015625, %v4922_v50 }
 0xbe1   : > { %7949 = vrsqrt.f32 %v4953_v1  ;;  %v4954_v51 = vadd.f32 1e-05, %v4938_v58 }
 0xbe3   : > { %7951 = vrsqrt.f32 %v4954_v51 }
 0xbe7   : > { %v7946_v28 = vpop.eup %7945 }
 0xbe8   : > { %v4983_v59 = vmul.f32 %v7946_v28, %v10272_v34 }
 0xbe9   : > { %v7948_v25 = vpop.eup %7947 }
 0xbea   : > { %v4984_v63 = vmul.f32 %v7948_v25, %v10275_v37  ;;  %v5005_v49 = vmul.f32 %v10298_v15, %v4983_v59 }
 0xbeb   : > { %v7950_v7 = vpop.eup %7949 }
 0xbec   : > { %v5006_v16 = vmul.f32 %v10298_v15, %v4984_v63  ;;  %v4985_v33 = vmul.f32 %v7950_v7, %v10280_v20  ;;  %v5027_v54 = vadd.f32 %v10305_v29, %v5005_v49 }
 0xbed   : > { %v7952_v43 = vpop.eup %7951 }
 0xbee   : > { %v4986_v40 = vmul.f32 %v7952_v43, %v10286_v5  ;;  %v5028_v46 = vadd.f32 %v10305_v29, %v5006_v16  ;;  %v5007_v37 = vmul.f32 %v10298_v15, %v4985_v33  ;;  %v7617_v5 = vld [vmem:[%s10774_s13 + $0x40] sm:$0xff]  }
 0xbef   : > { %7031 = vmatprep.subr.bf16.mxu0 %v7617_v5 }
 0xbf0   : > { %v5037_v13 = vpack.c.bf16 %v5028_v46, %v5027_v54  ;;  %v5008_v34 = vmul.f32 %v10298_v15, %v4986_v40  ;;  %v5029_v61 = vadd.f32 %v10305_v29, %v5007_v37  ;;  %7032 = vmatpush3.bf16.msra.mxu0 %v7618_v21  ;;  %v7620_v15 = vld [vmem:[%s10774_s13 + $0x8] sm:$0xff]  }
 0xbf2   : > { %6320 = vmatmul.mubr.msk.bf16.gmra.mrb[112].mxu1 %vm639_vm0, %v5037_v13  ;;  %v5030_v3 = vadd.f32 %v10305_v29, %v5008_v34  ;;  %v7621_v29 = vld [vmem:[%s10774_s13 + $0x50] sm:$0xff]  }
 0xbf3   : > { %5225 = vmatprep.mubr.bf16.mxu1 %v8137_v24  ;;  %v7619_v24 = vld [vmem:[%s10774_s13 + $0x48] sm:$0xff]  }
 0xbf4   : > { %v5038_v20 = vpack.c.bf16 %v5030_v3, %v5029_v61  ;;  %7033 = vmatprep.subr.bf16.mxu0 %v7619_v24 }
 0xbf5   : > { %7034 = vmatpush3.bf16.msra.mxu0 %v7620_v15 }
 0xbf6   : > { %7035 = vmatprep.subr.bf16.mxu0 %v7621_v29 }
 0xbf9   : > { %7036 = vmatpush3.bf16.msra.mxu0 %v7622_v38 }
 0xbfa   : > { %6321 = vmatmul.mubr.msk.bf16.gmra.mrb[116].mxu1 %vm639_vm0, %v5038_v20  ;;  %7037 = vmatprep.subr.bf16.mxu0 %v7623_v22 }
 0xbfd   : > { %7038 = vmatpush3.bf16.msra.mxu0 %v7624_v18 }
 0xbfe   : > { %7039 = vmatprep.subr.bf16.mxu0 %v7625_v52 }
 0xc01   : > { %7040 = vmatpush3.bf16.msra.mxu0 %v7626_v47 }
 0xc02   : > { %7041 = vmatprep.subr.bf16.mxu0 %v7627_v12 }
 0xc05   : > { %7042 = vmatpush3.bf16.msra.mxu0 %v7628_v41 }
 0xc06   : > { %7043 = vmatprep.subr.bf16.mxu0 %v7629_v57 }
 0xc09   : > { %7044 = vmatpush3.bf16.msra.mxu0 %v7630_v56 }
 0xc0a   : > { %7045 = vmatprep.subr.bf16.mxu0 %v7631_v19 }
 0xc0d   : > { %7046 = vmatpush3.bf16.msra.mxu0 %v7632_v4 }
 0xc83   : > { %v5157_v39 = vpop.f32.mrb[88].mxu1 }
 0xc84   : > { %v5158_v62 = vadd.f32 %v5157_v39, %v10419_v11  ;;  %v5159_v14 = vpop.f32.mrb[89].mxu1 }
 0xc85   : > { %v5160_v45 = vadd.f32 %v5159_v14, %v10421_v23  ;;  %v5161_v10 = vpop.f32.mrb[90].mxu1 }
 0xc86   : > { %v5236_v26 = vmul.f32 %v5158_v62, %v5158_v62  ;;  %v5162_v35 = vadd.f32 %v5161_v10, %v10419_v11  ;;  %v5163_v0 = vpop.f32.mrb[91].mxu1  ;;  %v10427_v42 = vmul.f32 0.5, %v5158_v62 }
 0xc87   : > { %v5237_v32 = vmul.f32 %v5160_v45, %v5160_v45  ;;  %v5164_v27 = vadd.f32 %v5163_v0, %v10421_v23  ;;  %v10429_v1 = vmul.f32 0.5, %v5160_v45 }
 0xc88   : > { %v5268_v48 = vmul.f32 %v5236_v26, %v5158_v62  ;;  %v5238_v36 = vmul.f32 %v5162_v35, %v5162_v35  ;;  %v10431_v51 = vmul.f32 0.5, %v5162_v35 }
 0xc89   : > { %v5269_v60 = vmul.f32 %v5237_v32, %v5160_v45  ;;  %v5239_v53 = vmul.f32 %v5164_v27, %v5164_v27  ;;  %v10435_v43 = vmul.f32 0.5, %v5164_v27 }
 0xc8a   : > { %v5332_v2 = vmul.f32 0.044715, %v5268_v48  ;;  %v5270_v55 = vmul.f32 %v5238_v36, %v5162_v35 }
 0xc8b   : > { %v5333_v17 = vmul.f32 0.044715, %v5269_v60  ;;  %v5271_v6 = vmul.f32 %v5239_v53, %v5164_v27  ;;  %v5167_v50 = vpop.f32.mrb[92].mxu1 }
 0xc8c   : > { %v5364_v58 = vadd.f32 %v5332_v2, %v5158_v62  ;;  %v5334_v28 = vmul.f32 0.044715, %v5270_v55  ;;  %v5168_v59 = vadd.f32 %v5167_v50, %v10419_v11  ;;  %v5169_v25 = vpop.f32.mrb[93].mxu1 }
 0xc8d   : > { %v5365_v63 = vadd.f32 %v5333_v17, %v5160_v45  ;;  %v5335_v49 = vmul.f32 0.044715, %v5271_v6  ;;  %v5170_v7 = vadd.f32 %v5169_v25, %v10421_v23  ;;  %v5171_v16 = vpop.f32.mrb[94].mxu1 }
 0xc8e   : > { %v5396_v33 = vmul.f32 0.7978846, %v5364_v58  ;;  %v5366_v40 = vadd.f32 %v5334_v28, %v5162_v35  ;;  %v5240_v54 = vmul.f32 %v5168_v59, %v5168_v59  ;;  %v5172_v46 = vadd.f32 %v5171_v16, %v10419_v11  ;;  %v5173_v13 = vpop.f32.mrb[95].mxu1 }
 0xc8f   : > { %v5397_v34 = vmul.f32 0.7978846, %v5365_v63  ;;  %v5367_v37 = vadd.f32 %v5335_v49, %v5164_v27  ;;  %v5241_v3 = vmul.f32 %v5170_v7, %v5170_v7  ;;  %v5174_v61 = vadd.f32 %v5173_v13, %v10421_v23 }
 0xc90   : > { %7953 = vtanh.f32 %v5396_v33  ;;  %v5398_v20 = vmul.f32 0.7978846, %v5366_v40  ;;  %v5272_v5 = vmul.f32 %v5240_v54, %v5168_v59  ;;  %v5242_v21 = vmul.f32 %v5172_v46, %v5172_v46 }
 0xc91   : > { %7955 = vtanh.f32 %v5397_v34  ;;  %v5399_v24 = vmul.f32 0.7978846, %v5367_v37  ;;  %v5273_v15 = vmul.f32 %v5241_v3, %v5170_v7  ;;  %v5243_v29 = vmul.f32 %v5174_v61, %v5174_v61 }
 0xc92   : > { %7957 = vtanh.f32 %v5398_v20  ;;  %v5336_v38 = vmul.f32 0.044715, %v5272_v5  ;;  %v5274_v22 = vmul.f32 %v5242_v21, %v5172_v46  ;;  %v10439_v18 = vmul.f32 0.5, %v5170_v7 }
 0xc93   : > { %7959 = vtanh.f32 %v5399_v24  ;;  %v5337_v52 = vmul.f32 0.044715, %v5273_v15  ;;  %v5275_v47 = vmul.f32 %v5243_v29, %v5174_v61  ;;  %v5177_v12 = vpop.f32.mrb[96].mxu1  ;;  %v10441_v41 = vmul.f32 0.5, %v5174_v61 }
 0xc94   : > { %v5368_v57 = vadd.f32 %v5336_v38, %v5168_v59  ;;  %v5338_v56 = vmul.f32 0.044715, %v5274_v22  ;;  %v10444_v19 = vadd.f32 %v5177_v12, %v10419_v11  ;;  %v5179_v4 = vpop.f32.mrb[97].mxu1  ;;  %v10446_v44 = vmul.f32 0.5, %v5168_v59 }
 0xc95   : > { %v5369_v8 = vadd.f32 %v5337_v52, %v5170_v7  ;;  %v5339_v30 = vmul.f32 0.044715, %v5275_v47  ;;  %v5180_v9 = vadd.f32 %v5179_v4, %v10421_v23  ;;  %v5181_v31 = vpop.f32.mrb[98].mxu1  ;;  %v10449_v39 = vmul.f32 0.5, %v5172_v46 }
 0xc96   : > { %v5400_v62 = vmul.f32 0.7978846, %v5368_v57  ;;  %v5370_v14 = vadd.f32 %v5338_v56, %v5172_v46  ;;  %v5244_v45 = vmul.f32 %v10444_v19, %v10444_v19  ;;  %v10454_v10 = vadd.f32 %v5181_v31, %v10419_v11  ;;  %v5183_v26 = vpop.f32.mrb[99].mxu1 }
 0xc97   : > { %v5401_v35 = vmul.f32 0.7978846, %v5369_v8  ;;  %v5371_v0 = vadd.f32 %v5339_v30, %v5174_v61  ;;  %v5245_v32 = vmul.f32 %v5180_v9, %v5180_v9  ;;  %v10457_v27 = vadd.f32 %v5183_v26, %v10421_v23 }
 0xc98   : > { %7961 = vtanh.f32 %v5400_v62  ;;  %v5402_v48 = vmul.f32 0.7978846, %v5370_v14  ;;  %v5276_v36 = vmul.f32 %v5244_v45, %v10444_v19  ;;  %v5246_v60 = vmul.f32 %v10454_v10, %v10454_v10 }
 0xc99   : > { %7963 = vtanh.f32 %v5401_v35  ;;  %v5403_v53 = vmul.f32 0.7978846, %v5371_v0  ;;  %v5277_v2 = vmul.f32 %v5245_v32, %v5180_v9  ;;  %v5247_v55 = vmul.f32 %v10457_v27, %v10457_v27 }
 0xc9a   : > { %v7954_v17 = vpop.eup %7953  ;;  %7965 = vtanh.f32 %v5402_v48  ;;  %v5340_v6 = vmul.f32 0.044715, %v5276_v36  ;;  %v5278_v50 = vmul.f32 %v5246_v60, %v10454_v10  ;;  %v10465_v58 = vmul.f32 0.5, %v5180_v9 }
 0xc9b   : > { %v7956_v28 = vpop.eup %7955  ;;  %v5460_v59 = vadd.f32 1.0, %v7954_v17  ;;  %7967 = vtanh.f32 %v5403_v53  ;;  %v5341_v25 = vmul.f32 0.044715, %v5277_v2  ;;  %v5279_v63 = vmul.f32 %v5247_v55, %v10457_v27  ;;  %v5187_v49 = vpop.f32.mrb[100].mxu1 }
 0xc9c   : > { %v7958_v7 = vpop.eup %7957  ;;  %v5372_v16 = vadd.f32 %v5340_v6, %v10444_v19  ;;  %v5342_v33 = vmul.f32 0.044715, %v5278_v50  ;;  %v10470_v40 = vadd.f32 %v5187_v49, %v10419_v11  ;;  %v5189_v54 = vpop.f32.mrb[101].mxu1  ;;  %v5461_v46 = vadd.f32 1.0, %v7956_v28 }
 0xc9d   : > { %v7960_v13 = vpop.eup %7959  ;;  %v10473_v34 = vmul.f32 %v5460_v59, %v10427_v42  ;;  %v5462_v37 = vadd.f32 1.0, %v7958_v7  ;;  %v5373_v3 = vadd.f32 %v5341_v25, %v5180_v9  ;;  %v5343_v61 = vmul.f32 0.044715, %v5279_v63  ;;  %v5191_v20 = vpop.f32.mrb[102].mxu1 }
 0xc9e   : > { %v5404_v5 = vmul.f32 0.7978846, %v5372_v16  ;;  %v5374_v21 = vadd.f32 %v5342_v33, %v10454_v10  ;;  %v5248_v24 = vmul.f32 %v10470_v40, %v10470_v40  ;;  %v10479_v15 = vadd.f32 %v5189_v54, %v10421_v23  ;;  %v5193_v29 = vpop.f32.mrb[103].mxu1 }
 0xc9f   : > { %v5494_v38 = vmul.f32 %v5462_v37, %v10431_v51  ;;  %v5405_v22 = vmul.f32 0.7978846, %v5373_v3  ;;  %v5375_v42 = vadd.f32 %v5343_v61, %v10457_v27  ;;  %v10484_v52 = vadd.f32 %v5191_v20, %v10419_v11 }
 0xca0   : > { %7969 = vtanh.f32 %v5404_v5  ;;  %v5406_v47 = vmul.f32 0.7978846, %v5374_v21  ;;  %v5280_v12 = vmul.f32 %v5248_v24, %v10470_v40  ;;  %v5249_v57 = vmul.f32 %v10479_v15, %v10479_v15 }
 0xca1   : > { %7971 = vtanh.f32 %v5405_v22  ;;  %v5407_v56 = vmul.f32 0.7978846, %v5375_v42  ;;  %v5250_v4 = vmul.f32 %v10484_v52, %v10484_v52  ;;  %v10492_v51 = vadd.f32 %v5193_v29, %v10421_v23 }
 0xca2   : > { %v10494_v8 = vpop.eup %7961  ;;  %7973 = vtanh.f32 %v5406_v47  ;;  %v5344_v30 = vmul.f32 0.044715, %v5280_v12  ;;  %v5281_v9 = vmul.f32 %v5249_v57, %v10479_v15  ;;  %v5463_v31 = vadd.f32 1.0, %v7960_v13 }
 0xca3   : > { %v7964_v62 = vpop.eup %7963  ;;  %7975 = vtanh.f32 %v5407_v56  ;;  %v5282_v14 = vmul.f32 %v5250_v4, %v10484_v52  ;;  %v5251_v45 = vmul.f32 %v10492_v51, %v10492_v51  ;;  %v5197_v26 = vpop.f32.mrb[104].mxu1  ;;  %v5493_v35 = vmul.f32 %v5461_v46, %v10429_v1 }
 0xca4   : > { %v10501_v0 = vpop.eup %7965  ;;  %v5376_v32 = vadd.f32 %v5344_v30, %v10470_v40  ;;  %v5345_v48 = vmul.f32 0.044715, %v5281_v9  ;;  %v10505_v36 = vadd.f32 %v5197_v26, %v10419_v11  ;;  %v5199_v60 = vpop.f32.mrb[105].mxu1  ;;  %v5495_v53 = vmul.f32 %v5463_v31, %v10435_v43 }
 0xca5   : > { %v7968_v2 = vpop.eup %7967  ;;  %v5346_v55 = vmul.f32 0.044715, %v5282_v14  ;;  %v5283_v17 = vmul.f32 %v5251_v45, %v10492_v51  ;;  %v10510_v6 = vadd.f32 %v5199_v60, %v10421_v23  ;;  %v5201_v50 = vpop.f32.mrb[106].mxu1  ;;  %v5524_v1 = vpack.c.bf16 %v5494_v38, %v10473_v34 }
 0xca6   : > { %v5408_v28 = vmul.f32 0.7978846, %v5376_v32  ;;  %v5377_v59 = vadd.f32 %v5345_v48, %v10479_v15  ;;  %v5252_v25 = vmul.f32 %v10505_v36, %v10505_v36  ;;  %v5525_v63 = vpack.c.bf16 %v5495_v53, %v5493_v35  ;;  %v5203_v49 = vpop.f32.mrb[107].mxu1 }
 0xca7   : > { %v5378_v43 = vadd.f32 %v5346_v55, %v10484_v52  ;;  %v5347_v7 = vmul.f32 0.044715, %v5283_v17  ;;  %v5253_v16 = vmul.f32 %v10510_v6, %v10510_v6  ;;  %v10520_v33 = vadd.f32 %v5201_v50, %v10419_v11 }
 0xca8   : > { %7977 = vtanh.f32 %v5408_v28  ;;  %v5409_v54 = vmul.f32 0.7978846, %v5377_v59  ;;  %v5284_v46 = vmul.f32 %v5252_v25, %v10505_v36  ;;  %5700 = vmatprep.mubr.bf16.mxu0 %v5525_v63  ;;  %v10524_v13 = vadd.f32 %v5203_v49, %v10421_v23 }
 0xca9   : > { %v5410_v34 = vmul.f32 0.7978846, %v5378_v43  ;;  %v5379_v37 = vadd.f32 %v5347_v7, %v10492_v51  ;;  %v5285_v3 = vmul.f32 %v5253_v16, %v10510_v6  ;;  %v5254_v61 = vmul.f32 %v10520_v33, %v10520_v33  ;;  %5701 = vmatmul.mubr.bf16.vlgmr.msra.gmra.mrb[152].mxu0 %v5524_v1 }
 0xcaa   : > { %v10530_v20 = vpop.eup %7969  ;;  %7979 = vtanh.f32 %v5409_v54  ;;  %v5348_v5 = vmul.f32 0.044715, %v5284_v46  ;;  %v5255_v21 = vmul.f32 %v10524_v13, %v10524_v13  ;;  %v5465_v24 = vadd.f32 1.0, %v7964_v62 }
 0xcab   : > { %v7972_v29 = vpop.eup %7971  ;;  %7981 = vtanh.f32 %v5410_v34  ;;  %v5411_v38 = vmul.f32 0.7978846, %v5379_v37  ;;  %v5349_v22 = vmul.f32 0.044715, %v5285_v3  ;;  %v5286_v42 = vmul.f32 %v5254_v61, %v10520_v33  ;;  %v5207_v47 = vpop.f32.mrb[108].mxu1 }
 0xcac   : > { %v10535_v12 = vpop.eup %7973  ;;  %v5380_v57 = vadd.f32 %v5348_v5, %v10505_v36  ;;  %v5287_v56 = vmul.f32 %v5255_v21, %v10524_v13  ;;  %v10540_v4 = vadd.f32 %v5207_v47, %v10419_v11  ;;  %v5209_v30 = vpop.f32.mrb[109].mxu1  ;;  %v5467_v9 = vadd.f32 1.0, %v7968_v2 }
 0xcad   : > { %v7976_v31 = vpop.eup %7975  ;;  %7983 = vtanh.f32 %v5411_v38  ;;  %v5381_v62 = vadd.f32 %v5349_v22, %v10510_v6  ;;  %v5350_v14 = vmul.f32 0.044715, %v5286_v42  ;;  %v10544_v45 = vadd.f32 %v5209_v30, %v10421_v23  ;;  %v5211_v26 = vpop.f32.mrb[110].mxu1 }
 0xcae   : > { %v5412_v35 = vmul.f32 0.7978846, %v5380_v57  ;;  %v5351_v32 = vmul.f32 0.044715, %v5287_v56  ;;  %v5256_v48 = vmul.f32 %v10540_v4, %v10540_v4  ;;  %v5497_v60 = vmul.f32 %v5465_v24, %v10439_v18  ;;  %v5213_v53 = vpop.f32.mrb[111].mxu1 }
 0xcaf   : > { %v5413_v55 = vmul.f32 0.7978846, %v5381_v62  ;;  %v5382_v2 = vadd.f32 %v5350_v14, %v10520_v33  ;;  %v5257_v17 = vmul.f32 %v10544_v45, %v10544_v45  ;;  %v5499_v50 = vmul.f32 %v5467_v9, %v10441_v41 }
 0xcb0   : > { %7985 = vtanh.f32 %v5412_v35  ;;  %v5383_v1 = vadd.f32 %v5351_v32, %v10524_v13  ;;  %v5288_v28 = vmul.f32 %v5256_v48, %v10540_v4  ;;  %v10556_v59 = vadd.f32 %v5211_v26, %v10419_v11 }
 0xcb1   : > { %7987 = vtanh.f32 %v5413_v55  ;;  %v5414_v25 = vmul.f32 0.7978846, %v5382_v2  ;;  %v5289_v18 = vmul.f32 %v5257_v17, %v10544_v45  ;;  %v5527_v63 = vpack.c.bf16 %v5499_v50, %v5497_v60 }
 0xcb2   : > { %v7978_v49 = vpop.eup %7977  ;;  %v5415_v43 = vmul.f32 0.7978846, %v5383_v1  ;;  %v5352_v7 = vmul.f32 0.044715, %v5288_v28  ;;  %v5258_v16 = vmul.f32 %v10556_v59, %v10556_v59  ;;  %v5464_v41 = vadd.f32 1.0, %v10494_v8 }
 0xcb3   : > { %7989 = vtanh.f32 %v5414_v25  ;;  %v5353_v54 = vmul.f32 0.044715, %v5289_v18  ;;  %5708 = vmatprep.mubr.bf16.mxu0 %v5527_v63  ;;  %v5466_v46 = vadd.f32 1.0, %v10501_v0  ;;  %v10564_v34 = vadd.f32 %v5213_v53, %v10421_v23 }
 0xcb4   : > { %v7980_v37 = vpop.eup %7979  ;;  %7991 = vtanh.f32 %v5415_v43  ;;  %v5384_v3 = vadd.f32 %v5352_v7, %v10540_v4  ;;  %v5290_v61 = vmul.f32 %v5258_v16, %v10556_v59  ;;  %v5496_v5 = vmul.f32 %v5464_v41, %v10446_v44 }
 0xcb5   : > { %v7982_v21 = vpop.eup %7981  ;;  %v5385_v24 = vadd.f32 %v5353_v54, %v10544_v45  ;;  %v5498_v8 = vmul.f32 %v5466_v46, %v10449_v39  ;;  %v5259_v38 = vmul.f32 %v10564_v34, %v10564_v34  ;;  %v5311_v0 = vmul.f32 0.5, %v10457_v27 }
 0xcb6   : > { %v5416_v22 = vmul.f32 0.7978846, %v5384_v3  ;;  %v5354_v42 = vmul.f32 0.044715, %v5290_v61  ;;  %v5469_v47 = vadd.f32 1.0, %v7972_v29  ;;  %v5471_v57 = vadd.f32 1.0, %v7976_v31 }
 0xcb7   : > { %v7984_v56 = vpop.eup %7983  ;;  %v5417_v30 = vmul.f32 0.7978846, %v5385_v24  ;;  %v5526_v9 = vpack.c.bf16 %v5498_v8, %v5496_v5  ;;  %v5291_v62 = vmul.f32 %v5259_v38, %v10564_v34  ;;  %v5308_v27 = vmul.f32 0.5, %v10444_v19 }
 0xcb8   : > { %7993 = vtanh.f32 %v5416_v22  ;;  %v5386_v44 = vadd.f32 %v5354_v42, %v10556_v59  ;;  %v5501_v14 = vmul.f32 %v5469_v47, %v10465_v58  ;;  %v5503_v39 = vmul.f32 %v5471_v57, %v5311_v0 }
 0xcb9   : > { %7995 = vtanh.f32 %v5417_v30  ;;  %5709 = vmatmul.mubr.bf16.gmra.mrb[156].mxu0 %v5526_v9  ;;  %v5355_v26 = vmul.f32 0.044715, %v5291_v62  ;;  %v5468_v35 = vadd.f32 1.0, %v10530_v20  ;;  %v5310_v48 = vmul.f32 0.5, %v10454_v10 }
 0xcba   : > { %v7986_v29 = vpop.eup %7985  ;;  %v5418_v31 = vmul.f32 0.7978846, %v5386_v44  ;;  %v5529_v32 = vpack.c.bf16 %v5503_v39, %v5501_v14  ;;  %v5470_v60 = vadd.f32 1.0, %v10535_v12  ;;  %v5313_v58 = vmul.f32 0.5, %v10479_v15 }
 0xcbb   : > { %v7988_v53 = vpop.eup %7987  ;;  %v5387_v55 = vadd.f32 %v5355_v26, %v10564_v34  ;;  %v5500_v2 = vmul.f32 %v5468_v35, %v5308_v27  ;;  %v5473_v17 = vadd.f32 1.0, %v7980_v37  ;;  %v5315_v19 = vmul.f32 0.5, %v10492_v51 }
 0xcbc   : > { %7997 = vtanh.f32 %v5418_v31  ;;  %5716 = vmatprep.mubr.bf16.mxu0 %v5529_v32  ;;  %v5502_v50 = vmul.f32 %v5470_v60, %v5310_v48  ;;  %v5475_v20 = vadd.f32 1.0, %v7984_v56  ;;  %v5312_v10 = vmul.f32 0.5, %v10470_v40 }
 0xcbd   : > { %v7990_v1 = vpop.eup %7989  ;;  %v5419_v28 = vmul.f32 0.7978846, %v5387_v55  ;;  %v5505_v25 = vmul.f32 %v5473_v17, %v5313_v58  ;;  %v5472_v18 = vadd.f32 1.0, %v7978_v49  ;;  %v5314_v7 = vmul.f32 0.5, %v10484_v52 }
 0xcbe   : > { %v7992_v12 = vpop.eup %7991  ;;  %v5528_v63 = vpack.c.bf16 %v5502_v50, %v5500_v2  ;;  %v5507_v43 = vmul.f32 %v5475_v20, %v5315_v19  ;;  %v5474_v16 = vadd.f32 1.0, %v7982_v21  ;;  %v5317_v41 = vmul.f32 0.5, %v10510_v6 }
 0xcbf   : > { %7999 = vtanh.f32 %v5419_v28  ;;  %v5504_v15 = vmul.f32 %v5472_v18, %v5312_v10  ;;  %v5477_v54 = vadd.f32 1.0, %v7988_v53  ;;  %v5319_v37 = vmul.f32 0.5, %v10524_v13 }
 0xcc0   : > { %v5531_v46 = vpack.c.bf16 %v5507_v43, %v5505_v25  ;;  %v5506_v51 = vmul.f32 %v5474_v16, %v5314_v7  ;;  %v5479_v3 = vadd.f32 1.0, %v7992_v12  ;;  %v5316_v40 = vmul.f32 0.5, %v10505_v36 }
 0xcc1   : > { %5717 = vmatmul.mubr.bf16.gmra.mrb[160].mxu0 %v5528_v63  ;;  %v5318_v49 = vmul.f32 0.5, %v10520_v33  ;;  %v5476_v61 = vadd.f32 1.0, %v7986_v29  ;;  %v5478_v5 = vadd.f32 1.0, %v7990_v1  ;;  %v5509_v21 = vmul.f32 %v5477_v54, %v5317_v41 }
 0xcc2   : > { %v7994_v24 = vpop.eup %7993  ;;  %5724 = vmatprep.mubr.bf16.mxu0 %v5531_v46  ;;  %v5530_v52 = vpack.c.bf16 %v5506_v51, %v5504_v15  ;;  %v5511_v8 = vmul.f32 %v5479_v3, %v5319_v37  ;;  %v5320_v9 = vmul.f32 0.5, %v10540_v4  ;;  %v5322_v62 = vmul.f32 0.5, %v10556_v59 }
 0xcc3   : > { %v7996_v38 = vpop.eup %7995  ;;  %v5508_v6 = vmul.f32 %v5476_v61, %v5316_v40  ;;  %v5510_v0 = vmul.f32 %v5478_v5, %v5318_v49  ;;  %v5480_v13 = vadd.f32 1.0, %v7994_v24  ;;  %v5321_v27 = vmul.f32 0.5, %v10544_v45 }
 0xcc4   : > { %v5533_v22 = vpack.c.bf16 %v5511_v8, %v5509_v21  ;;  %v5481_v35 = vadd.f32 1.0, %v7996_v38  ;;  %v5323_v53 = vmul.f32 0.5, %v10564_v34 }
 0xcc5   : > { %v5217_v42 = vpop.f32.mrb[112].mxu1  ;;  %v5532_v47 = vpack.c.bf16 %v5510_v0, %v5508_v6  ;;  %v5512_v59 = vmul.f32 %v5480_v13, %v5320_v9 }
 0xcc6   : > { %v7998_v57 = vpop.eup %7997  ;;  %v10591_v56 = vadd.f32 %v5217_v42, %v10419_v11  ;;  %v5219_v36 = vpop.f32.mrb[113].mxu1  ;;  %v5513_v19 = vmul.f32 %v5481_v35, %v5321_v27 }
 0xcc7   : > { %v10594_v33 = vadd.f32 %v5219_v36, %v10421_v23  ;;  %v5221_v30 = vpop.f32.mrb[114].mxu1  ;;  %v5482_v44 = vadd.f32 1.0, %v7998_v57 }
 0xcc8   : > { %v5260_v14 = vmul.f32 %v10591_v56, %v10591_v56  ;;  %v10601_v39 = vadd.f32 %v5221_v30, %v10419_v11  ;;  %v5223_v26 = vpop.f32.mrb[115].mxu1 }
 0xcc9   : > { %v8000_v29 = vpop.eup %7999  ;;  %5725 = vmatmul.mubr.bf16.gmra.mrb[164].mxu0 %v5530_v52  ;;  %v5261_v31 = vmul.f32 %v10594_v33, %v10594_v33  ;;  %v10607_v4 = vadd.f32 %v5223_v26, %v10421_v23  ;;  %v5514_v32 = vmul.f32 %v5482_v44, %v5322_v62 }
 0xcca   : > { %5732 = vmatprep.mubr.bf16.mxu0 %v5533_v22  ;;  %v5292_v48 = vmul.f32 %v5260_v14, %v10591_v56  ;;  %v5262_v60 = vmul.f32 %v10601_v39, %v10601_v39  ;;  %v5483_v45 = vadd.f32 1.0, %v8000_v29 }
 0xccb   : > { %v5293_v55 = vmul.f32 %v5261_v31, %v10594_v33  ;;  %v5263_v2 = vmul.f32 %v10607_v4, %v10607_v4  ;;  %v5534_v58 = vpack.c.bf16 %v5514_v32, %v5512_v59  ;;  %v5324_v59 = vmul.f32 0.5, %v10591_v56 }
 0xccc   : > { %v5356_v17 = vmul.f32 0.044715, %v5292_v48  ;;  %v5294_v50 = vmul.f32 %v5262_v60, %v10601_v39  ;;  %v5515_v20 = vmul.f32 %v5483_v45, %v5323_v53  ;;  %v5326_v32 = vmul.f32 0.5, %v10601_v39 }
 0xccd   : > { %v5357_v1 = vmul.f32 0.044715, %v5293_v55  ;;  %v5295_v28 = vmul.f32 %v5263_v2, %v10607_v4  ;;  %v5227_v25 = vpop.f32.mrb[116].mxu1  ;;  %v5325_v60 = vmul.f32 0.5, %v10594_v33  ;;  %v5327_v53 = vmul.f32 0.5, %v10607_v4 }
 0xcce   : > { %v5388_v10 = vadd.f32 %v5356_v17, %v10591_v56  ;;  %v5358_v18 = vmul.f32 0.044715, %v5294_v50  ;;  %v5535_v34 = vpack.c.bf16 %v5515_v20, %v5513_v19  ;;  %v10620_v12 = vadd.f32 %v5227_v25, %v10419_v11  ;;  %v5229_v63 = vpop.f32.mrb[117].mxu1 }
 0xccf   : > { %v5389_v43 = vadd.f32 %v5357_v1, %v10594_v33  ;;  %v5359_v7 = vmul.f32 0.044715, %v5295_v28  ;;  %v10624_v16 = vadd.f32 %v5229_v63, %v10421_v23  ;;  %v5231_v15 = vpop.f32.mrb[118].mxu1 }
 0xcd0   : > { %v5420_v41 = vmul.f32 0.7978846, %v5388_v10  ;;  %v5390_v54 = vadd.f32 %v5358_v18, %v10601_v39  ;;  %v5264_v46 = vmul.f32 %v10620_v12, %v10620_v12  ;;  %v10630_v51 = vadd.f32 %v5231_v15, %v10419_v11  ;;  %v5233_v37 = vpop.f32.mrb[119].mxu1 }
 0xcd1   : > { %5733 = vmatmul.mubr.bf16.gmra.mrb[168].mxu0 %v5532_v47  ;;  %v5421_v3 = vmul.f32 0.7978846, %v5389_v43  ;;  %v5391_v40 = vadd.f32 %v5359_v7, %v10607_v4  ;;  %v5265_v49 = vmul.f32 %v10624_v16, %v10624_v16  ;;  %v5234_v61 = vadd.f32 %v5233_v37, %v10421_v23 }
 0xcd2   : > { %8001 = vtanh.f32 %v5420_v41  ;;  %v5422_v5 = vmul.f32 0.7978846, %v5390_v54  ;;  %5740 = vmatprep.mubr.bf16.mxu0 %v5535_v34  ;;  %v5296_v24 = vmul.f32 %v5264_v46, %v10620_v12  ;;  %v5266_v52 = vmul.f32 %v10630_v51, %v10630_v51 }
 0xcd3   : > { %8003 = vtanh.f32 %v5421_v3  ;;  %v5423_v11 = vmul.f32 0.7978846, %v5391_v40  ;;  %v5297_v21 = vmul.f32 %v5265_v49, %v10624_v16  ;;  %v5267_v8 = vmul.f32 %v5234_v61, %v5234_v61 }
 0xcd4   : > { %8005 = vtanh.f32 %v5422_v5  ;;  %v5360_v38 = vmul.f32 0.044715, %v5296_v24  ;;  %v5298_v6 = vmul.f32 %v5266_v52, %v10630_v51  ;;  %v5328_v33 = vmul.f32 0.5, %v10620_v12 }
 0xcd5   : > { %8007 = vtanh.f32 %v5423_v11  ;;  %v5361_v0 = vmul.f32 0.044715, %v5297_v21  ;;  %v5299_v23 = vmul.f32 %v5267_v8, %v5234_v61  ;;  %v5330_v39 = vmul.f32 0.5, %v10630_v51 }
 0xcd6   : > { %v5392_v22 = vadd.f32 %v5360_v38, %v10620_v12  ;;  %v5362_v42 = vmul.f32 0.044715, %v5298_v6  ;;  %v5329_v18 = vmul.f32 0.5, %v10624_v16  ;;  %v5331_v34 = vmul.f32 0.5, %v5234_v61 }
 0xcd7   : > { %v5393_v47 = vadd.f32 %v5361_v0, %v10624_v16  ;;  %v5363_v13 = vmul.f32 0.044715, %v5299_v23 }
 0xcd8   : > { %v5424_v57 = vmul.f32 0.7978846, %v5392_v22  ;;  %v5394_v36 = vadd.f32 %v5362_v42, %v10630_v51 }
 0xcd9   : > { %5741 = vmatmul.mubr.bf16.gmra.mrb[172].mxu0 %v5534_v58  ;;  %v5425_v30 = vmul.f32 0.7978846, %v5393_v47  ;;  %v5395_v9 = vadd.f32 %v5363_v13, %v5234_v61 }
 0xcda   : > { %8009 = vtanh.f32 %v5424_v57  ;;  %v5426_v62 = vmul.f32 0.7978846, %v5394_v36 }
 0xcdb   : > { %8011 = vtanh.f32 %v5425_v30  ;;  %v5427_v44 = vmul.f32 0.7978846, %v5395_v9 }
 0xcdc   : > { %v8002_v14 = vpop.eup %8001  ;;  %8013 = vtanh.f32 %v5426_v62 }
 0xcdd   : > { %v8004_v26 = vpop.eup %8003  ;;  %8015 = vtanh.f32 %v5427_v44  ;;  %v5484_v27 = vadd.f32 1.0, %v8002_v14 }
 0xcde   : > { %v8006_v35 = vpop.eup %8005  ;;  %v5485_v29 = vadd.f32 1.0, %v8004_v26 }
 0xcdf   : > { %v8008_v31 = vpop.eup %8007  ;;  %v5486_v48 = vadd.f32 1.0, %v8006_v35  ;;  %v5516_v55 = vmul.f32 %v5484_v27, %v5324_v59 }
 0xce0   : > { %v5487_v45 = vadd.f32 1.0, %v8008_v31  ;;  %v5517_v58 = vmul.f32 %v5485_v29, %v5325_v60 }
 0xce1   : > { %v5518_v2 = vmul.f32 %v5486_v48, %v5326_v32 }
 0xce2   : > { %v5519_v17 = vmul.f32 %v5487_v45, %v5327_v53 }
 0xce3   : > { %v5536_v50 = vpack.c.bf16 %v5518_v2, %v5516_v55 }
 0xce4   : > { %v8010_v19 = vpop.eup %8009  ;;  %v5537_v20 = vpack.c.bf16 %v5519_v17, %v5517_v58 }
 0xce5   : > { %v8012_v1 = vpop.eup %8011  ;;  %v5488_v28 = vadd.f32 1.0, %v8010_v19 }
 0xce6   : > { %v8014_v25 = vpop.eup %8013  ;;  %5748 = vmatprep.mubr.bf16.mxu0 %v5537_v20  ;;  %v5489_v56 = vadd.f32 1.0, %v8012_v1 }
 0xce7   : > { %v8016_v10 = vpop.eup %8015  ;;  %5749 = vmatmul.mubr.bf16.gmra.mrb[176].mxu0 %v5536_v50  ;;  %v5490_v4 = vadd.f32 1.0, %v8014_v25  ;;  %v5520_v43 = vmul.f32 %v5488_v28, %v5328_v33 }
 0xce8   : > { %v5491_v63 = vadd.f32 1.0, %v8016_v10  ;;  %v5521_v15 = vmul.f32 %v5489_v56, %v5329_v18 }
 0xce9   : > { %v5522_v7 = vmul.f32 %v5490_v4, %v5330_v39 }
 0xcea   : > { %v5523_v41 = vmul.f32 %v5491_v63, %v5331_v34 }
 0xceb   : > { %v5538_v54 = vpack.c.bf16 %v5522_v7, %v5520_v43 }
 0xcec   : > { %v5539_v46 = vpack.c.bf16 %v5523_v41, %v5521_v15 }
 0xcee   : > { %5756 = vmatprep.mubr.bf16.mxu0 %v5539_v46 }
 0xcef   : > { %5757 = vmatmul.mubr.bf16.gmra.mrb[180].mxu0 %v5538_v54 }
 0xcf0   : > { %8076 = shalt.err (!%p8073_p3)
}
 0xcf1   : > { %s8077_s1 = scalar_lea.hbm %s10655_s16, 4096  ;;  %s8081_s20 = scalar_lea.hbm %s10778_s17, 16384 }
 0xcf2   : > { %p8078_p4 = scmp.ne.s32.totalorder %s10655_s16, %s8077_s1  ;;  %p8082_p2 = scmp.lt.u32.totalorder %s10655_s16, %s10778_s17 }
 0xcf3   : > { %p8083_p7 = scmp.lt.u32.totalorder %s8081_s20, %s8077_s1  ;;  %p8085_p6 = scmp.lt.u32.totalorder %s8077_s1, %s10655_s16 }
 0xcf4   : > { %p8079_p5 = pnand %p8078_p4, %p10902_p11 }
 0xcf5   : > { %p8084_p10 = por %p8083_p7, %p8082_p2 }
 0xcf6   : > { %p8080_p0 = pneg %p8079_p5 }
 0xcf7   : > { %p8086_p12 = por %p8085_p6, %p8084_p10 }
 0xcf9   : > { %p8087_p8 = pnand %p8086_p12, %p8080_p0 }
 0xcfb   : > { %8090 = shalt.err (!%p8087_p8)
}
 0xcfc   : > { %s8139_s23 = smov 64   ;;  %s8140_s21 = smov 4   ;;  %v8017_v49 = vld [vmem:[#allocation2] sm:$0xff]  ;;  %v8018_v52 = vld [vmem:[#allocation2 + $0x8] sm:$0xff]  ;;  %vm5868_vm2 = vcmask 519168   ;;  %v8019_v47 = vld [vmem:[#allocation2 + $0x10] sm:$0xff] }
 0xcfd   : > { %7537 = dma.vmem_to_hbm [thread:$0]  (%p10902_p11), %s10658_s22, 4096, %s10655_s16, %s5891_s19, %s8139_s23, %s8139_s23, %s8140_s21   ;;  %v8020_v30 = vld [vmem:[#allocation2 + $0x18] sm:$0xff]  ;;  %v8021_v59 = vld [vmem:[#allocation2 + $0x20] sm:$0xff]  ;;  %v8022_v53 = vld [vmem:[#allocation2 + $0x28] sm:$0xff] }
 0xcfe   : > { %s10903_s1 = sld [smem:[#allocation43_spill]]  ;;  %s10904_s24 = sshll.u32 %s10914_s14, 2  ;;  %v8023_v28 = vld [vmem:[#allocation2 + $0x30] sm:$0xff]  ;;  %v8024_v33 = vld [vmem:[#allocation2 + $0x38] sm:$0xff]  ;;  %v8025_v54 = vld [vmem:[#allocation2 + $0x40] sm:$0xff] }
 0xcff   : > { %s10905_s22 = sld [smem:[#allocation44_spill]] }
 0xd04   : > { %v10687_v3 = vld [vmem:[%s10903_s1] ss:$0 sm:$0xff] }
 0xd05   : > { %s10695_s19 = scalar_lea.vmem %s10905_s22, %s10904_s24 }
 0xd7c   : > { %v7047_v12 = vpop.f32.mrb[152].mxu0 }
 0xd7d   : > { %v7048_v16 = vpop.f32.mrb[153].mxu0 }
 0xd7e   : > { %v7049_v51 = vadd.f32 %v7048_v16, %v7047_v12  ;;  %v7050_v37 = vpop.f32.mrb[154].mxu0 }
 0xd7f   : > { %v7051_v40 = vpop.f32.mrb[155].mxu0 }
 0xd80   : > { %v5765_v61 = vadd.f32 %v8017_v49, %v7049_v51  ;;  %v7052_v5 = vadd.f32 %v7051_v40, %v7050_v37  ;;  %v8026_v51 = vld [vmem:[#allocation2 + $0x48] sm:$0xff] }
 0xd82   : > { %v5788_v24 = vadd.f32 %v10687_v3, %v5765_v61  ;;  %v5766_v11 = vadd.f32 %v8018_v52, %v7052_v5 }
 0xd84   : > { %v6425_v21 = vpack.c.bf16 %v5788_v24, %v5788_v24  ;;  %v5789_v8 = vadd.f32 %v10687_v3, %v5766_v11 }
 0xd86   : > { %5869 = vst.msk [vmem:[%s10695_s19] sm:$0xf] %vm5868_vm2, %v6425_v21  ;;  %v6426_v38 = vpack.c.bf16 %v5789_v8, %v5789_v8  ;;  %v8027_v8 = vld [vmem:[#allocation2 + $0x50] sm:$0xff] }
 0xd88   : > { %5870 = vst.msk [vmem:[%s10695_s19 + $0x4] sm:$0xf] %vm5868_vm2, %v6426_v38 }
 0xd8c   : > { %v7053_v6 = vpop.f32.mrb[156].mxu0 }
 0xd8d   : > { %v7054_v0 = vpop.f32.mrb[157].mxu0 }
 0xd8e   : > { %v7055_v23 = vadd.f32 %v7054_v0, %v7053_v6  ;;  %v7056_v22 = vpop.f32.mrb[158].mxu0 }
 0xd8f   : > { %v7057_v42 = vpop.f32.mrb[159].mxu0 }
 0xd90   : > { %v5767_v13 = vadd.f32 %v8019_v47, %v7055_v23  ;;  %v7058_v57 = vadd.f32 %v7057_v42, %v7056_v22  ;;  %v8028_v23 = vld [vmem:[#allocation2 + $0x58] sm:$0xff] }
 0xd92   : > { %v5790_v36 = vadd.f32 %v10687_v3, %v5767_v13  ;;  %v5768_v9 = vadd.f32 %v8020_v30, %v7058_v57 }
 0xd94   : > { %v6427_v62 = vpack.c.bf16 %v5790_v36, %v5790_v36  ;;  %v5791_v44 = vadd.f32 %v10687_v3, %v5768_v9  ;;  %v7059_v14 = vpop.f32.mrb[160].mxu0 }
 0xd95   : > { %v7060_v26 = vpop.f32.mrb[161].mxu0 }
 0xd96   : > { %5871 = vst.msk [vmem:[%s10695_s19 + $0x8] sm:$0xf] %vm5868_vm2, %v6427_v62  ;;  %v6428_v27 = vpack.c.bf16 %v5791_v44, %v5791_v44  ;;  %v7061_v35 = vadd.f32 %v7060_v26, %v7059_v14  ;;  %v7062_v29 = vpop.f32.mrb[162].mxu0  ;;  %v8029_v44 = vld [vmem:[#allocation2 + $0x60] sm:$0xff] }
 0xd97   : > { %v7063_v31 = vpop.f32.mrb[163].mxu0 }
 0xd98   : > { %5872 = vst.msk [vmem:[%s10695_s19 + $0xc] sm:$0xf] %vm5868_vm2, %v6428_v27  ;;  %v5769_v32 = vadd.f32 %v8021_v59, %v7061_v35  ;;  %v7064_v48 = vadd.f32 %v7063_v31, %v7062_v29  ;;  %v8030_v35 = vld [vmem:[#allocation2 + $0x68] sm:$0xff] }
 0xd9a   : > { %v5792_v60 = vadd.f32 %v10687_v3, %v5769_v32  ;;  %v5770_v45 = vadd.f32 %v8022_v53, %v7064_v48 }
 0xd9c   : > { %v6429_v55 = vpack.c.bf16 %v5792_v60, %v5792_v60  ;;  %v5793_v2 = vadd.f32 %v10687_v3, %v5770_v45  ;;  %v7065_v58 = vpop.f32.mrb[164].mxu0 }
 0xd9d   : > { %v7066_v17 = vpop.f32.mrb[165].mxu0 }
 0xd9e   : > { %5873 = vst.msk [vmem:[%s10695_s19 + $0x10] sm:$0xf] %vm5868_vm2, %v6429_v55  ;;  %v6430_v50 = vpack.c.bf16 %v5793_v2, %v5793_v2  ;;  %v7067_v19 = vadd.f32 %v7066_v17, %v7065_v58  ;;  %v7068_v20 = vpop.f32.mrb[166].mxu0  ;;  %v8031_v2 = vld [vmem:[#allocation2 + $0x70] sm:$0xff] }
 0xd9f   : > { %v7069_v1 = vpop.f32.mrb[167].mxu0 }
 0xda0   : > { %5874 = vst.msk [vmem:[%s10695_s19 + $0x14] sm:$0xf] %vm5868_vm2, %v6430_v50  ;;  %v5771_v25 = vadd.f32 %v8023_v28, %v7067_v19  ;;  %v7070_v56 = vadd.f32 %v7069_v1, %v7068_v20  ;;  %v8032_v19 = vld [vmem:[#allocation2 + $0x78] sm:$0xff] }
 0xda2   : > { %v5794_v10 = vadd.f32 %v10687_v3, %v5771_v25  ;;  %v5772_v39 = vadd.f32 %v8024_v33, %v7070_v56 }
 0xda4   : > { %v6431_v4 = vpack.c.bf16 %v5794_v10, %v5794_v10  ;;  %v5795_v18 = vadd.f32 %v10687_v3, %v5772_v39  ;;  %v7071_v34 = vpop.f32.mrb[168].mxu0 }
 0xda5   : > { %v7072_v63 = vpop.f32.mrb[169].mxu0 }
 0xda6   : > { %5875 = vst.msk [vmem:[%s10695_s19 + $0x18] sm:$0xf] %vm5868_vm2, %v6431_v4  ;;  %v6432_v43 = vpack.c.bf16 %v5795_v18, %v5795_v18  ;;  %v7073_v7 = vadd.f32 %v7072_v63, %v7071_v34  ;;  %v7074_v15 = vpop.f32.mrb[170].mxu0 }
 0xda7   : > { %v7075_v41 = vpop.f32.mrb[171].mxu0 }
 0xda8   : > { %5876 = vst.msk [vmem:[%s10695_s19 + $0x1c] sm:$0xf] %vm5868_vm2, %v6432_v43  ;;  %v5773_v46 = vadd.f32 %v8025_v54, %v7073_v7  ;;  %v7076_v12 = vadd.f32 %v7075_v41, %v7074_v15 }
 0xdaa   : > { %v5796_v16 = vadd.f32 %v10687_v3, %v5773_v46  ;;  %v5774_v37 = vadd.f32 %v8026_v51, %v7076_v12 }
 0xdac   : > { %v6433_v40 = vpack.c.bf16 %v5796_v16, %v5796_v16  ;;  %v5797_v49 = vadd.f32 %v10687_v3, %v5774_v37  ;;  %v7077_v61 = vpop.f32.mrb[172].mxu0 }
 0xdad   : > { %v7078_v5 = vpop.f32.mrb[173].mxu0 }
 0xdae   : > { %5877 = vst.msk [vmem:[%s10695_s19 + $0x20] sm:$0xf] %vm5868_vm2, %v6433_v40  ;;  %v6434_v24 = vpack.c.bf16 %v5797_v49, %v5797_v49  ;;  %v7079_v52 = vadd.f32 %v7078_v5, %v7077_v61  ;;  %v7080_v11 = vpop.f32.mrb[174].mxu0 }
 0xdaf   : > { %v7081_v21 = vpop.f32.mrb[175].mxu0 }
 0xdb0   : > { %5878 = vst.msk [vmem:[%s10695_s19 + $0x24] sm:$0xf] %vm5868_vm2, %v6434_v24  ;;  %v5775_v38 = vadd.f32 %v8027_v8, %v7079_v52  ;;  %v7082_v6 = vadd.f32 %v7081_v21, %v7080_v11 }
 0xdb2   : > { %v5798_v0 = vadd.f32 %v10687_v3, %v5775_v38  ;;  %v5776_v22 = vadd.f32 %v8028_v23, %v7082_v6 }
 0xdb4   : > { %v6435_v42 = vpack.c.bf16 %v5798_v0, %v5798_v0  ;;  %v5799_v47 = vadd.f32 %v10687_v3, %v5776_v22 }
 0xdb6   : > { %5879 = vst.msk [vmem:[%s10695_s19 + $0x28] sm:$0xf] %vm5868_vm2, %v6435_v42  ;;  %v6436_v13 = vpack.c.bf16 %v5799_v47, %v5799_v47 }
 0xdb8   : > { %5880 = vst.msk [vmem:[%s10695_s19 + $0x2c] sm:$0xf] %vm5868_vm2, %v6436_v13 }
 0xdba   : > { %v7083_v57 = vpop.f32.mrb[176].mxu0 }
 0xdbb   : > { %v7084_v36 = vpop.f32.mrb[177].mxu0 }
 0xdbc   : > { %v7085_v30 = vadd.f32 %v7084_v36, %v7083_v57  ;;  %v7086_v9 = vpop.f32.mrb[178].mxu0 }
 0xdbd   : > { %v7087_v62 = vpop.f32.mrb[179].mxu0 }
 0xdbe   : > { %v5777_v14 = vadd.f32 %v8029_v44, %v7085_v30  ;;  %v7088_v26 = vadd.f32 %v7087_v62, %v7086_v9 }
 0xdc0   : > { %v5800_v27 = vadd.f32 %v10687_v3, %v5777_v14  ;;  %v5778_v29 = vadd.f32 %v8030_v35, %v7088_v26 }
 0xdc2   : > { %v6437_v31 = vpack.c.bf16 %v5800_v27, %v5800_v27  ;;  %v5801_v59 = vadd.f32 %v10687_v3, %v5778_v29  ;;  %v7089_v32 = vpop.f32.mrb[180].mxu0 }
 0xdc3   : > { %v7090_v48 = vpop.f32.mrb[181].mxu0 }
 0xdc4   : > { %5881 = vst.msk [vmem:[%s10695_s19 + $0x30] sm:$0xf] %vm5868_vm2, %v6437_v31  ;;  %v6438_v60 = vpack.c.bf16 %v5801_v59, %v5801_v59  ;;  %v7091_v53 = vadd.f32 %v7090_v48, %v7089_v32  ;;  %v7092_v45 = vpop.f32.mrb[182].mxu0 }
 0xdc5   : > { %v7093_v55 = vpop.f32.mrb[183].mxu0 }
 0xdc6   : > { %5882 = vst.msk [vmem:[%s10695_s19 + $0x34] sm:$0xf] %vm5868_vm2, %v6438_v60  ;;  %v5779_v58 = vadd.f32 %v8031_v2, %v7091_v53  ;;  %v7094_v17 = vadd.f32 %v7093_v55, %v7092_v45 }
 0xdc8   : > { %v5802_v50 = vadd.f32 %v10687_v3, %v5779_v58  ;;  %v5780_v20 = vadd.f32 %v8032_v19, %v7094_v17 }
 0xdca   : > { %v6439_v1 = vpack.c.bf16 %v5802_v50, %v5802_v50  ;;  %v5803_v28 = vadd.f32 %v10687_v3, %v5780_v20 }
 0xdcc   : > { %5883 = vst.msk [vmem:[%s10695_s19 + $0x38] sm:$0xf] %vm5868_vm2, %v6439_v1  ;;  %v6440_v25 = vpack.c.bf16 %v5803_v28, %v5803_v28 }
 0xdce   : > { %5884 = vst.msk [vmem:[%s10695_s19 + $0x3c] sm:$0xf] %vm5868_vm2, %v6440_v25 }
 0xdcf PF: > { %s10906_s14 = sld [smem:[#allocation10_spill]]  ;;  %p7548_p11 = scmp.ge.s32.totalorder %s8129_s0, 2 }
 0xdd0   : > { %p10907_p9 = scmp.ne.s32.totalorder %s10835_s25, 0 }
 0xdd2   : > { %p7544_p13 = pnand %p7548_p11, %p10907_p9 }
 0xdd5   : > { %s5931_s27 = sand.u32 1, %s10906_s14  }
 0xdd6   : > { %s5932_s20 = scalar_lea.sflag [#allocation6], %s5931_s27 }
 0xdd7   : > { %8112 = dma.done.wait (!%p7544_p13), %s5932_s20, 4096  }
 0xdd8   : > { %8114 = vsyncadd (!%p7544_p13), %s5932_s20, 4294963200  ;;  %s10908_s0 = sld [smem:[#allocation12_spill]]  ;;  %s10909_s2 = sld [smem:[#allocation11_spill]] }
 0xdd9   : > { %s10910_s29 = sld [smem:[#allocation13_spill]]  ;;  %s10911_s27 = smov %s8121_s28 }
 0xdde   : > { %p32_p1 = scmp.ge.s32.totalorder %s10908_s0, 6   ;;  %s10912_s28 = smov %s10909_s2 }
 0xde0   :  { %34 = sbr.rel (!%p32_p1) target bundleno = 14 (0xe), region = 153 }
 0xde7   :  { %5937 = vsyncpa [#allocation5], 1 }
 0xde8   :  { %5939 = vsyncpa [#allocation5 + $0x1], 1 }
 0xde9   :  { %5940 = vsyncpa [#allocation6], 1 }
 0xdea   :  { %5942 = vsyncpa [#allocation6 + $0x1], 1 }

</bundles_post_ra>
